<compile_context>
chip_gen: v7x
topology: tpu7x:2x2x1
jax: 0.10.0
libtpu: 0.0.40
codegen_flags: <defaults>
</compile_context>

<pallas_src>
import functools
import math

import numpy as np
import jax
import jax.numpy as jnp
from jax.experimental import pallas as pl
from jax.experimental.pallas import tpu as pltpu


# ----------------------------------------------------------------------------
# Small helpers
# ----------------------------------------------------------------------------
def _round_up(n, m=128):
    return ((n + m - 1) // m) * m


def _pad_last(x, target):
    pad = target - x.shape[-1]
    if pad == 0:
        return x
    return jnp.pad(x, [(0, 0)] * (x.ndim - 1) + [(0, pad)])


# ----------------------------------------------------------------------------
# In-kernel building blocks
# ----------------------------------------------------------------------------
def _layer_norm(z, gamma, beta, n_real, mask):
    """LayerNorm over the n_real real lanes of z (eps=1e-5).

    mask is a (1, W) 0/1 f32 row selecting the real lanes (hoisted, built once
    per kernel body), or None when the block is fully lane-dense.  gamma/beta
    are zero in padded lanes so padded output lanes stay exactly zero.
    """
    if mask is not None:
        z = z * mask
    inv_n = 1.0 / n_real
    mu = jnp.sum(z, axis=-1, keepdims=True) * inv_n
    zc = z - mu
    if mask is not None:
        zc = zc * mask
    var = jnp.sum(zc * zc, axis=-1, keepdims=True) * inv_n
    return zc * jax.lax.rsqrt(var + 1e-5) * gamma + beta


def _mha(Q, K, V, *, nhead, hp, n_batch, L):
    """Multi-head attention on head-packed activations.

    Q/K/V: (n_batch*L, nhead*hp) f32, head h living in lanes [h*hp, (h+1)*hp)
    with hp a multiple of 128 and padded head lanes exactly zero.  The softmax
    scale is already folded into Wq/bq at pack time.  Returns the head-packed
    (n_batch*L, nhead*hp) attention output (f32).
    """
    # TODO(synk): for large L / nhead, switch to a lax.fori_loop over heads (or
    # a head grid axis) + KV-blocked online softmax to bound vreg/VMEM live
    # ranges; at these block sizes the unrolled static loop is cheapest.
    outs = []
    for b in range(n_batch):                       # static, small
        r0 = b * L
        Qb = Q[r0:r0 + L]
        Vb = V[r0:r0 + L].astype(jnp.bfloat16)
        # K relayout hoisted out of the head loop: one transpose per element.
        Ktb = K[r0:r0 + L].T.astype(jnp.bfloat16)  # (nhead*hp, L)
        heads = []
        for h in range(nhead):                     # static, small (unrolled)
            c0 = h * hp
            qh = Qb[:, c0:c0 + hp].astype(jnp.bfloat16)              # (L, hp)
            s = jnp.dot(qh, Ktb[c0:c0 + hp, :],
                        preferred_element_type=jnp.float32)          # (L, L)
            s = s - jnp.max(s, axis=-1, keepdims=True)
            e = jnp.exp(s)
            p = e * pl.reciprocal(jnp.sum(e, axis=-1, keepdims=True), approx=True)
            heads.append(jnp.dot(p.astype(jnp.bfloat16), Vb[:, c0:c0 + hp],
                                 preferred_element_type=jnp.float32))
        outs.append(jnp.concatenate(heads, axis=-1))                 # (L, nhead*hp)
    return jnp.concatenate(outs, axis=0) if n_batch > 1 else outs[0]


# ----------------------------------------------------------------------------
# Fused kernels (block_b batch elements per grid step)
# ----------------------------------------------------------------------------
def _joint_kernel(sv_ref, st_ref, pos_ref,
                  wqk_ref, bqk_ref, wv_ref, bv_ref, wo_ref, bo_ref,
                  g1_ref, be1_ref, w1_ref, b1_ref, w2_ref, b2_ref,
                  g2_ref, be2_ref, o_ref, *, nhead, d_real):
    """self_attn(q=k=src+pos, v=src) -> norm1 -> lin1/relu/lin2 -> norm2.

    The 2*d feature axis uses a split-lane layout [src_v | src_t], each half
    padded to dp lanes; all joint weights were packed to this layout.
    """
    Bb, L, dp = sv_ref.shape
    R = Bb * L
    HP = wqk_ref.shape[1] // 2          # head-packed width (nhead * hp)
    hp = HP // nhead

    sv = sv_ref[...].reshape(R, dp)     # f32, padded lanes exactly zero
    st = st_ref[...].reshape(R, dp)
    p = pos_ref[...].reshape(R, dp)

    # LayerNorm lane masks: built once per kernel body, skipped when dense.
    if d_real != dp:
        col = jax.lax.broadcasted_iota(jnp.int32, (1, dp), 1)
        mask_d = (col < d_real).astype(jnp.float32)
        mask_e = jnp.concatenate([mask_d, mask_d], axis=-1)
    else:
        mask_d = None
        mask_e = None

    src = jnp.concatenate([sv, st], axis=-1)            # (R, 2*dp) split layout
    qk = jnp.concatenate([sv + p, st + p], axis=-1)     # fused pos add, q == k

    # q == k: Wq|Wk packed into one matmul; softmax scale folded into Wq/bq.
    qkp = jnp.dot(qk.astype(jnp.bfloat16), wqk_ref[...],
                  preferred_element_type=jnp.float32) + bqk_ref[...]
    Q = qkp[:, :HP]
    K = qkp[:, HP:]
    V = jnp.dot(src.astype(jnp.bfloat16), wv_ref[...],
                preferred_element_type=jnp.float32) + bv_ref[...]

    attn = _mha(Q, K, V, nhead=nhead, hp=hp, n_batch=Bb, L=L)
    out = jnp.dot(attn.astype(jnp.bfloat16), wo_ref[...],
                  preferred_element_type=jnp.float32) + bo_ref[...]

    # norm1(src + attn_out)   (2*d real features in split layout)
    x = _layer_norm(src + out, g1_ref[...], be1_ref[...], 2 * d_real, mask_e)

    # FFN: 2d -> dff -> d
    h = jnp.dot(x.astype(jnp.bfloat16), w1_ref[...],
                preferred_element_type=jnp.float32) + b1_ref[...]
    h = jnp.maximum(h, 0.0)
    y = jnp.dot(h.astype(jnp.bfloat16), w2_ref[...],
                preferred_element_type=jnp.float32) + b2_ref[...]

    # norm2(ffn_out + src_v + src_t)  (res2 computed in-kernel; no HBM array)
    o = _layer_norm(y + sv + st, g2_ref[...], be2_ref[...], d_real, mask_d)
    o_ref[...] = o.reshape(Bb, L, dp).astype(o_ref.dtype)     # bf16 out


def _branch_kernel(x_ref, src_ref, pos_ref,
                   wq_ref, bq_ref, wk_ref, bk_ref, wv_ref, bv_ref,
                   wo_ref, bo_ref,
                   ga_ref, ba_ref, w3_ref, b3_ref, w4_ref, b4_ref,
                   gb_ref, bb_ref, o_ref, *, nhead, d_real):
    """cross_attn(q=x+pos, k=src+pos, v=src) -> norm -> FFN -> norm."""
    Bb, L, dp = x_ref.shape
    R = Bb * L
    HP = wq_ref.shape[1]
    hp = HP // nhead

    x = x_ref[...].reshape(R, dp)
    # src arrives in bf16 (kernel-1 output); upcast before the reshape so the
    # leading-dim merge stays a clean sublane-aligned f32 relayout.
    src = src_ref[...].astype(jnp.float32).reshape(R, dp)
    p = pos_ref[...].reshape(R, dp)

    if d_real != dp:
        col = jax.lax.broadcasted_iota(jnp.int32, (1, dp), 1)
        mask_d = (col < d_real).astype(jnp.float32)
    else:
        mask_d = None

    q_in = (x + p).astype(jnp.bfloat16)              # fused pos adds
    k_in = (src + p).astype(jnp.bfloat16)
    Q = jnp.dot(q_in, wq_ref[...], preferred_element_type=jnp.float32) + bq_ref[...]
    K = jnp.dot(k_in, wk_ref[...], preferred_element_type=jnp.float32) + bk_ref[...]
    V = jnp.dot(src.astype(jnp.bfloat16), wv_ref[...],
                preferred_element_type=jnp.float32) + bv_ref[...]

    attn = _mha(Q, K, V, nhead=nhead, hp=hp, n_batch=Bb, L=L)
    out = jnp.dot(attn.astype(jnp.bfloat16), wo_ref[...],
                  preferred_element_type=jnp.float32) + bo_ref[...]

    z = _layer_norm(x + out, ga_ref[...], ba_ref[...], d_real, mask_d)

    h = jnp.dot(z.astype(jnp.bfloat16), w3_ref[...],
                preferred_element_type=jnp.float32) + b3_ref[...]
    h = jnp.maximum(h, 0.0)
    y = jnp.dot(h.astype(jnp.bfloat16), w4_ref[...],
                preferred_element_type=jnp.float32) + b4_ref[...]

    o = _layer_norm(z + y, gb_ref[...], bb_ref[...], d_real, mask_d)
    o_ref[...] = o.reshape(Bb, L, dp).astype(o_ref.dtype)


# ----------------------------------------------------------------------------
# pallas_call plumbing
# ----------------------------------------------------------------------------
def _act_spec(block_b, L, C):
    return pl.BlockSpec((block_b, L, C), lambda b: (b, 0, 0))


def _const_spec(arr):
    n = arr.ndim
    return pl.BlockSpec(arr.shape, lambda b, _n=n: (0,) * _n)


def _vmem_limit_bytes(act_block_bytes, weights):
    w_bytes = sum(int(w.size) * w.dtype.itemsize for w in weights)
    # activations + weights double-buffered by the pipeline, plus headroom for
    # in-kernel intermediates; clamp to v7x's 64 MiB physical VMEM.
    need = 2 * act_block_bytes + 2 * w_bytes + (8 << 20)
    return int(min(max(need, 32 << 20), 64 << 20))


def _joint_call(svp, stp, pp, weights, nhead, d_real, block_b):
    B, L, dp = svp.shape
    act = _act_spec(block_b, L, dp)
    act_bytes = block_b * L * dp * (3 * 4 + 2)      # 3 f32 inputs + bf16 output
    return pl.pallas_call(
        functools.partial(_joint_kernel, nhead=nhead, d_real=d_real),
        grid=(B // block_b,),
        in_specs=[act, act, act] + [_const_spec(w) for w in weights],
        out_specs=act,
        out_shape=jax.ShapeDtypeStruct((B, L, dp), jnp.bfloat16),
        compiler_params=pltpu.CompilerParams(
            dimension_semantics=("parallel",),
            vmem_limit_bytes=_vmem_limit_bytes(act_bytes, weights)),
    )(svp, stp, pp, *weights)


def _branch_call(xp, src_fused, pp, weights, nhead, d_real, block_b):
    B, L, dp = xp.shape
    act = _act_spec(block_b, L, dp)
    act_bytes = block_b * L * dp * (4 + 2 + 4 + 4)  # x f32, src bf16, pos f32, out f32
    return pl.pallas_call(
        functools.partial(_branch_kernel, nhead=nhead, d_real=d_real),
        grid=(B // block_b,),
        in_specs=[act, act, act] + [_const_spec(w) for w in weights],
        out_specs=act,
        out_shape=jax.ShapeDtypeStruct((B, L, dp), jnp.float32),
        compiler_params=pltpu.CompilerParams(
            dimension_semantics=("parallel",),
            vmem_limit_bytes=_vmem_limit_bytes(act_bytes, weights)),
    )(xp, src_fused, pp, *weights)


# ----------------------------------------------------------------------------
# One-time weight packing: transpose, scatter into padded lane layouts,
# head-pack Q/K/V columns (scale folded into Wq), pack Wq|Wk, cast to bf16.
# ----------------------------------------------------------------------------
def pack_params(params, d_model, dff, nhead):
    d = d_model
    dp = _round_up(d)
    fp = _round_up(dff)
    ep2 = 2 * dp

    pos_d = np.arange(d)                                     # dense d   -> dp lanes
    pos_f = np.arange(dff)                                   # dense dff -> fp lanes
    pos_e = np.concatenate([pos_d, dp + pos_d])              # split 2d  -> 2*dp lanes

    def head_positions(e):
        hd = e // nhead
        hp = _round_up(hd)
        idx = np.arange(e)
        return (idx // hd) * hp + (idx % hd), nhead * hp

    def mat(w_io, rpos, rpad, cpos, cpad):                   # (in, out) -> bf16
        out = jnp.zeros((rpad, cpad), jnp.float32)
        out = out.at[np.asarray(rpos)[:, None], np.asarray(cpos)[None, :]].set(w_io)
        return out.astype(jnp.bfloat16)

    def vec(b, cpos, cpad):                                  # biases / LN stay f32
        return jnp.zeros((1, cpad), jnp.float32).at[0, np.asarray(cpos)].set(b)

    def attn_pack(ap, e, in_pos, in_pad, out_pos, out_pad):
        """Pack nn.MultiheadAttention: head-pack Q/K/V columns (hp=128 lanes per
        head) and fold the 1/sqrt(head_dim) softmax scale into Wq / bq."""
        hpos, hpad = head_positions(e)
        scale = 1.0 / math.sqrt(e // nhead)
        w_in, b_in = ap["w_in"], ap["b_in"]
        wq = mat(w_in[0:e].T * scale, in_pos, in_pad, hpos, hpad)
        bq = vec(b_in[0:e] * scale, hpos, hpad)
        wk = mat(w_in[e:2 * e].T, in_pos, in_pad, hpos, hpad)
        bk = vec(b_in[e:2 * e], hpos, hpad)
        wv = mat(w_in[2 * e:3 * e].T, in_pos, in_pad, hpos, hpad)
        bv = vec(b_in[2 * e:3 * e], hpos, hpad)
        wo = mat(ap["w_out"].T, hpos, hpad, out_pos, out_pad)
        bo = vec(ap["b_out"], out_pos, out_pad)
        return wq, bq, wk, bk, wv, bv, wo, bo

    def ln(ln_p, cpos, cpad):
        return vec(ln_p["g"], cpos, cpad), vec(ln_p["b"], cpos, cpad)

    # ---- joint block (embed = 2*d, split-lane layout) ----
    wq, bq, wk, bk, wv, bv, wo, bo = attn_pack(
        params["self_attn"], 2 * d, pos_e, ep2, pos_e, ep2)
    wqk = jnp.concatenate([wq, wk], axis=1)       # q == k -> one packed matmul
    bqk = jnp.concatenate([bq, bk], axis=1)
    g1, be1 = ln(params["norm1"], pos_e, ep2)
    w1 = mat(params["lin1"]["w"].T, pos_e, ep2, pos_f, fp)
    b1 = vec(params["lin1"]["b"], pos_f, fp)
    w2 = mat(params["lin2"]["w"].T, pos_f, fp, pos_d, dp)
    b2 = vec(params["lin2"]["b"], pos_d, dp)
    g2, be2 = ln(params["norm2"], pos_d, dp)
    joint = (wqk, bqk, wv, bv, wo, bo, g1, be1, w1, b1, w2, b2, g2, be2)

    # ---- per-branch blocks (embed = d, dense lanes) ----
    def branch(attn_p, lin_a, lin_b, norm_a, norm_b):
        aw = attn_pack(attn_p, d, pos_d, dp, pos_d, dp)
        ga, ba = ln(norm_a, pos_d, dp)
        wa = mat(lin_a["w"].T, pos_d, dp, pos_f, fp)
        bba = vec(lin_a["b"], pos_f, fp)
        wb = mat(lin_b["w"].T, pos_f, fp, pos_d, dp)
        bbb = vec(lin_b["b"], pos_d, dp)
        gb, bb = ln(norm_b, pos_d, dp)
        return aw + (ga, ba, wa, bba, wb, bbb, gb, bb)

    return {
        "joint": joint,
        "vis": branch(params["attn_v"], params["lin3"], params["lin4"],
                      params["norm3"], params["norm4"]),
        "txt": branch(params["attn_t"], params["lin5"], params["lin6"],
                      params["norm5"], params["norm6"]),
    }


# ----------------------------------------------------------------------------
# Full forward (mirrors TransformerEncoderLayer.forward, dropout = identity)
# ----------------------------------------------------------------------------
def transformer_encoder_layer(src_v, src_t, pos, packed, nhead, block_b=1):
    # src_v, src_t, pos: (L, N, d) seq-first, like the PyTorch module.
    L, N, d = src_v.shape
    dp = _round_up(d)
    assert N % block_b == 0
    if block_b > 1:
        assert L % 8 == 0, "batch folding needs sublane-aligned sequence blocks"

    # to batch-first (B, L, d), lane-pad once (padded lanes are exactly zero)
    svp = _pad_last(jnp.transpose(src_v, (1, 0, 2)), dp)
    stp = _pad_last(jnp.transpose(src_t, (1, 0, 2)), dp)
    pp = _pad_last(jnp.transpose(pos, (1, 0, 2)), dp)

    # kernel 1: joint self-attn + norm1 + FFN(2d->dff->d) + norm2  (bf16 out)
    src_fused = _joint_call(svp, stp, pp, packed["joint"], nhead, d, block_b)

    # kernels 2/3: per-branch cross-attn + norm + FFN + norm
    out_v = _branch_call(svp, src_fused, pp, packed["vis"], nhead, d, block_b)
    out_t = _branch_call(stp, src_fused, pp, packed["txt"], nhead, d, block_b)

    out_v = jnp.transpose(out_v[:, :, :d], (1, 0, 2))
    out_t = jnp.transpose(out_t[:, :, :d], (1, 0, 2))
    return out_v, out_t


# ----------------------------------------------------------------------------
# Deterministic parameter init (shapes from the module's __init__)
# ----------------------------------------------------------------------------
def init_params(key, d_model, dff):
    def lin(k, out_f, in_f):
        kw, kb = jax.random.split(k)
        return {"w": 0.05 * jax.random.normal(kw, (out_f, in_f), jnp.float32),
                "b": 0.05 * jax.random.normal(kb, (out_f,), jnp.float32)}

    def attn(k, e):
        kw, kb, ko, kob = jax.random.split(k, 4)
        return {"w_in": 0.05 * jax.random.normal(kw, (3 * e, e), jnp.float32),
                "b_in": 0.05 * jax.random.normal(kb, (3 * e,), jnp.float32),
                "w_out": 0.05 * jax.random.normal(ko, (e, e), jnp.float32),
                "b_out": 0.05 * jax.random.normal(kob, (e,), jnp.float32)}

    def ln(d):
        return {"g": jnp.ones((d,), jnp.float32), "b": jnp.zeros((d,), jnp.float32)}

    ks = jax.random.split(key, 9)
    return {
        "self_attn": attn(ks[0], 2 * d_model),
        "attn_v": attn(ks[1], d_model),
        "attn_t": attn(ks[2], d_model),
        "lin1": lin(ks[3], dff, 2 * d_model),
        "lin2": lin(ks[4], d_model, dff),
        "lin3": lin(ks[5], dff, d_model),
        "lin4": lin(ks[6], d_model, dff),
        "lin5": lin(ks[7], dff, d_model),
        "lin6": lin(ks[8], d_model, dff),
        "norm1": ln(2 * d_model),
        "norm2": ln(d_model),
        "norm3": ln(d_model),
        "norm4": ln(d_model),
        "norm5": ln(d_model),
        "norm6": ln(d_model),
    }


# ----------------------------------------------------------------------------
# Pure-JAX f32 reference (PyTorch eval semantics) for a correctness check
# ----------------------------------------------------------------------------
def _ref_mha(q, k, v, ap, nhead):
    E = q.shape[-1]
    hd = E // nhead
    w_in, b_in = ap["w_in"], ap["b_in"]
    Q = q @ w_in[0:E].T + b_in[0:E]
    K = k @ w_in[E:2 * E].T + b_in[E:2 * E]
    V = v @ w_in[2 * E:3 * E].T + b_in[2 * E:3 * E]
    B, L, _ = Q.shape

    def split(x):
        return x.reshape(B, L, nhead, hd).transpose(0, 2, 1, 3)

    Qh, Kh, Vh = split(Q), split(K), split(V)
    s = jnp.einsum("bhqd,bhkd->bhqk", Qh, Kh) / math.sqrt(hd)
    p = jax.nn.softmax(s, axis=-1)
    o = jnp.einsum("bhqk,bhkd->bhqd", p, Vh).transpose(0, 2, 1, 3).reshape(B, L, E)
    return o @ ap["w_out"].T + ap["b_out"]


def _ref_ln(x, ln):
    mu = x.mean(-1, keepdims=True)
    var = ((x - mu) ** 2).mean(-1, keepdims=True)
    return (x - mu) / jnp.sqrt(var + 1e-5) * ln["g"] + ln["b"]


def _ref_ffn(x, l1, l2):
    h = jnp.maximum(x @ l1["w"].T + l1["b"], 0.0)
    return h @ l2["w"].T + l2["b"]


def reference_forward(src_v, src_t, pos, params, nhead):
    sv = src_v.transpose(1, 0, 2)
    st = src_t.transpose(1, 0, 2)
    p = pos.transpose(1, 0, 2)
    src = jnp.concatenate([sv, st], -1)
    pos_all = jnp.concatenate([p, p], -1)
    qk = src + pos_all
    src1 = _ref_mha(qk, qk, src, params["self_attn"], nhead)
    src = _ref_ln(src + src1, params["norm1"])
    src2 = _ref_ffn(src, params["lin1"], params["lin2"])
    src = _ref_ln(src2 + sv + st, params["norm2"])
    qv = sv + p
    kf = src + p
    sv1 = _ref_mha(qv, kf, src, params["attn_v"], nhead)
    svn = _ref_ln(sv + sv1, params["norm3"])
    sv2 = _ref_ffn(svn, params["lin3"], params["lin4"])
    svn = _ref_ln(svn + sv2, params["norm4"])
    qt = st + p
    st1 = _ref_mha(qt, kf, src, params["attn_t"], nhead)
    stn = _ref_ln(st + st1, params["norm5"])
    st2 = _ref_ffn(stn, params["lin5"], params["lin6"])
    stn = _ref_ln(stn + st2, params["norm6"])
    return svn.transpose(1, 0, 2), stn.transpose(1, 0, 2)


if __name__ == "__main__":
    d_model, nhead, dff = 32, 4, 64
    L = 8

    key = jax.random.PRNGKey(0)
    kp, kd = jax.random.split(key)
    params = init_params(kp, d_model, dff)
    packed = pack_params(params, d_model, dff, nhead)    # one-time weight packing

    def make_inputs(k, n):
        k1, k2, k3 = jax.random.split(k, 3)
        return (jax.random.normal(k1, (L, n, d_model), jnp.float32),
                jax.random.normal(k2, (L, n, d_model), jnp.float32),
                jax.random.normal(k3, (L, n, d_model), jnp.float32))

    def check(n, block_b):
        src_v, src_t, pos = make_inputs(jax.random.fold_in(kd, n), n)
        fwd = jax.jit(functools.partial(transformer_encoder_layer,
                                        nhead=nhead, block_b=block_b))
        out_v, out_t = fwd(src_v, src_t, pos, packed)
        jax.block_until_ready((out_v, out_t))
        assert out_v.shape == (L, n, d_model) and out_t.shape == (L, n, d_model)
        assert bool(jnp.all(jnp.isfinite(out_v))) and bool(jnp.all(jnp.isfinite(out_t)))
        # Parity with a pure-JAX f32 reference (bf16 MXU operands + approx
        # softmax reciprocal => loose tolerance).
        ref_v, ref_t = reference_forward(src_v, src_t, pos, params, nhead)
        err = max(float(jnp.max(jnp.abs(out_v - ref_v))),
                  float(jnp.max(jnp.abs(out_t - ref_t))))
        assert err < 1e-1, f"max abs error vs reference (N={n}): {err}"

    check(2, block_b=1)   # primary config: grid=(2,), one batch element / step
    check(4, block_b=2)   # batch-folding path: 2*L rows per step, grid=(2,)

    print("KERNEL_OK")
</pallas_src>

<mosaic_0001>
module attributes {stable_mosaic.version = 11 : i64} {
  func.func @_joint_kernel(%arg0: i32, %arg1: memref<1x8x128xf32, #tpu.memory_space<vmem>>, %arg2: memref<1x8x128xf32, #tpu.memory_space<vmem>>, %arg3: memref<1x8x128xf32, #tpu.memory_space<vmem>>, %arg4: memref<256x1024xbf16, #tpu.memory_space<vmem>>, %arg5: memref<1x1024xf32, #tpu.memory_space<vmem>>, %arg6: memref<256x512xbf16, #tpu.memory_space<vmem>>, %arg7: memref<1x512xf32, #tpu.memory_space<vmem>>, %arg8: memref<512x256xbf16, #tpu.memory_space<vmem>>, %arg9: memref<1x256xf32, #tpu.memory_space<vmem>>, %arg10: memref<1x256xf32, #tpu.memory_space<vmem>>, %arg11: memref<1x256xf32, #tpu.memory_space<vmem>>, %arg12: memref<256x128xbf16, #tpu.memory_space<vmem>>, %arg13: memref<1x128xf32, #tpu.memory_space<vmem>>, %arg14: memref<128x128xbf16, #tpu.memory_space<vmem>>, %arg15: memref<1x128xf32, #tpu.memory_space<vmem>>, %arg16: memref<1x128xf32, #tpu.memory_space<vmem>>, %arg17: memref<1x128xf32, #tpu.memory_space<vmem>>, %arg18: memref<1x8x128xbf16, #tpu.memory_space<vmem>>) attributes {dimension_semantics = [#tpu.dimension_semantics<parallel>], iteration_bounds = array<i64: 2>, scalar_prefetch = 0 : i64, scratch_operands = 0 : i64, tpu.core_type = #tpu.core_type<tc>, window_params = [{transform_indices = @transform_0, window_bounds = array<i64: 1, 8, 128>}, {transform_indices = @transform_1, window_bounds = array<i64: 1, 8, 128>}, {transform_indices = @transform_2, window_bounds = array<i64: 1, 8, 128>}, {pipeline_mode = #tpu.pipeline_mode<synchronous>, transform_indices = @transform_3, window_bounds = array<i64: 256, 1024>}, {pipeline_mode = #tpu.pipeline_mode<synchronous>, transform_indices = @transform_4, window_bounds = array<i64: 1, 1024>}, {pipeline_mode = #tpu.pipeline_mode<synchronous>, transform_indices = @transform_5, window_bounds = array<i64: 256, 512>}, {pipeline_mode = #tpu.pipeline_mode<synchronous>, transform_indices = @transform_6, window_bounds = array<i64: 1, 512>}, {pipeline_mode = #tpu.pipeline_mode<synchronous>, transform_indices = @transform_7, window_bounds = array<i64: 512, 256>}, {pipeline_mode = #tpu.pipeline_mode<synchronous>, transform_indices = @transform_8, window_bounds = array<i64: 1, 256>}, {pipeline_mode = #tpu.pipeline_mode<synchronous>, transform_indices = @transform_9, window_bounds = array<i64: 1, 256>}, {pipeline_mode = #tpu.pipeline_mode<synchronous>, transform_indices = @transform_10, window_bounds = array<i64: 1, 256>}, {pipeline_mode = #tpu.pipeline_mode<synchronous>, transform_indices = @transform_11, window_bounds = array<i64: 256, 128>}, {pipeline_mode = #tpu.pipeline_mode<synchronous>, transform_indices = @transform_12, window_bounds = array<i64: 1, 128>}, {pipeline_mode = #tpu.pipeline_mode<synchronous>, transform_indices = @transform_13, window_bounds = array<i64: 128, 128>}, {pipeline_mode = #tpu.pipeline_mode<synchronous>, transform_indices = @transform_14, window_bounds = array<i64: 1, 128>}, {pipeline_mode = #tpu.pipeline_mode<synchronous>, transform_indices = @transform_15, window_bounds = array<i64: 1, 128>}, {pipeline_mode = #tpu.pipeline_mode<synchronous>, transform_indices = @transform_16, window_bounds = array<i64: 1, 128>}, {transform_indices = @transform_17, window_bounds = array<i64: 1, 8, 128>}]} {
    %c0 = arith.constant 0 : index
    %c0_0 = arith.constant 0 : index
    %c0_1 = arith.constant 0 : index
    %0 = vector.load %arg1[%c0, %c0_0, %c0_1] : memref<1x8x128xf32, #tpu.memory_space<vmem>>, vector<1x8x128xf32>
    %1 = vector.shape_cast %0 : vector<1x8x128xf32> to vector<8x128xf32>
    %c0_2 = arith.constant 0 : index
    %c0_3 = arith.constant 0 : index
    %c0_4 = arith.constant 0 : index
    %2 = vector.load %arg2[%c0_2, %c0_3, %c0_4] : memref<1x8x128xf32, #tpu.memory_space<vmem>>, vector<1x8x128xf32>
    %3 = vector.shape_cast %2 : vector<1x8x128xf32> to vector<8x128xf32>
    %c0_5 = arith.constant 0 : index
    %c0_6 = arith.constant 0 : index
    %c0_7 = arith.constant 0 : index
    %4 = vector.load %arg3[%c0_5, %c0_6, %c0_7] : memref<1x8x128xf32, #tpu.memory_space<vmem>>, vector<1x8x128xf32>
    %5 = vector.shape_cast %4 : vector<1x8x128xf32> to vector<8x128xf32>
    %6 = tpu.iota {dimensions = array<i32: 1>} : vector<1x128xi32>
    %c32_i32 = arith.constant 32 : i32
    %7 = vector.broadcast %c32_i32 : i32 to vector<1x128xi32>
    %8 = arith.cmpi slt, %6, %7 : vector<1x128xi32>
    %9 = arith.extui %8 : vector<1x128xi1> to vector<1x128xi32>
    %10 = arith.sitofp %9 : vector<1x128xi32> to vector<1x128xf32>
    %11 = tpu.concatenate %10, %10 in 1 : vector<1x128xf32>, vector<1x128xf32> -> vector<1x256xf32>
    %12 = tpu.concatenate %1, %3 in 1 : vector<8x128xf32>, vector<8x128xf32> -> vector<8x256xf32>
    %13 = arith.addf %1, %5 : vector<8x128xf32>
    %14 = arith.addf %3, %5 : vector<8x128xf32>
    %15 = tpu.concatenate %13, %14 in 1 : vector<8x128xf32>, vector<8x128xf32> -> vector<8x256xf32>
    %16 = arith.truncf %15 : vector<8x256xf32> to vector<8x256xbf16>
    %c0_8 = arith.constant 0 : index
    %c0_9 = arith.constant 0 : index
    %17 = vector.load %arg4[%c0_8, %c0_9] : memref<256x1024xbf16, #tpu.memory_space<vmem>>, vector<256x1024xbf16>
    %cst = arith.constant dense<0.000000e+00> : vector<8x1024xf32>
    %18 = tpu.matmul %16, %17, %cst {dimension_numbers = #tpu.dot_dimension_numbers<[1], [0], [0], [1], [0, 0, 1, 1], [], []>} : vector<8x256xbf16>, vector<256x1024xbf16>, vector<8x1024xf32> -> vector<8x1024xf32>
    %c0_10 = arith.constant 0 : index
    %c0_11 = arith.constant 0 : index
    %19 = vector.load %arg5[%c0_10, %c0_11] : memref<1x1024xf32, #tpu.memory_space<vmem>>, vector<1x1024xf32>
    %20 = vector.broadcast %19 : vector<1x1024xf32> to vector<8x1024xf32>
    %21 = arith.addf %18, %20 : vector<8x1024xf32>
    %22 = vector.extract_strided_slice %21 {offsets = [0, 0], sizes = [8, 512], strides = [1, 1]} : vector<8x1024xf32> to vector<8x512xf32>
    %23 = vector.extract_strided_slice %21 {offsets = [0, 512], sizes = [8, 512], strides = [1, 1]} : vector<8x1024xf32> to vector<8x512xf32>
    %24 = arith.truncf %12 : vector<8x256xf32> to vector<8x256xbf16>
    %c0_12 = arith.constant 0 : index
    %c0_13 = arith.constant 0 : index
    %25 = vector.load %arg6[%c0_12, %c0_13] : memref<256x512xbf16, #tpu.memory_space<vmem>>, vector<256x512xbf16>
    %cst_14 = arith.constant dense<0.000000e+00> : vector<8x512xf32>
    %26 = tpu.matmul %24, %25, %cst_14 {dimension_numbers = #tpu.dot_dimension_numbers<[1], [0], [0], [1], [0, 0, 1, 1], [], []>} : vector<8x256xbf16>, vector<256x512xbf16>, vector<8x512xf32> -> vector<8x512xf32>
    %c0_15 = arith.constant 0 : index
    %c0_16 = arith.constant 0 : index
    %27 = vector.load %arg7[%c0_15, %c0_16] : memref<1x512xf32, #tpu.memory_space<vmem>>, vector<1x512xf32>
    %28 = vector.broadcast %27 : vector<1x512xf32> to vector<8x512xf32>
    %29 = arith.addf %26, %28 : vector<8x512xf32>
    %30 = arith.truncf %29 : vector<8x512xf32> to vector<8x512xbf16>
    %31 = tpu.transpose %23, [1, 0] : vector<8x512xf32> -> vector<512x8xf32>
    %32 = arith.truncf %31 : vector<512x8xf32> to vector<512x8xbf16>
    %33 = vector.extract_strided_slice %22 {offsets = [0, 0], sizes = [8, 128], strides = [1, 1]} : vector<8x512xf32> to vector<8x128xf32>
    %34 = arith.truncf %33 : vector<8x128xf32> to vector<8x128xbf16>
    %35 = vector.extract_strided_slice %32 {offsets = [0, 0], sizes = [128, 8], strides = [1, 1]} : vector<512x8xbf16> to vector<128x8xbf16>
    %cst_17 = arith.constant dense<0.000000e+00> : vector<8x8xf32>
    %36 = tpu.matmul %34, %35, %cst_17 {dimension_numbers = #tpu.dot_dimension_numbers<[1], [0], [0], [1], [0, 0, 1, 1], [], []>} : vector<8x128xbf16>, vector<128x8xbf16>, vector<8x8xf32> -> vector<8x8xf32>
    %cst_18 = arith.constant dense<0xFF800000> : vector<8xf32>
    %37 = vector.multi_reduction <maximumf>, %36, %cst_18 [1] : vector<8x8xf32> to vector<8xf32>
    %38 = vector.shape_cast %37 : vector<8xf32> to vector<8x1xf32>
    %39 = vector.broadcast %38 : vector<8x1xf32> to vector<8x8xf32>
    %40 = arith.subf %36, %39 : vector<8x8xf32>
    %41 = math.exp %40 : vector<8x8xf32>
    %cst_19 = arith.constant dense<0.000000e+00> : vector<8xf32>
    %42 = vector.multi_reduction <add>, %41, %cst_19 [1] : vector<8x8xf32> to vector<8xf32>
    %43 = vector.shape_cast %42 : vector<8xf32> to vector<8x1xf32>
    %44 = tpu.reciprocal %43 {approx = true} : vector<8x1xf32> -> vector<8x1xf32>
    %45 = vector.broadcast %44 : vector<8x1xf32> to vector<8x8xf32>
    %46 = arith.mulf %41, %45 : vector<8x8xf32>
    %47 = arith.truncf %46 : vector<8x8xf32> to vector<8x8xbf16>
    %48 = vector.extract_strided_slice %30 {offsets = [0, 0], sizes = [8, 128], strides = [1, 1]} : vector<8x512xbf16> to vector<8x128xbf16>
    %cst_20 = arith.constant dense<0.000000e+00> : vector<8x128xf32>
    %49 = tpu.matmul %47, %48, %cst_20 {dimension_numbers = #tpu.dot_dimension_numbers<[1], [0], [0], [1], [0, 0, 1, 1], [], []>} : vector<8x8xbf16>, vector<8x128xbf16>, vector<8x128xf32> -> vector<8x128xf32>
    %50 = vector.extract_strided_slice %22 {offsets = [0, 128], sizes = [8, 128], strides = [1, 1]} : vector<8x512xf32> to vector<8x128xf32>
    %51 = arith.truncf %50 : vector<8x128xf32> to vector<8x128xbf16>
    %52 = vector.extract_strided_slice %32 {offsets = [128, 0], sizes = [128, 8], strides = [1, 1]} : vector<512x8xbf16> to vector<128x8xbf16>
    %cst_21 = arith.constant dense<0.000000e+00> : vector<8x8xf32>
    %53 = tpu.matmul %51, %52, %cst_21 {dimension_numbers = #tpu.dot_dimension_numbers<[1], [0], [0], [1], [0, 0, 1, 1], [], []>} : vector<8x128xbf16>, vector<128x8xbf16>, vector<8x8xf32> -> vector<8x8xf32>
    %cst_22 = arith.constant dense<0xFF800000> : vector<8xf32>
    %54 = vector.multi_reduction <maximumf>, %53, %cst_22 [1] : vector<8x8xf32> to vector<8xf32>
    %55 = vector.shape_cast %54 : vector<8xf32> to vector<8x1xf32>
    %56 = vector.broadcast %55 : vector<8x1xf32> to vector<8x8xf32>
    %57 = arith.subf %53, %56 : vector<8x8xf32>
    %58 = math.exp %57 : vector<8x8xf32>
    %cst_23 = arith.constant dense<0.000000e+00> : vector<8xf32>
    %59 = vector.multi_reduction <add>, %58, %cst_23 [1] : vector<8x8xf32> to vector<8xf32>
    %60 = vector.shape_cast %59 : vector<8xf32> to vector<8x1xf32>
    %61 = tpu.reciprocal %60 {approx = true} : vector<8x1xf32> -> vector<8x1xf32>
    %62 = vector.broadcast %61 : vector<8x1xf32> to vector<8x8xf32>
    %63 = arith.mulf %58, %62 : vector<8x8xf32>
    %64 = arith.truncf %63 : vector<8x8xf32> to vector<8x8xbf16>
    %65 = vector.extract_strided_slice %30 {offsets = [0, 128], sizes = [8, 128], strides = [1, 1]} : vector<8x512xbf16> to vector<8x128xbf16>
    %cst_24 = arith.constant dense<0.000000e+00> : vector<8x128xf32>
    %66 = tpu.matmul %64, %65, %cst_24 {dimension_numbers = #tpu.dot_dimension_numbers<[1], [0], [0], [1], [0, 0, 1, 1], [], []>} : vector<8x8xbf16>, vector<8x128xbf16>, vector<8x128xf32> -> vector<8x128xf32>
    %67 = vector.extract_strided_slice %22 {offsets = [0, 256], sizes = [8, 128], strides = [1, 1]} : vector<8x512xf32> to vector<8x128xf32>
    %68 = arith.truncf %67 : vector<8x128xf32> to vector<8x128xbf16>
    %69 = vector.extract_strided_slice %32 {offsets = [256, 0], sizes = [128, 8], strides = [1, 1]} : vector<512x8xbf16> to vector<128x8xbf16>
    %cst_25 = arith.constant dense<0.000000e+00> : vector<8x8xf32>
    %70 = tpu.matmul %68, %69, %cst_25 {dimension_numbers = #tpu.dot_dimension_numbers<[1], [0], [0], [1], [0, 0, 1, 1], [], []>} : vector<8x128xbf16>, vector<128x8xbf16>, vector<8x8xf32> -> vector<8x8xf32>
    %cst_26 = arith.constant dense<0xFF800000> : vector<8xf32>
    %71 = vector.multi_reduction <maximumf>, %70, %cst_26 [1] : vector<8x8xf32> to vector<8xf32>
    %72 = vector.shape_cast %71 : vector<8xf32> to vector<8x1xf32>
    %73 = vector.broadcast %72 : vector<8x1xf32> to vector<8x8xf32>
    %74 = arith.subf %70, %73 : vector<8x8xf32>
    %75 = math.exp %74 : vector<8x8xf32>
    %cst_27 = arith.constant dense<0.000000e+00> : vector<8xf32>
    %76 = vector.multi_reduction <add>, %75, %cst_27 [1] : vector<8x8xf32> to vector<8xf32>
    %77 = vector.shape_cast %76 : vector<8xf32> to vector<8x1xf32>
    %78 = tpu.reciprocal %77 {approx = true} : vector<8x1xf32> -> vector<8x1xf32>
    %79 = vector.broadcast %78 : vector<8x1xf32> to vector<8x8xf32>
    %80 = arith.mulf %75, %79 : vector<8x8xf32>
    %81 = arith.truncf %80 : vector<8x8xf32> to vector<8x8xbf16>
    %82 = vector.extract_strided_slice %30 {offsets = [0, 256], sizes = [8, 128], strides = [1, 1]} : vector<8x512xbf16> to vector<8x128xbf16>
    %cst_28 = arith.constant dense<0.000000e+00> : vector<8x128xf32>
    %83 = tpu.matmul %81, %82, %cst_28 {dimension_numbers = #tpu.dot_dimension_numbers<[1], [0], [0], [1], [0, 0, 1, 1], [], []>} : vector<8x8xbf16>, vector<8x128xbf16>, vector<8x128xf32> -> vector<8x128xf32>
    %84 = vector.extract_strided_slice %22 {offsets = [0, 384], sizes = [8, 128], strides = [1, 1]} : vector<8x512xf32> to vector<8x128xf32>
    %85 = arith.truncf %84 : vector<8x128xf32> to vector<8x128xbf16>
    %86 = vector.extract_strided_slice %32 {offsets = [384, 0], sizes = [128, 8], strides = [1, 1]} : vector<512x8xbf16> to vector<128x8xbf16>
    %cst_29 = arith.constant dense<0.000000e+00> : vector<8x8xf32>
    %87 = tpu.matmul %85, %86, %cst_29 {dimension_numbers = #tpu.dot_dimension_numbers<[1], [0], [0], [1], [0, 0, 1, 1], [], []>} : vector<8x128xbf16>, vector<128x8xbf16>, vector<8x8xf32> -> vector<8x8xf32>
    %cst_30 = arith.constant dense<0xFF800000> : vector<8xf32>
    %88 = vector.multi_reduction <maximumf>, %87, %cst_30 [1] : vector<8x8xf32> to vector<8xf32>
    %89 = vector.shape_cast %88 : vector<8xf32> to vector<8x1xf32>
    %90 = vector.broadcast %89 : vector<8x1xf32> to vector<8x8xf32>
    %91 = arith.subf %87, %90 : vector<8x8xf32>
    %92 = math.exp %91 : vector<8x8xf32>
    %cst_31 = arith.constant dense<0.000000e+00> : vector<8xf32>
    %93 = vector.multi_reduction <add>, %92, %cst_31 [1] : vector<8x8xf32> to vector<8xf32>
    %94 = vector.shape_cast %93 : vector<8xf32> to vector<8x1xf32>
    %95 = tpu.reciprocal %94 {approx = true} : vector<8x1xf32> -> vector<8x1xf32>
    %96 = vector.broadcast %95 : vector<8x1xf32> to vector<8x8xf32>
    %97 = arith.mulf %92, %96 : vector<8x8xf32>
    %98 = arith.truncf %97 : vector<8x8xf32> to vector<8x8xbf16>
    %99 = vector.extract_strided_slice %30 {offsets = [0, 384], sizes = [8, 128], strides = [1, 1]} : vector<8x512xbf16> to vector<8x128xbf16>
    %cst_32 = arith.constant dense<0.000000e+00> : vector<8x128xf32>
    %100 = tpu.matmul %98, %99, %cst_32 {dimension_numbers = #tpu.dot_dimension_numbers<[1], [0], [0], [1], [0, 0, 1, 1], [], []>} : vector<8x8xbf16>, vector<8x128xbf16>, vector<8x128xf32> -> vector<8x128xf32>
    %101 = tpu.concatenate %49, %66, %83, %100 in 1 : vector<8x128xf32>, vector<8x128xf32>, vector<8x128xf32>, vector<8x128xf32> -> vector<8x512xf32>
    %102 = arith.truncf %101 : vector<8x512xf32> to vector<8x512xbf16>
    %c0_33 = arith.constant 0 : index
    %c0_34 = arith.constant 0 : index
    %103 = vector.load %arg8[%c0_33, %c0_34] : memref<512x256xbf16, #tpu.memory_space<vmem>>, vector<512x256xbf16>
    %cst_35 = arith.constant dense<0.000000e+00> : vector<8x256xf32>
    %104 = tpu.matmul %102, %103, %cst_35 {dimension_numbers = #tpu.dot_dimension_numbers<[1], [0], [0], [1], [0, 0, 1, 1], [], []>} : vector<8x512xbf16>, vector<512x256xbf16>, vector<8x256xf32> -> vector<8x256xf32>
    %c0_36 = arith.constant 0 : index
    %c0_37 = arith.constant 0 : index
    %105 = vector.load %arg9[%c0_36, %c0_37] : memref<1x256xf32, #tpu.memory_space<vmem>>, vector<1x256xf32>
    %106 = vector.broadcast %105 : vector<1x256xf32> to vector<8x256xf32>
    %107 = arith.addf %104, %106 : vector<8x256xf32>
    %108 = arith.addf %12, %107 : vector<8x256xf32>
    %c0_38 = arith.constant 0 : index
    %c0_39 = arith.constant 0 : index
    %109 = vector.load %arg10[%c0_38, %c0_39] : memref<1x256xf32, #tpu.memory_space<vmem>>, vector<1x256xf32>
    %c0_40 = arith.constant 0 : index
    %c0_41 = arith.constant 0 : index
    %110 = vector.load %arg11[%c0_40, %c0_41] : memref<1x256xf32, #tpu.memory_space<vmem>>, vector<1x256xf32>
    %111 = vector.broadcast %11 : vector<1x256xf32> to vector<8x256xf32>
    %112 = arith.mulf %108, %111 : vector<8x256xf32>
    %cst_42 = arith.constant dense<0.000000e+00> : vector<8xf32>
    %113 = vector.multi_reduction <add>, %112, %cst_42 [1] : vector<8x256xf32> to vector<8xf32>
    %114 = vector.shape_cast %113 : vector<8xf32> to vector<8x1xf32>
    %cst_43 = arith.constant 1.562500e-02 : f32
    %115 = vector.broadcast %cst_43 : f32 to vector<8x1xf32>
    %116 = arith.mulf %114, %115 : vector<8x1xf32>
    %117 = vector.broadcast %116 : vector<8x1xf32> to vector<8x256xf32>
    %118 = arith.subf %112, %117 : vector<8x256xf32>
    %119 = vector.broadcast %11 : vector<1x256xf32> to vector<8x256xf32>
    %120 = arith.mulf %118, %119 : vector<8x256xf32>
    %121 = arith.mulf %120, %120 : vector<8x256xf32>
    %cst_44 = arith.constant dense<0.000000e+00> : vector<8xf32>
    %122 = vector.multi_reduction <add>, %121, %cst_44 [1] : vector<8x256xf32> to vector<8xf32>
    %123 = vector.shape_cast %122 : vector<8xf32> to vector<8x1xf32>
    %cst_45 = arith.constant 1.562500e-02 : f32
    %124 = vector.broadcast %cst_45 : f32 to vector<8x1xf32>
    %125 = arith.mulf %123, %124 : vector<8x1xf32>
    %cst_46 = arith.constant 9.99999974E-6 : f32
    %126 = vector.broadcast %cst_46 : f32 to vector<8x1xf32>
    %127 = arith.addf %125, %126 : vector<8x1xf32>
    %128 = math.rsqrt %127 : vector<8x1xf32>
    %129 = vector.broadcast %128 : vector<8x1xf32> to vector<8x256xf32>
    %130 = arith.mulf %120, %129 : vector<8x256xf32>
    %131 = vector.broadcast %109 : vector<1x256xf32> to vector<8x256xf32>
    %132 = arith.mulf %130, %131 : vector<8x256xf32>
    %133 = vector.broadcast %110 : vector<1x256xf32> to vector<8x256xf32>
    %134 = arith.addf %132, %133 : vector<8x256xf32>
    %135 = arith.truncf %134 : vector<8x256xf32> to vector<8x256xbf16>
    %c0_47 = arith.constant 0 : index
    %c0_48 = arith.constant 0 : index
    %136 = vector.load %arg12[%c0_47, %c0_48] : memref<256x128xbf16, #tpu.memory_space<vmem>>, vector<256x128xbf16>
    %cst_49 = arith.constant dense<0.000000e+00> : vector<8x128xf32>
    %137 = tpu.matmul %135, %136, %cst_49 {dimension_numbers = #tpu.dot_dimension_numbers<[1], [0], [0], [1], [0, 0, 1, 1], [], []>} : vector<8x256xbf16>, vector<256x128xbf16>, vector<8x128xf32> -> vector<8x128xf32>
    %c0_50 = arith.constant 0 : index
    %c0_51 = arith.constant 0 : index
    %138 = vector.load %arg13[%c0_50, %c0_51] : memref<1x128xf32, #tpu.memory_space<vmem>>, vector<1x128xf32>
    %139 = vector.broadcast %138 : vector<1x128xf32> to vector<8x128xf32>
    %140 = arith.addf %137, %139 : vector<8x128xf32>
    %cst_52 = arith.constant 0.000000e+00 : f32
    %141 = vector.broadcast %cst_52 : f32 to vector<8x128xf32>
    %142 = arith.maximumf %140, %141 : vector<8x128xf32>
    %143 = arith.truncf %142 : vector<8x128xf32> to vector<8x128xbf16>
    %c0_53 = arith.constant 0 : index
    %c0_54 = arith.constant 0 : index
    %144 = vector.load %arg14[%c0_53, %c0_54] : memref<128x128xbf16, #tpu.memory_space<vmem>>, vector<128x128xbf16>
    %cst_55 = arith.constant dense<0.000000e+00> : vector<8x128xf32>
    %145 = tpu.matmul %143, %144, %cst_55 {dimension_numbers = #tpu.dot_dimension_numbers<[1], [0], [0], [1], [0, 0, 1, 1], [], []>} : vector<8x128xbf16>, vector<128x128xbf16>, vector<8x128xf32> -> vector<8x128xf32>
    %c0_56 = arith.constant 0 : index
    %c0_57 = arith.constant 0 : index
    %146 = vector.load %arg15[%c0_56, %c0_57] : memref<1x128xf32, #tpu.memory_space<vmem>>, vector<1x128xf32>
    %147 = vector.broadcast %146 : vector<1x128xf32> to vector<8x128xf32>
    %148 = arith.addf %145, %147 : vector<8x128xf32>
    %149 = arith.addf %148, %1 : vector<8x128xf32>
    %150 = arith.addf %149, %3 : vector<8x128xf32>
    %c0_58 = arith.constant 0 : index
    %c0_59 = arith.constant 0 : index
    %151 = vector.load %arg16[%c0_58, %c0_59] : memref<1x128xf32, #tpu.memory_space<vmem>>, vector<1x128xf32>
    %c0_60 = arith.constant 0 : index
    %c0_61 = arith.constant 0 : index
    %152 = vector.load %arg17[%c0_60, %c0_61] : memref<1x128xf32, #tpu.memory_space<vmem>>, vector<1x128xf32>
    %153 = vector.broadcast %10 : vector<1x128xf32> to vector<8x128xf32>
    %154 = arith.mulf %150, %153 : vector<8x128xf32>
    %cst_62 = arith.constant dense<0.000000e+00> : vector<8xf32>
    %155 = vector.multi_reduction <add>, %154, %cst_62 [1] : vector<8x128xf32> to vector<8xf32>
    %156 = vector.shape_cast %155 : vector<8xf32> to vector<8x1xf32>
    %cst_63 = arith.constant 3.125000e-02 : f32
    %157 = vector.broadcast %cst_63 : f32 to vector<8x1xf32>
    %158 = arith.mulf %156, %157 : vector<8x1xf32>
    %159 = vector.broadcast %158 : vector<8x1xf32> to vector<8x128xf32>
    %160 = arith.subf %154, %159 : vector<8x128xf32>
    %161 = vector.broadcast %10 : vector<1x128xf32> to vector<8x128xf32>
    %162 = arith.mulf %160, %161 : vector<8x128xf32>
    %163 = arith.mulf %162, %162 : vector<8x128xf32>
    %cst_64 = arith.constant dense<0.000000e+00> : vector<8xf32>
    %164 = vector.multi_reduction <add>, %163, %cst_64 [1] : vector<8x128xf32> to vector<8xf32>
    %165 = vector.shape_cast %164 : vector<8xf32> to vector<8x1xf32>
    %cst_65 = arith.constant 3.125000e-02 : f32
    %166 = vector.broadcast %cst_65 : f32 to vector<8x1xf32>
    %167 = arith.mulf %165, %166 : vector<8x1xf32>
    %cst_66 = arith.constant 9.99999974E-6 : f32
    %168 = vector.broadcast %cst_66 : f32 to vector<8x1xf32>
    %169 = arith.addf %167, %168 : vector<8x1xf32>
    %170 = math.rsqrt %169 : vector<8x1xf32>
    %171 = vector.broadcast %170 : vector<8x1xf32> to vector<8x128xf32>
    %172 = arith.mulf %162, %171 : vector<8x128xf32>
    %173 = vector.broadcast %151 : vector<1x128xf32> to vector<8x128xf32>
    %174 = arith.mulf %172, %173 : vector<8x128xf32>
    %175 = vector.broadcast %152 : vector<1x128xf32> to vector<8x128xf32>
    %176 = arith.addf %174, %175 : vector<8x128xf32>
    %177 = vector.shape_cast %176 : vector<8x128xf32> to vector<1x8x128xf32>
    %178 = arith.truncf %177 : vector<1x8x128xf32> to vector<1x8x128xbf16>
    %c0_67 = arith.constant 0 : index
    %c0_68 = arith.constant 0 : index
    %c0_69 = arith.constant 0 : index
    %179 = vector.load %arg18[%c0_67, %c0_68, %c0_69] : memref<1x8x128xbf16, #tpu.memory_space<vmem>>, vector<1x8x128xbf16>
    tpu.vector_store %arg18[%c0_67, %c0_68, %c0_69], %178 {strides = array<i32>} : memref<1x8x128xbf16, #tpu.memory_space<vmem>>, vector<1x8x128xbf16>,
    return
  }
  func.func @transform_0(%arg0: i32) -> (i32, i32, i32) {
    %c0_i32 = arith.constant 0 : i32
    %c0_i32_0 = arith.constant 0 : i32
    %c0_i32_1 = arith.constant 0 : i32
    return %arg0, %c0_i32, %c0_i32_0 : i32, i32, i32
  }
  func.func @transform_1(%arg0: i32) -> (i32, i32, i32) {
    %c0_i32 = arith.constant 0 : i32
    %c0_i32_0 = arith.constant 0 : i32
    %c0_i32_1 = arith.constant 0 : i32
    return %arg0, %c0_i32, %c0_i32_0 : i32, i32, i32
  }
  func.func @transform_2(%arg0: i32) -> (i32, i32, i32) {
    %c0_i32 = arith.constant 0 : i32
    %c0_i32_0 = arith.constant 0 : i32
    %c0_i32_1 = arith.constant 0 : i32
    return %arg0, %c0_i32, %c0_i32_0 : i32, i32, i32
  }
  func.func @transform_3(%arg0: i32) -> (i32, i32) {
    %c0_i32 = arith.constant 0 : i32
    %c0_i32_0 = arith.constant 0 : i32
    %c0_i32_1 = arith.constant 0 : i32
    return %c0_i32, %c0_i32_0 : i32, i32
  }
  func.func @transform_4(%arg0: i32) -> (i32, i32) {
    %c0_i32 = arith.constant 0 : i32
    %c0_i32_0 = arith.constant 0 : i32
    %c0_i32_1 = arith.constant 0 : i32
    return %c0_i32, %c0_i32_0 : i32, i32
  }
  func.func @transform_5(%arg0: i32) -> (i32, i32) {
    %c0_i32 = arith.constant 0 : i32
    %c0_i32_0 = arith.constant 0 : i32
    %c0_i32_1 = arith.constant 0 : i32
    return %c0_i32, %c0_i32_0 : i32, i32
  }
  func.func @transform_6(%arg0: i32) -> (i32, i32) {
    %c0_i32 = arith.constant 0 : i32
    %c0_i32_0 = arith.constant 0 : i32
    %c0_i32_1 = arith.constant 0 : i32
    return %c0_i32, %c0_i32_0 : i32, i32
  }
  func.func @transform_7(%arg0: i32) -> (i32, i32) {
    %c0_i32 = arith.constant 0 : i32
    %c0_i32_0 = arith.constant 0 : i32
    %c0_i32_1 = arith.constant 0 : i32
    return %c0_i32, %c0_i32_0 : i32, i32
  }
  func.func @transform_8(%arg0: i32) -> (i32, i32) {
    %c0_i32 = arith.constant 0 : i32
    %c0_i32_0 = arith.constant 0 : i32
    %c0_i32_1 = arith.constant 0 : i32
    return %c0_i32, %c0_i32_0 : i32, i32
  }
  func.func @transform_9(%arg0: i32) -> (i32, i32) {
    %c0_i32 = arith.constant 0 : i32
    %c0_i32_0 = arith.constant 0 : i32
    %c0_i32_1 = arith.constant 0 : i32
    return %c0_i32, %c0_i32_0 : i32, i32
  }
  func.func @transform_10(%arg0: i32) -> (i32, i32) {
    %c0_i32 = arith.constant 0 : i32
    %c0_i32_0 = arith.constant 0 : i32
    %c0_i32_1 = arith.constant 0 : i32
    return %c0_i32, %c0_i32_0 : i32, i32
  }
  func.func @transform_11(%arg0: i32) -> (i32, i32) {
    %c0_i32 = arith.constant 0 : i32
    %c0_i32_0 = arith.constant 0 : i32
    %c0_i32_1 = arith.constant 0 : i32
    return %c0_i32, %c0_i32_0 : i32, i32
  }
  func.func @transform_12(%arg0: i32) -> (i32, i32) {
    %c0_i32 = arith.constant 0 : i32
    %c0_i32_0 = arith.constant 0 : i32
    %c0_i32_1 = arith.constant 0 : i32
    return %c0_i32, %c0_i32_0 : i32, i32
  }
  func.func @transform_13(%arg0: i32) -> (i32, i32) {
    %c0_i32 = arith.constant 0 : i32
    %c0_i32_0 = arith.constant 0 : i32
    %c0_i32_1 = arith.constant 0 : i32
    return %c0_i32, %c0_i32_0 : i32, i32
  }
  func.func @transform_14(%arg0: i32) -> (i32, i32) {
    %c0_i32 = arith.constant 0 : i32
    %c0_i32_0 = arith.constant 0 : i32
    %c0_i32_1 = arith.constant 0 : i32
    return %c0_i32, %c0_i32_0 : i32, i32
  }
  func.func @transform_15(%arg0: i32) -> (i32, i32) {
    %c0_i32 = arith.constant 0 : i32
    %c0_i32_0 = arith.constant 0 : i32
    %c0_i32_1 = arith.constant 0 : i32
    return %c0_i32, %c0_i32_0 : i32, i32
  }
  func.func @transform_16(%arg0: i32) -> (i32, i32) {
    %c0_i32 = arith.constant 0 : i32
    %c0_i32_0 = arith.constant 0 : i32
    %c0_i32_1 = arith.constant 0 : i32
    return %c0_i32, %c0_i32_0 : i32, i32
  }
  func.func @transform_17(%arg0: i32) -> (i32, i32, i32) {
    %c0_i32 = arith.constant 0 : i32
    %c0_i32_0 = arith.constant 0 : i32
    %c0_i32_1 = arith.constant 0 : i32
    return %arg0, %c0_i32, %c0_i32_0 : i32, i32, i32
  }
}

module attributes {stable_mosaic.version = 11 : i64} {
  func.func @_branch_kernel(%arg0: i32, %arg1: memref<1x8x128xf32, #tpu.memory_space<vmem>>, %arg2: memref<1x8x128xbf16, #tpu.memory_space<vmem>>, %arg3: memref<1x8x128xf32, #tpu.memory_space<vmem>>, %arg4: memref<128x512xbf16, #tpu.memory_space<vmem>>, %arg5: memref<1x512xf32, #tpu.memory_space<vmem>>, %arg6: memref<128x512xbf16, #tpu.memory_space<vmem>>, %arg7: memref<1x512xf32, #tpu.memory_space<vmem>>, %arg8: memref<128x512xbf16, #tpu.memory_space<vmem>>, %arg9: memref<1x512xf32, #tpu.memory_space<vmem>>, %arg10: memref<512x128xbf16, #tpu.memory_space<vmem>>, %arg11: memref<1x128xf32, #tpu.memory_space<vmem>>, %arg12: memref<1x128xf32, #tpu.memory_space<vmem>>, %arg13: memref<1x128xf32, #tpu.memory_space<vmem>>, %arg14: memref<128x128xbf16, #tpu.memory_space<vmem>>, %arg15: memref<1x128xf32, #tpu.memory_space<vmem>>, %arg16: memref<128x128xbf16, #tpu.memory_space<vmem>>, %arg17: memref<1x128xf32, #tpu.memory_space<vmem>>, %arg18: memref<1x128xf32, #tpu.memory_space<vmem>>, %arg19: memref<1x128xf32, #tpu.memory_space<vmem>>, %arg20: memref<1x8x128xf32, #tpu.memory_space<vmem>>) attributes {dimension_semantics = [#tpu.dimension_semantics<parallel>], iteration_bounds = array<i64: 2>, scalar_prefetch = 0 : i64, scratch_operands = 0 : i64, tpu.core_type = #tpu.core_type<tc>, window_params = [{transform_indices = @transform_0, window_bounds = array<i64: 1, 8, 128>}, {transform_indices = @transform_1, window_bounds = array<i64: 1, 8, 128>}, {transform_indices = @transform_2, window_bounds = array<i64: 1, 8, 128>}, {pipeline_mode = #tpu.pipeline_mode<synchronous>, transform_indices = @transform_3, window_bounds = array<i64: 128, 512>}, {pipeline_mode = #tpu.pipeline_mode<synchronous>, transform_indices = @transform_4, window_bounds = array<i64: 1, 512>}, {pipeline_mode = #tpu.pipeline_mode<synchronous>, transform_indices = @transform_5, window_bounds = array<i64: 128, 512>}, {pipeline_mode = #tpu.pipeline_mode<synchronous>, transform_indices = @transform_6, window_bounds = array<i64: 1, 512>}, {pipeline_mode = #tpu.pipeline_mode<synchronous>, transform_indices = @transform_7, window_bounds = array<i64: 128, 512>}, {pipeline_mode = #tpu.pipeline_mode<synchronous>, transform_indices = @transform_8, window_bounds = array<i64: 1, 512>}, {pipeline_mode = #tpu.pipeline_mode<synchronous>, transform_indices = @transform_9, window_bounds = array<i64: 512, 128>}, {pipeline_mode = #tpu.pipeline_mode<synchronous>, transform_indices = @transform_10, window_bounds = array<i64: 1, 128>}, {pipeline_mode = #tpu.pipeline_mode<synchronous>, transform_indices = @transform_11, window_bounds = array<i64: 1, 128>}, {pipeline_mode = #tpu.pipeline_mode<synchronous>, transform_indices = @transform_12, window_bounds = array<i64: 1, 128>}, {pipeline_mode = #tpu.pipeline_mode<synchronous>, transform_indices = @transform_13, window_bounds = array<i64: 128, 128>}, {pipeline_mode = #tpu.pipeline_mode<synchronous>, transform_indices = @transform_14, window_bounds = array<i64: 1, 128>}, {pipeline_mode = #tpu.pipeline_mode<synchronous>, transform_indices = @transform_15, window_bounds = array<i64: 128, 128>}, {pipeline_mode = #tpu.pipeline_mode<synchronous>, transform_indices = @transform_16, window_bounds = array<i64: 1, 128>}, {pipeline_mode = #tpu.pipeline_mode<synchronous>, transform_indices = @transform_17, window_bounds = array<i64: 1, 128>}, {pipeline_mode = #tpu.pipeline_mode<synchronous>, transform_indices = @transform_18, window_bounds = array<i64: 1, 128>}, {transform_indices = @transform_19, window_bounds = array<i64: 1, 8, 128>}]} {
    %c0 = arith.constant 0 : index
    %c0_0 = arith.constant 0 : index
    %c0_1 = arith.constant 0 : index
    %0 = vector.load %arg1[%c0, %c0_0, %c0_1] : memref<1x8x128xf32, #tpu.memory_space<vmem>>, vector<1x8x128xf32>
    %1 = vector.shape_cast %0 : vector<1x8x128xf32> to vector<8x128xf32>
    %c0_2 = arith.constant 0 : index
    %c0_3 = arith.constant 0 : index
    %c0_4 = arith.constant 0 : index
    %2 = vector.load %arg2[%c0_2, %c0_3, %c0_4] : memref<1x8x128xbf16, #tpu.memory_space<vmem>>, vector<1x8x128xbf16>
    %3 = arith.extf %2 : vector<1x8x128xbf16> to vector<1x8x128xf32>
    %4 = vector.shape_cast %3 : vector<1x8x128xf32> to vector<8x128xf32>
    %c0_5 = arith.constant 0 : index
    %c0_6 = arith.constant 0 : index
    %c0_7 = arith.constant 0 : index
    %5 = vector.load %arg3[%c0_5, %c0_6, %c0_7] : memref<1x8x128xf32, #tpu.memory_space<vmem>>, vector<1x8x128xf32>
    %6 = vector.shape_cast %5 : vector<1x8x128xf32> to vector<8x128xf32>
    %7 = tpu.iota {dimensions = array<i32: 1>} : vector<1x128xi32>
    %c32_i32 = arith.constant 32 : i32
    %8 = vector.broadcast %c32_i32 : i32 to vector<1x128xi32>
    %9 = arith.cmpi slt, %7, %8 : vector<1x128xi32>
    %10 = arith.extui %9 : vector<1x128xi1> to vector<1x128xi32>
    %11 = arith.sitofp %10 : vector<1x128xi32> to vector<1x128xf32>
    %12 = arith.addf %1, %6 : vector<8x128xf32>
    %13 = arith.truncf %12 : vector<8x128xf32> to vector<8x128xbf16>
    %14 = arith.addf %4, %6 : vector<8x128xf32>
    %15 = arith.truncf %14 : vector<8x128xf32> to vector<8x128xbf16>
    %c0_8 = arith.constant 0 : index
    %c0_9 = arith.constant 0 : index
    %16 = vector.load %arg4[%c0_8, %c0_9] : memref<128x512xbf16, #tpu.memory_space<vmem>>, vector<128x512xbf16>
    %cst = arith.constant dense<0.000000e+00> : vector<8x512xf32>
    %17 = tpu.matmul %13, %16, %cst {dimension_numbers = #tpu.dot_dimension_numbers<[1], [0], [0], [1], [0, 0, 1, 1], [], []>} : vector<8x128xbf16>, vector<128x512xbf16>, vector<8x512xf32> -> vector<8x512xf32>
    %c0_10 = arith.constant 0 : index
    %c0_11 = arith.constant 0 : index
    %18 = vector.load %arg5[%c0_10, %c0_11] : memref<1x512xf32, #tpu.memory_space<vmem>>, vector<1x512xf32>
    %19 = vector.broadcast %18 : vector<1x512xf32> to vector<8x512xf32>
    %20 = arith.addf %17, %19 : vector<8x512xf32>
    %c0_12 = arith.constant 0 : index
    %c0_13 = arith.constant 0 : index
    %21 = vector.load %arg6[%c0_12, %c0_13] : memref<128x512xbf16, #tpu.memory_space<vmem>>, vector<128x512xbf16>
    %cst_14 = arith.constant dense<0.000000e+00> : vector<8x512xf32>
    %22 = tpu.matmul %15, %21, %cst_14 {dimension_numbers = #tpu.dot_dimension_numbers<[1], [0], [0], [1], [0, 0, 1, 1], [], []>} : vector<8x128xbf16>, vector<128x512xbf16>, vector<8x512xf32> -> vector<8x512xf32>
    %c0_15 = arith.constant 0 : index
    %c0_16 = arith.constant 0 : index
    %23 = vector.load %arg7[%c0_15, %c0_16] : memref<1x512xf32, #tpu.memory_space<vmem>>, vector<1x512xf32>
    %24 = vector.broadcast %23 : vector<1x512xf32> to vector<8x512xf32>
    %25 = arith.addf %22, %24 : vector<8x512xf32>
    %26 = arith.truncf %4 : vector<8x128xf32> to vector<8x128xbf16>
    %c0_17 = arith.constant 0 : index
    %c0_18 = arith.constant 0 : index
    %27 = vector.load %arg8[%c0_17, %c0_18] : memref<128x512xbf16, #tpu.memory_space<vmem>>, vector<128x512xbf16>
    %cst_19 = arith.constant dense<0.000000e+00> : vector<8x512xf32>
    %28 = tpu.matmul %26, %27, %cst_19 {dimension_numbers = #tpu.dot_dimension_numbers<[1], [0], [0], [1], [0, 0, 1, 1], [], []>} : vector<8x128xbf16>, vector<128x512xbf16>, vector<8x512xf32> -> vector<8x512xf32>
    %c0_20 = arith.constant 0 : index
    %c0_21 = arith.constant 0 : index
    %29 = vector.load %arg9[%c0_20, %c0_21] : memref<1x512xf32, #tpu.memory_space<vmem>>, vector<1x512xf32>
    %30 = vector.broadcast %29 : vector<1x512xf32> to vector<8x512xf32>
    %31 = arith.addf %28, %30 : vector<8x512xf32>
    %32 = arith.truncf %31 : vector<8x512xf32> to vector<8x512xbf16>
    %33 = tpu.transpose %25, [1, 0] : vector<8x512xf32> -> vector<512x8xf32>
    %34 = arith.truncf %33 : vector<512x8xf32> to vector<512x8xbf16>
    %35 = vector.extract_strided_slice %20 {offsets = [0, 0], sizes = [8, 128], strides = [1, 1]} : vector<8x512xf32> to vector<8x128xf32>
    %36 = arith.truncf %35 : vector<8x128xf32> to vector<8x128xbf16>
    %37 = vector.extract_strided_slice %34 {offsets = [0, 0], sizes = [128, 8], strides = [1, 1]} : vector<512x8xbf16> to vector<128x8xbf16>
    %cst_22 = arith.constant dense<0.000000e+00> : vector<8x8xf32>
    %38 = tpu.matmul %36, %37, %cst_22 {dimension_numbers = #tpu.dot_dimension_numbers<[1], [0], [0], [1], [0, 0, 1, 1], [], []>} : vector<8x128xbf16>, vector<128x8xbf16>, vector<8x8xf32> -> vector<8x8xf32>
    %cst_23 = arith.constant dense<0xFF800000> : vector<8xf32>
    %39 = vector.multi_reduction <maximumf>, %38, %cst_23 [1] : vector<8x8xf32> to vector<8xf32>
    %40 = vector.shape_cast %39 : vector<8xf32> to vector<8x1xf32>
    %41 = vector.broadcast %40 : vector<8x1xf32> to vector<8x8xf32>
    %42 = arith.subf %38, %41 : vector<8x8xf32>
    %43 = math.exp %42 : vector<8x8xf32>
    %cst_24 = arith.constant dense<0.000000e+00> : vector<8xf32>
    %44 = vector.multi_reduction <add>, %43, %cst_24 [1] : vector<8x8xf32> to vector<8xf32>
    %45 = vector.shape_cast %44 : vector<8xf32> to vector<8x1xf32>
    %46 = tpu.reciprocal %45 {approx = true} : vector<8x1xf32> -> vector<8x1xf32>
    %47 = vector.broadcast %46 : vector<8x1xf32> to vector<8x8xf32>
    %48 = arith.mulf %43, %47 : vector<8x8xf32>
    %49 = arith.truncf %48 : vector<8x8xf32> to vector<8x8xbf16>
    %50 = vector.extract_strided_slice %32 {offsets = [0, 0], sizes = [8, 128], strides = [1, 1]} : vector<8x512xbf16> to vector<8x128xbf16>
    %cst_25 = arith.constant dense<0.000000e+00> : vector<8x128xf32>
    %51 = tpu.matmul %49, %50, %cst_25 {dimension_numbers = #tpu.dot_dimension_numbers<[1], [0], [0], [1], [0, 0, 1, 1], [], []>} : vector<8x8xbf16>, vector<8x128xbf16>, vector<8x128xf32> -> vector<8x128xf32>
    %52 = vector.extract_strided_slice %20 {offsets = [0, 128], sizes = [8, 128], strides = [1, 1]} : vector<8x512xf32> to vector<8x128xf32>
    %53 = arith.truncf %52 : vector<8x128xf32> to vector<8x128xbf16>
    %54 = vector.extract_strided_slice %34 {offsets = [128, 0], sizes = [128, 8], strides = [1, 1]} : vector<512x8xbf16> to vector<128x8xbf16>
    %cst_26 = arith.constant dense<0.000000e+00> : vector<8x8xf32>
    %55 = tpu.matmul %53, %54, %cst_26 {dimension_numbers = #tpu.dot_dimension_numbers<[1], [0], [0], [1], [0, 0, 1, 1], [], []>} : vector<8x128xbf16>, vector<128x8xbf16>, vector<8x8xf32> -> vector<8x8xf32>
    %cst_27 = arith.constant dense<0xFF800000> : vector<8xf32>
    %56 = vector.multi_reduction <maximumf>, %55, %cst_27 [1] : vector<8x8xf32> to vector<8xf32>
    %57 = vector.shape_cast %56 : vector<8xf32> to vector<8x1xf32>
    %58 = vector.broadcast %57 : vector<8x1xf32> to vector<8x8xf32>
    %59 = arith.subf %55, %58 : vector<8x8xf32>
    %60 = math.exp %59 : vector<8x8xf32>
    %cst_28 = arith.constant dense<0.000000e+00> : vector<8xf32>
    %61 = vector.multi_reduction <add>, %60, %cst_28 [1] : vector<8x8xf32> to vector<8xf32>
    %62 = vector.shape_cast %61 : vector<8xf32> to vector<8x1xf32>
    %63 = tpu.reciprocal %62 {approx = true} : vector<8x1xf32> -> vector<8x1xf32>
    %64 = vector.broadcast %63 : vector<8x1xf32> to vector<8x8xf32>
    %65 = arith.mulf %60, %64 : vector<8x8xf32>
    %66 = arith.truncf %65 : vector<8x8xf32> to vector<8x8xbf16>
    %67 = vector.extract_strided_slice %32 {offsets = [0, 128], sizes = [8, 128], strides = [1, 1]} : vector<8x512xbf16> to vector<8x128xbf16>
    %cst_29 = arith.constant dense<0.000000e+00> : vector<8x128xf32>
    %68 = tpu.matmul %66, %67, %cst_29 {dimension_numbers = #tpu.dot_dimension_numbers<[1], [0], [0], [1], [0, 0, 1, 1], [], []>} : vector<8x8xbf16>, vector<8x128xbf16>, vector<8x128xf32> -> vector<8x128xf32>
    %69 = vector.extract_strided_slice %20 {offsets = [0, 256], sizes = [8, 128], strides = [1, 1]} : vector<8x512xf32> to vector<8x128xf32>
    %70 = arith.truncf %69 : vector<8x128xf32> to vector<8x128xbf16>
    %71 = vector.extract_strided_slice %34 {offsets = [256, 0], sizes = [128, 8], strides = [1, 1]} : vector<512x8xbf16> to vector<128x8xbf16>
    %cst_30 = arith.constant dense<0.000000e+00> : vector<8x8xf32>
    %72 = tpu.matmul %70, %71, %cst_30 {dimension_numbers = #tpu.dot_dimension_numbers<[1], [0], [0], [1], [0, 0, 1, 1], [], []>} : vector<8x128xbf16>, vector<128x8xbf16>, vector<8x8xf32> -> vector<8x8xf32>
    %cst_31 = arith.constant dense<0xFF800000> : vector<8xf32>
    %73 = vector.multi_reduction <maximumf>, %72, %cst_31 [1] : vector<8x8xf32> to vector<8xf32>
    %74 = vector.shape_cast %73 : vector<8xf32> to vector<8x1xf32>
    %75 = vector.broadcast %74 : vector<8x1xf32> to vector<8x8xf32>
    %76 = arith.subf %72, %75 : vector<8x8xf32>
    %77 = math.exp %76 : vector<8x8xf32>
    %cst_32 = arith.constant dense<0.000000e+00> : vector<8xf32>
    %78 = vector.multi_reduction <add>, %77, %cst_32 [1] : vector<8x8xf32> to vector<8xf32>
    %79 = vector.shape_cast %78 : vector<8xf32> to vector<8x1xf32>
    %80 = tpu.reciprocal %79 {approx = true} : vector<8x1xf32> -> vector<8x1xf32>
    %81 = vector.broadcast %80 : vector<8x1xf32> to vector<8x8xf32>
    %82 = arith.mulf %77, %81 : vector<8x8xf32>
    %83 = arith.truncf %82 : vector<8x8xf32> to vector<8x8xbf16>
    %84 = vector.extract_strided_slice %32 {offsets = [0, 256], sizes = [8, 128], strides = [1, 1]} : vector<8x512xbf16> to vector<8x128xbf16>
    %cst_33 = arith.constant dense<0.000000e+00> : vector<8x128xf32>
    %85 = tpu.matmul %83, %84, %cst_33 {dimension_numbers = #tpu.dot_dimension_numbers<[1], [0], [0], [1], [0, 0, 1, 1], [], []>} : vector<8x8xbf16>, vector<8x128xbf16>, vector<8x128xf32> -> vector<8x128xf32>
    %86 = vector.extract_strided_slice %20 {offsets = [0, 384], sizes = [8, 128], strides = [1, 1]} : vector<8x512xf32> to vector<8x128xf32>
    %87 = arith.truncf %86 : vector<8x128xf32> to vector<8x128xbf16>
    %88 = vector.extract_strided_slice %34 {offsets = [384, 0], sizes = [128, 8], strides = [1, 1]} : vector<512x8xbf16> to vector<128x8xbf16>
    %cst_34 = arith.constant dense<0.000000e+00> : vector<8x8xf32>
    %89 = tpu.matmul %87, %88, %cst_34 {dimension_numbers = #tpu.dot_dimension_numbers<[1], [0], [0], [1], [0, 0, 1, 1], [], []>} : vector<8x128xbf16>, vector<128x8xbf16>, vector<8x8xf32> -> vector<8x8xf32>
    %cst_35 = arith.constant dense<0xFF800000> : vector<8xf32>
    %90 = vector.multi_reduction <maximumf>, %89, %cst_35 [1] : vector<8x8xf32> to vector<8xf32>
    %91 = vector.shape_cast %90 : vector<8xf32> to vector<8x1xf32>
    %92 = vector.broadcast %91 : vector<8x1xf32> to vector<8x8xf32>
    %93 = arith.subf %89, %92 : vector<8x8xf32>
    %94 = math.exp %93 : vector<8x8xf32>
    %cst_36 = arith.constant dense<0.000000e+00> : vector<8xf32>
    %95 = vector.multi_reduction <add>, %94, %cst_36 [1] : vector<8x8xf32> to vector<8xf32>
    %96 = vector.shape_cast %95 : vector<8xf32> to vector<8x1xf32>
    %97 = tpu.reciprocal %96 {approx = true} : vector<8x1xf32> -> vector<8x1xf32>
    %98 = vector.broadcast %97 : vector<8x1xf32> to vector<8x8xf32>
    %99 = arith.mulf %94, %98 : vector<8x8xf32>
    %100 = arith.truncf %99 : vector<8x8xf32> to vector<8x8xbf16>
    %101 = vector.extract_strided_slice %32 {offsets = [0, 384], sizes = [8, 128], strides = [1, 1]} : vector<8x512xbf16> to vector<8x128xbf16>
    %cst_37 = arith.constant dense<0.000000e+00> : vector<8x128xf32>
    %102 = tpu.matmul %100, %101, %cst_37 {dimension_numbers = #tpu.dot_dimension_numbers<[1], [0], [0], [1], [0, 0, 1, 1], [], []>} : vector<8x8xbf16>, vector<8x128xbf16>, vector<8x128xf32> -> vector<8x128xf32>
    %103 = tpu.concatenate %51, %68, %85, %102 in 1 : vector<8x128xf32>, vector<8x128xf32>, vector<8x128xf32>, vector<8x128xf32> -> vector<8x512xf32>
    %104 = arith.truncf %103 : vector<8x512xf32> to vector<8x512xbf16>
    %c0_38 = arith.constant 0 : index
    %c0_39 = arith.constant 0 : index
    %105 = vector.load %arg10[%c0_38, %c0_39] : memref<512x128xbf16, #tpu.memory_space<vmem>>, vector<512x128xbf16>
    %cst_40 = arith.constant dense<0.000000e+00> : vector<8x128xf32>
    %106 = tpu.matmul %104, %105, %cst_40 {dimension_numbers = #tpu.dot_dimension_numbers<[1], [0], [0], [1], [0, 0, 1, 1], [], []>} : vector<8x512xbf16>, vector<512x128xbf16>, vector<8x128xf32> -> vector<8x128xf32>
    %c0_41 = arith.constant 0 : index
    %c0_42 = arith.constant 0 : index
    %107 = vector.load %arg11[%c0_41, %c0_42] : memref<1x128xf32, #tpu.memory_space<vmem>>, vector<1x128xf32>
    %108 = vector.broadcast %107 : vector<1x128xf32> to vector<8x128xf32>
    %109 = arith.addf %106, %108 : vector<8x128xf32>
    %110 = arith.addf %1, %109 : vector<8x128xf32>
    %c0_43 = arith.constant 0 : index
    %c0_44 = arith.constant 0 : index
    %111 = vector.load %arg12[%c0_43, %c0_44] : memref<1x128xf32, #tpu.memory_space<vmem>>, vector<1x128xf32>
    %c0_45 = arith.constant 0 : index
    %c0_46 = arith.constant 0 : index
    %112 = vector.load %arg13[%c0_45, %c0_46] : memref<1x128xf32, #tpu.memory_space<vmem>>, vector<1x128xf32>
    %113 = vector.broadcast %11 : vector<1x128xf32> to vector<8x128xf32>
    %114 = arith.mulf %110, %113 : vector<8x128xf32>
    %cst_47 = arith.constant dense<0.000000e+00> : vector<8xf32>
    %115 = vector.multi_reduction <add>, %114, %cst_47 [1] : vector<8x128xf32> to vector<8xf32>
    %116 = vector.shape_cast %115 : vector<8xf32> to vector<8x1xf32>
    %cst_48 = arith.constant 3.125000e-02 : f32
    %117 = vector.broadcast %cst_48 : f32 to vector<8x1xf32>
    %118 = arith.mulf %116, %117 : vector<8x1xf32>
    %119 = vector.broadcast %118 : vector<8x1xf32> to vector<8x128xf32>
    %120 = arith.subf %114, %119 : vector<8x128xf32>
    %121 = vector.broadcast %11 : vector<1x128xf32> to vector<8x128xf32>
    %122 = arith.mulf %120, %121 : vector<8x128xf32>
    %123 = arith.mulf %122, %122 : vector<8x128xf32>
    %cst_49 = arith.constant dense<0.000000e+00> : vector<8xf32>
    %124 = vector.multi_reduction <add>, %123, %cst_49 [1] : vector<8x128xf32> to vector<8xf32>
    %125 = vector.shape_cast %124 : vector<8xf32> to vector<8x1xf32>
    %cst_50 = arith.constant 3.125000e-02 : f32
    %126 = vector.broadcast %cst_50 : f32 to vector<8x1xf32>
    %127 = arith.mulf %125, %126 : vector<8x1xf32>
    %cst_51 = arith.constant 9.99999974E-6 : f32
    %128 = vector.broadcast %cst_51 : f32 to vector<8x1xf32>
    %129 = arith.addf %127, %128 : vector<8x1xf32>
    %130 = math.rsqrt %129 : vector<8x1xf32>
    %131 = vector.broadcast %130 : vector<8x1xf32> to vector<8x128xf32>
    %132 = arith.mulf %122, %131 : vector<8x128xf32>
    %133 = vector.broadcast %111 : vector<1x128xf32> to vector<8x128xf32>
    %134 = arith.mulf %132, %133 : vector<8x128xf32>
    %135 = vector.broadcast %112 : vector<1x128xf32> to vector<8x128xf32>
    %136 = arith.addf %134, %135 : vector<8x128xf32>
    %137 = arith.truncf %136 : vector<8x128xf32> to vector<8x128xbf16>
    %c0_52 = arith.constant 0 : index
    %c0_53 = arith.constant 0 : index
    %138 = vector.load %arg14[%c0_52, %c0_53] : memref<128x128xbf16, #tpu.memory_space<vmem>>, vector<128x128xbf16>
    %cst_54 = arith.constant dense<0.000000e+00> : vector<8x128xf32>
    %139 = tpu.matmul %137, %138, %cst_54 {dimension_numbers = #tpu.dot_dimension_numbers<[1], [0], [0], [1], [0, 0, 1, 1], [], []>} : vector<8x128xbf16>, vector<128x128xbf16>, vector<8x128xf32> -> vector<8x128xf32>
    %c0_55 = arith.constant 0 : index
    %c0_56 = arith.constant 0 : index
    %140 = vector.load %arg15[%c0_55, %c0_56] : memref<1x128xf32, #tpu.memory_space<vmem>>, vector<1x128xf32>
    %141 = vector.broadcast %140 : vector<1x128xf32> to vector<8x128xf32>
    %142 = arith.addf %139, %141 : vector<8x128xf32>
    %cst_57 = arith.constant 0.000000e+00 : f32
    %143 = vector.broadcast %cst_57 : f32 to vector<8x128xf32>
    %144 = arith.maximumf %142, %143 : vector<8x128xf32>
    %145 = arith.truncf %144 : vector<8x128xf32> to vector<8x128xbf16>
    %c0_58 = arith.constant 0 : index
    %c0_59 = arith.constant 0 : index
    %146 = vector.load %arg16[%c0_58, %c0_59] : memref<128x128xbf16, #tpu.memory_space<vmem>>, vector<128x128xbf16>
    %cst_60 = arith.constant dense<0.000000e+00> : vector<8x128xf32>
    %147 = tpu.matmul %145, %146, %cst_60 {dimension_numbers = #tpu.dot_dimension_numbers<[1], [0], [0], [1], [0, 0, 1, 1], [], []>} : vector<8x128xbf16>, vector<128x128xbf16>, vector<8x128xf32> -> vector<8x128xf32>
    %c0_61 = arith.constant 0 : index
    %c0_62 = arith.constant 0 : index
    %148 = vector.load %arg17[%c0_61, %c0_62] : memref<1x128xf32, #tpu.memory_space<vmem>>, vector<1x128xf32>
    %149 = vector.broadcast %148 : vector<1x128xf32> to vector<8x128xf32>
    %150 = arith.addf %147, %149 : vector<8x128xf32>
    %151 = arith.addf %136, %150 : vector<8x128xf32>
    %c0_63 = arith.constant 0 : index
    %c0_64 = arith.constant 0 : index
    %152 = vector.load %arg18[%c0_63, %c0_64] : memref<1x128xf32, #tpu.memory_space<vmem>>, vector<1x128xf32>
    %c0_65 = arith.constant 0 : index
    %c0_66 = arith.constant 0 : index
    %153 = vector.load %arg19[%c0_65, %c0_66] : memref<1x128xf32, #tpu.memory_space<vmem>>, vector<1x128xf32>
    %154 = vector.broadcast %11 : vector<1x128xf32> to vector<8x128xf32>
    %155 = arith.mulf %151, %154 : vector<8x128xf32>
    %cst_67 = arith.constant dense<0.000000e+00> : vector<8xf32>
    %156 = vector.multi_reduction <add>, %155, %cst_67 [1] : vector<8x128xf32> to vector<8xf32>
    %157 = vector.shape_cast %156 : vector<8xf32> to vector<8x1xf32>
    %cst_68 = arith.constant 3.125000e-02 : f32
    %158 = vector.broadcast %cst_68 : f32 to vector<8x1xf32>
    %159 = arith.mulf %157, %158 : vector<8x1xf32>
    %160 = vector.broadcast %159 : vector<8x1xf32> to vector<8x128xf32>
    %161 = arith.subf %155, %160 : vector<8x128xf32>
    %162 = vector.broadcast %11 : vector<1x128xf32> to vector<8x128xf32>
    %163 = arith.mulf %161, %162 : vector<8x128xf32>
    %164 = arith.mulf %163, %163 : vector<8x128xf32>
    %cst_69 = arith.constant dense<0.000000e+00> : vector<8xf32>
    %165 = vector.multi_reduction <add>, %164, %cst_69 [1] : vector<8x128xf32> to vector<8xf32>
    %166 = vector.shape_cast %165 : vector<8xf32> to vector<8x1xf32>
    %cst_70 = arith.constant 3.125000e-02 : f32
    %167 = vector.broadcast %cst_70 : f32 to vector<8x1xf32>
    %168 = arith.mulf %166, %167 : vector<8x1xf32>
    %cst_71 = arith.constant 9.99999974E-6 : f32
    %169 = vector.broadcast %cst_71 : f32 to vector<8x1xf32>
    %170 = arith.addf %168, %169 : vector<8x1xf32>
    %171 = math.rsqrt %170 : vector<8x1xf32>
    %172 = vector.broadcast %171 : vector<8x1xf32> to vector<8x128xf32>
    %173 = arith.mulf %163, %172 : vector<8x128xf32>
    %174 = vector.broadcast %152 : vector<1x128xf32> to vector<8x128xf32>
    %175 = arith.mulf %173, %174 : vector<8x128xf32>
    %176 = vector.broadcast %153 : vector<1x128xf32> to vector<8x128xf32>
    %177 = arith.addf %175, %176 : vector<8x128xf32>
    %178 = vector.shape_cast %177 : vector<8x128xf32> to vector<1x8x128xf32>
    %c0_72 = arith.constant 0 : index
    %c0_73 = arith.constant 0 : index
    %c0_74 = arith.constant 0 : index
    %179 = vector.load %arg20[%c0_72, %c0_73, %c0_74] : memref<1x8x128xf32, #tpu.memory_space<vmem>>, vector<1x8x128xf32>
    tpu.vector_store %arg20[%c0_72, %c0_73, %c0_74], %178 {strides = array<i32>} : memref<1x8x128xf32, #tpu.memory_space<vmem>>, vector<1x8x128xf32>,
    return
  }
  func.func @transform_0(%arg0: i32) -> (i32, i32, i32) {
    %c0_i32 = arith.constant 0 : i32
    %c0_i32_0 = arith.constant 0 : i32
    %c0_i32_1 = arith.constant 0 : i32
    return %arg0, %c0_i32, %c0_i32_0 : i32, i32, i32
  }
  func.func @transform_1(%arg0: i32) -> (i32, i32, i32) {
    %c0_i32 = arith.constant 0 : i32
    %c0_i32_0 = arith.constant 0 : i32
    %c0_i32_1 = arith.constant 0 : i32
    return %arg0, %c0_i32, %c0_i32_0 : i32, i32, i32
  }
  func.func @transform_2(%arg0: i32) -> (i32, i32, i32) {
    %c0_i32 = arith.constant 0 : i32
    %c0_i32_0 = arith.constant 0 : i32
    %c0_i32_1 = arith.constant 0 : i32
    return %arg0, %c0_i32, %c0_i32_0 : i32, i32, i32
  }
  func.func @transform_3(%arg0: i32) -> (i32, i32) {
    %c0_i32 = arith.constant 0 : i32
    %c0_i32_0 = arith.constant 0 : i32
    %c0_i32_1 = arith.constant 0 : i32
    return %c0_i32, %c0_i32_0 : i32, i32
  }
  func.func @transform_4(%arg0: i32) -> (i32, i32) {
    %c0_i32 = arith.constant 0 : i32
    %c0_i32_0 = arith.constant 0 : i32
    %c0_i32_1 = arith.constant 0 : i32
    return %c0_i32, %c0_i32_0 : i32, i32
  }
  func.func @transform_5(%arg0: i32) -> (i32, i32) {
    %c0_i32 = arith.constant 0 : i32
    %c0_i32_0 = arith.constant 0 : i32
    %c0_i32_1 = arith.constant 0 : i32
    return %c0_i32, %c0_i32_0 : i32, i32
  }
  func.func @transform_6(%arg0: i32) -> (i32, i32) {
    %c0_i32 = arith.constant 0 : i32
    %c0_i32_0 = arith.constant 0 : i32
    %c0_i32_1 = arith.constant 0 : i32
    return %c0_i32, %c0_i32_0 : i32, i32
  }
  func.func @transform_7(%arg0: i32) -> (i32, i32) {
    %c0_i32 = arith.constant 0 : i32
    %c0_i32_0 = arith.constant 0 : i32
    %c0_i32_1 = arith.constant 0 : i32
    return %c0_i32, %c0_i32_0 : i32, i32
  }
  func.func @transform_8(%arg0: i32) -> (i32, i32) {
    %c0_i32 = arith.constant 0 : i32
    %c0_i32_0 = arith.constant 0 : i32
    %c0_i32_1 = arith.constant 0 : i32
    return %c0_i32, %c0_i32_0 : i32, i32
  }
  func.func @transform_9(%arg0: i32) -> (i32, i32) {
    %c0_i32 = arith.constant 0 : i32
    %c0_i32_0 = arith.constant 0 : i32
    %c0_i32_1 = arith.constant 0 : i32
    return %c0_i32, %c0_i32_0 : i32, i32
  }
  func.func @transform_10(%arg0: i32) -> (i32, i32) {
    %c0_i32 = arith.constant 0 : i32
    %c0_i32_0 = arith.constant 0 : i32
    %c0_i32_1 = arith.constant 0 : i32
    return %c0_i32, %c0_i32_0 : i32, i32
  }
  func.func @transform_11(%arg0: i32) -> (i32, i32) {
    %c0_i32 = arith.constant 0 : i32
    %c0_i32_0 = arith.constant 0 : i32
    %c0_i32_1 = arith.constant 0 : i32
    return %c0_i32, %c0_i32_0 : i32, i32
  }
  func.func @transform_12(%arg0: i32) -> (i32, i32) {
    %c0_i32 = arith.constant 0 : i32
    %c0_i32_0 = arith.constant 0 : i32
    %c0_i32_1 = arith.constant 0 : i32
    return %c0_i32, %c0_i32_0 : i32, i32
  }
  func.func @transform_13(%arg0: i32) -> (i32, i32) {
    %c0_i32 = arith.constant 0 : i32
    %c0_i32_0 = arith.constant 0 : i32
    %c0_i32_1 = arith.constant 0 : i32
    return %c0_i32, %c0_i32_0 : i32, i32
  }
  func.func @transform_14(%arg0: i32) -> (i32, i32) {
    %c0_i32 = arith.constant 0 : i32
    %c0_i32_0 = arith.constant 0 : i32
    %c0_i32_1 = arith.constant 0 : i32
    return %c0_i32, %c0_i32_0 : i32, i32
  }
  func.func @transform_15(%arg0: i32) -> (i32, i32) {
    %c0_i32 = arith.constant 0 : i32
    %c0_i32_0 = arith.constant 0 : i32
    %c0_i32_1 = arith.constant 0 : i32
    return %c0_i32, %c0_i32_0 : i32, i32
  }
  func.func @transform_16(%arg0: i32) -> (i32, i32) {
    %c0_i32 = arith.constant 0 : i32
    %c0_i32_0 = arith.constant 0 : i32
    %c0_i32_1 = arith.constant 0 : i32
    return %c0_i32, %c0_i32_0 : i32, i32
  }
  func.func @transform_17(%arg0: i32) -> (i32, i32) {
    %c0_i32 = arith.constant 0 : i32
    %c0_i32_0 = arith.constant 0 : i32
    %c0_i32_1 = arith.constant 0 : i32
    return %c0_i32, %c0_i32_0 : i32, i32
  }
  func.func @transform_18(%arg0: i32) -> (i32, i32) {
    %c0_i32 = arith.constant 0 : i32
    %c0_i32_0 = arith.constant 0 : i32
    %c0_i32_1 = arith.constant 0 : i32
    return %c0_i32, %c0_i32_0 : i32, i32
  }
  func.func @transform_19(%arg0: i32) -> (i32, i32, i32) {
    %c0_i32 = arith.constant 0 : i32
    %c0_i32_0 = arith.constant 0 : i32
    %c0_i32_1 = arith.constant 0 : i32
    return %arg0, %c0_i32, %c0_i32_0 : i32, i32, i32
  }
}

module attributes {stable_mosaic.version = 11 : i64} {
  func.func @_branch_kernel(%arg0: i32, %arg1: memref<1x8x128xf32, #tpu.memory_space<vmem>>, %arg2: memref<1x8x128xbf16, #tpu.memory_space<vmem>>, %arg3: memref<1x8x128xf32, #tpu.memory_space<vmem>>, %arg4: memref<128x512xbf16, #tpu.memory_space<vmem>>, %arg5: memref<1x512xf32, #tpu.memory_space<vmem>>, %arg6: memref<128x512xbf16, #tpu.memory_space<vmem>>, %arg7: memref<1x512xf32, #tpu.memory_space<vmem>>, %arg8: memref<128x512xbf16, #tpu.memory_space<vmem>>, %arg9: memref<1x512xf32, #tpu.memory_space<vmem>>, %arg10: memref<512x128xbf16, #tpu.memory_space<vmem>>, %arg11: memref<1x128xf32, #tpu.memory_space<vmem>>, %arg12: memref<1x128xf32, #tpu.memory_space<vmem>>, %arg13: memref<1x128xf32, #tpu.memory_space<vmem>>, %arg14: memref<128x128xbf16, #tpu.memory_space<vmem>>, %arg15: memref<1x128xf32, #tpu.memory_space<vmem>>, %arg16: memref<128x128xbf16, #tpu.memory_space<vmem>>, %arg17: memref<1x128xf32, #tpu.memory_space<vmem>>, %arg18: memref<1x128xf32, #tpu.memory_space<vmem>>, %arg19: memref<1x128xf32, #tpu.memory_space<vmem>>, %arg20: memref<1x8x128xf32, #tpu.memory_space<vmem>>) attributes {dimension_semantics = [#tpu.dimension_semantics<parallel>], iteration_bounds = array<i64: 2>, scalar_prefetch = 0 : i64, scratch_operands = 0 : i64, tpu.core_type = #tpu.core_type<tc>, window_params = [{transform_indices = @transform_0, window_bounds = array<i64: 1, 8, 128>}, {transform_indices = @transform_1, window_bounds = array<i64: 1, 8, 128>}, {transform_indices = @transform_2, window_bounds = array<i64: 1, 8, 128>}, {pipeline_mode = #tpu.pipeline_mode<synchronous>, transform_indices = @transform_3, window_bounds = array<i64: 128, 512>}, {pipeline_mode = #tpu.pipeline_mode<synchronous>, transform_indices = @transform_4, window_bounds = array<i64: 1, 512>}, {pipeline_mode = #tpu.pipeline_mode<synchronous>, transform_indices = @transform_5, window_bounds = array<i64: 128, 512>}, {pipeline_mode = #tpu.pipeline_mode<synchronous>, transform_indices = @transform_6, window_bounds = array<i64: 1, 512>}, {pipeline_mode = #tpu.pipeline_mode<synchronous>, transform_indices = @transform_7, window_bounds = array<i64: 128, 512>}, {pipeline_mode = #tpu.pipeline_mode<synchronous>, transform_indices = @transform_8, window_bounds = array<i64: 1, 512>}, {pipeline_mode = #tpu.pipeline_mode<synchronous>, transform_indices = @transform_9, window_bounds = array<i64: 512, 128>}, {pipeline_mode = #tpu.pipeline_mode<synchronous>, transform_indices = @transform_10, window_bounds = array<i64: 1, 128>}, {pipeline_mode = #tpu.pipeline_mode<synchronous>, transform_indices = @transform_11, window_bounds = array<i64: 1, 128>}, {pipeline_mode = #tpu.pipeline_mode<synchronous>, transform_indices = @transform_12, window_bounds = array<i64: 1, 128>}, {pipeline_mode = #tpu.pipeline_mode<synchronous>, transform_indices = @transform_13, window_bounds = array<i64: 128, 128>}, {pipeline_mode = #tpu.pipeline_mode<synchronous>, transform_indices = @transform_14, window_bounds = array<i64: 1, 128>}, {pipeline_mode = #tpu.pipeline_mode<synchronous>, transform_indices = @transform_15, window_bounds = array<i64: 128, 128>}, {pipeline_mode = #tpu.pipeline_mode<synchronous>, transform_indices = @transform_16, window_bounds = array<i64: 1, 128>}, {pipeline_mode = #tpu.pipeline_mode<synchronous>, transform_indices = @transform_17, window_bounds = array<i64: 1, 128>}, {pipeline_mode = #tpu.pipeline_mode<synchronous>, transform_indices = @transform_18, window_bounds = array<i64: 1, 128>}, {transform_indices = @transform_19, window_bounds = array<i64: 1, 8, 128>}]} {
    %c0 = arith.constant 0 : index
    %c0_0 = arith.constant 0 : index
    %c0_1 = arith.constant 0 : index
    %0 = vector.load %arg1[%c0, %c0_0, %c0_1] : memref<1x8x128xf32, #tpu.memory_space<vmem>>, vector<1x8x128xf32>
    %1 = vector.shape_cast %0 : vector<1x8x128xf32> to vector<8x128xf32>
    %c0_2 = arith.constant 0 : index
    %c0_3 = arith.constant 0 : index
    %c0_4 = arith.constant 0 : index
    %2 = vector.load %arg2[%c0_2, %c0_3, %c0_4] : memref<1x8x128xbf16, #tpu.memory_space<vmem>>, vector<1x8x128xbf16>
    %3 = arith.extf %2 : vector<1x8x128xbf16> to vector<1x8x128xf32>
    %4 = vector.shape_cast %3 : vector<1x8x128xf32> to vector<8x128xf32>
    %c0_5 = arith.constant 0 : index
    %c0_6 = arith.constant 0 : index
    %c0_7 = arith.constant 0 : index
    %5 = vector.load %arg3[%c0_5, %c0_6, %c0_7] : memref<1x8x128xf32, #tpu.memory_space<vmem>>, vector<1x8x128xf32>
    %6 = vector.shape_cast %5 : vector<1x8x128xf32> to vector<8x128xf32>
    %7 = tpu.iota {dimensions = array<i32: 1>} : vector<1x128xi32>
    %c32_i32 = arith.constant 32 : i32
    %8 = vector.broadcast %c32_i32 : i32 to vector<1x128xi32>
    %9 = arith.cmpi slt, %7, %8 : vector<1x128xi32>
    %10 = arith.extui %9 : vector<1x128xi1> to vector<1x128xi32>
    %11 = arith.sitofp %10 : vector<1x128xi32> to vector<1x128xf32>
    %12 = arith.addf %1, %6 : vector<8x128xf32>
    %13 = arith.truncf %12 : vector<8x128xf32> to vector<8x128xbf16>
    %14 = arith.addf %4, %6 : vector<8x128xf32>
    %15 = arith.truncf %14 : vector<8x128xf32> to vector<8x128xbf16>
    %c0_8 = arith.constant 0 : index
    %c0_9 = arith.constant 0 : index
    %16 = vector.load %arg4[%c0_8, %c0_9] : memref<128x512xbf16, #tpu.memory_space<vmem>>, vector<128x512xbf16>
    %cst = arith.constant dense<0.000000e+00> : vector<8x512xf32>
    %17 = tpu.matmul %13, %16, %cst {dimension_numbers = #tpu.dot_dimension_numbers<[1], [0], [0], [1], [0, 0, 1, 1], [], []>} : vector<8x128xbf16>, vector<128x512xbf16>, vector<8x512xf32> -> vector<8x512xf32>
    %c0_10 = arith.constant 0 : index
    %c0_11 = arith.constant 0 : index
    %18 = vector.load %arg5[%c0_10, %c0_11] : memref<1x512xf32, #tpu.memory_space<vmem>>, vector<1x512xf32>
    %19 = vector.broadcast %18 : vector<1x512xf32> to vector<8x512xf32>
    %20 = arith.addf %17, %19 : vector<8x512xf32>
    %c0_12 = arith.constant 0 : index
    %c0_13 = arith.constant 0 : index
    %21 = vector.load %arg6[%c0_12, %c0_13] : memref<128x512xbf16, #tpu.memory_space<vmem>>, vector<128x512xbf16>
    %cst_14 = arith.constant dense<0.000000e+00> : vector<8x512xf32>
    %22 = tpu.matmul %15, %21, %cst_14 {dimension_numbers = #tpu.dot_dimension_numbers<[1], [0], [0], [1], [0, 0, 1, 1], [], []>} : vector<8x128xbf16>, vector<128x512xbf16>, vector<8x512xf32> -> vector<8x512xf32>
    %c0_15 = arith.constant 0 : index
    %c0_16 = arith.constant 0 : index
    %23 = vector.load %arg7[%c0_15, %c0_16] : memref<1x512xf32, #tpu.memory_space<vmem>>, vector<1x512xf32>
    %24 = vector.broadcast %23 : vector<1x512xf32> to vector<8x512xf32>
    %25 = arith.addf %22, %24 : vector<8x512xf32>
    %26 = arith.truncf %4 : vector<8x128xf32> to vector<8x128xbf16>
    %c0_17 = arith.constant 0 : index
    %c0_18 = arith.constant 0 : index
    %27 = vector.load %arg8[%c0_17, %c0_18] : memref<128x512xbf16, #tpu.memory_space<vmem>>, vector<128x512xbf16>
    %cst_19 = arith.constant dense<0.000000e+00> : vector<8x512xf32>
    %28 = tpu.matmul %26, %27, %cst_19 {dimension_numbers = #tpu.dot_dimension_numbers<[1], [0], [0], [1], [0, 0, 1, 1], [], []>} : vector<8x128xbf16>, vector<128x512xbf16>, vector<8x512xf32> -> vector<8x512xf32>
    %c0_20 = arith.constant 0 : index
    %c0_21 = arith.constant 0 : index
    %29 = vector.load %arg9[%c0_20, %c0_21] : memref<1x512xf32, #tpu.memory_space<vmem>>, vector<1x512xf32>
    %30 = vector.broadcast %29 : vector<1x512xf32> to vector<8x512xf32>
    %31 = arith.addf %28, %30 : vector<8x512xf32>
    %32 = arith.truncf %31 : vector<8x512xf32> to vector<8x512xbf16>
    %33 = tpu.transpose %25, [1, 0] : vector<8x512xf32> -> vector<512x8xf32>
    %34 = arith.truncf %33 : vector<512x8xf32> to vector<512x8xbf16>
    %35 = vector.extract_strided_slice %20 {offsets = [0, 0], sizes = [8, 128], strides = [1, 1]} : vector<8x512xf32> to vector<8x128xf32>
    %36 = arith.truncf %35 : vector<8x128xf32> to vector<8x128xbf16>
    %37 = vector.extract_strided_slice %34 {offsets = [0, 0], sizes = [128, 8], strides = [1, 1]} : vector<512x8xbf16> to vector<128x8xbf16>
    %cst_22 = arith.constant dense<0.000000e+00> : vector<8x8xf32>
    %38 = tpu.matmul %36, %37, %cst_22 {dimension_numbers = #tpu.dot_dimension_numbers<[1], [0], [0], [1], [0, 0, 1, 1], [], []>} : vector<8x128xbf16>, vector<128x8xbf16>, vector<8x8xf32> -> vector<8x8xf32>
    %cst_23 = arith.constant dense<0xFF800000> : vector<8xf32>
    %39 = vector.multi_reduction <maximumf>, %38, %cst_23 [1] : vector<8x8xf32> to vector<8xf32>
    %40 = vector.shape_cast %39 : vector<8xf32> to vector<8x1xf32>
    %41 = vector.broadcast %40 : vector<8x1xf32> to vector<8x8xf32>
    %42 = arith.subf %38, %41 : vector<8x8xf32>
    %43 = math.exp %42 : vector<8x8xf32>
    %cst_24 = arith.constant dense<0.000000e+00> : vector<8xf32>
    %44 = vector.multi_reduction <add>, %43, %cst_24 [1] : vector<8x8xf32> to vector<8xf32>
    %45 = vector.shape_cast %44 : vector<8xf32> to vector<8x1xf32>
    %46 = tpu.reciprocal %45 {approx = true} : vector<8x1xf32> -> vector<8x1xf32>
    %47 = vector.broadcast %46 : vector<8x1xf32> to vector<8x8xf32>
    %48 = arith.mulf %43, %47 : vector<8x8xf32>
    %49 = arith.truncf %48 : vector<8x8xf32> to vector<8x8xbf16>
    %50 = vector.extract_strided_slice %32 {offsets = [0, 0], sizes = [8, 128], strides = [1, 1]} : vector<8x512xbf16> to vector<8x128xbf16>
    %cst_25 = arith.constant dense<0.000000e+00> : vector<8x128xf32>
    %51 = tpu.matmul %49, %50, %cst_25 {dimension_numbers = #tpu.dot_dimension_numbers<[1], [0], [0], [1], [0, 0, 1, 1], [], []>} : vector<8x8xbf16>, vector<8x128xbf16>, vector<8x128xf32> -> vector<8x128xf32>
    %52 = vector.extract_strided_slice %20 {offsets = [0, 128], sizes = [8, 128], strides = [1, 1]} : vector<8x512xf32> to vector<8x128xf32>
    %53 = arith.truncf %52 : vector<8x128xf32> to vector<8x128xbf16>
    %54 = vector.extract_strided_slice %34 {offsets = [128, 0], sizes = [128, 8], strides = [1, 1]} : vector<512x8xbf16> to vector<128x8xbf16>
    %cst_26 = arith.constant dense<0.000000e+00> : vector<8x8xf32>
    %55 = tpu.matmul %53, %54, %cst_26 {dimension_numbers = #tpu.dot_dimension_numbers<[1], [0], [0], [1], [0, 0, 1, 1], [], []>} : vector<8x128xbf16>, vector<128x8xbf16>, vector<8x8xf32> -> vector<8x8xf32>
    %cst_27 = arith.constant dense<0xFF800000> : vector<8xf32>
    %56 = vector.multi_reduction <maximumf>, %55, %cst_27 [1] : vector<8x8xf32> to vector<8xf32>
    %57 = vector.shape_cast %56 : vector<8xf32> to vector<8x1xf32>
    %58 = vector.broadcast %57 : vector<8x1xf32> to vector<8x8xf32>
    %59 = arith.subf %55, %58 : vector<8x8xf32>
    %60 = math.exp %59 : vector<8x8xf32>
    %cst_28 = arith.constant dense<0.000000e+00> : vector<8xf32>
    %61 = vector.multi_reduction <add>, %60, %cst_28 [1] : vector<8x8xf32> to vector<8xf32>
    %62 = vector.shape_cast %61 : vector<8xf32> to vector<8x1xf32>
    %63 = tpu.reciprocal %62 {approx = true} : vector<8x1xf32> -> vector<8x1xf32>
    %64 = vector.broadcast %63 : vector<8x1xf32> to vector<8x8xf32>
    %65 = arith.mulf %60, %64 : vector<8x8xf32>
    %66 = arith.truncf %65 : vector<8x8xf32> to vector<8x8xbf16>
    %67 = vector.extract_strided_slice %32 {offsets = [0, 128], sizes = [8, 128], strides = [1, 1]} : vector<8x512xbf16> to vector<8x128xbf16>
    %cst_29 = arith.constant dense<0.000000e+00> : vector<8x128xf32>
    %68 = tpu.matmul %66, %67, %cst_29 {dimension_numbers = #tpu.dot_dimension_numbers<[1], [0], [0], [1], [0, 0, 1, 1], [], []>} : vector<8x8xbf16>, vector<8x128xbf16>, vector<8x128xf32> -> vector<8x128xf32>
    %69 = vector.extract_strided_slice %20 {offsets = [0, 256], sizes = [8, 128], strides = [1, 1]} : vector<8x512xf32> to vector<8x128xf32>
    %70 = arith.truncf %69 : vector<8x128xf32> to vector<8x128xbf16>
    %71 = vector.extract_strided_slice %34 {offsets = [256, 0], sizes = [128, 8], strides = [1, 1]} : vector<512x8xbf16> to vector<128x8xbf16>
    %cst_30 = arith.constant dense<0.000000e+00> : vector<8x8xf32>
    %72 = tpu.matmul %70, %71, %cst_30 {dimension_numbers = #tpu.dot_dimension_numbers<[1], [0], [0], [1], [0, 0, 1, 1], [], []>} : vector<8x128xbf16>, vector<128x8xbf16>, vector<8x8xf32> -> vector<8x8xf32>
    %cst_31 = arith.constant dense<0xFF800000> : vector<8xf32>
    %73 = vector.multi_reduction <maximumf>, %72, %cst_31 [1] : vector<8x8xf32> to vector<8xf32>
    %74 = vector.shape_cast %73 : vector<8xf32> to vector<8x1xf32>
    %75 = vector.broadcast %74 : vector<8x1xf32> to vector<8x8xf32>
    %76 = arith.subf %72, %75 : vector<8x8xf32>
    %77 = math.exp %76 : vector<8x8xf32>
    %cst_32 = arith.constant dense<0.000000e+00> : vector<8xf32>
    %78 = vector.multi_reduction <add>, %77, %cst_32 [1] : vector<8x8xf32> to vector<8xf32>
    %79 = vector.shape_cast %78 : vector<8xf32> to vector<8x1xf32>
    %80 = tpu.reciprocal %79 {approx = true} : vector<8x1xf32> -> vector<8x1xf32>
    %81 = vector.broadcast %80 : vector<8x1xf32> to vector<8x8xf32>
    %82 = arith.mulf %77, %81 : vector<8x8xf32>
    %83 = arith.truncf %82 : vector<8x8xf32> to vector<8x8xbf16>
    %84 = vector.extract_strided_slice %32 {offsets = [0, 256], sizes = [8, 128], strides = [1, 1]} : vector<8x512xbf16> to vector<8x128xbf16>
    %cst_33 = arith.constant dense<0.000000e+00> : vector<8x128xf32>
    %85 = tpu.matmul %83, %84, %cst_33 {dimension_numbers = #tpu.dot_dimension_numbers<[1], [0], [0], [1], [0, 0, 1, 1], [], []>} : vector<8x8xbf16>, vector<8x128xbf16>, vector<8x128xf32> -> vector<8x128xf32>
    %86 = vector.extract_strided_slice %20 {offsets = [0, 384], sizes = [8, 128], strides = [1, 1]} : vector<8x512xf32> to vector<8x128xf32>
    %87 = arith.truncf %86 : vector<8x128xf32> to vector<8x128xbf16>
    %88 = vector.extract_strided_slice %34 {offsets = [384, 0], sizes = [128, 8], strides = [1, 1]} : vector<512x8xbf16> to vector<128x8xbf16>
    %cst_34 = arith.constant dense<0.000000e+00> : vector<8x8xf32>
    %89 = tpu.matmul %87, %88, %cst_34 {dimension_numbers = #tpu.dot_dimension_numbers<[1], [0], [0], [1], [0, 0, 1, 1], [], []>} : vector<8x128xbf16>, vector<128x8xbf16>, vector<8x8xf32> -> vector<8x8xf32>
    %cst_35 = arith.constant dense<0xFF800000> : vector<8xf32>
    %90 = vector.multi_reduction <maximumf>, %89, %cst_35 [1] : vector<8x8xf32> to vector<8xf32>
    %91 = vector.shape_cast %90 : vector<8xf32> to vector<8x1xf32>
    %92 = vector.broadcast %91 : vector<8x1xf32> to vector<8x8xf32>
    %93 = arith.subf %89, %92 : vector<8x8xf32>
    %94 = math.exp %93 : vector<8x8xf32>
    %cst_36 = arith.constant dense<0.000000e+00> : vector<8xf32>
    %95 = vector.multi_reduction <add>, %94, %cst_36 [1] : vector<8x8xf32> to vector<8xf32>
    %96 = vector.shape_cast %95 : vector<8xf32> to vector<8x1xf32>
    %97 = tpu.reciprocal %96 {approx = true} : vector<8x1xf32> -> vector<8x1xf32>
    %98 = vector.broadcast %97 : vector<8x1xf32> to vector<8x8xf32>
    %99 = arith.mulf %94, %98 : vector<8x8xf32>
    %100 = arith.truncf %99 : vector<8x8xf32> to vector<8x8xbf16>
    %101 = vector.extract_strided_slice %32 {offsets = [0, 384], sizes = [8, 128], strides = [1, 1]} : vector<8x512xbf16> to vector<8x128xbf16>
    %cst_37 = arith.constant dense<0.000000e+00> : vector<8x128xf32>
    %102 = tpu.matmul %100, %101, %cst_37 {dimension_numbers = #tpu.dot_dimension_numbers<[1], [0], [0], [1], [0, 0, 1, 1], [], []>} : vector<8x8xbf16>, vector<8x128xbf16>, vector<8x128xf32> -> vector<8x128xf32>
    %103 = tpu.concatenate %51, %68, %85, %102 in 1 : vector<8x128xf32>, vector<8x128xf32>, vector<8x128xf32>, vector<8x128xf32> -> vector<8x512xf32>
    %104 = arith.truncf %103 : vector<8x512xf32> to vector<8x512xbf16>
    %c0_38 = arith.constant 0 : index
    %c0_39 = arith.constant 0 : index
    %105 = vector.load %arg10[%c0_38, %c0_39] : memref<512x128xbf16, #tpu.memory_space<vmem>>, vector<512x128xbf16>
    %cst_40 = arith.constant dense<0.000000e+00> : vector<8x128xf32>
    %106 = tpu.matmul %104, %105, %cst_40 {dimension_numbers = #tpu.dot_dimension_numbers<[1], [0], [0], [1], [0, 0, 1, 1], [], []>} : vector<8x512xbf16>, vector<512x128xbf16>, vector<8x128xf32> -> vector<8x128xf32>
    %c0_41 = arith.constant 0 : index
    %c0_42 = arith.constant 0 : index
    %107 = vector.load %arg11[%c0_41, %c0_42] : memref<1x128xf32, #tpu.memory_space<vmem>>, vector<1x128xf32>
    %108 = vector.broadcast %107 : vector<1x128xf32> to vector<8x128xf32>
    %109 = arith.addf %106, %108 : vector<8x128xf32>
    %110 = arith.addf %1, %109 : vector<8x128xf32>
    %c0_43 = arith.constant 0 : index
    %c0_44 = arith.constant 0 : index
    %111 = vector.load %arg12[%c0_43, %c0_44] : memref<1x128xf32, #tpu.memory_space<vmem>>, vector<1x128xf32>
    %c0_45 = arith.constant 0 : index
    %c0_46 = arith.constant 0 : index
    %112 = vector.load %arg13[%c0_45, %c0_46] : memref<1x128xf32, #tpu.memory_space<vmem>>, vector<1x128xf32>
    %113 = vector.broadcast %11 : vector<1x128xf32> to vector<8x128xf32>
    %114 = arith.mulf %110, %113 : vector<8x128xf32>
    %cst_47 = arith.constant dense<0.000000e+00> : vector<8xf32>
    %115 = vector.multi_reduction <add>, %114, %cst_47 [1] : vector<8x128xf32> to vector<8xf32>
    %116 = vector.shape_cast %115 : vector<8xf32> to vector<8x1xf32>
    %cst_48 = arith.constant 3.125000e-02 : f32
    %117 = vector.broadcast %cst_48 : f32 to vector<8x1xf32>
    %118 = arith.mulf %116, %117 : vector<8x1xf32>
    %119 = vector.broadcast %118 : vector<8x1xf32> to vector<8x128xf32>
    %120 = arith.subf %114, %119 : vector<8x128xf32>
    %121 = vector.broadcast %11 : vector<1x128xf32> to vector<8x128xf32>
    %122 = arith.mulf %120, %121 : vector<8x128xf32>
    %123 = arith.mulf %122, %122 : vector<8x128xf32>
    %cst_49 = arith.constant dense<0.000000e+00> : vector<8xf32>
    %124 = vector.multi_reduction <add>, %123, %cst_49 [1] : vector<8x128xf32> to vector<8xf32>
    %125 = vector.shape_cast %124 : vector<8xf32> to vector<8x1xf32>
    %cst_50 = arith.constant 3.125000e-02 : f32
    %126 = vector.broadcast %cst_50 : f32 to vector<8x1xf32>
    %127 = arith.mulf %125, %126 : vector<8x1xf32>
    %cst_51 = arith.constant 9.99999974E-6 : f32
    %128 = vector.broadcast %cst_51 : f32 to vector<8x1xf32>
    %129 = arith.addf %127, %128 : vector<8x1xf32>
    %130 = math.rsqrt %129 : vector<8x1xf32>
    %131 = vector.broadcast %130 : vector<8x1xf32> to vector<8x128xf32>
    %132 = arith.mulf %122, %131 : vector<8x128xf32>
    %133 = vector.broadcast %111 : vector<1x128xf32> to vector<8x128xf32>
    %134 = arith.mulf %132, %133 : vector<8x128xf32>
    %135 = vector.broadcast %112 : vector<1x128xf32> to vector<8x128xf32>
    %136 = arith.addf %134, %135 : vector<8x128xf32>
    %137 = arith.truncf %136 : vector<8x128xf32> to vector<8x128xbf16>
    %c0_52 = arith.constant 0 : index
    %c0_53 = arith.constant 0 : index
    %138 = vector.load %arg14[%c0_52, %c0_53] : memref<128x128xbf16, #tpu.memory_space<vmem>>, vector<128x128xbf16>
    %cst_54 = arith.constant dense<0.000000e+00> : vector<8x128xf32>
    %139 = tpu.matmul %137, %138, %cst_54 {dimension_numbers = #tpu.dot_dimension_numbers<[1], [0], [0], [1], [0, 0, 1, 1], [], []>} : vector<8x128xbf16>, vector<128x128xbf16>, vector<8x128xf32> -> vector<8x128xf32>
    %c0_55 = arith.constant 0 : index
    %c0_56 = arith.constant 0 : index
    %140 = vector.load %arg15[%c0_55, %c0_56] : memref<1x128xf32, #tpu.memory_space<vmem>>, vector<1x128xf32>
    %141 = vector.broadcast %140 : vector<1x128xf32> to vector<8x128xf32>
    %142 = arith.addf %139, %141 : vector<8x128xf32>
    %cst_57 = arith.constant 0.000000e+00 : f32
    %143 = vector.broadcast %cst_57 : f32 to vector<8x128xf32>
    %144 = arith.maximumf %142, %143 : vector<8x128xf32>
    %145 = arith.truncf %144 : vector<8x128xf32> to vector<8x128xbf16>
    %c0_58 = arith.constant 0 : index
    %c0_59 = arith.constant 0 : index
    %146 = vector.load %arg16[%c0_58, %c0_59] : memref<128x128xbf16, #tpu.memory_space<vmem>>, vector<128x128xbf16>
    %cst_60 = arith.constant dense<0.000000e+00> : vector<8x128xf32>
    %147 = tpu.matmul %145, %146, %cst_60 {dimension_numbers = #tpu.dot_dimension_numbers<[1], [0], [0], [1], [0, 0, 1, 1], [], []>} : vector<8x128xbf16>, vector<128x128xbf16>, vector<8x128xf32> -> vector<8x128xf32>
    %c0_61 = arith.constant 0 : index
    %c0_62 = arith.constant 0 : index
    %148 = vector.load %arg17[%c0_61, %c0_62] : memref<1x128xf32, #tpu.memory_space<vmem>>, vector<1x128xf32>
    %149 = vector.broadcast %148 : vector<1x128xf32> to vector<8x128xf32>
    %150 = arith.addf %147, %149 : vector<8x128xf32>
    %151 = arith.addf %136, %150 : vector<8x128xf32>
    %c0_63 = arith.constant 0 : index
    %c0_64 = arith.constant 0 : index
    %152 = vector.load %arg18[%c0_63, %c0_64] : memref<1x128xf32, #tpu.memory_space<vmem>>, vector<1x128xf32>
    %c0_65 = arith.constant 0 : index
    %c0_66 = arith.constant 0 : index
    %153 = vector.load %arg19[%c0_65, %c0_66] : memref<1x128xf32, #tpu.memory_space<vmem>>, vector<1x128xf32>
    %154 = vector.broadcast %11 : vector<1x128xf32> to vector<8x128xf32>
    %155 = arith.mulf %151, %154 : vector<8x128xf32>
    %cst_67 = arith.constant dense<0.000000e+00> : vector<8xf32>
    %156 = vector.multi_reduction <add>, %155, %cst_67 [1] : vector<8x128xf32> to vector<8xf32>
    %157 = vector.shape_cast %156 : vector<8xf32> to vector<8x1xf32>
    %cst_68 = arith.constant 3.125000e-02 : f32
    %158 = vector.broadcast %cst_68 : f32 to vector<8x1xf32>
    %159 = arith.mulf %157, %158 : vector<8x1xf32>
    %160 = vector.broadcast %159 : vector<8x1xf32> to vector<8x128xf32>
    %161 = arith.subf %155, %160 : vector<8x128xf32>
    %162 = vector.broadcast %11 : vector<1x128xf32> to vector<8x128xf32>
    %163 = arith.mulf %161, %162 : vector<8x128xf32>
    %164 = arith.mulf %163, %163 : vector<8x128xf32>
    %cst_69 = arith.constant dense<0.000000e+00> : vector<8xf32>
    %165 = vector.multi_reduction <add>, %164, %cst_69 [1] : vector<8x128xf32> to vector<8xf32>
    %166 = vector.shape_cast %165 : vector<8xf32> to vector<8x1xf32>
    %cst_70 = arith.constant 3.125000e-02 : f32
    %167 = vector.broadcast %cst_70 : f32 to vector<8x1xf32>
    %168 = arith.mulf %166, %167 : vector<8x1xf32>
    %cst_71 = arith.constant 9.99999974E-6 : f32
    %169 = vector.broadcast %cst_71 : f32 to vector<8x1xf32>
    %170 = arith.addf %168, %169 : vector<8x1xf32>
    %171 = math.rsqrt %170 : vector<8x1xf32>
    %172 = vector.broadcast %171 : vector<8x1xf32> to vector<8x128xf32>
    %173 = arith.mulf %163, %172 : vector<8x128xf32>
    %174 = vector.broadcast %152 : vector<1x128xf32> to vector<8x128xf32>
    %175 = arith.mulf %173, %174 : vector<8x128xf32>
    %176 = vector.broadcast %153 : vector<1x128xf32> to vector<8x128xf32>
    %177 = arith.addf %175, %176 : vector<8x128xf32>
    %178 = vector.shape_cast %177 : vector<8x128xf32> to vector<1x8x128xf32>
    %c0_72 = arith.constant 0 : index
    %c0_73 = arith.constant 0 : index
    %c0_74 = arith.constant 0 : index
    %179 = vector.load %arg20[%c0_72, %c0_73, %c0_74] : memref<1x8x128xf32, #tpu.memory_space<vmem>>, vector<1x8x128xf32>
    tpu.vector_store %arg20[%c0_72, %c0_73, %c0_74], %178 {strides = array<i32>} : memref<1x8x128xf32, #tpu.memory_space<vmem>>, vector<1x8x128xf32>,
    return
  }
  func.func @transform_0(%arg0: i32) -> (i32, i32, i32) {
    %c0_i32 = arith.constant 0 : i32
    %c0_i32_0 = arith.constant 0 : i32
    %c0_i32_1 = arith.constant 0 : i32
    return %arg0, %c0_i32, %c0_i32_0 : i32, i32, i32
  }
  func.func @transform_1(%arg0: i32) -> (i32, i32, i32) {
    %c0_i32 = arith.constant 0 : i32
    %c0_i32_0 = arith.constant 0 : i32
    %c0_i32_1 = arith.constant 0 : i32
    return %arg0, %c0_i32, %c0_i32_0 : i32, i32, i32
  }
  func.func @transform_2(%arg0: i32) -> (i32, i32, i32) {
    %c0_i32 = arith.constant 0 : i32
    %c0_i32_0 = arith.constant 0 : i32
    %c0_i32_1 = arith.constant 0 : i32
    return %arg0, %c0_i32, %c0_i32_0 : i32, i32, i32
  }
  func.func @transform_3(%arg0: i32) -> (i32, i32) {
    %c0_i32 = arith.constant 0 : i32
    %c0_i32_0 = arith.constant 0 : i32
    %c0_i32_1 = arith.constant 0 : i32
    return %c0_i32, %c0_i32_0 : i32, i32
  }
  func.func @transform_4(%arg0: i32) -> (i32, i32) {
    %c0_i32 = arith.constant 0 : i32
    %c0_i32_0 = arith.constant 0 : i32
    %c0_i32_1 = arith.constant 0 : i32
    return %c0_i32, %c0_i32_0 : i32, i32
  }
  func.func @transform_5(%arg0: i32) -> (i32, i32) {
    %c0_i32 = arith.constant 0 : i32
    %c0_i32_0 = arith.constant 0 : i32
    %c0_i32_1 = arith.constant 0 : i32
    return %c0_i32, %c0_i32_0 : i32, i32
  }
  func.func @transform_6(%arg0: i32) -> (i32, i32) {
    %c0_i32 = arith.constant 0 : i32
    %c0_i32_0 = arith.constant 0 : i32
    %c0_i32_1 = arith.constant 0 : i32
    return %c0_i32, %c0_i32_0 : i32, i32
  }
  func.func @transform_7(%arg0: i32) -> (i32, i32) {
    %c0_i32 = arith.constant 0 : i32
    %c0_i32_0 = arith.constant 0 : i32
    %c0_i32_1 = arith.constant 0 : i32
    return %c0_i32, %c0_i32_0 : i32, i32
  }
  func.func @transform_8(%arg0: i32) -> (i32, i32) {
    %c0_i32 = arith.constant 0 : i32
    %c0_i32_0 = arith.constant 0 : i32
    %c0_i32_1 = arith.constant 0 : i32
    return %c0_i32, %c0_i32_0 : i32, i32
  }
  func.func @transform_9(%arg0: i32) -> (i32, i32) {
    %c0_i32 = arith.constant 0 : i32
    %c0_i32_0 = arith.constant 0 : i32
    %c0_i32_1 = arith.constant 0 : i32
    return %c0_i32, %c0_i32_0 : i32, i32
  }
  func.func @transform_10(%arg0: i32) -> (i32, i32) {
    %c0_i32 = arith.constant 0 : i32
    %c0_i32_0 = arith.constant 0 : i32
    %c0_i32_1 = arith.constant 0 : i32
    return %c0_i32, %c0_i32_0 : i32, i32
  }
  func.func @transform_11(%arg0: i32) -> (i32, i32) {
    %c0_i32 = arith.constant 0 : i32
    %c0_i32_0 = arith.constant 0 : i32
    %c0_i32_1 = arith.constant 0 : i32
    return %c0_i32, %c0_i32_0 : i32, i32
  }
  func.func @transform_12(%arg0: i32) -> (i32, i32) {
    %c0_i32 = arith.constant 0 : i32
    %c0_i32_0 = arith.constant 0 : i32
    %c0_i32_1 = arith.constant 0 : i32
    return %c0_i32, %c0_i32_0 : i32, i32
  }
  func.func @transform_13(%arg0: i32) -> (i32, i32) {
    %c0_i32 = arith.constant 0 : i32
    %c0_i32_0 = arith.constant 0 : i32
    %c0_i32_1 = arith.constant 0 : i32
    return %c0_i32, %c0_i32_0 : i32, i32
  }
  func.func @transform_14(%arg0: i32) -> (i32, i32) {
    %c0_i32 = arith.constant 0 : i32
    %c0_i32_0 = arith.constant 0 : i32
    %c0_i32_1 = arith.constant 0 : i32
    return %c0_i32, %c0_i32_0 : i32, i32
  }
  func.func @transform_15(%arg0: i32) -> (i32, i32) {
    %c0_i32 = arith.constant 0 : i32
    %c0_i32_0 = arith.constant 0 : i32
    %c0_i32_1 = arith.constant 0 : i32
    return %c0_i32, %c0_i32_0 : i32, i32
  }
  func.func @transform_16(%arg0: i32) -> (i32, i32) {
    %c0_i32 = arith.constant 0 : i32
    %c0_i32_0 = arith.constant 0 : i32
    %c0_i32_1 = arith.constant 0 : i32
    return %c0_i32, %c0_i32_0 : i32, i32
  }
  func.func @transform_17(%arg0: i32) -> (i32, i32) {
    %c0_i32 = arith.constant 0 : i32
    %c0_i32_0 = arith.constant 0 : i32
    %c0_i32_1 = arith.constant 0 : i32
    return %c0_i32, %c0_i32_0 : i32, i32
  }
  func.func @transform_18(%arg0: i32) -> (i32, i32) {
    %c0_i32 = arith.constant 0 : i32
    %c0_i32_0 = arith.constant 0 : i32
    %c0_i32_1 = arith.constant 0 : i32
    return %c0_i32, %c0_i32_0 : i32, i32
  }
  func.func @transform_19(%arg0: i32) -> (i32, i32, i32) {
    %c0_i32 = arith.constant 0 : i32
    %c0_i32_0 = arith.constant 0 : i32
    %c0_i32_1 = arith.constant 0 : i32
    return %arg0, %c0_i32, %c0_i32_0 : i32, i32, i32
  }
}

</mosaic_0001>

<bundles_post_ra>
// kernel: transformer_encoder_layer.4
= control target key start
LH: loop header
LB: loop body
LE: loop exit
PB: predicated region body
PF: predicated region fallthrough
CT: control target
= control target key end

     0   :  { %s4556_s0 = inlined_call_operand.vmem [shape: f32[2,8,128], index: 0, kind: input, shape index: {}]   ;;  %s4557_s1 = inlined_call_operand.vmem [shape: bf16[2,8,128], index: 1, kind: input, shape index: {}]   ;;  %s4558_s2 = inlined_call_operand.vmem [shape: f32[2,8,128], index: 2, kind: input, shape index: {}]   ;;  %s4559_s3 = inlined_call_operand.vmem [shape: bf16[128,512], index: 3, kind: input, shape index: {}]   ;;  %s4560_s4 = inlined_call_operand.vmem [shape: f32[1,512], index: 4, kind: input, shape index: {}]   ;;  %s4561_s5 = inlined_call_operand.vmem [shape: bf16[128,512], index: 5, kind: input, shape index: {}]   ;;  %s4562_s6 = inlined_call_operand.vmem [shape: f32[1,512], index: 6, kind: input, shape index: {}]   ;;  %s4563_s7 = inlined_call_operand.vmem [shape: bf16[128,512], index: 7, kind: input, shape index: {}]   ;;  %s4564_s8 = inlined_call_operand.vmem [shape: f32[1,512], index: 8, kind: input, shape index: {}]   ;;  %s4565_s9 = inlined_call_operand.vmem [shape: bf16[512,128], index: 9, kind: input, shape index: {}]   ;;  %s4566_s10 = inlined_call_operand.vmem [shape: f32[1,128], index: 10, kind: input, shape index: {}]   ;;  %s4567_s11 = inlined_call_operand.vmem [shape: f32[1,128], index: 11, kind: input, shape index: {}]   ;;  %s4568_s12 = inlined_call_operand.vmem [shape: f32[1,128], index: 12, kind: input, shape index: {}]   ;;  %s4569_s13 = inlined_call_operand.vmem [shape: bf16[128,128], index: 13, kind: input, shape index: {}]   ;;  %s4570_s14 = inlined_call_operand.vmem [shape: f32[1,128], index: 14, kind: input, shape index: {}]   ;;  %s4571_s15 = inlined_call_operand.vmem [shape: bf16[128,128], index: 15, kind: input, shape index: {}]   ;;  %s4572_s16 = inlined_call_operand.hbm [shape: f32[1,128], index: 16, kind: input, shape index: {}]   ;;  %s4573_s17 = inlined_call_operand.hbm [shape: f32[1,128], index: 17, kind: input, shape index: {}]   ;;  %s4574_s18 = inlined_call_operand.hbm [shape: f32[1,128], index: 18, kind: input, shape index: {}]   ;;  %s4575_s19 = inlined_call_operand.vmem [shape: f32[2,8,128], index: 19, kind: output, shape index: {}]  }
   0x1   :  { %4580 = sst [smem:[#allocation10_spill]] %s4556_s0 }
   0x2   :  { %4581 = sst [smem:[#allocation11_spill]] %s4557_s1 }
   0x3   :  { %4582 = sst [smem:[#allocation12_spill]] %s4558_s2 }
   0x4   :  { %4583 = sst [smem:[#allocation13_spill]] %s4559_s3 }
   0x5   :  { %4584 = sst [smem:[#allocation14_spill]] %s4572_s16 }
   0x6   :  { %4585 = sst [smem:[#allocation15_spill]] %s4575_s19 }
   0x7   :  { %24 = vsyncpa [#allocation3], 0 }
   0x8   :  { %25 = vsyncpa [#allocation5], 0  ;;  %s3762_s0 = smov 0  }
   0x9 LB: > { %4586 = sst [smem:[#allocation9_spill]] %s3654_s0  ;;  %s3768_s30 = sadd.s32 4294967295, %s3654_s0   ;;  %s3654_s0 = sphi %s3762_s0, %s31_s0  }
   0xa   : > { %p2878_p0 = scmp.ge.s32.totalorder %s3654_s0, 1  ;;  %p476_p1 = scmp.lt.s32.totalorder %s3654_s0, 3 }
   0xb   : > { %p4577_p2 = scmp.eq.s32.totalorder %s3768_s30, 0  ;;  %s3656_s21 = smov [#allocation4]  }
   0xc   : > { %p3773_p3 = pnand %p2878_p0, %p476_p1  ;;  %s539_s1 = sshll.u32 %s3656_s21, 4  ;;  %s540_s1 = int_to_ptr.vmem [resolvable:$true] %s539_s1 }
   0xd   : > { %s3657_s22 = smov [#allocation2]   ;;  %s3658_s23 = smov [#allocation6]  }
   0xe   : > { %s4587_s20 = scalar_select %p3773_p3, 1, 0 }
   0xf   : > { %p3312_p4 = pneg %p3773_p3  ;;  %s528_s2 = sshll.u32 %s3657_s22, 4  ;;  %s3785_s2 = int_to_ptr.vmem [resolvable:$true] %s528_s2 }
  0x10   : > { %s550_s24 = sshll.u32 %s3658_s23, 4  ;;  %s3556_s27 = scalar_lea.hbm %s4573_s17, 16  ;;  %s3787_s24 = int_to_ptr.vmem [resolvable:$true] %s550_s24 }
  0x11   : > { %p3781_p5 = pnand %p4577_p2, %p3312_p4  ;;  %p3557_p6 = scmp.ne.s32.totalorder %s4573_s17, %s3556_s27 }
  0x12   : > { %p3563_p10 = scmp.lt.u32.totalorder %s3556_s27, %s4573_s17 }
  0x13   : > { %p3797_p7 = pneg %p3781_p5 }
  0x15   : > { %p3559_p8 = pnand %p3797_p7, %p3557_p6 }
  0x17   : > { %p3560_p9 = pneg %p3559_p8 }
  0x19   : > { %p3565_p11 = pnand %p3563_p10, %p3560_p9 }
  0x1b   : > { %3568 = shalt.err (!%p3565_p11)
}
  0x1c   : > { %s3569_s3 = scalar_lea.vmem %s540_s1, 16  ;;  %s3576_s26 = scalar_lea.vmem %s540_s1, 32 }
  0x1d   : > { %p3570_p12 = scmp.ne.s32.totalorder %s540_s1, %s3569_s3  ;;  %p3577_p1 = scmp.lt.s32.totalorder %s540_s1, %s540_s1 }
  0x1e   : > { %p3578_p4 = scmp.lt.s32.totalorder %s3576_s26, %s3569_s3 }
  0x1f   : > { %p3572_p13 = pnand %p3570_p12, %p3797_p7 }
  0x20   : > { %p3579_p2 = por %p3578_p4, %p3577_p1 }
  0x21   : > { %p3573_p0 = pneg %p3572_p13 }
  0x23   : > { %p3580_p3 = pnand %p3579_p2, %p3573_p0 }
  0x25   : > { %3583 = shalt.err (!%p3580_p3)
}
  0x26   : > { %3318 = dma.hbm_to_vmem [thread:$0]  (!%p3781_p5), %s4573_s17, 16, %s540_s1, [#allocation5]  }
  0x27   : > { %s4590_s16 = sld [smem:[#allocation14_spill]] }
  0x2d   : > { %s3584_s23 = scalar_lea.hbm %s4590_s16, 16 }
  0x2e   : > { %p3585_p6 = scmp.ne.s32.totalorder %s4590_s16, %s3584_s23  ;;  %p3591_p2 = scmp.lt.u32.totalorder %s3584_s23, %s4590_s16 }
  0x30   : > { %p3587_p8 = pnand %p3585_p6, %p3797_p7 }
  0x32   : > { %p3588_p9 = pneg %p3587_p8 }
  0x34   : > { %p3593_p3 = pnand %p3591_p2, %p3588_p9 }
  0x36   : > { %3596 = shalt.err (!%p3593_p3)
}
  0x37   : > { %s3597_s1 = scalar_lea.vmem %s3785_s2, 16  ;;  %s3604_s19 = scalar_lea.vmem %s3785_s2, 32 }
  0x38   : > { %p3598_p10 = scmp.ne.s32.totalorder %s3785_s2, %s3597_s1  ;;  %p3605_p13 = scmp.lt.s32.totalorder %s3785_s2, %s3785_s2 }
  0x39   : > { %p3606_p0 = scmp.lt.s32.totalorder %s3604_s19, %s3597_s1 }
  0x3a   : > { %p3600_p11 = pnand %p3598_p10, %p3797_p7 }
  0x3b   : > { %p3607_p1 = por %p3606_p0, %p3605_p13 }
  0x3c   : > { %p3601_p12 = pneg %p3600_p11 }
  0x3e   : > { %p3608_p4 = pnand %p3607_p1, %p3601_p12 }
  0x40   : > { %3611 = shalt.err (!%p3608_p4)
}
  0x41   : > { %3315 = dma.hbm_to_vmem [thread:$0]  (!%p3781_p5), %s4590_s16, 16, %s3785_s2, [#allocation3]  }
  0x42   : > { %s3612_s22 = scalar_lea.hbm %s4574_s18, 16 }
  0x43   : > { %p3613_p6 = scmp.ne.s32.totalorder %s4574_s18, %s3612_s22  ;;  %p3619_p2 = scmp.lt.u32.totalorder %s3612_s22, %s4574_s18 }
  0x45   : > { %p3615_p8 = pnand %p3613_p6, %p3797_p7 }
  0x47   : > { %p3616_p9 = pneg %p3615_p8 }
  0x49   : > { %p3621_p3 = pnand %p3619_p2, %p3616_p9 }
  0x4b   : > { %3624 = shalt.err (!%p3621_p3)
}
  0x4c   : > { %s3625_s2 = scalar_lea.vmem %s3787_s24, 16  ;;  %s3632_s19 = scalar_lea.vmem %s3787_s24, 32 }
  0x4d   : > { %p3626_p10 = scmp.ne.s32.totalorder %s3787_s24, %s3625_s2  ;;  %p3633_p13 = scmp.lt.s32.totalorder %s3787_s24, %s3787_s24 }
  0x4e   : > { %p3634_p0 = scmp.lt.s32.totalorder %s3632_s19, %s3625_s2 }
  0x4f   : > { %p3628_p11 = pnand %p3626_p10, %p3797_p7 }
  0x50   : > { %p3635_p1 = por %p3634_p0, %p3633_p13 }
  0x51   : > { %p3629_p12 = pneg %p3628_p11 }
  0x53   : > { %p3636_p4 = pnand %p3635_p1, %p3629_p12 }
  0x55   : > { %3639 = shalt.err (!%p3636_p4)
}
  0x56   : > { %3321 = dma.hbm_to_vmem [thread:$0]  (!%p3781_p5), %s4574_s18, 16, %s3787_s24, [#allocation5]  }
  0x57   : > { %p4591_p6 = scmp.ne.s32.totalorder %s4587_s20, 0 }
  0x58   : > { %p4592_p7 = scmp.eq.s32.totalorder (!%p4591_p6), %s3768_s30, 0 }
  0x59   : > { %584 = sbr.rel (%p4591_p6) target bundleno = 4394 (0x112a), region = 96 }
  0x60   : > { %3645 = dma.done.wait (%p4592_p7), [#allocation3], 16   ;;  %p4593_p8 = pmov %p4592_p7 }
  0x61   : > { %p4594_p9 = pmov %p4592_p7 }
  0x62   : > { %3647 = vsyncadd (%p4593_p8), [#allocation3], 4294967280 }
  0x63   : > { %3649 = dma.done.wait (%p4594_p9), [#allocation5], 32   ;;  %p4595_p2 = pmov %p4592_p7 }
  0x64   : > { %v3659_v0 = vmov 0   ;;  %s4596_s25 = sld [smem:[#allocation13_spill]]  ;;  %p654_p5 = scmp.lt.s32.totalorder %s3768_s30, 1  ;;  %v3368_v20 = vld [vmem:[%s4561_s5 + $0x4] ss:$16 sps:$4 sm:$0xff]   ;;  %v675_v59 = vlaneseq  ;;  %vm3661_vm0 = vmmov 0  }
  0x65   : > { %3651 = vsyncadd (%p4595_p2), [#allocation5], 4294967264  ;;  %930 = vmatprep.mubr.bf16.mxu0 %v3659_v0  ;;  %971 = vmatprep.mubr.bf16.mxu1 %v3659_v0  ;;  %s4597_s28 = sld [smem:[#allocation10_spill]]  ;;  %s4598_s29 = sld [smem:[#allocation12_spill]]  ;;  %v3366_v21 = vld [vmem:[%s4561_s5] ss:$16 sps:$4 sm:$0xff]  }
  0x66   : > { %s4603_s30 = smov (!%p654_p5, %s3768_s30), 1  ;;  %v3371_v23 = vld [vmem:[%s4561_s5 + $0x24] ss:$16 sps:$4 sm:$0xff]   ;;  %v3369_v24 = vld [vmem:[%s4561_s5 + $0x20] ss:$16 sps:$4 sm:$0xff]   ;;  %s4599_s2 = sld [smem:[#allocation11_spill]] }
  0x67   : > { %s3911_s26 = sshll.u32 %s4603_s30, 3  ;;  %v3374_v25 = vld [vmem:[%s4561_s5 + $0x44] ss:$16 sps:$4 sm:$0xff]   ;;  %v3372_v26 = vld [vmem:[%s4561_s5 + $0x40] ss:$16 sps:$4 sm:$0xff]   ;;  %v4049_v60 = vshrl.u32 %v675_v59, 7 }
  0x68   : > { %v3377_v27 = vld [vmem:[%s4561_s5 + $0x64] ss:$16 sps:$4 sm:$0xff]   ;;  %v3375_v28 = vld [vmem:[%s4561_s5 + $0x60] ss:$16 sps:$4 sm:$0xff]   ;;  %vm1794_vm1 = vcmask 1043456   ;;  %vm1778_vm2 = vcmask 64512  }
  0x69   : > { %v3380_v29 = vld [vmem:[%s4561_s5 + $0x84] ss:$16 sps:$4 sm:$0xff]   ;;  %v3378_v30 = vld [vmem:[%s4561_s5 + $0x80] ss:$16 sps:$4 sm:$0xff]   ;;  %v4057_v62 = vsub.s32 0, %v4049_v60  ;;  %s4600_s1 = sld [smem:[#allocation15_spill]] }
  0x6a   : > { %v3342_v1 = vld [vmem:[%s4596_s25 + $0x4] ss:$16 sps:$4 sm:$0xff]   ;;  %v3344_v2 = vld [vmem:[%s4596_s25] ss:$16 sps:$4 sm:$0xff]  }
  0x6b   : > { %898 = vmatprep.subr.bf16.mxu0 %v3342_v1  ;;  %v3345_v3 = vld [vmem:[%s4596_s25 + $0x24] ss:$16 sps:$4 sm:$0xff]   ;;  %v3347_v4 = vld [vmem:[%s4596_s25 + $0x20] ss:$16 sps:$4 sm:$0xff]   ;;  %s3920_s20 = scalar_lea.vmem %s4597_s28, %s3911_s26  ;;  %s665_s27 = scalar_lea.vmem %s4598_s29, %s3911_s26 }
  0x6c   : > { %899 = vmatpush1.bf16.msra.mxu0 %v3344_v2  ;;  %v3348_v5 = vld [vmem:[%s4596_s25 + $0x44] ss:$16 sps:$4 sm:$0xff]   ;;  %v3350_v6 = vld [vmem:[%s4596_s25 + $0x40] ss:$16 sps:$4 sm:$0xff]  }
  0x6d   : > { %900 = vmatprep.subr.bf16.mxu0 %v3345_v3  ;;  %v3351_v7 = vld [vmem:[%s4596_s25 + $0x64] ss:$16 sps:$4 sm:$0xff]   ;;  %v3353_v8 = vld [vmem:[%s4596_s25 + $0x60] ss:$16 sps:$4 sm:$0xff]  }
  0x6e   : > { %v3354_v9 = vld [vmem:[%s4596_s25 + $0x84] ss:$16 sps:$4 sm:$0xff]   ;;  %v3356_v10 = vld [vmem:[%s4596_s25 + $0x80] ss:$16 sps:$4 sm:$0xff]  }
  0x6f   : > { %v3357_v11 = vld [vmem:[%s4596_s25 + $0xa4] ss:$16 sps:$4 sm:$0xff]   ;;  %v3359_v12 = vld [vmem:[%s4596_s25 + $0xa0] ss:$16 sps:$4 sm:$0xff]  }
  0x70   : > { %901 = vmatpush1.bf16.msra.mxu0 %v3347_v4  ;;  %v3360_v13 = vld [vmem:[%s4596_s25 + $0xc4] ss:$16 sps:$4 sm:$0xff]   ;;  %v3362_v14 = vld [vmem:[%s4596_s25 + $0xc0] ss:$16 sps:$4 sm:$0xff]  }
  0x71   : > { %902 = vmatprep.subr.bf16.mxu0 %v3348_v5  ;;  %v3363_v15 = vld [vmem:[%s4596_s25 + $0xe4] ss:$16 sps:$4 sm:$0xff]   ;;  %v3365_v18 = vld [vmem:[%s4596_s25 + $0xe0] ss:$16 sps:$4 sm:$0xff]  }
  0x72   : > { %v671_v16 = vld [vmem:[%s3920_s20] sm:$0xff] }
  0x73   : > { %v674_v17 = vld [vmem:[%s665_s27] sm:$0xff]  ;;  %s2888_s27 = sshll.u32 %s4603_s30, 2 }
  0x74   : > { %903 = vmatpush1.bf16.msra.mxu0 %v3350_v6  ;;  %v680_v19 = vadd.f32 %v674_v17, %v671_v16  ;;  %s661_s19 = scalar_lea.vmem %s4599_s2, %s2888_s27  ;;  %v3383_v31 = vld [vmem:[%s4561_s5 + $0xa4] ss:$16 sps:$4 sm:$0xff]   ;;  %v3381_v33 = vld [vmem:[%s4561_s5 + $0xa0] ss:$16 sps:$4 sm:$0xff]   ;;  %v3424_v16 = vld [vmem:[%s4596_s25 + $0x6c] ss:$16 sps:$4 sm:$0xff]   ;;  %s669_s2 = scalar_lea.vmem %s4600_s1, %s3911_s26 }
  0x75   : > { %904 = vmatprep.subr.bf16.mxu0 %v3351_v7  ;;  %v3980_v32 = vld [vmem:[%s661_s19] sm:$0xf]  ;;  %v3386_v34 = vld [vmem:[%s4561_s5 + $0xc4] ss:$16 sps:$4 sm:$0xff]  }
  0x76   : > { %v3945_v22 = vpack.c.bf16 %v680_v19, %v680_v19  ;;  %v3384_v35 = vld [vmem:[%s4561_s5 + $0xc0] ss:$16 sps:$4 sm:$0xff]   ;;  %v673_v36 = vunpack.c.l.bf16 %v3980_v32  ;;  %v3389_v37 = vld [vmem:[%s4561_s5 + $0xe4] ss:$16 sps:$4 sm:$0xff]   ;;  %v3429_v19 = vld [vmem:[%s4596_s25 + $0x88] ss:$16 sps:$4 sm:$0xff]  }
  0x77   : > { %v3387_v38 = vld [vmem:[%s4561_s5 + $0xe0] ss:$16 sps:$4 sm:$0xff]   ;;  %v3392_v42 = vld [vmem:[%s4563_s7 + $0x4] ss:$16 sps:$4 sm:$0xff]  }
  0x78   : > { %905 = vmatpush1.bf16.msra.mxu0 %v3353_v8  ;;  %v682_v39 = vadd.f32 %v674_v17, %v673_v36  ;;  %v3390_v41 = vld [vmem:[%s4563_s7] ss:$16 sps:$4 sm:$0xff]   ;;  %v3395_v43 = vld [vmem:[%s4563_s7 + $0x24] ss:$16 sps:$4 sm:$0xff]   ;;  %v4071_v8 = vcombine.low %v3980_v32, %v3980_v32  ;;  %v3426_v17 = vld [vmem:[%s4596_s25 + $0x68] ss:$16 sps:$4 sm:$0xff]  }
  0x79   : > { %906 = vmatprep.subr.bf16.mxu0 %v3354_v9  ;;  %v3393_v44 = vld [vmem:[%s4563_s7 + $0x20] ss:$16 sps:$4 sm:$0xff]   ;;  %v3398_v45 = vld [vmem:[%s4563_s7 + $0x44] ss:$16 sps:$4 sm:$0xff]   ;;  %v3660_v9 = vmov 0.0  }
  0x7a   : > { %v3998_v40 = vpack.c.bf16 %v682_v39, %v682_v39  ;;  %v3396_v46 = vld [vmem:[%s4563_s7 + $0x40] ss:$16 sps:$4 sm:$0xff]   ;;  %v3401_v47 = vld [vmem:[%s4563_s7 + $0x64] ss:$16 sps:$4 sm:$0xff]   ;;  %v3445_v32 = vld [vmem:[%s4561_s5 + $0x48] ss:$16 sps:$4 sm:$0xff]  }
  0x7b   : > { %v3399_v48 = vld [vmem:[%s4563_s7 + $0x60] ss:$16 sps:$4 sm:$0xff]   ;;  %v3404_v49 = vld [vmem:[%s4563_s7 + $0x84] ss:$16 sps:$4 sm:$0xff]   ;;  %v3456_v36 = vld [vmem:[%s4561_s5 + $0xac] ss:$16 sps:$4 sm:$0xff]  }
  0x7c   : > { %907 = vmatpush1.bf16.msra.mxu0 %v3356_v10  ;;  %v3402_v50 = vld [vmem:[%s4563_s7 + $0x80] ss:$16 sps:$4 sm:$0xff]   ;;  %v3407_v51 = vld [vmem:[%s4563_s7 + $0xa4] ss:$16 sps:$4 sm:$0xff]   ;;  %v3415_v10 = vld [vmem:[%s4596_s25 + $0xc] ss:$16 sps:$4 sm:$0xff]  }
  0x7d   : > { %908 = vmatprep.subr.bf16.mxu0 %v3357_v11  ;;  %v3405_v52 = vld [vmem:[%s4563_s7 + $0xa0] ss:$16 sps:$4 sm:$0xff]   ;;  %v3410_v53 = vld [vmem:[%s4563_s7 + $0xc4] ss:$16 sps:$4 sm:$0xff]   ;;  %v3417_v11 = vld [vmem:[%s4596_s25 + $0x8] ss:$16 sps:$4 sm:$0xff]   ;;  %939 = vmatprep.subr.bf16.mxu1 %v3415_v10 }
  0x7e   : > { %v3408_v54 = vld [vmem:[%s4563_s7 + $0xc0] ss:$16 sps:$4 sm:$0xff]   ;;  %v3413_v7 = vld [vmem:[%s4563_s7 + $0xe4] ss:$16 sps:$4 sm:$0xff]   ;;  %940 = vmatpush1.bf16.msra.mxu1 %v3417_v11  ;;  %v3457_v39 = vld [vmem:[%s4561_s5 + $0xc8] ss:$16 sps:$4 sm:$0xff]  }
  0x7f   : > { %v4054_v61 = vld [vmem:[%s4562_s6] sm:$0xf]  ;;  %v3481_v10 = vld [vmem:[%s4563_s7 + $0xc8] ss:$16 sps:$4 sm:$0xff]   ;;  %v3486_v11 = vld [vmem:[%s4563_s7 + $0xec] ss:$16 sps:$4 sm:$0xff]  }
  0x80   : > { %909 = vmatpush1.bf16.msra.mxu0 %v3359_v12  ;;  %v1017_v63 = vrot.slane %v4054_v61, %v4057_v62  ;;  %v3411_v6 = vld [vmem:[%s4563_s7 + $0xe0] ss:$16 sps:$4 sm:$0xff]   ;;  %v3418_v12 = vld [vmem:[%s4596_s25 + $0x2c] ss:$16 sps:$4 sm:$0xff]  }
  0x81   : > { %910 = vmatprep.subr.bf16.mxu0 %v3360_v13  ;;  %v3420_v13 = vld [vmem:[%s4596_s25 + $0x28] ss:$16 sps:$4 sm:$0xff]   ;;  %941 = vmatprep.subr.bf16.mxu1 %v3418_v12 }
  0x82   : > { %942 = vmatpush1.bf16.msra.mxu1 %v3420_v13 }
  0x84   : > { %911 = vmatpush1.bf16.msra.mxu0 %v3362_v14  ;;  %v3421_v14 = vld [vmem:[%s4596_s25 + $0x4c] ss:$16 sps:$4 sm:$0xff]  }
  0x85   : > { %912 = vmatprep.subr.bf16.mxu0 %v3363_v15  ;;  %v3423_v15 = vld [vmem:[%s4596_s25 + $0x48] ss:$16 sps:$4 sm:$0xff]   ;;  %943 = vmatprep.subr.bf16.mxu1 %v3421_v14 }
  0x86   : > { %944 = vmatpush1.bf16.msra.mxu1 %v3423_v15  ;;  %v3484_v14 = vld [vmem:[%s4563_s7 + $0xe8] ss:$16 sps:$4 sm:$0xff]  }
  0x87   : > { %945 = vmatprep.subr.bf16.mxu1 %v3424_v16 }
  0x88   : > { %913 = vmatpush1.bf16.msra.mxu0 %v3365_v18  ;;  %v3427_v18 = vld [vmem:[%s4596_s25 + $0x8c] ss:$16 sps:$4 sm:$0xff]  }
  0x89   : > { %1194 = vmatprep.subr.bf16.mxu0 %v3368_v20  ;;  %v3430_v20 = vld [vmem:[%s4596_s25 + $0xac] ss:$16 sps:$4 sm:$0xff]  }
  0x8a   : > { %946 = vmatpush1.bf16.msra.mxu1 %v3426_v17 }
  0x8b   : > { %931 = vmatmul.mubr.bf16.vlgmr.msra.gmra.mrb[0].mxu0 %v3945_v22  ;;  %947 = vmatprep.subr.bf16.mxu1 %v3427_v18 }
  0x8c   : > { %1195 = vmatpush1.bf16.msra.mxu0 %v3366_v21  ;;  %1226 = vmatprep.mubr.bf16.mxu0 %v3659_v0  ;;  %v3432_v21 = vld [vmem:[%s4596_s25 + $0xa8] ss:$16 sps:$4 sm:$0xff]  }
  0x8d   : > { %1196 = vmatprep.subr.bf16.mxu0 %v3371_v23  ;;  %v3433_v23 = vld [vmem:[%s4596_s25 + $0xcc] ss:$16 sps:$4 sm:$0xff]  }
  0x8e   : > { %948 = vmatpush1.bf16.msra.mxu1 %v3429_v19 }
  0x8f   : > { %949 = vmatprep.subr.bf16.mxu1 %v3430_v20 }
  0x90   : > { %1197 = vmatpush1.bf16.msra.mxu0 %v3369_v24  ;;  %v3435_v24 = vld [vmem:[%s4596_s25 + $0xc8] ss:$16 sps:$4 sm:$0xff]  }
  0x91   : > { %1198 = vmatprep.subr.bf16.mxu0 %v3374_v25  ;;  %v3436_v25 = vld [vmem:[%s4596_s25 + $0xec] ss:$16 sps:$4 sm:$0xff]  }
  0x92   : > { %950 = vmatpush1.bf16.msra.mxu1 %v3432_v21 }
  0x93   : > { %951 = vmatprep.subr.bf16.mxu1 %v3433_v23 }
  0x94   : > { %1199 = vmatpush1.bf16.msra.mxu0 %v3372_v26  ;;  %v3438_v26 = vld [vmem:[%s4596_s25 + $0xe8] ss:$16 sps:$4 sm:$0xff]  }
  0x95   : > { %1200 = vmatprep.subr.bf16.mxu0 %v3377_v27  ;;  %v3441_v27 = vld [vmem:[%s4561_s5 + $0xc] ss:$16 sps:$4 sm:$0xff]  }
  0x96   : > { %952 = vmatpush1.bf16.msra.mxu1 %v3435_v24  ;;  %v4238_v24 = vld [vmem:[%s4560_s4] sm:$0xf] }
  0x97   : > { %953 = vmatprep.subr.bf16.mxu1 %v3436_v25  ;;  %v721_v25 = vrot.slane %v4238_v24, %v4057_v62 }
  0x98   : > { %1201 = vmatpush1.bf16.msra.mxu0 %v3375_v28  ;;  %v3439_v28 = vld [vmem:[%s4561_s5 + $0x8] ss:$16 sps:$4 sm:$0xff]  }
  0x99   : > { %1202 = vmatprep.subr.bf16.mxu0 %v3380_v29  ;;  %v3444_v29 = vld [vmem:[%s4561_s5 + $0x2c] ss:$16 sps:$4 sm:$0xff]  }
  0x9a   : > { %954 = vmatpush1.bf16.msra.mxu1 %v3438_v26 }
  0x9b   : > { %1235 = vmatprep.subr.bf16.mxu1 %v3441_v27 }
  0x9c   : > { %1203 = vmatpush1.bf16.msra.mxu0 %v3378_v30  ;;  %v3442_v30 = vld [vmem:[%s4561_s5 + $0x28] ss:$16 sps:$4 sm:$0xff]  }
  0x9d   : > { %1204 = vmatprep.subr.bf16.mxu0 %v3383_v31  ;;  %972 = vmatmul.mubr.bf16.vlgmr.msra.gmra.mrb[0].mxu1 %v3945_v22  ;;  %v3447_v31 = vld [vmem:[%s4561_s5 + $0x4c] ss:$16 sps:$4 sm:$0xff]  }
  0x9e   : > { %1236 = vmatpush1.bf16.msra.mxu1 %v3439_v28  ;;  %1267 = vmatprep.mubr.bf16.mxu1 %v3659_v0  ;;  %v3450_v22 = vld [vmem:[%s4561_s5 + $0x6c] ss:$16 sps:$4 sm:$0xff]  }
  0x9f   : > { %1237 = vmatprep.subr.bf16.mxu1 %v3444_v29 }
  0xa0   : > { %1205 = vmatpush1.bf16.msra.mxu0 %v3381_v33  ;;  %v3448_v33 = vld [vmem:[%s4561_s5 + $0x68] ss:$16 sps:$4 sm:$0xff]  }
  0xa1   : > { %1206 = vmatprep.subr.bf16.mxu0 %v3386_v34  ;;  %v3453_v34 = vld [vmem:[%s4561_s5 + $0x8c] ss:$16 sps:$4 sm:$0xff]  }
  0xa2   : > { %1238 = vmatpush1.bf16.msra.mxu1 %v3442_v30 }
  0xa3   : > { %1239 = vmatprep.subr.bf16.mxu1 %v3447_v31  ;;  %v4250_v31 = vld [vmem:[%s4564_s8] sm:$0xf] }
  0xa4   : > { %1207 = vmatpush1.bf16.msra.mxu0 %v3384_v35  ;;  %v3451_v35 = vld [vmem:[%s4561_s5 + $0x88] ss:$16 sps:$4 sm:$0xff]  }
  0xa5   : > { %1208 = vmatprep.subr.bf16.mxu0 %v3389_v37  ;;  %v3454_v37 = vld [vmem:[%s4561_s5 + $0xa8] ss:$16 sps:$4 sm:$0xff]  }
  0xa6   : > { %1240 = vmatpush1.bf16.msra.mxu1 %v3445_v32  ;;  %v4253_v32 = vsub.s32 1, %v4049_v60 }
  0xa7   : > { %1241 = vmatprep.subr.bf16.mxu1 %v3450_v22 }
  0xa8   : > { %1209 = vmatpush1.bf16.msra.mxu0 %v3387_v38  ;;  %v3459_v38 = vld [vmem:[%s4561_s5 + $0xcc] ss:$16 sps:$4 sm:$0xff]   ;;  %v1318_v22 = vrot.slane %v4250_v31, %v4253_v32 }
  0xa9   : > { %1491 = vmatprep.subr.bf16.mxu0 %v3392_v42  ;;  %v3460_v42 = vld [vmem:[%s4561_s5 + $0xe8] ss:$16 sps:$4 sm:$0xff]  }
  0xaa   : > { %1242 = vmatpush1.bf16.msra.mxu1 %v3448_v33 }
  0xab   : > { %1227 = vmatmul.mubr.bf16.vlgmr.msra.gmra.mrb[4].mxu0 %v3998_v40  ;;  %1243 = vmatprep.subr.bf16.mxu1 %v3453_v34 }
  0xac   : > { %1523 = vmatprep.mubr.bf16.mxu0 %v3659_v0  ;;  %1492 = vmatpush1.bf16.msra.mxu0 %v3390_v41  ;;  %v3462_v41 = vld [vmem:[%s4561_s5 + $0xec] ss:$16 sps:$4 sm:$0xff]  }
  0xad   : > { %1493 = vmatprep.subr.bf16.mxu0 %v3395_v43  ;;  %v3465_v43 = vld [vmem:[%s4563_s7 + $0xc] ss:$16 sps:$4 sm:$0xff]  }
  0xae   : > { %1244 = vmatpush1.bf16.msra.mxu1 %v3451_v35 }
  0xaf   : > { %1245 = vmatprep.subr.bf16.mxu1 %v3456_v36 }
  0xb0   : > { %1494 = vmatpush1.bf16.msra.mxu0 %v3393_v44 }
  0xb1   : > { %1495 = vmatprep.subr.bf16.mxu0 %v3398_v45  ;;  %v3463_v45 = vld [vmem:[%s4563_s7 + $0x8] ss:$16 sps:$4 sm:$0xff]  }
  0xb2   : > { %1246 = vmatpush1.bf16.msra.mxu1 %v3454_v37 }
  0xb3   : > { %1247 = vmatprep.subr.bf16.mxu1 %v3459_v38 }
  0xb4   : > { %1496 = vmatpush1.bf16.msra.mxu0 %v3396_v46  ;;  %v3468_v46 = vld [vmem:[%s4563_s7 + $0x2c] ss:$16 sps:$4 sm:$0xff]  }
  0xb5   : > { %1497 = vmatprep.subr.bf16.mxu0 %v3401_v47 }
  0xb6   : > { %1248 = vmatpush1.bf16.msra.mxu1 %v3457_v39 }
  0xb7   : > { %1249 = vmatprep.subr.bf16.mxu1 %v3462_v41 }
  0xb8   : > { %1498 = vmatpush1.bf16.msra.mxu0 %v3399_v48 }
  0xb9   : > { %1499 = vmatprep.subr.bf16.mxu0 %v3404_v49  ;;  %v3466_v49 = vld [vmem:[%s4563_s7 + $0x28] ss:$16 sps:$4 sm:$0xff]  }
  0xba   : > { %1250 = vmatpush1.bf16.msra.mxu1 %v3460_v42 }
  0xbb   : > { %1532 = vmatprep.subr.bf16.mxu1 %v3465_v43 }
  0xbc   : > { %1500 = vmatpush1.bf16.msra.mxu0 %v3402_v50  ;;  %v3471_v50 = vld [vmem:[%s4563_s7 + $0x4c] ss:$16 sps:$4 sm:$0xff]  }
  0xbd   : > { %1501 = vmatprep.subr.bf16.mxu0 %v3407_v51  ;;  %1268 = vmatmul.mubr.bf16.vlgmr.msra.gmra.mrb[4].mxu1 %v3998_v40  ;;  %v3469_v40 = vld [vmem:[%s4563_s7 + $0x48] ss:$16 sps:$4 sm:$0xff]  }
  0xbe   : > { %1533 = vmatpush1.bf16.msra.mxu1 %v3463_v45  ;;  %1564 = vmatprep.mubr.bf16.mxu1 %v3659_v0 }
  0xbf   : > { %1534 = vmatprep.subr.bf16.mxu1 %v3468_v46 }
  0xc0   : > { %1502 = vmatpush1.bf16.msra.mxu0 %v3405_v52  ;;  %v3474_v52 = vld [vmem:[%s4563_s7 + $0x6c] ss:$16 sps:$4 sm:$0xff]  }
  0xc1   : > { %1503 = vmatprep.subr.bf16.mxu0 %v3410_v53 }
  0xc2   : > { %1535 = vmatpush1.bf16.msra.mxu1 %v3466_v49 }
  0xc3   : > { %1536 = vmatprep.subr.bf16.mxu1 %v3471_v50 }
  0xc4   : > { %1504 = vmatpush1.bf16.msra.mxu0 %v3408_v54  ;;  %v3472_v54 = vld [vmem:[%s4563_s7 + $0x68] ss:$16 sps:$4 sm:$0xff]  }
  0xc5   : > { %1505 = vmatprep.subr.bf16.mxu0 %v3413_v7 }
  0xc6   : > { %1537 = vmatpush1.bf16.msra.mxu1 %v3469_v40 }
  0xc7   : > { %1538 = vmatprep.subr.bf16.mxu1 %v3474_v52  ;;  %v1021_v52 = vrot.slane %v4054_v61, %v4253_v32 }
  0xc8   : > { %1506 = vmatpush1.bf16.msra.mxu0 %v3411_v6  ;;  %v3483_v6 = vld [vmem:[%s4563_s7 + $0xcc] ss:$16 sps:$4 sm:$0xff]  }
  0xc9   : > { %3156 = vmatprep.subr.bf16.mxu0 %v3660_v9 }
  0xca   : > { %1539 = vmatpush1.bf16.msra.mxu1 %v3472_v54 }
  0xcb   : > { %1524 = vmatmul.mubr.bf16.vlgmr.msra.gmra.mrb[8].mxu0 %v4071_v8 }
  0xcc   : > { %3172 = vmatprep.mubr.msk.bf16.mxu0 %vm3661_vm0, %v3660_v9 }
 0x15e   : > { %v4044_v55 = vpop.f32.mrb[0].mxu0 }
 0x15f   : > { %v4046_v56 = vpop.f32.mrb[1].mxu0  ;;  %v933_v27 = vadd.f32 %v4044_v55, %v721_v25  ;;  %v1314_v55 = vrot.slane %v4250_v31, %v4057_v62 }
 0x160   : > { %v936_v57 = vpop.f32.mrb[2].mxu0 }
 0x161   : > { %v937_v58 = vpop.f32.mrb[3].mxu0  ;;  %v3477_v57 = vld [vmem:[%s4563_s7 + $0x8c] ss:$16 sps:$4 sm:$0xff]   ;;  %v1737_v30 = vpack.c.bf16 %v933_v27, %v933_v27 }
 0x162   : > { %1540 = vmatprep.subr.bf16.mxu1 %v3477_v57  ;;  %v4272_v57 = vsub.s32 3, %v4049_v60 }
 0x170   : > { %v973_v54 = vpop.f32.mrb[0].mxu1 }
 0x17e   : > { %v1228_v1 = vpop.f32.mrb[4].mxu0 }
 0x17f   : > { %v4061_v2 = vpop.f32.mrb[5].mxu0  ;;  %v1229_v3 = vadd.f32 %v1228_v1, %v1017_v63  ;;  %v3475_v63 = vld [vmem:[%s4563_s7 + $0x88] ss:$16 sps:$4 sm:$0xff]   ;;  %v3480_v1 = vld [vmem:[%s4563_s7 + $0xac] ss:$16 sps:$4 sm:$0xff]  }
 0x180   : > { %v1232_v4 = vpop.f32.mrb[6].mxu0  ;;  %1541 = vmatpush1.bf16.msra.mxu1 %v3475_v63 }
 0x181   : > { %v1233_v5 = vpop.f32.mrb[7].mxu0  ;;  %1577 = vxpose.xlu0.b32.start.end [1/1] (short) %v1229_v3, 128  ;;  %1542 = vmatprep.subr.bf16.mxu1 %v3480_v1  ;;  %v733_v1 = vrot.slane %v4238_v24, %v4272_v57 }
 0x182   : > { %v3478_v5 = vld [vmem:[%s4563_s7 + $0xa8] ss:$16 sps:$4 sm:$0xff]  }
 0x184   : > { %1543 = vmatpush1.bf16.msra.mxu1 %v3478_v5 }
 0x185   : > { %1544 = vmatprep.subr.bf16.mxu1 %v3483_v6 }
 0x188   : > { %1545 = vmatpush1.bf16.msra.mxu1 %v3481_v10 }
 0x189   : > { %1546 = vmatprep.subr.bf16.mxu1 %v3486_v11 }
 0x18c   : > { %1547 = vmatpush1.bf16.msra.mxu1 %v3484_v14 }
 0x18d   : > { %3176 = vmatprep.subr.bf16.mxu1 %v3660_v9 }
 0x18f   : > { %1565 = vmatmul.mubr.bf16.vlgmr.msra.gmra.mrb[8].mxu1 %v4071_v8 }
 0x190   : > { %3178 = vmatprep.mubr.msk.bf16.mxu1 %vm3661_vm0, %v3660_v9 }
 0x19e   : > { %v1525_v33 = vpop.f32.mrb[8].mxu0 }
 0x19f   : > { %v1526_v34 = vadd.f32 %v1525_v33, %v1314_v55  ;;  %v1527_v35 = vpop.f32.mrb[9].mxu0 }
 0x1a0   : > { %v1528_v36 = vadd.f32 %v1527_v35, %v1318_v22  ;;  %v1529_v37 = vpop.f32.mrb[10].mxu0 }
 0x1a1   : > { %v1573_v38 = vpack.c.bf16 %v1526_v34, %v1526_v34  ;;  %v1530_v39 = vpop.f32.mrb[11].mxu0 }
 0x1a2   : > { %v1574_v41 = vpack.c.bf16 %v1528_v36, %v1528_v36 }
 0x1a3   : > { %v1796_v42 = vsel %vm1794_vm1, %v1573_v38, 0 }
 0x1a4   : > { %v1895_v43 = vsel %vm1794_vm1, %v1574_v41, 0  ;;  %3177 = vmatpush3.bf16.msra.mxu1 %v1796_v42 }
 0x1a5   : > { %3182 = vmatprep.subr.bf16.mxu1 %v3660_v9 }
 0x201   : > { %v1593_v44 = vpop.trf.xlu0 }
 0x205   : > { %v1594_v47 = vpop.trf.xlu0 }
 0x206   : > { %v1705_v48 = vpack.c.bf16 %v1594_v47, %v1593_v44 }
 0x208   : > { %3157 = vmatpush3.bf16.msra.mxu0 %v1705_v48 }
 0x209   : > { %v1595_v51 = vpop.trf.xlu0  ;;  %3158 = vmatprep.subr.bf16.mxu0 %v3660_v9 }
 0x20d   : > { %v1596_v0 = vpop.trf.xlu0 }
 0x20e   : > { %v1706_v53 = vpack.c.bf16 %v1596_v0, %v1595_v51  ;;  %v1231_v0 = vadd.f32 %v4061_v2, %v1021_v52  ;;  %v1029_v2 = vrot.slane %v4054_v61, %v4272_v57 }
 0x210   : > { %3159 = vmatpush3.bf16.msra.mxu0 %v1706_v53  ;;  %v4269_v53 = vsub.s32 2, %v4049_v60 }
 0x211   : > { %v1597_v58 = vpop.trf.xlu0  ;;  %3160 = vmatprep.subr.bf16.mxu0 %v3660_v9 }
 0x212   : > { %v729_v63 = vrot.slane %v4238_v24, %v4269_v53 }
 0x214   : > { %v4282_v6 = vadd.f32 %v973_v54, %v729_v63 }
 0x215   : > { %v1598_v3 = vpop.trf.xlu0 }
 0x216   : > { %v1707_v4 = vpack.c.bf16 %v1598_v3, %v1597_v58  ;;  %v975_v58 = vpop.f32.mrb[1].mxu1 }
 0x217   : > { %v977_v3 = vpop.f32.mrb[2].mxu1 }
 0x218   : > { %3161 = vmatpush3.bf16.msra.mxu0 %v1707_v4  ;;  %v1025_v4 = vrot.slane %v4054_v61, %v4269_v53  ;;  %v978_v5 = vpop.f32.mrb[3].mxu1 }
 0x219   : > { %v1599_v7 = vpop.trf.xlu0  ;;  %3162 = vmatprep.subr.bf16.mxu0 %v3660_v9  ;;  %v1269_v60 = vpop.f32.mrb[4].mxu1 }
 0x21a   : > { %v4286_v10 = vadd.f32 %v1269_v60, %v1025_v4  ;;  %v1271_v11 = vpop.f32.mrb[5].mxu1 }
 0x21d   : > { %v1600_v12 = vpop.trf.xlu0 }
 0x21e   : > { %v1708_v13 = vpack.c.bf16 %v1600_v12, %v1599_v7  ;;  %v4284_v7 = vadd.f32 %v975_v58, %v733_v1  ;;  %v4288_v12 = vadd.f32 %v1271_v11, %v1029_v2 }
 0x220   : > { %3163 = vmatpush3.bf16.msra.mxu0 %v1708_v13  ;;  %v1273_v13 = vpop.f32.mrb[6].mxu1 }
 0x221   : > { %v1601_v15 = vpop.trf.xlu0  ;;  %3164 = vmatprep.subr.bf16.mxu0 %v3660_v9  ;;  %v1274_v14 = vpop.f32.mrb[7].mxu1 }
 0x225   : > { %v1602_v16 = vpop.trf.xlu0 }
 0x226   : > { %v1709_v17 = vpack.c.bf16 %v1602_v16, %v1601_v15 }
 0x228   : > { %3165 = vmatpush3.bf16.msra.mxu0 %v1709_v17 }
 0x229   : > { %v1603_v18 = vpop.trf.xlu0  ;;  %3166 = vmatprep.subr.bf16.mxu0 %v3660_v9 }
 0x22d   : > { %v1604_v19 = vpop.trf.xlu0 }
 0x22e   : > { %v1710_v20 = vpack.c.bf16 %v1604_v19, %v1603_v18 }
 0x230   : > { %3167 = vmatpush3.bf16.msra.mxu0 %v1710_v20 }
 0x231   : > { %v1605_v21 = vpop.trf.xlu0  ;;  %3168 = vmatprep.subr.bf16.mxu0 %v3660_v9 }
 0x235   : > { %v1606_v23 = vpop.trf.xlu0 }
 0x236   : > { %v1711_v8 = vpack.c.bf16 %v1606_v23, %v1605_v21 }
 0x238   : > { %3169 = vmatpush3.bf16.msra.mxu0 %v1711_v8 }
 0x239   : > { %v1607_v26 = vpop.trf.xlu0  ;;  %3170 = vmatprep.subr.bf16.mxu0 %v3660_v9 }
 0x23d   : > { %v1608_v28 = vpop.trf.xlu0 }
 0x23e   : > { %v1712_v29 = vpack.c.bf16 %v1608_v28, %v1607_v26 }
 0x240   : > { %3171 = vmatpush3.bf16.msra.mxu0 %v1712_v29 }
 0x241   : > { %3202 = vmatprep.subr.bf16.mxu0 %v3660_v9 }
 0x243   : > { %3173 = vmatmul.mubr.bf16.vlgmr.msra.gmra.mrb[12].mxu0 %v1737_v30 }
 0x244   : > { %3204 = vmatprep.mubr.msk.bf16.mxu0 %vm3661_vm0, %v3660_v9  ;;  %3203 = vmatpush3.bf16.msra.mxu0 %v1895_v43 }
 0x245   : > { %3208 = vmatprep.subr.bf16.mxu0 %v3660_v9 }
 0x262   : > { %v1566_v15 = vpop.f32.mrb[8].mxu1 }
 0x263   : > { %v4290_v16 = vpop.f32.mrb[9].mxu1 }
 0x264   : > { %v1570_v17 = vpop.f32.mrb[10].mxu1 }
 0x265   : > { %v1571_v18 = vpop.f32.mrb[11].mxu1 }
 0x316   : > { %v1772_v62 = vpop.f32.mrb[12].mxu0 }
 0x317   : > { %v3174_v44 = vpop.f32.mrb[13].mxu0  ;;  %v1779_v45 = vsel %vm1778_vm2, %v1772_v62, -inf }
 0x318   : > { %1780 = vmax.xlane.f32.xlu0 %v1779_v45  ;;  %v1775_v46 = vpop.f32.mrb[14].mxu0  ;;  %v725_v45 = vrot.slane %v4238_v24, %v4253_v32 }
 0x319   : > { %v3175_v47 = vpop.f32.mrb[15].mxu0 }
 0x3a5   : > { %v1781_v48 = vpop.xlane.xlu0 %1780 }
 0x3a6   : > { %v1782_v49 = vsub.f32 %v1772_v62, %v1781_v48  ;;  %v1322_v62 = vrot.slane %v4250_v31, %v4269_v53  ;;  %v935_v48 = vadd.f32 %v4046_v56, %v725_v45 }
 0x3a8   : > { %v1783_v50 = vmul.f32 1.442695, %v1782_v49  ;;  %v1567_v47 = vadd.f32 %v1566_v15, %v1322_v62  ;;  %v1937_v62 = vpack.c.bf16 %v4282_v6, %v4282_v6 }
 0x3aa   : > { %3535 = vpow2.f32 %v1783_v50  ;;  %v1575_v50 = vpack.c.bf16 %v1567_v47, %v1567_v47 }
 0x3ac   : > { %v1994_v52 = vsel %vm1794_vm1, %v1575_v50, 0 }
 0x3b4   : > { %v3536_v51 = vpop.eup %3535 }
 0x3b5   : > { %v1785_v40 = vsel %vm1778_vm2, %v3536_v51, 0.0 }
 0x3b6   : > { %1786 = vadd.xlane.f32.xlu1 %v1785_v40  ;;  %v1838_v40 = vpack.c.bf16 %v935_v48, %v935_v48 }
 0x3e9   : > { %1609 = vxpose.xlu1.b32.start.end [1/1] (short) %v1231_v0, 128 }
 0x443   : > { %v1787_v19 = vpop.xlane.xlu1 %1786 }
 0x444   : > { %3537 = vrcp.f32 %v1787_v19 }
 0x44e   : > { %v3538_v61 = vpop.eup %3537 }
 0x44f   : > { %v1789_v20 = vmul.f32 %v3538_v61, %v3536_v51 }
 0x451   : > { %v1790_v21 = vpack.c.bf16 %v1789_v20, %v1789_v20 }
 0x453   : > { %3179 = vmatmul.mubr.msk.bf16.vlgmr.msra.gmra.mrb[12].mxu1 %vm1778_vm2, %v1790_v21 }
 0x454   : > { %3198 = vmatprep.mubr.msk.bf16.mxu1 %vm3661_vm0, %v3660_v9 }
 0x469   : > { %v1625_v23 = vpop.trf.xlu1 }
 0x46d   : > { %v1626_v8 = vpop.trf.xlu1 }
 0x46e   : > { %v1713_v25 = vpack.c.bf16 %v1626_v8, %v1625_v23 }
 0x470   : > { %3183 = vmatpush3.bf16.msra.mxu1 %v1713_v25 }
 0x471   : > { %v1627_v26 = vpop.trf.xlu1  ;;  %3184 = vmatprep.subr.bf16.mxu1 %v3660_v9 }
 0x475   : > { %v1628_v27 = vpop.trf.xlu1 }
 0x476   : > { %v1714_v28 = vpack.c.bf16 %v1628_v27, %v1627_v26 }
 0x478   : > { %3185 = vmatpush3.bf16.msra.mxu1 %v1714_v28 }
 0x479   : > { %v1629_v29 = vpop.trf.xlu1  ;;  %3186 = vmatprep.subr.bf16.mxu1 %v3660_v9 }
 0x47d   : > { %v1630_v30 = vpop.trf.xlu1 }
 0x47e   : > { %v1715_v55 = vpack.c.bf16 %v1630_v30, %v1629_v29 }
 0x480   : > { %3187 = vmatpush3.bf16.msra.mxu1 %v1715_v55 }
 0x481   : > { %v1631_v22 = vpop.trf.xlu1  ;;  %3188 = vmatprep.subr.bf16.mxu1 %v3660_v9 }
 0x485   : > { %v1632_v33 = vpop.trf.xlu1 }
 0x486   : > { %v1716_v34 = vpack.c.bf16 %v1632_v33, %v1631_v22 }
 0x488   : > { %3189 = vmatpush3.bf16.msra.mxu1 %v1716_v34 }
 0x489   : > { %v1633_v35 = vpop.trf.xlu1  ;;  %3190 = vmatprep.subr.bf16.mxu1 %v3660_v9 }
 0x48d   : > { %v1634_v36 = vpop.trf.xlu1 }
 0x48e   : > { %v1717_v37 = vpack.c.bf16 %v1634_v36, %v1633_v35 }
 0x490   : > { %3191 = vmatpush3.bf16.msra.mxu1 %v1717_v37  ;;  %v1326_v37 = vrot.slane %v4250_v31, %v4272_v57 }
 0x491   : > { %v1635_v38 = vpop.trf.xlu1  ;;  %3192 = vmatprep.subr.bf16.mxu1 %v3660_v9 }
 0x495   : > { %v1636_v39 = vpop.trf.xlu1 }
 0x496   : > { %v1718_v41 = vpack.c.bf16 %v1636_v39, %v1635_v38  ;;  %v1569_v39 = vadd.f32 %v4290_v16, %v1326_v37 }
 0x498   : > { %3193 = vmatpush3.bf16.msra.mxu1 %v1718_v41 }
 0x499   : > { %v1637_v42 = vpop.trf.xlu1  ;;  %3194 = vmatprep.subr.bf16.mxu1 %v3660_v9 }
 0x49d   : > { %v1638_v43 = vpop.trf.xlu1 }
 0x49e   : > { %v1719_v44 = vpack.c.bf16 %v1638_v43, %v1637_v42  ;;  %v1576_v43 = vpack.c.bf16 %v1569_v39, %v1569_v39 }
 0x4a0   : > { %3195 = vmatpush3.bf16.msra.mxu1 %v1719_v44  ;;  %v2093_v44 = vsel %vm1794_vm1, %v1576_v43, 0  ;;  %v3503_v43 = vld [vmem:[%s4565_s9 + $0xc0] sm:$0xff]  }
 0x4a1   : > { %v1639_v46 = vpop.trf.xlu1  ;;  %3196 = vmatprep.subr.bf16.mxu1 %v3660_v9 }
 0x4a5   : > { %v1640_v49 = vpop.trf.xlu1 }
 0x4a6   : > { %v1720_v51 = vpack.c.bf16 %v1640_v49, %v1639_v46 }
 0x4a8   : > { %3197 = vmatpush3.bf16.msra.mxu1 %v1720_v51 }
 0x4a9   : > { %3228 = vmatprep.subr.bf16.mxu1 %v3660_v9 }
 0x4ab   : > { %3199 = vmatmul.mubr.bf16.vlgmr.msra.gmra.mrb[16].mxu1 %v1838_v40 }
 0x4ac   : > { %3229 = vmatpush3.bf16.msra.mxu1 %v1994_v52  ;;  %3230 = vmatprep.mubr.msk.bf16.mxu1 %vm3661_vm0, %v3660_v9 }
 0x4ad   : > { %3234 = vmatprep.subr.bf16.mxu1 %v3660_v9 }
 0x526   : > { %v4312_v24 = vpop.f32.mrb[12].mxu1 }
 0x527   : > { %v3180_v32 = vpop.f32.mrb[13].mxu1 }
 0x528   : > { %v1835_v56 = vpop.f32.mrb[14].mxu1 }
 0x529   : > { %v3181_v0 = vpop.f32.mrb[15].mxu1 }
 0x57e   : > { %v1873_v53 = vpop.f32.mrb[16].mxu1 }
 0x57f   : > { %v3200_v54 = vpop.f32.mrb[17].mxu1  ;;  %v1879_v58 = vsel %vm1778_vm2, %v1873_v53, -inf }
 0x580   : > { %1880 = vmax.xlane.f32.xlu1 %v1879_v58  ;;  %v1876_v63 = vpop.f32.mrb[18].mxu1 }
 0x581   : > { %v3201_v1 = vpop.f32.mrb[19].mxu1 }
 0x60d   : > { %v1881_v3 = vpop.xlane.xlu1 %1880 }
 0x60e   : > { %v1882_v4 = vsub.f32 %v1873_v53, %v1881_v3 }
 0x610   : > { %v1883_v2 = vmul.f32 1.442695, %v1882_v4 }
 0x612   : > { %3539 = vpow2.f32 %v1883_v2 }
 0x61c   : > { %v3540_v5 = vpop.eup %3539 }
 0x61d   : > { %v1885_v60 = vsel %vm1778_vm2, %v3540_v5, 0.0 }
 0x61e   : > { %1886 = vadd.xlane.f32.xlu0 %v1885_v60 }
 0x64b   : > { %1641 = vxpose.xlu0.b32.start.end [1/1] (short) %v4286_v10, 128 }
 0x6ab   : > { %v1887_v11 = vpop.xlane.xlu0 %1886 }
 0x6ac   : > { %3541 = vrcp.f32 %v1887_v11 }
 0x6b6   : > { %v3542_v13 = vpop.eup %3541 }
 0x6b7   : > { %v1889_v14 = vmul.f32 %v3542_v13, %v3540_v5 }
 0x6b9   : > { %v1890_v15 = vpack.c.bf16 %v1889_v14, %v1889_v14 }
 0x6bb   : > { %3205 = vmatmul.mubr.msk.bf16.vlgmr.msra.gmra.mrb[16].mxu0 %vm1778_vm2, %v1890_v15 }
 0x6bc   : > { %3224 = vmatprep.mubr.msk.bf16.mxu0 %vm3661_vm0, %v3660_v9 }
 0x6cb   : > { %v1657_v17 = vpop.trf.xlu0 }
 0x6cf   : > { %v1658_v18 = vpop.trf.xlu0 }
 0x6d0   : > { %v1721_v19 = vpack.c.bf16 %v1658_v18, %v1657_v17 }
 0x6d2   : > { %3209 = vmatpush3.bf16.msra.mxu0 %v1721_v19 }
 0x6d3   : > { %v1659_v61 = vpop.trf.xlu0  ;;  %3210 = vmatprep.subr.bf16.mxu0 %v3660_v9 }
 0x6d7   : > { %v1660_v20 = vpop.trf.xlu0 }
 0x6d8   : > { %v1722_v21 = vpack.c.bf16 %v1660_v20, %v1659_v61 }
 0x6da   : > { %3211 = vmatpush3.bf16.msra.mxu0 %v1722_v21 }
 0x6db   : > { %v1661_v10 = vpop.trf.xlu0  ;;  %3212 = vmatprep.subr.bf16.mxu0 %v3660_v9 }
 0x6df   : > { %v1662_v23 = vpop.trf.xlu0 }
 0x6e0   : > { %v1723_v8 = vpack.c.bf16 %v1662_v23, %v1661_v10 }
 0x6e2   : > { %3213 = vmatpush3.bf16.msra.mxu0 %v1723_v8 }
 0x6e3   : > { %v1663_v25 = vpop.trf.xlu0  ;;  %3214 = vmatprep.subr.bf16.mxu0 %v3660_v9 }
 0x6e7   : > { %v1664_v26 = vpop.trf.xlu0 }
 0x6e8   : > { %v1724_v27 = vpack.c.bf16 %v1664_v26, %v1663_v25 }
 0x6ea   : > { %3215 = vmatpush3.bf16.msra.mxu0 %v1724_v27  ;;  %v2036_v27 = vpack.c.bf16 %v4284_v7, %v4284_v7 }
 0x6eb   : > { %v1665_v28 = vpop.trf.xlu0  ;;  %3216 = vmatprep.subr.bf16.mxu0 %v3660_v9 }
 0x6ef   : > { %v1666_v29 = vpop.trf.xlu0 }
 0x6f0   : > { %v1725_v30 = vpack.c.bf16 %v1666_v29, %v1665_v28 }
 0x6f2   : > { %3217 = vmatpush3.bf16.msra.mxu0 %v1725_v30 }
 0x6f3   : > { %v1667_v55 = vpop.trf.xlu0  ;;  %3218 = vmatprep.subr.bf16.mxu0 %v3660_v9 }
 0x6f7   : > { %v1668_v22 = vpop.trf.xlu0 }
 0x6f8   : > { %v1726_v33 = vpack.c.bf16 %v1668_v22, %v1667_v55 }
 0x6fa   : > { %3219 = vmatpush3.bf16.msra.mxu0 %v1726_v33 }
 0x6fb   : > { %v1669_v34 = vpop.trf.xlu0  ;;  %3220 = vmatprep.subr.bf16.mxu0 %v3660_v9 }
 0x6ff   : > { %v1670_v35 = vpop.trf.xlu0 }
 0x700   : > { %v1727_v36 = vpack.c.bf16 %v1670_v35, %v1669_v34 }
 0x702   : > { %3221 = vmatpush3.bf16.msra.mxu0 %v1727_v36 }
 0x703   : > { %v1671_v38 = vpop.trf.xlu0  ;;  %3222 = vmatprep.subr.bf16.mxu0 %v3660_v9 }
 0x707   : > { %v1672_v41 = vpop.trf.xlu0 }
 0x708   : > { %v1728_v42 = vpack.c.bf16 %v1672_v41, %v1671_v38 }
 0x70a   : > { %3223 = vmatpush3.bf16.msra.mxu0 %v1728_v42  ;;  %v3487_v42 = vld [vmem:[%s4565_s9 + $0x40] sm:$0xff]  }
 0x70b   : > { %3254 = vmatprep.subr.bf16.mxu0 %v3660_v9 }
 0x70d   : > { %3225 = vmatmul.mubr.bf16.vlgmr.msra.gmra.mrb[20].mxu0 %v1937_v62  ;;  %v3504_v62 = vld [vmem:[%s4565_s9 + $0x80] sm:$0xff]  }
 0x70e   : > { %3255 = vmatpush3.bf16.msra.mxu0 %v2093_v44  ;;  %3256 = vmatprep.mubr.msk.bf16.mxu0 %vm3661_vm0, %v3660_v9  ;;  %v3505_v44 = vld [vmem:[%s4565_s9 + $0xc8] sm:$0xff]  }
 0x70f   : > { %3094 = vmatprep.subr.bf16.mxu0 %v3487_v42  ;;  %v3520_v42 = vld [vmem:[%s4569_s13 + $0x8] sm:$0xff]  }
 0x78e   : > { %v4336_v31 = vpop.f32.mrb[16].mxu0 }
 0x78f   : > { %v3206_v57 = vpop.f32.mrb[17].mxu0 }
 0x790   : > { %v1934_v16 = vpop.f32.mrb[18].mxu0  ;;  %v3506_v57 = vld [vmem:[%s4565_s9 + $0x88] sm:$0xff]  }
 0x791   : > { %v3207_v45 = vpop.f32.mrb[19].mxu0  ;;  %v3507_v16 = vld [vmem:[%s4565_s9 + $0xd0] sm:$0xff]  }
 0x792   : > { %v3508_v45 = vld [vmem:[%s4565_s9 + $0x90] sm:$0xff]  }
 0x7e0   : > { %v1972_v46 = vpop.f32.mrb[20].mxu0 }
 0x7e1   : > { %v3226_v47 = vpop.f32.mrb[21].mxu0  ;;  %v1978_v48 = vsel %vm1778_vm2, %v1972_v46, -inf }
 0x7e2   : > { %1979 = vmax.xlane.f32.xlu1 %v1978_v48  ;;  %v1975_v6 = vpop.f32.mrb[22].mxu0  ;;  %v3510_v47 = vld [vmem:[%s4565_s9 + $0x98] sm:$0xff]   ;;  %v3511_v48 = vld [vmem:[%s4565_s9 + $0xe0] sm:$0xff]  }
 0x7e3   : > { %v3227_v49 = vpop.f32.mrb[23].mxu0  ;;  %v3512_v6 = vld [vmem:[%s4565_s9 + $0xa0] sm:$0xff]  }
 0x7e4   : > { %v3513_v49 = vld [vmem:[%s4565_s9 + $0xe8] sm:$0xff]  }
 0x815   : > { %1673 = vxpose.xlu1.b32.start.end [1/1] (short) %v4288_v12, 128 }
 0x86f   : > { %v1980_v50 = vpop.xlane.xlu1 %1979 }
 0x870   : > { %v1981_v51 = vsub.f32 %v1972_v46, %v1980_v50  ;;  %v3509_v46 = vld [vmem:[%s4565_s9 + $0xd8] sm:$0xff]   ;;  %v3514_v50 = vld [vmem:[%s4565_s9 + $0xa8] sm:$0xff]  }
 0x872   : > { %v1982_v40 = vmul.f32 1.442695, %v1981_v51  ;;  %v3515_v51 = vld [vmem:[%s4565_s9 + $0xf0] sm:$0xff]  }
 0x874   : > { %3543 = vpow2.f32 %v1982_v40  ;;  %v3516_v40 = vld [vmem:[%s4565_s9 + $0xb0] sm:$0xff]  }
 0x87e   : > { %v3544_v52 = vpop.eup %3543 }
 0x87f   : > { %v1984_v32 = vsel %vm1778_vm2, %v3544_v52, 0.0 }
 0x880   : > { %1985 = vadd.xlane.f32.xlu0 %v1984_v32 }
 0x895   : > { %v1689_v56 = vpop.trf.xlu1 }
 0x899   : > { %v1690_v0 = vpop.trf.xlu1 }
 0x89a   : > { %v1729_v14 = vpack.c.bf16 %v1690_v0, %v1689_v56  ;;  %v3488_v0 = vld [vmem:[%s4565_s9] sm:$0xff]  }
 0x89d   : > { %v1691_v53 = vpop.trf.xlu1 }
 0x8a1   : > { %v1692_v54 = vpop.trf.xlu1 }
 0x8a2   : > { %v1730_v17 = vpack.c.bf16 %v1692_v54, %v1691_v53  ;;  %v3489_v54 = vld [vmem:[%s4565_s9 + $0x48] sm:$0xff]  }
 0x8a5   : > { %v1693_v58 = vpop.trf.xlu1 }
 0x8a9   : > { %v1694_v63 = vpop.trf.xlu1 }
 0x8aa   : > { %v1731_v19 = vpack.c.bf16 %v1694_v63, %v1693_v58  ;;  %v2136_v58 = vpack.c.bf16 %v4336_v31, %v4336_v31  ;;  %v3490_v63 = vld [vmem:[%s4565_s9 + $0x8] sm:$0xff]   ;;  %v3493_v31 = vld [vmem:[%s4565_s9 + $0x58] sm:$0xff]  }
 0x8ad   : > { %v1695_v1 = vpop.trf.xlu1 }
 0x8b1   : > { %v1696_v3 = vpop.trf.xlu1 }
 0x8b2   : > { %v1732_v61 = vpack.c.bf16 %v1696_v3, %v1695_v1  ;;  %v3491_v1 = vld [vmem:[%s4565_s9 + $0x50] sm:$0xff]  }
 0x8b3   : > { %v3492_v3 = vld [vmem:[%s4565_s9 + $0x10] sm:$0xff]  }
 0x8b5   : > { %v1697_v4 = vpop.trf.xlu1 }
 0x8b9   : > { %v1698_v12 = vpop.trf.xlu1 }
 0x8ba   : > { %v1733_v21 = vpack.c.bf16 %v1698_v12, %v1697_v4  ;;  %v3494_v4 = vld [vmem:[%s4565_s9 + $0x18] sm:$0xff]   ;;  %v3496_v12 = vld [vmem:[%s4565_s9 + $0x20] sm:$0xff]  }
 0x8bd   : > { %v1699_v5 = vpop.trf.xlu1 }
 0x8c1   : > { %v1700_v15 = vpop.trf.xlu1 }
 0x8c2   : > { %v1734_v23 = vpack.c.bf16 %v1700_v15, %v1699_v5  ;;  %v3497_v5 = vld [vmem:[%s4565_s9 + $0x68] sm:$0xff]   ;;  %v3502_v15 = vld [vmem:[%s4565_s9 + $0x38] sm:$0xff]  }
 0x8c5   : > { %v1701_v18 = vpop.trf.xlu1 }
 0x8c9   : > { %v1702_v20 = vpop.trf.xlu1 }
 0x8ca   : > { %v1735_v8 = vpack.c.bf16 %v1702_v20, %v1701_v18  ;;  %v3517_v18 = vld [vmem:[%s4565_s9 + $0xf8] sm:$0xff]  }
 0x8cd   : > { %v1703_v10 = vpop.trf.xlu1 }
 0x8d1   : > { %v1704_v25 = vpop.trf.xlu1 }
 0x8d2   : > { %v1736_v26 = vpack.c.bf16 %v1704_v25, %v1703_v10 }
 0x90d   : > { %v1986_v2 = vpop.xlane.xlu0 %1985 }
 0x90e   : > { %3545 = vrcp.f32 %v1986_v2  ;;  %v3495_v2 = vld [vmem:[%s4565_s9 + $0x60] sm:$0xff]  }
 0x918   : > { %v3546_v60 = vpop.eup %3545 }
 0x919   : > { %v1988_v11 = vmul.f32 %v3546_v60, %v3544_v52  ;;  %v3498_v60 = vld [vmem:[%s4565_s9 + $0x28] sm:$0xff]  }
 0x91b   : > { %v1989_v13 = vpack.c.bf16 %v1988_v11, %v1988_v11  ;;  %v3499_v11 = vld [vmem:[%s4565_s9 + $0x70] sm:$0xff]  }
 0x91d   : > { %3231 = vmatmul.mubr.msk.bf16.vlgmr.msra.gmra.mrb[20].mxu1 %vm1778_vm2, %v1989_v13  ;;  %v3500_v13 = vld [vmem:[%s4565_s9 + $0x30] sm:$0xff]  }
 0x91e   : > { %3235 = vmatpush3.bf16.msra.mxu1 %v1729_v14  ;;  %3250 = vmatprep.mubr.msk.bf16.mxu1 %vm3661_vm0, %v3660_v9  ;;  %v3501_v14 = vld [vmem:[%s4565_s9 + $0x78] sm:$0xff]  }
 0x91f   : > { %3236 = vmatprep.subr.bf16.mxu1 %v3660_v9 }
 0x922   : > { %3237 = vmatpush3.bf16.msra.mxu1 %v1730_v17  ;;  %v2135_v17 = vpack.c.bf16 %v4312_v24, %v4312_v24 }
 0x923   : > { %3238 = vmatprep.subr.bf16.mxu1 %v3660_v9 }
 0x926   : > { %3239 = vmatpush3.bf16.msra.mxu1 %v1731_v19  ;;  %v3518_v19 = vld [vmem:[%s4565_s9 + $0xb8] sm:$0xff]  }
 0x927   : > { %3240 = vmatprep.subr.bf16.mxu1 %v3660_v9 }
 0x92a   : > { %3241 = vmatpush3.bf16.msra.mxu1 %v1732_v61 }
 0x92b   : > { %3242 = vmatprep.subr.bf16.mxu1 %v3660_v9 }
 0x92e   : > { %3243 = vmatpush3.bf16.msra.mxu1 %v1733_v21 }
 0x92f   : > { %3244 = vmatprep.subr.bf16.mxu1 %v3660_v9 }
 0x932   : > { %3245 = vmatpush3.bf16.msra.mxu1 %v1734_v23 }
 0x933   : > { %3246 = vmatprep.subr.bf16.mxu1 %v3660_v9 }
 0x936   : > { %3247 = vmatpush3.bf16.msra.mxu1 %v1735_v8 }
 0x937   : > { %3248 = vmatprep.subr.bf16.mxu1 %v3660_v9 }
 0x93a   : > { %3249 = vmatpush3.bf16.msra.mxu1 %v1736_v26 }
 0x93b   : > { %3116 = vmatprep.subr.bf16.mxu1 %v3503_v43 }
 0x93d   : > { %3251 = vmatmul.mubr.bf16.vlgmr.msra.gmra.mrb[24].mxu1 %v2036_v27 }
 0x93e   : > { %3117 = vmatpush3.bf16.msra.mxu1 %v3504_v62 }
 0x93f   : > { %3118 = vmatprep.subr.bf16.mxu1 %v3505_v44 }
 0x942   : > { %3119 = vmatpush3.bf16.msra.mxu1 %v3506_v57 }
 0x943   : > { %3120 = vmatprep.subr.bf16.mxu1 %v3507_v16 }
 0x946   : > { %3121 = vmatpush3.bf16.msra.mxu1 %v3508_v45  ;;  %v3521_v45 = vld [vmem:[%s4569_s13 + $0x10] sm:$0xff]  }
 0x947   : > { %3122 = vmatprep.subr.bf16.mxu1 %v3509_v46  ;;  %v3522_v46 = vld [vmem:[%s4569_s13 + $0x18] sm:$0xff]  }
 0x94a   : > { %3123 = vmatpush3.bf16.msra.mxu1 %v3510_v47  ;;  %v3523_v47 = vld [vmem:[%s4569_s13 + $0x20] sm:$0xff]  }
 0x94b   : > { %3124 = vmatprep.subr.bf16.mxu1 %v3511_v48  ;;  %v3524_v48 = vld [vmem:[%s4569_s13 + $0x28] sm:$0xff]  }
 0x94e   : > { %3125 = vmatpush3.bf16.msra.mxu1 %v3512_v6  ;;  %v3525_v6 = vld [vmem:[%s4569_s13 + $0x30] sm:$0xff]  }
 0x94f   : > { %3126 = vmatprep.subr.bf16.mxu1 %v3513_v49  ;;  %v3526_v49 = vld [vmem:[%s4569_s13 + $0x38] sm:$0xff]  }
 0x952   : > { %3127 = vmatpush3.bf16.msra.mxu1 %v3514_v50  ;;  %v3527_v50 = vld [vmem:[%s4571_s15] sm:$0xff]  }
 0x953   : > { %3128 = vmatprep.subr.bf16.mxu1 %v3515_v51  ;;  %v3528_v51 = vld [vmem:[%s4571_s15 + $0x8] sm:$0xff]  }
 0x956   : > { %3129 = vmatpush3.bf16.msra.mxu1 %v3516_v40  ;;  %v3529_v40 = vld [vmem:[%s4571_s15 + $0x10] sm:$0xff]  }
 0x957   : > { %3130 = vmatprep.subr.bf16.mxu1 %v3517_v18 }
 0x95a   : > { %3131 = vmatpush3.bf16.msra.mxu1 %v3518_v19 }
 0x95b   : > { %3280 = vmatprep.subr.bf16.mxu1 %v3660_v9 }
 0x9f0   : > { %v4353_v28 = vpop.f32.mrb[20].mxu1 }
 0x9f1   : > { %v3232_v29 = vpop.f32.mrb[21].mxu1  ;;  %v2137_v21 = vpack.c.bf16 %v4353_v28, %v4353_v28 }
 0x9f2   : > { %v2033_v30 = vpop.f32.mrb[22].mxu1 }
 0x9f3   : > { %v3233_v55 = vpop.f32.mrb[23].mxu1  ;;  %v676_v30 = vand.u32 127, %v675_v59  ;;  %v3519_v59 = vld [vmem:[%s4569_s13] sm:$0xff]  }
 0x9f4   : > { %v2993_v55 = vld [vmem:[%s4566_s10] ss:$0 sm:$0xff] }
 0x9f5   : > { %vm677_vm3 = vcmp.lt.s32.totalorder %v676_v30, 32 }
 0xa10   : > { %v2071_v22 = vpop.f32.mrb[24].mxu1 }
 0xa11   : > { %v3252_v33 = vpop.f32.mrb[25].mxu1  ;;  %v2077_v34 = vsel %vm1778_vm2, %v2071_v22, -inf }
 0xa12   : > { %2078 = vmax.xlane.f32.xlu1 %v2077_v34  ;;  %v2074_v35 = vpop.f32.mrb[26].mxu1 }
 0xa13   : > { %v3253_v36 = vpop.f32.mrb[27].mxu1 }
 0xa9f   : > { %v2079_v37 = vpop.xlane.xlu1 %2078 }
 0xaa0   : > { %v2080_v38 = vsub.f32 %v2071_v22, %v2079_v37 }
 0xaa2   : > { %v2081_v39 = vmul.f32 1.442695, %v2080_v38  ;;  %v4471_v38 = vsel %vm677_vm3, 1.0, %v3660_v9 }
 0xaa4   : > { %3547 = vpow2.f32 %v2081_v39  ;;  %v3555_v39 = vld [vmem:[%s3920_s20] sm:$0xff] }
 0xaae   : > { %v3548_v41 = vpop.eup %3547 }
 0xaaf   : > { %v2083_v7 = vsel %vm1778_vm2, %v3548_v41, 0.0 }
 0xab0   : > { %2084 = vadd.xlane.f32.xlu0 %v2083_v7 }
 0xb3d   : > { %v2085_v52 = vpop.xlane.xlu0 %2084 }
 0xb3e   : > { %3549 = vrcp.f32 %v2085_v52  ;;  %v3530_v52 = vld [vmem:[%s4571_s15 + $0x18] sm:$0xff]  }
 0xb48   : > { %v3550_v32 = vpop.eup %3549 }
 0xb49   : > { %v2087_v56 = vmul.f32 %v3550_v32, %v3548_v41  ;;  %v3531_v32 = vld [vmem:[%s4571_s15 + $0x20] sm:$0xff]  }
 0xb4b   : > { %v2088_v53 = vpack.c.bf16 %v2087_v56, %v2087_v56  ;;  %v3532_v56 = vld [vmem:[%s4571_s15 + $0x28] sm:$0xff]  }
 0xb4d   : > { %3257 = vmatmul.mubr.msk.bf16.vlgmr.msra.gmra.mrb[24].mxu0 %vm1778_vm2, %v2088_v53 }
 0xb4e   : > { %3095 = vmatpush3.bf16.msra.mxu0 %v3488_v0  ;;  %2434 = vmatprep.mubr.bf16.mxu0 %v2136_v58 }
 0xb4f   : > { %3096 = vmatprep.subr.bf16.mxu0 %v3489_v54 }
 0xb52   : > { %3097 = vmatpush3.bf16.msra.mxu0 %v3490_v63  ;;  %v3026_v63 = vld [vmem:[%s4567_s11] ss:$0 sm:$0xff] }
 0xb53   : > { %3098 = vmatprep.subr.bf16.mxu0 %v3491_v1 }
 0xb56   : > { %3099 = vmatpush3.bf16.msra.mxu0 %v3492_v3  ;;  %v3027_v3 = vld [vmem:[%s4568_s12] ss:$0 sm:$0xff] }
 0xb57   : > { %3100 = vmatprep.subr.bf16.mxu0 %v3493_v31 }
 0xb5a   : > { %3101 = vmatpush3.bf16.msra.mxu0 %v3494_v4 }
 0xb5b   : > { %3102 = vmatprep.subr.bf16.mxu0 %v3495_v2 }
 0xb5e   : > { %3103 = vmatpush3.bf16.msra.mxu0 %v3496_v12  ;;  %v3533_v12 = vld [vmem:[%s4571_s15 + $0x30] sm:$0xff]  }
 0xb5f   : > { %3104 = vmatprep.subr.bf16.mxu0 %v3497_v5  ;;  %v3534_v5 = vld [vmem:[%s4571_s15 + $0x38] sm:$0xff]  }
 0xb62   : > { %3105 = vmatpush3.bf16.msra.mxu0 %v3498_v60  ;;  %v3028_v60 = vld [vmem:[%s4570_s14] ss:$0 sm:$0xff] }
 0xb63   : > { %3106 = vmatprep.subr.bf16.mxu0 %v3499_v11 }
 0xb66   : > { %3107 = vmatpush3.bf16.msra.mxu0 %v3500_v13 }
 0xb67   : > { %3108 = vmatprep.subr.bf16.mxu0 %v3501_v14 }
 0xb6a   : > { %3109 = vmatpush3.bf16.msra.mxu0 %v3502_v15 }
 0xb6b   : > { %3260 = vmatprep.subr.bf16.mxu0 %v3660_v9 }
 0xb6d   : > { %2435 = vmatmul.mubr.bf16.vlgmr.msra.gmra.mrb[28].mxu0 %v2135_v17 }
 0xb6e   : > { %3276 = vmatprep.mubr.msk.bf16.mxu0 %vm3661_vm0, %v3660_v9  ;;  %3261 = vmatpush3.bf16.msra.mxu0 %v3519_v59 }
 0xb6f   : > { %3262 = vmatprep.subr.bf16.mxu0 %v3660_v9 }
 0xb72   : > { %3263 = vmatpush3.bf16.msra.mxu0 %v3520_v42 }
 0xb73   : > { %3264 = vmatprep.subr.bf16.mxu0 %v3660_v9 }
 0xb76   : > { %3265 = vmatpush3.bf16.msra.mxu0 %v3521_v45 }
 0xb77   : > { %3266 = vmatprep.subr.bf16.mxu0 %v3660_v9 }
 0xb7a   : > { %3267 = vmatpush3.bf16.msra.mxu0 %v3522_v46 }
 0xb7b   : > { %3268 = vmatprep.subr.bf16.mxu0 %v3660_v9 }
 0xb7e   : > { %3269 = vmatpush3.bf16.msra.mxu0 %v3523_v47 }
 0xb7f   : > { %3270 = vmatprep.subr.bf16.mxu0 %v3660_v9 }
 0xb82   : > { %3271 = vmatpush3.bf16.msra.mxu0 %v3524_v48 }
 0xb83   : > { %3272 = vmatprep.subr.bf16.mxu0 %v3660_v9 }
 0xb86   : > { %3273 = vmatpush3.bf16.msra.mxu0 %v3525_v6 }
 0xb87   : > { %3274 = vmatprep.subr.bf16.mxu0 %v3660_v9 }
 0xb8a   : > { %3275 = vmatpush3.bf16.msra.mxu0 %v3526_v49 }
 0xc20   : > { %v2129_v61 = vpop.f32.mrb[24].mxu0 }
 0xc21   : > { %v2138_v24 = vpack.c.bf16 %v2129_v61, %v2129_v61  ;;  %v3258_v20 = vpop.f32.mrb[25].mxu0  ;;  %v3037_v61 = vld [vmem:[#allocation2] ss:$0 sm:$0xff] }
 0xc22   : > { %v2132_v10 = vpop.f32.mrb[26].mxu0 }
 0xc23   : > { %v3259_v23 = vpop.f32.mrb[27].mxu0  ;;  %2474 = vmatprep.mubr.bf16.mxu1 %v2138_v24 }
 0xc24   : > { %2475 = vmatmul.mubr.bf16.vlgmr.msra.gmra.mrb[28].mxu1 %v2137_v21 }
 0xc25   : > { %3296 = vmatprep.mubr.msk.bf16.mxu1 %vm3661_vm0, %v3660_v9  ;;  %3281 = vmatpush3.bf16.msra.mxu1 %v3527_v50 }
 0xc26   : > { %3282 = vmatprep.subr.bf16.mxu1 %v3660_v9 }
 0xc29   : > { %3283 = vmatpush3.bf16.msra.mxu1 %v3528_v51 }
 0xc2a   : > { %3284 = vmatprep.subr.bf16.mxu1 %v3660_v9 }
 0xc2d   : > { %3285 = vmatpush3.bf16.msra.mxu1 %v3529_v40 }
 0xc2e   : > { %3286 = vmatprep.subr.bf16.mxu1 %v3660_v9 }
 0xc31   : > { %3287 = vmatpush3.bf16.msra.mxu1 %v3530_v52 }
 0xc32   : > { %3288 = vmatprep.subr.bf16.mxu1 %v3660_v9 }
 0xc35   : > { %3289 = vmatpush3.bf16.msra.mxu1 %v3531_v32 }
 0xc36   : > { %3290 = vmatprep.subr.bf16.mxu1 %v3660_v9 }
 0xc39   : > { %3291 = vmatpush3.bf16.msra.mxu1 %v3532_v56 }
 0xc3a   : > { %3292 = vmatprep.subr.bf16.mxu1 %v3660_v9 }
 0xc3d   : > { %3293 = vmatpush3.bf16.msra.mxu1 %v3533_v12 }
 0xc3e   : > { %3294 = vmatprep.subr.bf16.mxu1 %v3660_v9 }
 0xc40   : > { %v3110_v8 = vpop.f32.mrb[28].mxu0 }
 0xc41   : > { %v3111_v25 = vpop.f32.mrb[29].mxu0  ;;  %3295 = vmatpush3.bf16.msra.mxu1 %v3534_v5 }
 0xc42   : > { %v3112_v26 = vadd.f32 %v3111_v25, %v3110_v8  ;;  %v3113_v27 = vpop.f32.mrb[30].mxu0 }
 0xc43   : > { %v3114_v29 = vpop.f32.mrb[31].mxu0 }
 0xc44   : > { %v2437_v33 = vadd.f32 %v3112_v26, %v2993_v55 }
 0xcf7   : > { %v3132_v28 = vpop.f32.mrb[28].mxu1 }
 0xcf8   : > { %v3133_v22 = vpop.f32.mrb[29].mxu1 }
 0xcf9   : > { %v3134_v34 = vadd.f32 %v3133_v22, %v3132_v28  ;;  %v3135_v35 = vpop.f32.mrb[30].mxu1 }
 0xcfa   : > { %v3136_v36 = vpop.f32.mrb[31].mxu1 }
 0xcfb   : > { %v2477_v37 = vadd.f32 %v3134_v34, %v2437_v33  ;;  %v3046_v34 = vld [vmem:[#allocation4] ss:$0 sm:$0xff]  ;;  %v3047_v36 = vld [vmem:[#allocation6] ss:$0 sm:$0xff] }
 0xcfd   : > { %v2482_v41 = vadd.f32 %v3555_v39, %v2477_v37 }
 0xcff   : > { %v2485_v7 = vmul.f32 %v4471_v38, %v2482_v41 }
 0xd01   : > { %2486 = vadd.xlane.f32.xlu0 %v2485_v7 }
 0xd8e   : > { %v2487_v43 = vpop.xlane.xlu0 %2486 }
 0xd8f   : > { %v2488_v62 = vmul.f32 0.03125, %v2487_v43 }
 0xd91   : > { %v2489_v44 = vsub.f32 %v2485_v7, %v2488_v62 }
 0xd93   : > { %v2490_v57 = vmul.f32 %v4471_v38, %v2489_v44 }
 0xd95   : > { %v2491_v16 = vmul.f32 %v2490_v57, %v2490_v57 }
 0xd97   : > { %2492 = vadd.xlane.f32.xlu0 %v2491_v16 }
 0xe24   : > { %v2493_v0 = vpop.xlane.xlu0 %2492 }
 0xe25   : > { %v2494_v53 = vmul.f32 0.03125, %v2493_v0 }
 0xe27   : > { %v2495_v54 = vadd.f32 1e-05, %v2494_v53 }
 0xe29   : > { %3551 = vrsqrt.f32 %v2495_v54 }
 0xe33   : > { %v3552_v58 = vpop.eup %3551 }
 0xe34   : > { %v2497_v1 = vmul.f32 %v3552_v58, %v2490_v57 }
 0xe36   : > { %v2504_v31 = vmul.f32 %v3026_v63, %v2497_v1 }
 0xe38   : > { %v2511_v4 = vadd.f32 %v3027_v3, %v2504_v31 }
 0xe3a   : > { %v2512_v2 = vpack.c.bf16 %v2511_v4, %v2511_v4 }
 0xe3c   : > { %3277 = vmatmul.mubr.bf16.vlgmr.msra.gmra.mrb[32].mxu0 %v2512_v2 }
 0xf0f   : > { %v2618_v11 = vpop.f32.mrb[32].mxu0 }
 0xf10   : > { %v2619_v13 = vadd.f32 %v3028_v60, %v2618_v11  ;;  %v3278_v14 = vpop.f32.mrb[33].mxu0 }
 0xf11   : > { %v2621_v15 = vpop.f32.mrb[34].mxu0 }
 0xf12   : > { %v2624_v17 = vmax.f32 %v2619_v13, 0.0  ;;  %v3279_v18 = vpop.f32.mrb[35].mxu0 }
 0xf14   : > { %v2625_v19 = vpack.c.bf16 %v2624_v17, %v2624_v17 }
 0xf16   : > { %3297 = vmatmul.mubr.bf16.vlgmr.msra.gmra.mrb[32].mxu1 %v2625_v19 }
 0xfe9   : > { %v2731_v24 = vpop.f32.mrb[32].mxu1 }
 0xfea   : > { %v2732_v9 = vadd.f32 %v3037_v61, %v2731_v24  ;;  %v3298_v20 = vpop.f32.mrb[33].mxu1 }
 0xfeb   : > { %v2734_v21 = vpop.f32.mrb[34].mxu1 }
 0xfec   : > { %v2737_v10 = vadd.f32 %v2732_v9, %v2511_v4  ;;  %v3299_v23 = vpop.f32.mrb[35].mxu1 }
 0xfee   : > { %v2740_v8 = vmul.f32 %v4471_v38, %v2737_v10 }
 0xff0   : > { %2741 = vadd.xlane.f32.xlu0 %v2740_v8 }
0x107d   : > { %v2742_v25 = vpop.xlane.xlu0 %2741 }
0x107e   : > { %v2743_v26 = vmul.f32 0.03125, %v2742_v25 }
0x1080   : > { %v2744_v27 = vsub.f32 %v2740_v8, %v2743_v26 }
0x1082   : > { %v2745_v29 = vmul.f32 %v4471_v38, %v2744_v27 }
0x1084   : > { %v2746_v30 = vmul.f32 %v2745_v29, %v2745_v29 }
0x1086   : > { %2747 = vadd.xlane.f32.xlu0 %v2746_v30 }
0x1113   : > { %v2748_v55 = vpop.xlane.xlu0 %2747 }
0x1114   : > { %v2749_v28 = vmul.f32 0.03125, %v2748_v55 }
0x1116   : > { %v2750_v22 = vadd.f32 1e-05, %v2749_v28 }
0x1118   : > { %3553 = vrsqrt.f32 %v2750_v22 }
0x1122   : > { %v3554_v33 = vpop.eup %3553 }
0x1123   : > { %v2752_v35 = vmul.f32 %v3554_v33, %v2745_v29 }
0x1125   : > { %v2759_v37 = vmul.f32 %v3046_v34, %v2752_v35 }
0x1127   : > { %v2766_v39 = vadd.f32 %v3047_v36, %v2759_v37 }
0x1129   : > { %2767 = vst [vmem:[%s669_s2] sm:$0xff] %v2766_v39 }
0x112a PF: > { %s4601_s19 = sld [smem:[#allocation9_spill]] }
0x1130   : > { %s31_s0 = sadd.s32 1, %s4601_s19  }
0x1131   : > { %p28_p3 = scmp.ge.s32.totalorder %s31_s0, 4  }
0x1133   :  { %30 = sbr.rel (!%p28_p3) target bundleno = 9 (0x9), region = 145 }
0x113a   :  { %2787 = vsyncpa [#allocation3], 1 }
0x113b   :  { %2789 = vsyncpa [#allocation3 + $0x1], 1 }
0x113c   :  { %2790 = vsyncpa [#allocation5], 1 }

// kernel: transformer_encoder_layer.5
= control target key start
LH: loop header
LB: loop body
LE: loop exit
PB: predicated region body
PF: predicated region fallthrough
CT: control target
= control target key end

     0   :  { %s4261_s0 = inlined_call_operand.vmem [shape: f32[2,8,128], index: 0, kind: input, shape index: {}]   ;;  %s4262_s1 = inlined_call_operand.vmem [shape: bf16[2,8,128], index: 1, kind: input, shape index: {}]   ;;  %s4263_s2 = inlined_call_operand.vmem [shape: f32[2,8,128], index: 2, kind: input, shape index: {}]   ;;  %s4264_s3 = inlined_call_operand.vmem [shape: bf16[128,512], index: 3, kind: input, shape index: {}]   ;;  %s4265_s4 = inlined_call_operand.vmem [shape: f32[1,512], index: 4, kind: input, shape index: {}]   ;;  %s4266_s5 = inlined_call_operand.vmem [shape: bf16[128,512], index: 5, kind: input, shape index: {}]   ;;  %s4267_s6 = inlined_call_operand.vmem [shape: f32[1,512], index: 6, kind: input, shape index: {}]   ;;  %s4268_s7 = inlined_call_operand.vmem [shape: bf16[128,512], index: 7, kind: input, shape index: {}]   ;;  %s4269_s8 = inlined_call_operand.vmem [shape: f32[1,512], index: 8, kind: input, shape index: {}]   ;;  %s4270_s9 = inlined_call_operand.vmem [shape: bf16[512,128], index: 9, kind: input, shape index: {}]   ;;  %s4271_s10 = inlined_call_operand.vmem [shape: f32[1,128], index: 10, kind: input, shape index: {}]   ;;  %s4272_s11 = inlined_call_operand.vmem [shape: f32[1,128], index: 11, kind: input, shape index: {}]   ;;  %s4273_s12 = inlined_call_operand.vmem [shape: f32[1,128], index: 12, kind: input, shape index: {}]   ;;  %s4274_s13 = inlined_call_operand.vmem [shape: bf16[128,128], index: 13, kind: input, shape index: {}]   ;;  %s4275_s14 = inlined_call_operand.vmem [shape: f32[1,128], index: 14, kind: input, shape index: {}]   ;;  %s4276_s15 = inlined_call_operand.vmem [shape: bf16[128,128], index: 15, kind: input, shape index: {}]   ;;  %s4277_s16 = inlined_call_operand.vmem [shape: f32[1,128], index: 16, kind: input, shape index: {}]   ;;  %s4278_s17 = inlined_call_operand.vmem [shape: f32[1,128], index: 17, kind: input, shape index: {}]   ;;  %s4279_s18 = inlined_call_operand.vmem [shape: f32[1,128], index: 18, kind: input, shape index: {}]   ;;  %s4280_s19 = inlined_call_operand.vmem [shape: f32[2,8,128], index: 19, kind: output, shape index: {}]  }
   0x1   :  { %4283 = sst [smem:[#allocation3_spill]] %s4261_s0  ;;  %s3561_s0 = smov 0  }
   0x2   :  { %4284 = sst [smem:[#allocation4_spill]] %s4262_s1 }
   0x3   :  { %4285 = sst [smem:[#allocation5_spill]] %s4263_s2 }
   0x4   :  { %4286 = sst [smem:[#allocation6_spill]] %s4264_s3 }
   0x5   :  { %4287 = sst [smem:[#allocation7_spill]] %s4279_s18 }
   0x6   :  { %4288 = sst [smem:[#allocation8_spill]] %s4280_s19 }
   0x7 LB: > { %4289 = sst [smem:[#allocation2_spill]] %s3456_s0  ;;  %s2807_s30 = sadd.s32 4294967295, %s3456_s0   ;;  %s3456_s0 = sphi %s3561_s0, %s29_s0  }
   0x8   : > { %p2811_p0 = scmp.ge.s32.totalorder %s3456_s0, 1  ;;  %p554_p1 = scmp.lt.s32.totalorder %s3456_s0, 3 }
   0xa   : > { %p555_p2 = pnand %p2811_p0, %p554_p1 }
   0xb   : > { %s4290_s1 = sld [smem:[#allocation6_spill]] (!%p555_p2)  ;;  %v3458_v2 = vmov (!%p555_p2), 0   ;;  %p616_p3 = scmp.lt.s32.totalorder (!%p555_p2), %s2807_s30, 1  ;;  %v3262_v20 = vld [vmem:[%s4266_s5 + $0x4] ss:$16 sps:$4 sm:$0xff] (!%p555_p2)   ;;  %v637_v59 = vlaneseq (!%p555_p2)  ;;  %vm3460_vm0 = vmmov (!%p555_p2), 0  }
   0xc   : > { %558 = sbr.rel (%p555_p2) target bundleno = 4305 (0x10d1), region = 96  ;;  %892 = vmatprep.mubr.bf16.mxu0 (!%p555_p2), %v3458_v2  ;;  %933 = vmatprep.mubr.bf16.mxu1 (!%p555_p2), %v3458_v2  ;;  %s4291_s2 = sld [smem:[#allocation3_spill]] (!%p555_p2)  ;;  %v3260_v21 = vld [vmem:[%s4266_s5] ss:$16 sps:$4 sm:$0xff] (!%p555_p2)   ;;  %v3265_v23 = vld [vmem:[%s4266_s5 + $0x24] ss:$16 sps:$4 sm:$0xff] (!%p555_p2)  }
   0xd   : > { %s4292_s3 = sld [smem:[#allocation5_spill]] (!%p555_p2)  ;;  %v3263_v24 = vld [vmem:[%s4266_s5 + $0x20] ss:$16 sps:$4 sm:$0xff] (!%p555_p2)   ;;  %v3268_v25 = vld [vmem:[%s4266_s5 + $0x44] ss:$16 sps:$4 sm:$0xff] (!%p555_p2)   ;;  %s4293_s20 = sld [smem:[#allocation4_spill]] (!%p555_p2) }
   0xe   : > { %v3266_v26 = vld [vmem:[%s4266_s5 + $0x40] ss:$16 sps:$4 sm:$0xff] (!%p555_p2)   ;;  %v3271_v27 = vld [vmem:[%s4266_s5 + $0x64] ss:$16 sps:$4 sm:$0xff] (!%p555_p2)   ;;  %v3745_v60 = vshrl.u32 (!%p555_p2), %v637_v59, 7  ;;  %vm1756_vm1 = vcmask (!%p555_p2), 1043456  }
   0xf   : > { %v3269_v28 = vld [vmem:[%s4266_s5 + $0x60] ss:$16 sps:$4 sm:$0xff] (!%p555_p2)   ;;  %v3274_v29 = vld [vmem:[%s4266_s5 + $0x84] ss:$16 sps:$4 sm:$0xff] (!%p555_p2)   ;;  %vm1740_vm2 = vcmask (!%p555_p2), 64512   ;;  %s4295_s18 = sld [smem:[#allocation8_spill]] (!%p555_p2) }
  0x10   : > { %v3272_v30 = vld [vmem:[%s4266_s5 + $0x80] ss:$16 sps:$4 sm:$0xff] (!%p555_p2)   ;;  %v3277_v31 = vld [vmem:[%s4266_s5 + $0xa4] ss:$16 sps:$4 sm:$0xff] (!%p555_p2)   ;;  %v3753_v62 = vsub.s32 (!%p555_p2), 0, %v3745_v60 }
  0x11   : > { %v3236_v0 = vld [vmem:[%s4290_s1 + $0x4] ss:$16 sps:$4 sm:$0xff] (!%p555_p2)   ;;  %v3238_v1 = vld [vmem:[%s4290_s1] ss:$16 sps:$4 sm:$0xff] (!%p555_p2)  }
  0x12   : > { %860 = vmatprep.subr.bf16.mxu0 (!%p555_p2), %v3236_v0  ;;  %v3239_v3 = vld [vmem:[%s4290_s1 + $0x24] ss:$16 sps:$4 sm:$0xff] (!%p555_p2)   ;;  %v3241_v4 = vld [vmem:[%s4290_s1 + $0x20] ss:$16 sps:$4 sm:$0xff] (!%p555_p2)  }
  0x13   : > { %861 = vmatpush1.bf16.msra.mxu0 %v3238_v1  ;;  %v3242_v5 = vld [vmem:[%s4290_s1 + $0x44] ss:$16 sps:$4 sm:$0xff]   ;;  %v3244_v6 = vld [vmem:[%s4290_s1 + $0x40] ss:$16 sps:$4 sm:$0xff]   ;;  %s4298_s30 = smov (!%p616_p3, %s2807_s30), 1 }
  0x14   : > { %862 = vmatprep.subr.bf16.mxu0 %v3239_v3  ;;  %v3245_v7 = vld [vmem:[%s4290_s1 + $0x64] ss:$16 sps:$4 sm:$0xff]   ;;  %v3247_v8 = vld [vmem:[%s4290_s1 + $0x60] ss:$16 sps:$4 sm:$0xff]   ;;  %s3607_s28 = sshll.u32 %s4298_s30, 3  ;;  %s2813_s25 = sshll.u32 %s4298_s30, 2 }
  0x15   : > { %v3248_v9 = vld [vmem:[%s4290_s1 + $0x84] ss:$16 sps:$4 sm:$0xff]   ;;  %v3250_v10 = vld [vmem:[%s4290_s1 + $0x80] ss:$16 sps:$4 sm:$0xff]   ;;  %s3616_s23 = scalar_lea.vmem %s4291_s2, %s3607_s28  ;;  %s627_s26 = scalar_lea.vmem %s4292_s3, %s3607_s28 }
  0x16   : > { %v3251_v11 = vld [vmem:[%s4290_s1 + $0xa4] ss:$16 sps:$4 sm:$0xff]   ;;  %v3253_v12 = vld [vmem:[%s4290_s1 + $0xa0] ss:$16 sps:$4 sm:$0xff]   ;;  %s623_s21 = scalar_lea.vmem %s4293_s20, %s2813_s25  ;;  %s4294_s2 = sld [smem:[#allocation7_spill]] }
  0x17   : > { %863 = vmatpush1.bf16.msra.mxu0 %v3241_v4  ;;  %v3254_v13 = vld [vmem:[%s4290_s1 + $0xc4] ss:$16 sps:$4 sm:$0xff]   ;;  %v3256_v14 = vld [vmem:[%s4290_s1 + $0xc0] ss:$16 sps:$4 sm:$0xff]   ;;  %s631_s19 = scalar_lea.vmem %s4295_s18, %s3607_s28 }
  0x18   : > { %864 = vmatprep.subr.bf16.mxu0 %v3242_v5  ;;  %v3257_v15 = vld [vmem:[%s4290_s1 + $0xe4] ss:$16 sps:$4 sm:$0xff]   ;;  %v3259_v18 = vld [vmem:[%s4290_s1 + $0xe0] ss:$16 sps:$4 sm:$0xff]  }
  0x19   : > { %v633_v16 = vld [vmem:[%s3616_s23] sm:$0xff] }
  0x1a   : > { %v636_v17 = vld [vmem:[%s627_s26] sm:$0xff] }
  0x1b   : > { %865 = vmatpush1.bf16.msra.mxu0 %v3244_v6  ;;  %v642_v19 = vadd.f32 %v636_v17, %v633_v16  ;;  %v3676_v32 = vld [vmem:[%s623_s21] sm:$0xf]  ;;  %v3280_v34 = vld [vmem:[%s4266_s5 + $0xc4] ss:$16 sps:$4 sm:$0xff]   ;;  %v3318_v16 = vld [vmem:[%s4290_s1 + $0x6c] ss:$16 sps:$4 sm:$0xff]  }
  0x1c   : > { %866 = vmatprep.subr.bf16.mxu0 %v3245_v7  ;;  %v3275_v33 = vld [vmem:[%s4266_s5 + $0xa0] ss:$16 sps:$4 sm:$0xff]   ;;  %v635_v36 = vunpack.c.l.bf16 %v3676_v32  ;;  %v3283_v37 = vld [vmem:[%s4266_s5 + $0xe4] ss:$16 sps:$4 sm:$0xff]  }
  0x1d   : > { %v3641_v22 = vpack.c.bf16 %v642_v19, %v642_v19  ;;  %v3278_v35 = vld [vmem:[%s4266_s5 + $0xc0] ss:$16 sps:$4 sm:$0xff]   ;;  %v3286_v42 = vld [vmem:[%s4268_s7 + $0x4] ss:$16 sps:$4 sm:$0xff]   ;;  %v3323_v19 = vld [vmem:[%s4290_s1 + $0x88] ss:$16 sps:$4 sm:$0xff]  }
  0x1e   : > { %v3281_v38 = vld [vmem:[%s4266_s5 + $0xe0] ss:$16 sps:$4 sm:$0xff]   ;;  %v644_v39 = vadd.f32 %v636_v17, %v635_v36  ;;  %v3289_v43 = vld [vmem:[%s4268_s7 + $0x24] ss:$16 sps:$4 sm:$0xff]   ;;  %v3320_v17 = vld [vmem:[%s4290_s1 + $0x68] ss:$16 sps:$4 sm:$0xff]  }
  0x1f   : > { %867 = vmatpush1.bf16.msra.mxu0 %v3247_v8  ;;  %v3284_v41 = vld [vmem:[%s4268_s7] ss:$16 sps:$4 sm:$0xff]   ;;  %v3292_v45 = vld [vmem:[%s4268_s7 + $0x44] ss:$16 sps:$4 sm:$0xff]   ;;  %v3767_v8 = vcombine.low %v3676_v32, %v3676_v32  ;;  %v3339_v32 = vld [vmem:[%s4266_s5 + $0x48] ss:$16 sps:$4 sm:$0xff]  }
  0x20   : > { %868 = vmatprep.subr.bf16.mxu0 %v3248_v9  ;;  %v3694_v40 = vpack.c.bf16 %v644_v39, %v644_v39  ;;  %v3287_v44 = vld [vmem:[%s4268_s7 + $0x20] ss:$16 sps:$4 sm:$0xff]   ;;  %v3295_v47 = vld [vmem:[%s4268_s7 + $0x64] ss:$16 sps:$4 sm:$0xff]   ;;  %v3459_v9 = vmov 0.0  }
  0x21   : > { %v3290_v46 = vld [vmem:[%s4268_s7 + $0x40] ss:$16 sps:$4 sm:$0xff]   ;;  %v3298_v49 = vld [vmem:[%s4268_s7 + $0x84] ss:$16 sps:$4 sm:$0xff]   ;;  %v3350_v36 = vld [vmem:[%s4266_s5 + $0xac] ss:$16 sps:$4 sm:$0xff]  }
  0x22   : > { %v3293_v48 = vld [vmem:[%s4268_s7 + $0x60] ss:$16 sps:$4 sm:$0xff]   ;;  %v3301_v51 = vld [vmem:[%s4268_s7 + $0xa4] ss:$16 sps:$4 sm:$0xff]   ;;  %v3351_v39 = vld [vmem:[%s4266_s5 + $0xc8] ss:$16 sps:$4 sm:$0xff]  }
  0x23   : > { %869 = vmatpush1.bf16.msra.mxu0 %v3250_v10  ;;  %v3296_v50 = vld [vmem:[%s4268_s7 + $0x80] ss:$16 sps:$4 sm:$0xff]   ;;  %v3304_v53 = vld [vmem:[%s4268_s7 + $0xc4] ss:$16 sps:$4 sm:$0xff]   ;;  %v3309_v10 = vld [vmem:[%s4290_s1 + $0xc] ss:$16 sps:$4 sm:$0xff]  }
  0x24   : > { %870 = vmatprep.subr.bf16.mxu0 %v3251_v11  ;;  %v3299_v52 = vld [vmem:[%s4268_s7 + $0xa0] ss:$16 sps:$4 sm:$0xff]   ;;  %v3307_v7 = vld [vmem:[%s4268_s7 + $0xe4] ss:$16 sps:$4 sm:$0xff]   ;;  %v3311_v11 = vld [vmem:[%s4290_s1 + $0x8] ss:$16 sps:$4 sm:$0xff]   ;;  %901 = vmatprep.subr.bf16.mxu1 %v3309_v10 }
  0x25   : > { %v3302_v54 = vld [vmem:[%s4268_s7 + $0xc0] ss:$16 sps:$4 sm:$0xff]   ;;  %902 = vmatpush1.bf16.msra.mxu1 %v3311_v11  ;;  %v3375_v10 = vld [vmem:[%s4268_s7 + $0xc8] ss:$16 sps:$4 sm:$0xff]   ;;  %v3380_v11 = vld [vmem:[%s4268_s7 + $0xec] ss:$16 sps:$4 sm:$0xff]  }
  0x26   : > { %v3750_v61 = vld [vmem:[%s4267_s6] sm:$0xf] }
  0x27   : > { %871 = vmatpush1.bf16.msra.mxu0 %v3253_v12  ;;  %v979_v63 = vrot.slane %v3750_v61, %v3753_v62  ;;  %v3305_v6 = vld [vmem:[%s4268_s7 + $0xe0] ss:$16 sps:$4 sm:$0xff]   ;;  %v3312_v12 = vld [vmem:[%s4290_s1 + $0x2c] ss:$16 sps:$4 sm:$0xff]  }
  0x28   : > { %872 = vmatprep.subr.bf16.mxu0 %v3254_v13  ;;  %v3314_v13 = vld [vmem:[%s4290_s1 + $0x28] ss:$16 sps:$4 sm:$0xff]   ;;  %903 = vmatprep.subr.bf16.mxu1 %v3312_v12 }
  0x29   : > { %904 = vmatpush1.bf16.msra.mxu1 %v3314_v13 }
  0x2b   : > { %873 = vmatpush1.bf16.msra.mxu0 %v3256_v14  ;;  %v3315_v14 = vld [vmem:[%s4290_s1 + $0x4c] ss:$16 sps:$4 sm:$0xff]  }
  0x2c   : > { %874 = vmatprep.subr.bf16.mxu0 %v3257_v15  ;;  %v3317_v15 = vld [vmem:[%s4290_s1 + $0x48] ss:$16 sps:$4 sm:$0xff]   ;;  %905 = vmatprep.subr.bf16.mxu1 %v3315_v14 }
  0x2d   : > { %906 = vmatpush1.bf16.msra.mxu1 %v3317_v15  ;;  %v3378_v14 = vld [vmem:[%s4268_s7 + $0xe8] ss:$16 sps:$4 sm:$0xff]  }
  0x2e   : > { %907 = vmatprep.subr.bf16.mxu1 %v3318_v16 }
  0x2f   : > { %875 = vmatpush1.bf16.msra.mxu0 %v3259_v18  ;;  %v3321_v18 = vld [vmem:[%s4290_s1 + $0x8c] ss:$16 sps:$4 sm:$0xff]  }
  0x30   : > { %1156 = vmatprep.subr.bf16.mxu0 %v3262_v20  ;;  %v3324_v20 = vld [vmem:[%s4290_s1 + $0xac] ss:$16 sps:$4 sm:$0xff]  }
  0x31   : > { %908 = vmatpush1.bf16.msra.mxu1 %v3320_v17 }
  0x32   : > { %893 = vmatmul.mubr.bf16.vlgmr.msra.gmra.mrb[0].mxu0 %v3641_v22  ;;  %909 = vmatprep.subr.bf16.mxu1 %v3321_v18 }
  0x33   : > { %1157 = vmatpush1.bf16.msra.mxu0 %v3260_v21  ;;  %1188 = vmatprep.mubr.bf16.mxu0 %v3458_v2  ;;  %v3326_v21 = vld [vmem:[%s4290_s1 + $0xa8] ss:$16 sps:$4 sm:$0xff]  }
  0x34   : > { %1158 = vmatprep.subr.bf16.mxu0 %v3265_v23  ;;  %v3327_v23 = vld [vmem:[%s4290_s1 + $0xcc] ss:$16 sps:$4 sm:$0xff]  }
  0x35   : > { %910 = vmatpush1.bf16.msra.mxu1 %v3323_v19 }
  0x36   : > { %911 = vmatprep.subr.bf16.mxu1 %v3324_v20 }
  0x37   : > { %1159 = vmatpush1.bf16.msra.mxu0 %v3263_v24  ;;  %v3329_v24 = vld [vmem:[%s4290_s1 + $0xc8] ss:$16 sps:$4 sm:$0xff]  }
  0x38   : > { %1160 = vmatprep.subr.bf16.mxu0 %v3268_v25  ;;  %v3330_v25 = vld [vmem:[%s4290_s1 + $0xec] ss:$16 sps:$4 sm:$0xff]  }
  0x39   : > { %912 = vmatpush1.bf16.msra.mxu1 %v3326_v21 }
  0x3a   : > { %913 = vmatprep.subr.bf16.mxu1 %v3327_v23 }
  0x3b   : > { %1161 = vmatpush1.bf16.msra.mxu0 %v3266_v26  ;;  %v3332_v26 = vld [vmem:[%s4290_s1 + $0xe8] ss:$16 sps:$4 sm:$0xff]  }
  0x3c   : > { %1162 = vmatprep.subr.bf16.mxu0 %v3271_v27  ;;  %v3335_v27 = vld [vmem:[%s4266_s5 + $0xc] ss:$16 sps:$4 sm:$0xff]  }
  0x3d   : > { %914 = vmatpush1.bf16.msra.mxu1 %v3329_v24  ;;  %v3934_v24 = vld [vmem:[%s4265_s4] sm:$0xf] }
  0x3e   : > { %915 = vmatprep.subr.bf16.mxu1 %v3330_v25  ;;  %v683_v25 = vrot.slane %v3934_v24, %v3753_v62 }
  0x3f   : > { %1163 = vmatpush1.bf16.msra.mxu0 %v3269_v28  ;;  %v3333_v28 = vld [vmem:[%s4266_s5 + $0x8] ss:$16 sps:$4 sm:$0xff]  }
  0x40   : > { %1164 = vmatprep.subr.bf16.mxu0 %v3274_v29  ;;  %v3338_v29 = vld [vmem:[%s4266_s5 + $0x2c] ss:$16 sps:$4 sm:$0xff]  }
  0x41   : > { %916 = vmatpush1.bf16.msra.mxu1 %v3332_v26 }
  0x42   : > { %1197 = vmatprep.subr.bf16.mxu1 %v3335_v27 }
  0x43   : > { %1165 = vmatpush1.bf16.msra.mxu0 %v3272_v30  ;;  %v3336_v30 = vld [vmem:[%s4266_s5 + $0x28] ss:$16 sps:$4 sm:$0xff]  }
  0x44   : > { %1166 = vmatprep.subr.bf16.mxu0 %v3277_v31  ;;  %934 = vmatmul.mubr.bf16.vlgmr.msra.gmra.mrb[0].mxu1 %v3641_v22  ;;  %v3341_v31 = vld [vmem:[%s4266_s5 + $0x4c] ss:$16 sps:$4 sm:$0xff]  }
  0x45   : > { %1198 = vmatpush1.bf16.msra.mxu1 %v3333_v28  ;;  %1229 = vmatprep.mubr.bf16.mxu1 %v3458_v2  ;;  %v3344_v22 = vld [vmem:[%s4266_s5 + $0x6c] ss:$16 sps:$4 sm:$0xff]  }
  0x46   : > { %1199 = vmatprep.subr.bf16.mxu1 %v3338_v29 }
  0x47   : > { %1167 = vmatpush1.bf16.msra.mxu0 %v3275_v33  ;;  %v3342_v33 = vld [vmem:[%s4266_s5 + $0x68] ss:$16 sps:$4 sm:$0xff]  }
  0x48   : > { %1168 = vmatprep.subr.bf16.mxu0 %v3280_v34  ;;  %v3347_v34 = vld [vmem:[%s4266_s5 + $0x8c] ss:$16 sps:$4 sm:$0xff]  }
  0x49   : > { %1200 = vmatpush1.bf16.msra.mxu1 %v3336_v30 }
  0x4a   : > { %1201 = vmatprep.subr.bf16.mxu1 %v3341_v31  ;;  %v3946_v31 = vld [vmem:[%s4269_s8] sm:$0xf] }
  0x4b   : > { %1169 = vmatpush1.bf16.msra.mxu0 %v3278_v35  ;;  %v3345_v35 = vld [vmem:[%s4266_s5 + $0x88] ss:$16 sps:$4 sm:$0xff]  }
  0x4c   : > { %1170 = vmatprep.subr.bf16.mxu0 %v3283_v37  ;;  %v3348_v37 = vld [vmem:[%s4266_s5 + $0xa8] ss:$16 sps:$4 sm:$0xff]  }
  0x4d   : > { %1202 = vmatpush1.bf16.msra.mxu1 %v3339_v32  ;;  %v3949_v32 = vsub.s32 1, %v3745_v60 }
  0x4e   : > { %1203 = vmatprep.subr.bf16.mxu1 %v3344_v22 }
  0x4f   : > { %1171 = vmatpush1.bf16.msra.mxu0 %v3281_v38  ;;  %v3353_v38 = vld [vmem:[%s4266_s5 + $0xcc] ss:$16 sps:$4 sm:$0xff]   ;;  %v1280_v22 = vrot.slane %v3946_v31, %v3949_v32 }
  0x50   : > { %1453 = vmatprep.subr.bf16.mxu0 %v3286_v42  ;;  %v3354_v42 = vld [vmem:[%s4266_s5 + $0xe8] ss:$16 sps:$4 sm:$0xff]  }
  0x51   : > { %1204 = vmatpush1.bf16.msra.mxu1 %v3342_v33 }
  0x52   : > { %1189 = vmatmul.mubr.bf16.vlgmr.msra.gmra.mrb[4].mxu0 %v3694_v40  ;;  %1205 = vmatprep.subr.bf16.mxu1 %v3347_v34 }
  0x53   : > { %1485 = vmatprep.mubr.bf16.mxu0 %v3458_v2  ;;  %1454 = vmatpush1.bf16.msra.mxu0 %v3284_v41  ;;  %v3356_v41 = vld [vmem:[%s4266_s5 + $0xec] ss:$16 sps:$4 sm:$0xff]  }
  0x54   : > { %1455 = vmatprep.subr.bf16.mxu0 %v3289_v43  ;;  %v3359_v43 = vld [vmem:[%s4268_s7 + $0xc] ss:$16 sps:$4 sm:$0xff]  }
  0x55   : > { %1206 = vmatpush1.bf16.msra.mxu1 %v3345_v35 }
  0x56   : > { %1207 = vmatprep.subr.bf16.mxu1 %v3350_v36 }
  0x57   : > { %1456 = vmatpush1.bf16.msra.mxu0 %v3287_v44 }
  0x58   : > { %1457 = vmatprep.subr.bf16.mxu0 %v3292_v45  ;;  %v3357_v45 = vld [vmem:[%s4268_s7 + $0x8] ss:$16 sps:$4 sm:$0xff]  }
  0x59   : > { %1208 = vmatpush1.bf16.msra.mxu1 %v3348_v37 }
  0x5a   : > { %1209 = vmatprep.subr.bf16.mxu1 %v3353_v38 }
  0x5b   : > { %1458 = vmatpush1.bf16.msra.mxu0 %v3290_v46  ;;  %v3362_v46 = vld [vmem:[%s4268_s7 + $0x2c] ss:$16 sps:$4 sm:$0xff]  }
  0x5c   : > { %1459 = vmatprep.subr.bf16.mxu0 %v3295_v47 }
  0x5d   : > { %1210 = vmatpush1.bf16.msra.mxu1 %v3351_v39 }
  0x5e   : > { %1211 = vmatprep.subr.bf16.mxu1 %v3356_v41 }
  0x5f   : > { %1460 = vmatpush1.bf16.msra.mxu0 %v3293_v48 }
  0x60   : > { %1461 = vmatprep.subr.bf16.mxu0 %v3298_v49  ;;  %v3360_v49 = vld [vmem:[%s4268_s7 + $0x28] ss:$16 sps:$4 sm:$0xff]  }
  0x61   : > { %1212 = vmatpush1.bf16.msra.mxu1 %v3354_v42 }
  0x62   : > { %1494 = vmatprep.subr.bf16.mxu1 %v3359_v43 }
  0x63   : > { %1462 = vmatpush1.bf16.msra.mxu0 %v3296_v50  ;;  %v3365_v50 = vld [vmem:[%s4268_s7 + $0x4c] ss:$16 sps:$4 sm:$0xff]  }
  0x64   : > { %1463 = vmatprep.subr.bf16.mxu0 %v3301_v51  ;;  %1230 = vmatmul.mubr.bf16.vlgmr.msra.gmra.mrb[4].mxu1 %v3694_v40  ;;  %v3363_v40 = vld [vmem:[%s4268_s7 + $0x48] ss:$16 sps:$4 sm:$0xff]  }
  0x65   : > { %1495 = vmatpush1.bf16.msra.mxu1 %v3357_v45  ;;  %1526 = vmatprep.mubr.bf16.mxu1 %v3458_v2 }
  0x66   : > { %1496 = vmatprep.subr.bf16.mxu1 %v3362_v46 }
  0x67   : > { %1464 = vmatpush1.bf16.msra.mxu0 %v3299_v52  ;;  %v3368_v52 = vld [vmem:[%s4268_s7 + $0x6c] ss:$16 sps:$4 sm:$0xff]  }
  0x68   : > { %1465 = vmatprep.subr.bf16.mxu0 %v3304_v53 }
  0x69   : > { %1497 = vmatpush1.bf16.msra.mxu1 %v3360_v49 }
  0x6a   : > { %1498 = vmatprep.subr.bf16.mxu1 %v3365_v50 }
  0x6b   : > { %1466 = vmatpush1.bf16.msra.mxu0 %v3302_v54  ;;  %v3366_v54 = vld [vmem:[%s4268_s7 + $0x68] ss:$16 sps:$4 sm:$0xff]  }
  0x6c   : > { %1467 = vmatprep.subr.bf16.mxu0 %v3307_v7 }
  0x6d   : > { %1499 = vmatpush1.bf16.msra.mxu1 %v3363_v40 }
  0x6e   : > { %1500 = vmatprep.subr.bf16.mxu1 %v3368_v52  ;;  %v983_v52 = vrot.slane %v3750_v61, %v3949_v32 }
  0x6f   : > { %1468 = vmatpush1.bf16.msra.mxu0 %v3305_v6  ;;  %v3377_v6 = vld [vmem:[%s4268_s7 + $0xcc] ss:$16 sps:$4 sm:$0xff]  }
  0x70   : > { %3081 = vmatprep.subr.bf16.mxu0 %v3459_v9 }
  0x71   : > { %1501 = vmatpush1.bf16.msra.mxu1 %v3366_v54 }
  0x72   : > { %1486 = vmatmul.mubr.bf16.vlgmr.msra.gmra.mrb[8].mxu0 %v3767_v8 }
  0x73   : > { %3097 = vmatprep.mubr.msk.bf16.mxu0 %vm3460_vm0, %v3459_v9 }
 0x105   : > { %v3740_v55 = vpop.f32.mrb[0].mxu0 }
 0x106   : > { %v3742_v56 = vpop.f32.mrb[1].mxu0  ;;  %v895_v27 = vadd.f32 %v3740_v55, %v683_v25  ;;  %v1276_v55 = vrot.slane %v3946_v31, %v3753_v62 }
 0x107   : > { %v898_v57 = vpop.f32.mrb[2].mxu0 }
 0x108   : > { %v899_v58 = vpop.f32.mrb[3].mxu0  ;;  %v3371_v57 = vld [vmem:[%s4268_s7 + $0x8c] ss:$16 sps:$4 sm:$0xff]   ;;  %v1699_v30 = vpack.c.bf16 %v895_v27, %v895_v27 }
 0x109   : > { %1502 = vmatprep.subr.bf16.mxu1 %v3371_v57  ;;  %v3968_v57 = vsub.s32 3, %v3745_v60 }
 0x117   : > { %v935_v54 = vpop.f32.mrb[0].mxu1 }
 0x125   : > { %v1190_v0 = vpop.f32.mrb[4].mxu0 }
 0x126   : > { %v3757_v1 = vpop.f32.mrb[5].mxu0  ;;  %v1191_v3 = vadd.f32 %v1190_v0, %v979_v63  ;;  %v3369_v63 = vld [vmem:[%s4268_s7 + $0x88] ss:$16 sps:$4 sm:$0xff]   ;;  %v3374_v0 = vld [vmem:[%s4268_s7 + $0xac] ss:$16 sps:$4 sm:$0xff]  }
 0x127   : > { %v1194_v4 = vpop.f32.mrb[6].mxu0  ;;  %1503 = vmatpush1.bf16.msra.mxu1 %v3369_v63 }
 0x128   : > { %v1195_v5 = vpop.f32.mrb[7].mxu0  ;;  %1539 = vxpose.xlu0.b32.start.end [1/1] (short) %v1191_v3, 128  ;;  %1504 = vmatprep.subr.bf16.mxu1 %v3374_v0  ;;  %v695_v0 = vrot.slane %v3934_v24, %v3968_v57 }
 0x129   : > { %v3372_v5 = vld [vmem:[%s4268_s7 + $0xa8] ss:$16 sps:$4 sm:$0xff]  }
 0x12b   : > { %1505 = vmatpush1.bf16.msra.mxu1 %v3372_v5 }
 0x12c   : > { %1506 = vmatprep.subr.bf16.mxu1 %v3377_v6 }
 0x12f   : > { %1507 = vmatpush1.bf16.msra.mxu1 %v3375_v10 }
 0x130   : > { %1508 = vmatprep.subr.bf16.mxu1 %v3380_v11 }
 0x133   : > { %1509 = vmatpush1.bf16.msra.mxu1 %v3378_v14 }
 0x134   : > { %3101 = vmatprep.subr.bf16.mxu1 %v3459_v9 }
 0x136   : > { %1527 = vmatmul.mubr.bf16.vlgmr.msra.gmra.mrb[8].mxu1 %v3767_v8 }
 0x137   : > { %3103 = vmatprep.mubr.msk.bf16.mxu1 %vm3460_vm0, %v3459_v9 }
 0x145   : > { %v1487_v33 = vpop.f32.mrb[8].mxu0 }
 0x146   : > { %v1488_v34 = vadd.f32 %v1487_v33, %v1276_v55  ;;  %v1489_v35 = vpop.f32.mrb[9].mxu0 }
 0x147   : > { %v1490_v36 = vadd.f32 %v1489_v35, %v1280_v22  ;;  %v1491_v37 = vpop.f32.mrb[10].mxu0 }
 0x148   : > { %v1535_v38 = vpack.c.bf16 %v1488_v34, %v1488_v34  ;;  %v1492_v39 = vpop.f32.mrb[11].mxu0 }
 0x149   : > { %v1536_v41 = vpack.c.bf16 %v1490_v36, %v1490_v36 }
 0x14a   : > { %v1758_v42 = vsel %vm1756_vm1, %v1535_v38, 0 }
 0x14b   : > { %v1857_v43 = vsel %vm1756_vm1, %v1536_v41, 0  ;;  %3102 = vmatpush3.bf16.msra.mxu1 %v1758_v42 }
 0x14c   : > { %3107 = vmatprep.subr.bf16.mxu1 %v3459_v9 }
 0x1a8   : > { %v1555_v44 = vpop.trf.xlu0 }
 0x1ac   : > { %v1556_v47 = vpop.trf.xlu0 }
 0x1ad   : > { %v1667_v48 = vpack.c.bf16 %v1556_v47, %v1555_v44 }
 0x1af   : > { %3082 = vmatpush3.bf16.msra.mxu0 %v1667_v48 }
 0x1b0   : > { %v1557_v51 = vpop.trf.xlu0  ;;  %3083 = vmatprep.subr.bf16.mxu0 %v3459_v9 }
 0x1b4   : > { %v1558_v2 = vpop.trf.xlu0 }
 0x1b5   : > { %v1668_v53 = vpack.c.bf16 %v1558_v2, %v1557_v51  ;;  %v1193_v2 = vadd.f32 %v3757_v1, %v983_v52  ;;  %v991_v1 = vrot.slane %v3750_v61, %v3968_v57 }
 0x1b7   : > { %3084 = vmatpush3.bf16.msra.mxu0 %v1668_v53  ;;  %v3965_v53 = vsub.s32 2, %v3745_v60 }
 0x1b8   : > { %v1559_v58 = vpop.trf.xlu0  ;;  %3085 = vmatprep.subr.bf16.mxu0 %v3459_v9 }
 0x1b9   : > { %v691_v63 = vrot.slane %v3934_v24, %v3965_v53 }
 0x1bb   : > { %v3978_v6 = vadd.f32 %v935_v54, %v691_v63 }
 0x1bc   : > { %v1560_v3 = vpop.trf.xlu0 }
 0x1bd   : > { %v1669_v4 = vpack.c.bf16 %v1560_v3, %v1559_v58  ;;  %v937_v58 = vpop.f32.mrb[1].mxu1 }
 0x1be   : > { %v939_v3 = vpop.f32.mrb[2].mxu1 }
 0x1bf   : > { %3086 = vmatpush3.bf16.msra.mxu0 %v1669_v4  ;;  %v987_v4 = vrot.slane %v3750_v61, %v3965_v53  ;;  %v940_v5 = vpop.f32.mrb[3].mxu1 }
 0x1c0   : > { %v1561_v7 = vpop.trf.xlu0  ;;  %3087 = vmatprep.subr.bf16.mxu0 %v3459_v9  ;;  %v1231_v60 = vpop.f32.mrb[4].mxu1 }
 0x1c1   : > { %v3982_v10 = vadd.f32 %v1231_v60, %v987_v4  ;;  %v1233_v11 = vpop.f32.mrb[5].mxu1 }
 0x1c4   : > { %v1562_v12 = vpop.trf.xlu0 }
 0x1c5   : > { %v1670_v13 = vpack.c.bf16 %v1562_v12, %v1561_v7  ;;  %v3980_v7 = vadd.f32 %v937_v58, %v695_v0  ;;  %v3984_v12 = vadd.f32 %v1233_v11, %v991_v1 }
 0x1c7   : > { %3088 = vmatpush3.bf16.msra.mxu0 %v1670_v13  ;;  %v1235_v13 = vpop.f32.mrb[6].mxu1 }
 0x1c8   : > { %v1563_v15 = vpop.trf.xlu0  ;;  %3089 = vmatprep.subr.bf16.mxu0 %v3459_v9  ;;  %v1236_v14 = vpop.f32.mrb[7].mxu1 }
 0x1cc   : > { %v1564_v16 = vpop.trf.xlu0 }
 0x1cd   : > { %v1671_v17 = vpack.c.bf16 %v1564_v16, %v1563_v15 }
 0x1cf   : > { %3090 = vmatpush3.bf16.msra.mxu0 %v1671_v17 }
 0x1d0   : > { %v1565_v18 = vpop.trf.xlu0  ;;  %3091 = vmatprep.subr.bf16.mxu0 %v3459_v9 }
 0x1d4   : > { %v1566_v19 = vpop.trf.xlu0 }
 0x1d5   : > { %v1672_v20 = vpack.c.bf16 %v1566_v19, %v1565_v18 }
 0x1d7   : > { %3092 = vmatpush3.bf16.msra.mxu0 %v1672_v20 }
 0x1d8   : > { %v1567_v21 = vpop.trf.xlu0  ;;  %3093 = vmatprep.subr.bf16.mxu0 %v3459_v9 }
 0x1dc   : > { %v1568_v23 = vpop.trf.xlu0 }
 0x1dd   : > { %v1673_v8 = vpack.c.bf16 %v1568_v23, %v1567_v21 }
 0x1df   : > { %3094 = vmatpush3.bf16.msra.mxu0 %v1673_v8 }
 0x1e0   : > { %v1569_v26 = vpop.trf.xlu0  ;;  %3095 = vmatprep.subr.bf16.mxu0 %v3459_v9 }
 0x1e4   : > { %v1570_v28 = vpop.trf.xlu0 }
 0x1e5   : > { %v1674_v29 = vpack.c.bf16 %v1570_v28, %v1569_v26 }
 0x1e7   : > { %3096 = vmatpush3.bf16.msra.mxu0 %v1674_v29 }
 0x1e8   : > { %3127 = vmatprep.subr.bf16.mxu0 %v3459_v9 }
 0x1ea   : > { %3098 = vmatmul.mubr.bf16.vlgmr.msra.gmra.mrb[12].mxu0 %v1699_v30 }
 0x1eb   : > { %3129 = vmatprep.mubr.msk.bf16.mxu0 %vm3460_vm0, %v3459_v9  ;;  %3128 = vmatpush3.bf16.msra.mxu0 %v1857_v43 }
 0x1ec   : > { %3133 = vmatprep.subr.bf16.mxu0 %v3459_v9 }
 0x209   : > { %v1528_v15 = vpop.f32.mrb[8].mxu1 }
 0x20a   : > { %v3986_v16 = vpop.f32.mrb[9].mxu1 }
 0x20b   : > { %v1532_v17 = vpop.f32.mrb[10].mxu1 }
 0x20c   : > { %v1533_v18 = vpop.f32.mrb[11].mxu1 }
 0x2bd   : > { %v1734_v62 = vpop.f32.mrb[12].mxu0 }
 0x2be   : > { %v3099_v44 = vpop.f32.mrb[13].mxu0  ;;  %v1741_v45 = vsel %vm1740_vm2, %v1734_v62, -inf }
 0x2bf   : > { %1742 = vmax.xlane.f32.xlu0 %v1741_v45  ;;  %v1737_v46 = vpop.f32.mrb[14].mxu0  ;;  %v687_v45 = vrot.slane %v3934_v24, %v3949_v32 }
 0x2c0   : > { %v3100_v47 = vpop.f32.mrb[15].mxu0 }
 0x34c   : > { %v1743_v48 = vpop.xlane.xlu0 %1742 }
 0x34d   : > { %v1744_v49 = vsub.f32 %v1734_v62, %v1743_v48  ;;  %v1284_v62 = vrot.slane %v3946_v31, %v3965_v53  ;;  %v897_v48 = vadd.f32 %v3742_v56, %v687_v45 }
 0x34f   : > { %v1745_v50 = vmul.f32 1.442695, %v1744_v49  ;;  %v1529_v47 = vadd.f32 %v1528_v15, %v1284_v62  ;;  %v1899_v62 = vpack.c.bf16 %v3978_v6, %v3978_v6 }
 0x351   : > { %3429 = vpow2.f32 %v1745_v50  ;;  %v1537_v50 = vpack.c.bf16 %v1529_v47, %v1529_v47 }
 0x353   : > { %v1956_v52 = vsel %vm1756_vm1, %v1537_v50, 0 }
 0x35b   : > { %v3430_v51 = vpop.eup %3429 }
 0x35c   : > { %v1747_v40 = vsel %vm1740_vm2, %v3430_v51, 0.0 }
 0x35d   : > { %1748 = vadd.xlane.f32.xlu1 %v1747_v40  ;;  %v1800_v40 = vpack.c.bf16 %v897_v48, %v897_v48 }
 0x390   : > { %1571 = vxpose.xlu1.b32.start.end [1/1] (short) %v1193_v2, 128 }
 0x3ea   : > { %v1749_v19 = vpop.xlane.xlu1 %1748 }
 0x3eb   : > { %3431 = vrcp.f32 %v1749_v19 }
 0x3f5   : > { %v3432_v61 = vpop.eup %3431 }
 0x3f6   : > { %v1751_v20 = vmul.f32 %v3432_v61, %v3430_v51 }
 0x3f8   : > { %v1752_v21 = vpack.c.bf16 %v1751_v20, %v1751_v20 }
 0x3fa   : > { %3104 = vmatmul.mubr.msk.bf16.vlgmr.msra.gmra.mrb[12].mxu1 %vm1740_vm2, %v1752_v21 }
 0x3fb   : > { %3123 = vmatprep.mubr.msk.bf16.mxu1 %vm3460_vm0, %v3459_v9 }
 0x410   : > { %v1587_v23 = vpop.trf.xlu1 }
 0x414   : > { %v1588_v8 = vpop.trf.xlu1 }
 0x415   : > { %v1675_v25 = vpack.c.bf16 %v1588_v8, %v1587_v23 }
 0x417   : > { %3108 = vmatpush3.bf16.msra.mxu1 %v1675_v25 }
 0x418   : > { %v1589_v26 = vpop.trf.xlu1  ;;  %3109 = vmatprep.subr.bf16.mxu1 %v3459_v9 }
 0x41c   : > { %v1590_v27 = vpop.trf.xlu1 }
 0x41d   : > { %v1676_v28 = vpack.c.bf16 %v1590_v27, %v1589_v26 }
 0x41f   : > { %3110 = vmatpush3.bf16.msra.mxu1 %v1676_v28 }
 0x420   : > { %v1591_v29 = vpop.trf.xlu1  ;;  %3111 = vmatprep.subr.bf16.mxu1 %v3459_v9 }
 0x424   : > { %v1592_v30 = vpop.trf.xlu1 }
 0x425   : > { %v1677_v55 = vpack.c.bf16 %v1592_v30, %v1591_v29 }
 0x427   : > { %3112 = vmatpush3.bf16.msra.mxu1 %v1677_v55 }
 0x428   : > { %v1593_v22 = vpop.trf.xlu1  ;;  %3113 = vmatprep.subr.bf16.mxu1 %v3459_v9 }
 0x42c   : > { %v1594_v33 = vpop.trf.xlu1 }
 0x42d   : > { %v1678_v34 = vpack.c.bf16 %v1594_v33, %v1593_v22 }
 0x42f   : > { %3114 = vmatpush3.bf16.msra.mxu1 %v1678_v34 }
 0x430   : > { %v1595_v35 = vpop.trf.xlu1  ;;  %3115 = vmatprep.subr.bf16.mxu1 %v3459_v9 }
 0x434   : > { %v1596_v36 = vpop.trf.xlu1 }
 0x435   : > { %v1679_v37 = vpack.c.bf16 %v1596_v36, %v1595_v35 }
 0x437   : > { %3116 = vmatpush3.bf16.msra.mxu1 %v1679_v37  ;;  %v1288_v37 = vrot.slane %v3946_v31, %v3968_v57 }
 0x438   : > { %v1597_v38 = vpop.trf.xlu1  ;;  %3117 = vmatprep.subr.bf16.mxu1 %v3459_v9 }
 0x43c   : > { %v1598_v39 = vpop.trf.xlu1 }
 0x43d   : > { %v1680_v41 = vpack.c.bf16 %v1598_v39, %v1597_v38  ;;  %v1531_v39 = vadd.f32 %v3986_v16, %v1288_v37 }
 0x43f   : > { %3118 = vmatpush3.bf16.msra.mxu1 %v1680_v41 }
 0x440   : > { %v1599_v42 = vpop.trf.xlu1  ;;  %3119 = vmatprep.subr.bf16.mxu1 %v3459_v9 }
 0x444   : > { %v1600_v43 = vpop.trf.xlu1 }
 0x445   : > { %v1681_v44 = vpack.c.bf16 %v1600_v43, %v1599_v42  ;;  %v1538_v43 = vpack.c.bf16 %v1531_v39, %v1531_v39 }
 0x447   : > { %3120 = vmatpush3.bf16.msra.mxu1 %v1681_v44  ;;  %v2055_v44 = vsel %vm1756_vm1, %v1538_v43, 0  ;;  %v3397_v43 = vld [vmem:[%s4270_s9 + $0xc0] sm:$0xff]  }
 0x448   : > { %v1601_v46 = vpop.trf.xlu1  ;;  %3121 = vmatprep.subr.bf16.mxu1 %v3459_v9 }
 0x44c   : > { %v1602_v49 = vpop.trf.xlu1 }
 0x44d   : > { %v1682_v51 = vpack.c.bf16 %v1602_v49, %v1601_v46 }
 0x44f   : > { %3122 = vmatpush3.bf16.msra.mxu1 %v1682_v51 }
 0x450   : > { %3153 = vmatprep.subr.bf16.mxu1 %v3459_v9 }
 0x452   : > { %3124 = vmatmul.mubr.bf16.vlgmr.msra.gmra.mrb[16].mxu1 %v1800_v40 }
 0x453   : > { %3154 = vmatpush3.bf16.msra.mxu1 %v1956_v52  ;;  %3155 = vmatprep.mubr.msk.bf16.mxu1 %vm3460_vm0, %v3459_v9 }
 0x454   : > { %3159 = vmatprep.subr.bf16.mxu1 %v3459_v9 }
 0x4cd   : > { %v4008_v24 = vpop.f32.mrb[12].mxu1 }
 0x4ce   : > { %v3105_v32 = vpop.f32.mrb[13].mxu1 }
 0x4cf   : > { %v1797_v56 = vpop.f32.mrb[14].mxu1 }
 0x4d0   : > { %v3106_v2 = vpop.f32.mrb[15].mxu1 }
 0x525   : > { %v1835_v53 = vpop.f32.mrb[16].mxu1 }
 0x526   : > { %v3125_v54 = vpop.f32.mrb[17].mxu1  ;;  %v1841_v58 = vsel %vm1740_vm2, %v1835_v53, -inf }
 0x527   : > { %1842 = vmax.xlane.f32.xlu1 %v1841_v58  ;;  %v1838_v63 = vpop.f32.mrb[18].mxu1 }
 0x528   : > { %v3126_v0 = vpop.f32.mrb[19].mxu1 }
 0x5b4   : > { %v1843_v3 = vpop.xlane.xlu1 %1842 }
 0x5b5   : > { %v1844_v4 = vsub.f32 %v1835_v53, %v1843_v3 }
 0x5b7   : > { %v1845_v1 = vmul.f32 1.442695, %v1844_v4 }
 0x5b9   : > { %3433 = vpow2.f32 %v1845_v1 }
 0x5c3   : > { %v3434_v5 = vpop.eup %3433 }
 0x5c4   : > { %v1847_v60 = vsel %vm1740_vm2, %v3434_v5, 0.0 }
 0x5c5   : > { %1848 = vadd.xlane.f32.xlu0 %v1847_v60 }
 0x5f2   : > { %1603 = vxpose.xlu0.b32.start.end [1/1] (short) %v3982_v10, 128 }
 0x652   : > { %v1849_v11 = vpop.xlane.xlu0 %1848 }
 0x653   : > { %3435 = vrcp.f32 %v1849_v11 }
 0x65d   : > { %v3436_v13 = vpop.eup %3435 }
 0x65e   : > { %v1851_v14 = vmul.f32 %v3436_v13, %v3434_v5 }
 0x660   : > { %v1852_v15 = vpack.c.bf16 %v1851_v14, %v1851_v14 }
 0x662   : > { %3130 = vmatmul.mubr.msk.bf16.vlgmr.msra.gmra.mrb[16].mxu0 %vm1740_vm2, %v1852_v15 }
 0x663   : > { %3149 = vmatprep.mubr.msk.bf16.mxu0 %vm3460_vm0, %v3459_v9 }
 0x672   : > { %v1619_v17 = vpop.trf.xlu0 }
 0x676   : > { %v1620_v18 = vpop.trf.xlu0 }
 0x677   : > { %v1683_v19 = vpack.c.bf16 %v1620_v18, %v1619_v17 }
 0x679   : > { %3134 = vmatpush3.bf16.msra.mxu0 %v1683_v19 }
 0x67a   : > { %v1621_v61 = vpop.trf.xlu0  ;;  %3135 = vmatprep.subr.bf16.mxu0 %v3459_v9 }
 0x67e   : > { %v1622_v20 = vpop.trf.xlu0 }
 0x67f   : > { %v1684_v21 = vpack.c.bf16 %v1622_v20, %v1621_v61 }
 0x681   : > { %3136 = vmatpush3.bf16.msra.mxu0 %v1684_v21 }
 0x682   : > { %v1623_v10 = vpop.trf.xlu0  ;;  %3137 = vmatprep.subr.bf16.mxu0 %v3459_v9 }
 0x686   : > { %v1624_v23 = vpop.trf.xlu0 }
 0x687   : > { %v1685_v8 = vpack.c.bf16 %v1624_v23, %v1623_v10 }
 0x689   : > { %3138 = vmatpush3.bf16.msra.mxu0 %v1685_v8 }
 0x68a   : > { %v1625_v25 = vpop.trf.xlu0  ;;  %3139 = vmatprep.subr.bf16.mxu0 %v3459_v9 }
 0x68e   : > { %v1626_v26 = vpop.trf.xlu0 }
 0x68f   : > { %v1686_v27 = vpack.c.bf16 %v1626_v26, %v1625_v25 }
 0x691   : > { %3140 = vmatpush3.bf16.msra.mxu0 %v1686_v27  ;;  %v1998_v27 = vpack.c.bf16 %v3980_v7, %v3980_v7 }
 0x692   : > { %v1627_v28 = vpop.trf.xlu0  ;;  %3141 = vmatprep.subr.bf16.mxu0 %v3459_v9 }
 0x696   : > { %v1628_v29 = vpop.trf.xlu0 }
 0x697   : > { %v1687_v30 = vpack.c.bf16 %v1628_v29, %v1627_v28 }
 0x699   : > { %3142 = vmatpush3.bf16.msra.mxu0 %v1687_v30 }
 0x69a   : > { %v1629_v55 = vpop.trf.xlu0  ;;  %3143 = vmatprep.subr.bf16.mxu0 %v3459_v9 }
 0x69e   : > { %v1630_v22 = vpop.trf.xlu0 }
 0x69f   : > { %v1688_v33 = vpack.c.bf16 %v1630_v22, %v1629_v55 }
 0x6a1   : > { %3144 = vmatpush3.bf16.msra.mxu0 %v1688_v33 }
 0x6a2   : > { %v1631_v34 = vpop.trf.xlu0  ;;  %3145 = vmatprep.subr.bf16.mxu0 %v3459_v9 }
 0x6a6   : > { %v1632_v35 = vpop.trf.xlu0 }
 0x6a7   : > { %v1689_v36 = vpack.c.bf16 %v1632_v35, %v1631_v34 }
 0x6a9   : > { %3146 = vmatpush3.bf16.msra.mxu0 %v1689_v36 }
 0x6aa   : > { %v1633_v38 = vpop.trf.xlu0  ;;  %3147 = vmatprep.subr.bf16.mxu0 %v3459_v9 }
 0x6ae   : > { %v1634_v41 = vpop.trf.xlu0 }
 0x6af   : > { %v1690_v42 = vpack.c.bf16 %v1634_v41, %v1633_v38 }
 0x6b1   : > { %3148 = vmatpush3.bf16.msra.mxu0 %v1690_v42  ;;  %v3381_v42 = vld [vmem:[%s4270_s9 + $0x40] sm:$0xff]  }
 0x6b2   : > { %3179 = vmatprep.subr.bf16.mxu0 %v3459_v9 }
 0x6b4   : > { %3150 = vmatmul.mubr.bf16.vlgmr.msra.gmra.mrb[20].mxu0 %v1899_v62  ;;  %v3398_v62 = vld [vmem:[%s4270_s9 + $0x80] sm:$0xff]  }
 0x6b5   : > { %3180 = vmatpush3.bf16.msra.mxu0 %v2055_v44  ;;  %3181 = vmatprep.mubr.msk.bf16.mxu0 %vm3460_vm0, %v3459_v9  ;;  %v3399_v44 = vld [vmem:[%s4270_s9 + $0xc8] sm:$0xff]  }
 0x6b6   : > { %3019 = vmatprep.subr.bf16.mxu0 %v3381_v42  ;;  %v3414_v42 = vld [vmem:[%s4274_s13 + $0x8] sm:$0xff]  }
 0x735   : > { %v4032_v31 = vpop.f32.mrb[16].mxu0 }
 0x736   : > { %v3131_v57 = vpop.f32.mrb[17].mxu0 }
 0x737   : > { %v1896_v16 = vpop.f32.mrb[18].mxu0  ;;  %v3400_v57 = vld [vmem:[%s4270_s9 + $0x88] sm:$0xff]  }
 0x738   : > { %v3132_v45 = vpop.f32.mrb[19].mxu0  ;;  %v3401_v16 = vld [vmem:[%s4270_s9 + $0xd0] sm:$0xff]  }
 0x739   : > { %v3402_v45 = vld [vmem:[%s4270_s9 + $0x90] sm:$0xff]  }
 0x787   : > { %v1934_v46 = vpop.f32.mrb[20].mxu0 }
 0x788   : > { %v3151_v47 = vpop.f32.mrb[21].mxu0  ;;  %v1940_v48 = vsel %vm1740_vm2, %v1934_v46, -inf }
 0x789   : > { %1941 = vmax.xlane.f32.xlu1 %v1940_v48  ;;  %v1937_v6 = vpop.f32.mrb[22].mxu0  ;;  %v3404_v47 = vld [vmem:[%s4270_s9 + $0x98] sm:$0xff]   ;;  %v3405_v48 = vld [vmem:[%s4270_s9 + $0xe0] sm:$0xff]  }
 0x78a   : > { %v3152_v49 = vpop.f32.mrb[23].mxu0  ;;  %v3406_v6 = vld [vmem:[%s4270_s9 + $0xa0] sm:$0xff]  }
 0x78b   : > { %v3407_v49 = vld [vmem:[%s4270_s9 + $0xe8] sm:$0xff]  }
 0x7bc   : > { %1635 = vxpose.xlu1.b32.start.end [1/1] (short) %v3984_v12, 128 }
 0x816   : > { %v1942_v50 = vpop.xlane.xlu1 %1941 }
 0x817   : > { %v1943_v51 = vsub.f32 %v1934_v46, %v1942_v50  ;;  %v3403_v46 = vld [vmem:[%s4270_s9 + $0xd8] sm:$0xff]   ;;  %v3408_v50 = vld [vmem:[%s4270_s9 + $0xa8] sm:$0xff]  }
 0x819   : > { %v1944_v40 = vmul.f32 1.442695, %v1943_v51  ;;  %v3409_v51 = vld [vmem:[%s4270_s9 + $0xf0] sm:$0xff]  }
 0x81b   : > { %3437 = vpow2.f32 %v1944_v40  ;;  %v3410_v40 = vld [vmem:[%s4270_s9 + $0xb0] sm:$0xff]  }
 0x825   : > { %v3438_v52 = vpop.eup %3437 }
 0x826   : > { %v1946_v32 = vsel %vm1740_vm2, %v3438_v52, 0.0 }
 0x827   : > { %1947 = vadd.xlane.f32.xlu0 %v1946_v32 }
 0x83c   : > { %v1651_v56 = vpop.trf.xlu1 }
 0x840   : > { %v1652_v2 = vpop.trf.xlu1 }
 0x841   : > { %v1691_v14 = vpack.c.bf16 %v1652_v2, %v1651_v56  ;;  %v3382_v2 = vld [vmem:[%s4270_s9] sm:$0xff]  }
 0x844   : > { %v1653_v53 = vpop.trf.xlu1 }
 0x848   : > { %v1654_v54 = vpop.trf.xlu1 }
 0x849   : > { %v1692_v17 = vpack.c.bf16 %v1654_v54, %v1653_v53  ;;  %v3383_v54 = vld [vmem:[%s4270_s9 + $0x48] sm:$0xff]  }
 0x84c   : > { %v1655_v58 = vpop.trf.xlu1 }
 0x850   : > { %v1656_v63 = vpop.trf.xlu1 }
 0x851   : > { %v1693_v19 = vpack.c.bf16 %v1656_v63, %v1655_v58  ;;  %v2098_v58 = vpack.c.bf16 %v4032_v31, %v4032_v31  ;;  %v3384_v63 = vld [vmem:[%s4270_s9 + $0x8] sm:$0xff]   ;;  %v3387_v31 = vld [vmem:[%s4270_s9 + $0x58] sm:$0xff]  }
 0x854   : > { %v1657_v0 = vpop.trf.xlu1 }
 0x858   : > { %v1658_v3 = vpop.trf.xlu1 }
 0x859   : > { %v1694_v61 = vpack.c.bf16 %v1658_v3, %v1657_v0  ;;  %v3385_v0 = vld [vmem:[%s4270_s9 + $0x50] sm:$0xff]  }
 0x85a   : > { %v3386_v3 = vld [vmem:[%s4270_s9 + $0x10] sm:$0xff]  }
 0x85c   : > { %v1659_v4 = vpop.trf.xlu1 }
 0x860   : > { %v1660_v12 = vpop.trf.xlu1 }
 0x861   : > { %v1695_v21 = vpack.c.bf16 %v1660_v12, %v1659_v4  ;;  %v3388_v4 = vld [vmem:[%s4270_s9 + $0x18] sm:$0xff]   ;;  %v3390_v12 = vld [vmem:[%s4270_s9 + $0x20] sm:$0xff]  }
 0x864   : > { %v1661_v5 = vpop.trf.xlu1 }
 0x868   : > { %v1662_v15 = vpop.trf.xlu1 }
 0x869   : > { %v1696_v23 = vpack.c.bf16 %v1662_v15, %v1661_v5  ;;  %v3391_v5 = vld [vmem:[%s4270_s9 + $0x68] sm:$0xff]   ;;  %v3396_v15 = vld [vmem:[%s4270_s9 + $0x38] sm:$0xff]  }
 0x86c   : > { %v1663_v18 = vpop.trf.xlu1 }
 0x870   : > { %v1664_v20 = vpop.trf.xlu1 }
 0x871   : > { %v1697_v8 = vpack.c.bf16 %v1664_v20, %v1663_v18  ;;  %v3411_v18 = vld [vmem:[%s4270_s9 + $0xf8] sm:$0xff]  }
 0x874   : > { %v1665_v10 = vpop.trf.xlu1 }
 0x878   : > { %v1666_v25 = vpop.trf.xlu1 }
 0x879   : > { %v1698_v26 = vpack.c.bf16 %v1666_v25, %v1665_v10 }
 0x8b4   : > { %v1948_v1 = vpop.xlane.xlu0 %1947 }
 0x8b5   : > { %3439 = vrcp.f32 %v1948_v1  ;;  %v3389_v1 = vld [vmem:[%s4270_s9 + $0x60] sm:$0xff]  }
 0x8bf   : > { %v3440_v60 = vpop.eup %3439 }
 0x8c0   : > { %v1950_v11 = vmul.f32 %v3440_v60, %v3438_v52  ;;  %v3392_v60 = vld [vmem:[%s4270_s9 + $0x28] sm:$0xff]  }
 0x8c2   : > { %v1951_v13 = vpack.c.bf16 %v1950_v11, %v1950_v11  ;;  %v3393_v11 = vld [vmem:[%s4270_s9 + $0x70] sm:$0xff]  }
 0x8c4   : > { %3156 = vmatmul.mubr.msk.bf16.vlgmr.msra.gmra.mrb[20].mxu1 %vm1740_vm2, %v1951_v13  ;;  %v3394_v13 = vld [vmem:[%s4270_s9 + $0x30] sm:$0xff]  }
 0x8c5   : > { %3160 = vmatpush3.bf16.msra.mxu1 %v1691_v14  ;;  %3175 = vmatprep.mubr.msk.bf16.mxu1 %vm3460_vm0, %v3459_v9  ;;  %v3395_v14 = vld [vmem:[%s4270_s9 + $0x78] sm:$0xff]  }
 0x8c6   : > { %3161 = vmatprep.subr.bf16.mxu1 %v3459_v9 }
 0x8c9   : > { %3162 = vmatpush3.bf16.msra.mxu1 %v1692_v17  ;;  %v2097_v17 = vpack.c.bf16 %v4008_v24, %v4008_v24 }
 0x8ca   : > { %3163 = vmatprep.subr.bf16.mxu1 %v3459_v9 }
 0x8cd   : > { %3164 = vmatpush3.bf16.msra.mxu1 %v1693_v19  ;;  %v3412_v19 = vld [vmem:[%s4270_s9 + $0xb8] sm:$0xff]  }
 0x8ce   : > { %3165 = vmatprep.subr.bf16.mxu1 %v3459_v9 }
 0x8d1   : > { %3166 = vmatpush3.bf16.msra.mxu1 %v1694_v61 }
 0x8d2   : > { %3167 = vmatprep.subr.bf16.mxu1 %v3459_v9 }
 0x8d5   : > { %3168 = vmatpush3.bf16.msra.mxu1 %v1695_v21 }
 0x8d6   : > { %3169 = vmatprep.subr.bf16.mxu1 %v3459_v9 }
 0x8d9   : > { %3170 = vmatpush3.bf16.msra.mxu1 %v1696_v23 }
 0x8da   : > { %3171 = vmatprep.subr.bf16.mxu1 %v3459_v9 }
 0x8dd   : > { %3172 = vmatpush3.bf16.msra.mxu1 %v1697_v8 }
 0x8de   : > { %3173 = vmatprep.subr.bf16.mxu1 %v3459_v9 }
 0x8e1   : > { %3174 = vmatpush3.bf16.msra.mxu1 %v1698_v26 }
 0x8e2   : > { %3041 = vmatprep.subr.bf16.mxu1 %v3397_v43 }
 0x8e4   : > { %3176 = vmatmul.mubr.bf16.vlgmr.msra.gmra.mrb[24].mxu1 %v1998_v27 }
 0x8e5   : > { %3042 = vmatpush3.bf16.msra.mxu1 %v3398_v62 }
 0x8e6   : > { %3043 = vmatprep.subr.bf16.mxu1 %v3399_v44 }
 0x8e9   : > { %3044 = vmatpush3.bf16.msra.mxu1 %v3400_v57 }
 0x8ea   : > { %3045 = vmatprep.subr.bf16.mxu1 %v3401_v16 }
 0x8ed   : > { %3046 = vmatpush3.bf16.msra.mxu1 %v3402_v45  ;;  %v3415_v45 = vld [vmem:[%s4274_s13 + $0x10] sm:$0xff]  }
 0x8ee   : > { %3047 = vmatprep.subr.bf16.mxu1 %v3403_v46  ;;  %v3416_v46 = vld [vmem:[%s4274_s13 + $0x18] sm:$0xff]  }
 0x8f1   : > { %3048 = vmatpush3.bf16.msra.mxu1 %v3404_v47  ;;  %v3417_v47 = vld [vmem:[%s4274_s13 + $0x20] sm:$0xff]  }
 0x8f2   : > { %3049 = vmatprep.subr.bf16.mxu1 %v3405_v48  ;;  %v3418_v48 = vld [vmem:[%s4274_s13 + $0x28] sm:$0xff]  }
 0x8f5   : > { %3050 = vmatpush3.bf16.msra.mxu1 %v3406_v6  ;;  %v3419_v6 = vld [vmem:[%s4274_s13 + $0x30] sm:$0xff]  }
 0x8f6   : > { %3051 = vmatprep.subr.bf16.mxu1 %v3407_v49  ;;  %v3420_v49 = vld [vmem:[%s4274_s13 + $0x38] sm:$0xff]  }
 0x8f9   : > { %3052 = vmatpush3.bf16.msra.mxu1 %v3408_v50  ;;  %v3421_v50 = vld [vmem:[%s4276_s15] sm:$0xff]  }
 0x8fa   : > { %3053 = vmatprep.subr.bf16.mxu1 %v3409_v51  ;;  %v3422_v51 = vld [vmem:[%s4276_s15 + $0x8] sm:$0xff]  }
 0x8fd   : > { %3054 = vmatpush3.bf16.msra.mxu1 %v3410_v40  ;;  %v3423_v40 = vld [vmem:[%s4276_s15 + $0x10] sm:$0xff]  }
 0x8fe   : > { %3055 = vmatprep.subr.bf16.mxu1 %v3411_v18 }
 0x901   : > { %3056 = vmatpush3.bf16.msra.mxu1 %v3412_v19 }
 0x902   : > { %3205 = vmatprep.subr.bf16.mxu1 %v3459_v9 }
 0x997   : > { %v4049_v28 = vpop.f32.mrb[20].mxu1 }
 0x998   : > { %v3157_v29 = vpop.f32.mrb[21].mxu1  ;;  %v2099_v21 = vpack.c.bf16 %v4049_v28, %v4049_v28 }
 0x999   : > { %v1995_v30 = vpop.f32.mrb[22].mxu1 }
 0x99a   : > { %v3158_v55 = vpop.f32.mrb[23].mxu1  ;;  %v638_v30 = vand.u32 127, %v637_v59  ;;  %v3413_v59 = vld [vmem:[%s4274_s13] sm:$0xff]  }
 0x99b   : > { %v2918_v55 = vld [vmem:[%s4271_s10] ss:$0 sm:$0xff] }
 0x99c   : > { %vm639_vm3 = vcmp.lt.s32.totalorder %v638_v30, 32 }
 0x9b7   : > { %v2033_v22 = vpop.f32.mrb[24].mxu1 }
 0x9b8   : > { %v3177_v33 = vpop.f32.mrb[25].mxu1  ;;  %v2039_v34 = vsel %vm1740_vm2, %v2033_v22, -inf }
 0x9b9   : > { %2040 = vmax.xlane.f32.xlu1 %v2039_v34  ;;  %v2036_v35 = vpop.f32.mrb[26].mxu1 }
 0x9ba   : > { %v3178_v36 = vpop.f32.mrb[27].mxu1 }
 0xa46   : > { %v2041_v37 = vpop.xlane.xlu1 %2040 }
 0xa47   : > { %v2042_v38 = vsub.f32 %v2033_v22, %v2041_v37 }
 0xa49   : > { %v2043_v39 = vmul.f32 1.442695, %v2042_v38  ;;  %v4167_v38 = vsel %vm639_vm3, 1.0, %v3459_v9 }
 0xa4b   : > { %3441 = vpow2.f32 %v2043_v39  ;;  %v3449_v39 = vld [vmem:[%s3616_s23] sm:$0xff] }
 0xa55   : > { %v3442_v41 = vpop.eup %3441 }
 0xa56   : > { %v2045_v7 = vsel %vm1740_vm2, %v3442_v41, 0.0 }
 0xa57   : > { %2046 = vadd.xlane.f32.xlu0 %v2045_v7 }
 0xae4   : > { %v2047_v52 = vpop.xlane.xlu0 %2046 }
 0xae5   : > { %3443 = vrcp.f32 %v2047_v52  ;;  %v3424_v52 = vld [vmem:[%s4276_s15 + $0x18] sm:$0xff]  }
 0xaef   : > { %v3444_v32 = vpop.eup %3443 }
 0xaf0   : > { %v2049_v56 = vmul.f32 %v3444_v32, %v3442_v41  ;;  %v3425_v32 = vld [vmem:[%s4276_s15 + $0x20] sm:$0xff]  }
 0xaf2   : > { %v2050_v53 = vpack.c.bf16 %v2049_v56, %v2049_v56  ;;  %v3426_v56 = vld [vmem:[%s4276_s15 + $0x28] sm:$0xff]  }
 0xaf4   : > { %3182 = vmatmul.mubr.msk.bf16.vlgmr.msra.gmra.mrb[24].mxu0 %vm1740_vm2, %v2050_v53 }
 0xaf5   : > { %3020 = vmatpush3.bf16.msra.mxu0 %v3382_v2  ;;  %2396 = vmatprep.mubr.bf16.mxu0 %v2098_v58 }
 0xaf6   : > { %3021 = vmatprep.subr.bf16.mxu0 %v3383_v54 }
 0xaf9   : > { %3022 = vmatpush3.bf16.msra.mxu0 %v3384_v63  ;;  %v2951_v63 = vld [vmem:[%s4272_s11] ss:$0 sm:$0xff] }
 0xafa   : > { %3023 = vmatprep.subr.bf16.mxu0 %v3385_v0 }
 0xafd   : > { %3024 = vmatpush3.bf16.msra.mxu0 %v3386_v3  ;;  %v2952_v3 = vld [vmem:[%s4273_s12] ss:$0 sm:$0xff] }
 0xafe   : > { %3025 = vmatprep.subr.bf16.mxu0 %v3387_v31 }
 0xb01   : > { %3026 = vmatpush3.bf16.msra.mxu0 %v3388_v4 }
 0xb02   : > { %3027 = vmatprep.subr.bf16.mxu0 %v3389_v1 }
 0xb05   : > { %3028 = vmatpush3.bf16.msra.mxu0 %v3390_v12  ;;  %v3427_v12 = vld [vmem:[%s4276_s15 + $0x30] sm:$0xff]  }
 0xb06   : > { %3029 = vmatprep.subr.bf16.mxu0 %v3391_v5  ;;  %v3428_v5 = vld [vmem:[%s4276_s15 + $0x38] sm:$0xff]  }
 0xb09   : > { %3030 = vmatpush3.bf16.msra.mxu0 %v3392_v60  ;;  %v2953_v60 = vld [vmem:[%s4275_s14] ss:$0 sm:$0xff] }
 0xb0a   : > { %3031 = vmatprep.subr.bf16.mxu0 %v3393_v11 }
 0xb0d   : > { %3032 = vmatpush3.bf16.msra.mxu0 %v3394_v13 }
 0xb0e   : > { %3033 = vmatprep.subr.bf16.mxu0 %v3395_v14 }
 0xb11   : > { %3034 = vmatpush3.bf16.msra.mxu0 %v3396_v15 }
 0xb12   : > { %3185 = vmatprep.subr.bf16.mxu0 %v3459_v9 }
 0xb14   : > { %2397 = vmatmul.mubr.bf16.vlgmr.msra.gmra.mrb[28].mxu0 %v2097_v17 }
 0xb15   : > { %3201 = vmatprep.mubr.msk.bf16.mxu0 %vm3460_vm0, %v3459_v9  ;;  %3186 = vmatpush3.bf16.msra.mxu0 %v3413_v59 }
 0xb16   : > { %3187 = vmatprep.subr.bf16.mxu0 %v3459_v9 }
 0xb19   : > { %3188 = vmatpush3.bf16.msra.mxu0 %v3414_v42 }
 0xb1a   : > { %3189 = vmatprep.subr.bf16.mxu0 %v3459_v9 }
 0xb1d   : > { %3190 = vmatpush3.bf16.msra.mxu0 %v3415_v45 }
 0xb1e   : > { %3191 = vmatprep.subr.bf16.mxu0 %v3459_v9 }
 0xb21   : > { %3192 = vmatpush3.bf16.msra.mxu0 %v3416_v46 }
 0xb22   : > { %3193 = vmatprep.subr.bf16.mxu0 %v3459_v9 }
 0xb25   : > { %3194 = vmatpush3.bf16.msra.mxu0 %v3417_v47 }
 0xb26   : > { %3195 = vmatprep.subr.bf16.mxu0 %v3459_v9 }
 0xb29   : > { %3196 = vmatpush3.bf16.msra.mxu0 %v3418_v48 }
 0xb2a   : > { %3197 = vmatprep.subr.bf16.mxu0 %v3459_v9 }
 0xb2d   : > { %3198 = vmatpush3.bf16.msra.mxu0 %v3419_v6 }
 0xb2e   : > { %3199 = vmatprep.subr.bf16.mxu0 %v3459_v9 }
 0xb31   : > { %3200 = vmatpush3.bf16.msra.mxu0 %v3420_v49 }
 0xbc7   : > { %v2091_v61 = vpop.f32.mrb[24].mxu0 }
 0xbc8   : > { %v2100_v24 = vpack.c.bf16 %v2091_v61, %v2091_v61  ;;  %v3183_v20 = vpop.f32.mrb[25].mxu0 }
 0xbc9   : > { %v2094_v10 = vpop.f32.mrb[26].mxu0 }
 0xbca   : > { %v3184_v23 = vpop.f32.mrb[27].mxu0  ;;  %2436 = vmatprep.mubr.bf16.mxu1 %v2100_v24 }
 0xbcb   : > { %2437 = vmatmul.mubr.bf16.vlgmr.msra.gmra.mrb[28].mxu1 %v2099_v21 }
 0xbcc   : > { %3221 = vmatprep.mubr.msk.bf16.mxu1 %vm3460_vm0, %v3459_v9  ;;  %3206 = vmatpush3.bf16.msra.mxu1 %v3421_v50 }
 0xbcd   : > { %3207 = vmatprep.subr.bf16.mxu1 %v3459_v9 }
 0xbd0   : > { %3208 = vmatpush3.bf16.msra.mxu1 %v3422_v51 }
 0xbd1   : > { %3209 = vmatprep.subr.bf16.mxu1 %v3459_v9 }
 0xbd4   : > { %3210 = vmatpush3.bf16.msra.mxu1 %v3423_v40 }
 0xbd5   : > { %3211 = vmatprep.subr.bf16.mxu1 %v3459_v9 }
 0xbd8   : > { %3212 = vmatpush3.bf16.msra.mxu1 %v3424_v52 }
 0xbd9   : > { %3213 = vmatprep.subr.bf16.mxu1 %v3459_v9 }
 0xbdc   : > { %3214 = vmatpush3.bf16.msra.mxu1 %v3425_v32 }
 0xbdd   : > { %3215 = vmatprep.subr.bf16.mxu1 %v3459_v9 }
 0xbe0   : > { %3216 = vmatpush3.bf16.msra.mxu1 %v3426_v56 }
 0xbe1   : > { %3217 = vmatprep.subr.bf16.mxu1 %v3459_v9 }
 0xbe4   : > { %3218 = vmatpush3.bf16.msra.mxu1 %v3427_v12 }
 0xbe5   : > { %3219 = vmatprep.subr.bf16.mxu1 %v3459_v9  ;;  %v2962_v9 = vld [vmem:[%s4277_s16] ss:$0 sm:$0xff] }
 0xbe7   : > { %v3035_v8 = vpop.f32.mrb[28].mxu0 }
 0xbe8   : > { %v3036_v25 = vpop.f32.mrb[29].mxu0  ;;  %3220 = vmatpush3.bf16.msra.mxu1 %v3428_v5 }
 0xbe9   : > { %v3037_v26 = vadd.f32 %v3036_v25, %v3035_v8  ;;  %v3038_v27 = vpop.f32.mrb[30].mxu0 }
 0xbea   : > { %v3039_v29 = vpop.f32.mrb[31].mxu0 }
 0xbeb   : > { %v2399_v33 = vadd.f32 %v3037_v26, %v2918_v55 }
 0xc9e   : > { %v3057_v28 = vpop.f32.mrb[28].mxu1 }
 0xc9f   : > { %v3058_v22 = vpop.f32.mrb[29].mxu1 }
 0xca0   : > { %v3059_v34 = vadd.f32 %v3058_v22, %v3057_v28  ;;  %v3060_v35 = vpop.f32.mrb[30].mxu1 }
 0xca1   : > { %v3061_v36 = vpop.f32.mrb[31].mxu1 }
 0xca2   : > { %v2439_v37 = vadd.f32 %v3059_v34, %v2399_v33  ;;  %v2971_v34 = vld [vmem:[%s4278_s17] ss:$0 sm:$0xff] }
 0xca3   : > { %v2972_v36 = vld [vmem:[%s4294_s2] ss:$0 sm:$0xff] }
 0xca4   : > { %v2444_v41 = vadd.f32 %v3449_v39, %v2439_v37 }
 0xca6   : > { %v2447_v7 = vmul.f32 %v4167_v38, %v2444_v41 }
 0xca8   : > { %2448 = vadd.xlane.f32.xlu0 %v2447_v7 }
 0xd35   : > { %v2449_v43 = vpop.xlane.xlu0 %2448 }
 0xd36   : > { %v2450_v62 = vmul.f32 0.03125, %v2449_v43 }
 0xd38   : > { %v2451_v44 = vsub.f32 %v2447_v7, %v2450_v62 }
 0xd3a   : > { %v2452_v57 = vmul.f32 %v4167_v38, %v2451_v44 }
 0xd3c   : > { %v2453_v16 = vmul.f32 %v2452_v57, %v2452_v57 }
 0xd3e   : > { %2454 = vadd.xlane.f32.xlu0 %v2453_v16 }
 0xdcb   : > { %v2455_v2 = vpop.xlane.xlu0 %2454 }
 0xdcc   : > { %v2456_v53 = vmul.f32 0.03125, %v2455_v2 }
 0xdce   : > { %v2457_v54 = vadd.f32 1e-05, %v2456_v53 }
 0xdd0   : > { %3445 = vrsqrt.f32 %v2457_v54 }
 0xdda   : > { %v3446_v58 = vpop.eup %3445 }
 0xddb   : > { %v2459_v0 = vmul.f32 %v3446_v58, %v2452_v57 }
 0xddd   : > { %v2466_v31 = vmul.f32 %v2951_v63, %v2459_v0 }
 0xddf   : > { %v2473_v4 = vadd.f32 %v2952_v3, %v2466_v31 }
 0xde1   : > { %v2474_v1 = vpack.c.bf16 %v2473_v4, %v2473_v4 }
 0xde3   : > { %3202 = vmatmul.mubr.bf16.vlgmr.msra.gmra.mrb[32].mxu0 %v2474_v1 }
 0xeb6   : > { %v2580_v11 = vpop.f32.mrb[32].mxu0 }
 0xeb7   : > { %v2581_v13 = vadd.f32 %v2953_v60, %v2580_v11  ;;  %v3203_v14 = vpop.f32.mrb[33].mxu0 }
 0xeb8   : > { %v2583_v15 = vpop.f32.mrb[34].mxu0 }
 0xeb9   : > { %v2586_v17 = vmax.f32 %v2581_v13, 0.0  ;;  %v3204_v18 = vpop.f32.mrb[35].mxu0 }
 0xebb   : > { %v2587_v19 = vpack.c.bf16 %v2586_v17, %v2586_v17 }
 0xebd   : > { %3222 = vmatmul.mubr.bf16.vlgmr.msra.gmra.mrb[32].mxu1 %v2587_v19 }
 0xf90   : > { %v2693_v61 = vpop.f32.mrb[32].mxu1 }
 0xf91   : > { %v2694_v24 = vadd.f32 %v2962_v9, %v2693_v61  ;;  %v3223_v20 = vpop.f32.mrb[33].mxu1 }
 0xf92   : > { %v2696_v21 = vpop.f32.mrb[34].mxu1 }
 0xf93   : > { %v2699_v10 = vadd.f32 %v2694_v24, %v2473_v4  ;;  %v3224_v23 = vpop.f32.mrb[35].mxu1 }
 0xf95   : > { %v2702_v8 = vmul.f32 %v4167_v38, %v2699_v10 }
 0xf97   : > { %2703 = vadd.xlane.f32.xlu0 %v2702_v8 }
0x1024   : > { %v2704_v25 = vpop.xlane.xlu0 %2703 }
0x1025   : > { %v2705_v26 = vmul.f32 0.03125, %v2704_v25 }
0x1027   : > { %v2706_v27 = vsub.f32 %v2702_v8, %v2705_v26 }
0x1029   : > { %v2707_v29 = vmul.f32 %v4167_v38, %v2706_v27 }
0x102b   : > { %v2708_v30 = vmul.f32 %v2707_v29, %v2707_v29 }
0x102d   : > { %2709 = vadd.xlane.f32.xlu0 %v2708_v30 }
0x10ba   : > { %v2710_v55 = vpop.xlane.xlu0 %2709 }
0x10bb   : > { %v2711_v28 = vmul.f32 0.03125, %v2710_v55 }
0x10bd   : > { %v2712_v22 = vadd.f32 1e-05, %v2711_v28 }
0x10bf   : > { %3447 = vrsqrt.f32 %v2712_v22 }
0x10c9   : > { %v3448_v33 = vpop.eup %3447 }
0x10ca   : > { %v2714_v35 = vmul.f32 %v3448_v33, %v2707_v29 }
0x10cc   : > { %v2721_v37 = vmul.f32 %v2971_v34, %v2714_v35 }
0x10ce   : > { %v2728_v38 = vadd.f32 %v2972_v36, %v2721_v37 }
0x10d0   : > { %2729 = vst [vmem:[%s631_s19] sm:$0xff] %v2728_v38 }
0x10d1 PF: > { %s4296_s23 = sld [smem:[#allocation2_spill]] }
0x10d7   : > { %s29_s0 = sadd.s32 1, %s4296_s23  }
0x10d8   : > { %p26_p4 = scmp.ge.s32.totalorder %s29_s0, 4  }
0x10da   :  { %28 = sbr.rel (!%p26_p4) target bundleno = 7 (0x7), region = 132 }

// kernel: transformer_encoder_layer.3
= control target key start
LH: loop header
LB: loop body
LE: loop exit
PB: predicated region body
PF: predicated region fallthrough
CT: control target
= control target key end

     0   :  { %s5080_s0 = inlined_call_operand.vmem [shape: f32[2,8,128], index: 0, kind: input, shape index: {}]   ;;  %s5081_s1 = inlined_call_operand.vmem [shape: f32[2,8,128], index: 1, kind: input, shape index: {}]   ;;  %s5082_s2 = inlined_call_operand.vmem [shape: f32[2,8,128], index: 2, kind: input, shape index: {}]   ;;  %s5083_s3 = inlined_call_operand.hbm [shape: bf16[256,1024], index: 3, kind: input, shape index: {}]   ;;  %s5084_s4 = inlined_call_operand.vmem [shape: f32[1,1024], index: 4, kind: input, shape index: {}]   ;;  %s5085_s5 = inlined_call_operand.hbm [shape: bf16[256,512], index: 5, kind: input, shape index: {}]   ;;  %s5086_s6 = inlined_call_operand.vmem [shape: f32[1,512], index: 6, kind: input, shape index: {}]   ;;  %s5087_s7 = inlined_call_operand.hbm [shape: bf16[512,256], index: 7, kind: input, shape index: {}]   ;;  %s5088_s8 = inlined_call_operand.vmem [shape: f32[1,256], index: 8, kind: input, shape index: {}]   ;;  %s5089_s9 = inlined_call_operand.vmem [shape: f32[1,256], index: 9, kind: input, shape index: {}]   ;;  %s5090_s10 = inlined_call_operand.vmem [shape: f32[1,256], index: 10, kind: input, shape index: {}]   ;;  %s5091_s11 = inlined_call_operand.vmem [shape: bf16[256,128], index: 11, kind: input, shape index: {}]   ;;  %s5092_s12 = inlined_call_operand.vmem [shape: f32[1,128], index: 12, kind: input, shape index: {}]   ;;  %s5093_s13 = inlined_call_operand.vmem [shape: bf16[128,128], index: 13, kind: input, shape index: {}]   ;;  %s5094_s14 = inlined_call_operand.vmem [shape: f32[1,128], index: 14, kind: input, shape index: {}]   ;;  %s5095_s15 = inlined_call_operand.vmem [shape: f32[1,128], index: 15, kind: input, shape index: {}]   ;;  %s5096_s16 = inlined_call_operand.vmem [shape: f32[1,128], index: 16, kind: input, shape index: {}]   ;;  %s5097_s17 = inlined_call_operand.vmem [shape: bf16[2,8,128], index: 17, kind: output, shape index: {}]  }
   0x1   :  { %5101 = sst [smem:[#allocation10_spill]] %s5080_s0 }
   0x2   :  { %5102 = sst [smem:[#allocation11_spill]] %s5081_s1 }
   0x3   :  { %5103 = sst [smem:[#allocation12_spill]] %s5095_s15 }
   0x4   :  { %5104 = sst [smem:[#allocation13_spill]] %s5096_s16 }
   0x5   :  { %5105 = sst [smem:[#allocation14_spill]] %s5097_s17 }
   0x6   :  { %22 = vsyncpa [#allocation3], 0 }
   0x7   :  { %23 = vsyncpa [#allocation5], 0  ;;  %s4620_s24 = smov 0  }
   0x8 LB: > { %5106 = sst [smem:[#allocation9_spill]] %s4517_s24  ;;  %s4519_s25 = smov [#allocation4]   ;;  %s4517_s24 = sphi %s4620_s24, %s29_s24  }
   0x9   : > { %s460_s26 = sshll.u32 %s4519_s25, 4  ;;  %s4626_s27 = sadd.s32 4294967295, %s4517_s24   ;;  %s4631_s26 = int_to_ptr.vmem [resolvable:$true] %s460_s26 }
   0xa   : > { %p3630_p0 = scmp.ge.s32.totalorder %s4517_s24, 1  ;;  %p432_p1 = scmp.lt.s32.totalorder %s4517_s24, 3 }
   0xb   : > { %p5099_p2 = scmp.eq.s32.totalorder %s4626_s27, 0  ;;  %s4520_s29 = smov [#allocation2]  }
   0xc   : > { %p4633_p3 = pnand %p3630_p0, %p432_p1  ;;  %s444_s0 = sshll.u32 %s4520_s29, 4  ;;  %s4639_s0 = int_to_ptr.vmem [resolvable:$true] %s444_s0 }
   0xd   : > { %s4521_s18 = smov [#allocation6]   ;;  %s4419_s21 = scalar_lea.hbm %s5085_s5, 8192 }
   0xe   : > { %s5107_s28 = scalar_select %p4633_p3, 1, 0 }
   0xf   : > { %p4145_p4 = pneg %p4633_p3  ;;  %s4647_s19 = sshll.u32 %s4521_s18, 4  ;;  %s477_s19 = int_to_ptr.vmem [resolvable:$true] %s4647_s19 }
  0x10   : > { %p4420_p6 = scmp.ne.s32.totalorder %s5085_s5, %s4419_s21  ;;  %p4426_p10 = scmp.lt.u32.totalorder %s4419_s21, %s5085_s5 }
  0x11   : > { %p4643_p5 = pnand %p5099_p2, %p4145_p4 }
  0x13   : > { %p4657_p7 = pneg %p4643_p5 }
  0x15   : > { %p4422_p8 = pnand %p4657_p7, %p4420_p6 }
  0x17   : > { %p4423_p9 = pneg %p4422_p8 }
  0x19   : > { %p4428_p11 = pnand %p4426_p10, %p4423_p9 }
  0x1b   : > { %4431 = shalt.err (!%p4428_p11)
}
  0x1c   : > { %s4432_s1 = scalar_lea.vmem %s4631_s26, 8192  ;;  %p4440_p1 = scmp.lt.s32.totalorder %s4631_s26, %s4631_s26 }
  0x1d   : > { %p4433_p12 = scmp.ne.s32.totalorder %s4631_s26, %s4432_s1  ;;  %p4441_p4 = scmp.lt.s32.totalorder %s4432_s1, %s4432_s1 }
  0x1f   : > { %p4435_p13 = pnand %p4433_p12, %p4657_p7  ;;  %p4442_p6 = por %p4441_p4, %p4440_p1 }
  0x21   : > { %p4436_p0 = pneg %p4435_p13 }
  0x23   : > { %p4443_p8 = pnand %p4442_p6, %p4436_p0 }
  0x25   : > { %4446 = shalt.err (!%p4443_p8)
}
  0x26   : > { %s4522_s20 = smov 256   ;;  %s4523_s21 = smov 16  }
  0x27   : > { %4151 = dma.hbm_to_vmem [thread:$0]  (!%p4643_p5), %s5085_s5, 8192, %s4631_s26, [#allocation5], %s4522_s20, %s4522_s20, %s4523_s21  }
  0x28   : > { %s4447_s24 = scalar_lea.hbm %s5083_s3, 16384 }
  0x29   : > { %p4448_p9 = scmp.ne.s32.totalorder %s5083_s3, %s4447_s24  ;;  %p4454_p12 = scmp.lt.u32.totalorder %s4447_s24, %s5083_s3 }
  0x2b   : > { %p4450_p10 = pnand %p4448_p9, %p4657_p7 }
  0x2d   : > { %p4451_p11 = pneg %p4450_p10 }
  0x2f   : > { %p4456_p13 = pnand %p4454_p12, %p4451_p11 }
  0x31   : > { %4459 = shalt.err (!%p4456_p13)
}
  0x32   : > { %s4460_s26 = scalar_lea.vmem %s4639_s0, 16384  ;;  %p4468_p6 = scmp.lt.s32.totalorder %s4639_s0, %s4639_s0 }
  0x33   : > { %p4461_p0 = scmp.ne.s32.totalorder %s4639_s0, %s4460_s26  ;;  %p4469_p8 = scmp.lt.s32.totalorder %s4460_s26, %s4460_s26 }
  0x35   : > { %p4463_p1 = pnand %p4461_p0, %p4657_p7  ;;  %p4470_p9 = por %p4469_p8, %p4468_p6 }
  0x37   : > { %p4464_p4 = pneg %p4463_p1 }
  0x39   : > { %p4471_p10 = pnand %p4470_p9, %p4464_p4 }
  0x3b   : > { %4474 = shalt.err (!%p4471_p10)
}
  0x3c   : > { %s4524_s16 = smov 512   ;;  %s4525_s15 = smov 32  }
  0x3d   : > { %4148 = dma.hbm_to_vmem [thread:$0]  (!%p4643_p5), %s5083_s3, 16384, %s4639_s0, [#allocation3], %s4524_s16, %s4524_s16, %s4525_s15  }
  0x3e   : > { %s4475_s22 = scalar_lea.hbm %s5087_s7, 8192 }
  0x3f   : > { %p4476_p11 = scmp.ne.s32.totalorder %s5087_s7, %s4475_s22  ;;  %p4482_p0 = scmp.lt.u32.totalorder %s4475_s22, %s5087_s7 }
  0x41   : > { %p4478_p12 = pnand %p4476_p11, %p4657_p7 }
  0x43   : > { %p4479_p13 = pneg %p4478_p12 }
  0x45   : > { %p4484_p1 = pnand %p4482_p0, %p4479_p13 }
  0x47   : > { %4487 = shalt.err (!%p4484_p1)
}
  0x48   : > { %s4488_s26 = scalar_lea.vmem %s477_s19, 8192  ;;  %p4496_p9 = scmp.lt.s32.totalorder %s477_s19, %s477_s19 }
  0x49   : > { %p4489_p4 = scmp.ne.s32.totalorder %s477_s19, %s4488_s26  ;;  %p4497_p10 = scmp.lt.s32.totalorder %s4488_s26, %s4488_s26 }
  0x4b   : > { %p4491_p6 = pnand %p4489_p4, %p4657_p7  ;;  %p4498_p2 = por %p4497_p10, %p4496_p9 }
  0x4d   : > { %p4492_p8 = pneg %p4491_p6 }
  0x4f   : > { %p4499_p3 = pnand %p4498_p2, %p4492_p8 }
  0x51   : > { %4502 = shalt.err (!%p4499_p3)
}
  0x52   : > { %s4526_s0 = smov 128   ;;  %s4527_s16 = smov 8  }
  0x53   : > { %4154 = dma.hbm_to_vmem [thread:$0]  (!%p4643_p5), %s5087_s7, 8192, %s477_s19, [#allocation5], %s4526_s0, %s4526_s0, %s4527_s16  }
  0x54   : > { %p5110_p11 = scmp.ne.s32.totalorder %s5107_s28, 0 }
  0x55   : > { %p5111_p12 = scmp.eq.s32.totalorder (!%p5110_p11), %s4626_s27, 0 }
  0x56   : > { %540 = sbr.rel (%p5110_p11) target bundleno = 4463 (0x116f), region = 88 }
  0x5d   : > { %4508 = dma.done.wait (%p5111_p12), [#allocation3], 16384   ;;  %p5112_p7 = pmov %p5111_p12 }
  0x5f   : > { %4510 = vsyncadd (%p5112_p7), [#allocation3], 4294950912  ;;  %p5113_p2 = pmov %p5112_p7 }
  0x61   : > { %4512 = dma.done.wait (%p5113_p2), [#allocation5], 16384   ;;  %p5114_p3 = pmov %p5113_p2 }
  0x62   : > { %p606_p13 = scmp.lt.s32.totalorder %s4626_s27, 1  ;;  %v635_v0 = vld [vmem:[#allocation2] sm:$0xff]  ;;  %s5115_s25 = sld [smem:[#allocation11_spill]]  ;;  %vm4529_vm0 = vmmov 0   ;;  %vm2320_vm1 = vcmask 1043456   ;;  %vm2304_vm2 = vcmask 64512  }
  0x63   : > { %4514 = vsyncadd (%p5114_p3), [#allocation5], 4294950912  ;;  %v639_v1 = vld [vmem:[#allocation2 + $0x20] sm:$0xff]  ;;  %s5116_s18 = sld [smem:[#allocation10_spill]]  ;;  %s5118_s0 = sld [smem:[#allocation13_spill]] }
  0x64   : > { %v643_v2 = vld [vmem:[#allocation2 + $0x40] sm:$0xff]  ;;  %s5122_s27 = smov (!%p606_p13, %s4626_s27), 1  ;;  %v3645_v3 = vcombine.high %v635_v0, %v639_v1  ;;  %v3644_v4 = vcombine.low %v635_v0, %v639_v1 }
  0x65   : > { %v647_v5 = vld [vmem:[#allocation2 + $0x60] sm:$0xff]  ;;  %s4735_s28 = sshll.u32 %s5122_s27, 3  ;;  %s3642_s16 = sshll.u32 %s5122_s27, 2 }
  0x66   : > { %v3653_v6 = vcombine.high %v643_v2, %v647_v5  ;;  %v651_v7 = vld [vmem:[#allocation2 + $0x80] sm:$0xff]  ;;  %1445 = vmatprep.subr.bf16.mxu0 %v3645_v3  ;;  %v3652_v9 = vcombine.low %v643_v2, %v647_v5  ;;  %s617_s22 = scalar_lea.vmem %s5082_s2, %s4735_s28  ;;  %v637_v3 = vld [vmem:[#allocation2 + $0x10] sm:$0xff] }
  0x67   : > { %v655_v8 = vld [vmem:[#allocation2 + $0xa0] sm:$0xff]  ;;  %1446 = vmatpush1.bf16.msra.mxu0 %v3644_v4  ;;  %v4750_v18 = vld [vmem:[%s617_s22] sm:$0xff] }
  0x68   : > { %1447 = vmatprep.subr.bf16.mxu0 %v3653_v6  ;;  %v3661_v10 = vcombine.high %v651_v7, %v655_v8  ;;  %v659_v11 = vld [vmem:[#allocation2 + $0xc0] sm:$0xff]  ;;  %s4741_s24 = scalar_lea.vmem %s5115_s25, %s4735_s28  ;;  %v3660_v13 = vcombine.low %v651_v7, %v655_v8  ;;  %v641_v4 = vld [vmem:[#allocation2 + $0x30] sm:$0xff] }
  0x69   : > { %v663_v12 = vld [vmem:[#allocation2 + $0xe0] sm:$0xff]  ;;  %v4748_v17 = vld [vmem:[%s4741_s24] sm:$0xff]  ;;  %s4762_s1 = scalar_lea.vmem %s5116_s18, %s4735_s28  ;;  %s5117_s18 = sld [smem:[#allocation12_spill]] }
  0x6a   : > { %v3669_v14 = vcombine.high %v659_v11, %v663_v12  ;;  %v667_v15 = vld [vmem:[#allocation2 + $0x100] sm:$0xff]  ;;  %v3668_v19 = vcombine.low %v659_v11, %v663_v12  ;;  %v632_v20 = vadd.f32 %v4750_v18, %v4748_v17  ;;  %v4765_v1 = vld [vmem:[%s4762_s1] sm:$0xff]  ;;  %v3648_v12 = vcombine.low %v637_v3, %v641_v4  ;;  %s5119_s28 = sld [smem:[#allocation14_spill]] }
  0x6b   : > { %1448 = vmatpush1.bf16.msra.mxu0 %v3652_v9  ;;  %v671_v16 = vld [vmem:[#allocation2 + $0x120] sm:$0xff]  ;;  %v631_v6 = vadd.f32 %v4750_v18, %v4765_v1  ;;  %v645_v8 = vld [vmem:[#allocation2 + $0x50] sm:$0xff] }
  0x6c   : > { %1449 = vmatprep.subr.bf16.mxu0 %v3661_v10  ;;  %v3677_v21 = vcombine.high %v667_v15, %v671_v16  ;;  %v675_v22 = vld [vmem:[#allocation2 + $0x140] sm:$0xff]  ;;  %v4754_v24 = vpack.c.bf16 %v632_v20, %v632_v20  ;;  %v3676_v25 = vcombine.low %v667_v15, %v671_v16  ;;  %v649_v9 = vld [vmem:[#allocation2 + $0x70] sm:$0xff]  ;;  %v3649_v10 = vcombine.high %v637_v3, %v641_v4 }
  0x6d   : > { %v679_v23 = vld [vmem:[#allocation2 + $0x160] sm:$0xff]  ;;  %v4769_v11 = vpack.c.bf16 %v631_v6, %v631_v6  ;;  %v3657_v15 = vcombine.high %v645_v8, %v649_v9  ;;  %v3656_v16 = vcombine.low %v645_v8, %v649_v9  ;;  %v665_v18 = vld [vmem:[#allocation2 + $0xf0] sm:$0xff] }
  0x6e   : > { %1477 = vmatprep.mubr.bf16.mxu0 %v4754_v24  ;;  %v3685_v26 = vcombine.high %v675_v22, %v679_v23  ;;  %v683_v27 = vld [vmem:[#allocation2 + $0x180] sm:$0xff]  ;;  %1518 = vmatprep.mubr.bf16.mxu1 %v4754_v24  ;;  %v3684_v29 = vcombine.low %v675_v22, %v679_v23  ;;  %v669_v22 = vld [vmem:[#allocation2 + $0x110] sm:$0xff] }
  0x6f   : > { %1450 = vmatpush1.bf16.msra.mxu0 %v3660_v13  ;;  %v687_v28 = vld [vmem:[#allocation2 + $0x1a0] sm:$0xff]  ;;  %v653_v13 = vld [vmem:[#allocation2 + $0x90] sm:$0xff] }
  0x70   : > { %1451 = vmatprep.subr.bf16.mxu0 %v3669_v14  ;;  %v3693_v30 = vcombine.high %v683_v27, %v687_v28  ;;  %v691_v31 = vld [vmem:[#allocation2 + $0x1c0] sm:$0xff]  ;;  %v3692_v33 = vcombine.low %v683_v27, %v687_v28  ;;  %v657_v14 = vld [vmem:[#allocation2 + $0xb0] sm:$0xff]  ;;  %s621_s30 = scalar_lea.vmem %s5119_s28, %s3642_s16 }
  0x71   : > { %v695_v32 = vld [vmem:[#allocation2 + $0x1e0] sm:$0xff]  ;;  %v3665_v20 = vcombine.high %v653_v13, %v657_v14  ;;  %v673_v23 = vld [vmem:[#allocation2 + $0x130] sm:$0xff] }
  0x72   : > { %v699_v34 = vld [vmem:[#allocation2 + $0x200] sm:$0xff]  ;;  %v3701_v36 = vcombine.high %v691_v31, %v695_v32  ;;  %v3700_v37 = vcombine.low %v691_v31, %v695_v32  ;;  %v677_v27 = vld [vmem:[#allocation2 + $0x150] sm:$0xff] }
  0x73   : > { %1452 = vmatpush1.bf16.msra.mxu0 %v3668_v19  ;;  %v703_v35 = vld [vmem:[#allocation2 + $0x220] sm:$0xff]  ;;  %v661_v19 = vld [vmem:[#allocation2 + $0xd0] sm:$0xff] }
  0x74   : > { %1453 = vmatprep.subr.bf16.mxu0 %v3677_v21  ;;  %v707_v38 = vld [vmem:[#allocation2 + $0x240] sm:$0xff]  ;;  %v3709_v40 = vcombine.high %v699_v34, %v703_v35  ;;  %v3708_v41 = vcombine.low %v699_v34, %v703_v35  ;;  %v3664_v21 = vcombine.low %v653_v13, %v657_v14  ;;  %v681_v28 = vld [vmem:[#allocation2 + $0x170] sm:$0xff] }
  0x75   : > { %v711_v39 = vld [vmem:[#allocation2 + $0x260] sm:$0xff]  ;;  %v3689_v31 = vcombine.high %v677_v27, %v681_v28  ;;  %v685_v32 = vld [vmem:[#allocation2 + $0x190] sm:$0xff]  ;;  %v3688_v34 = vcombine.low %v677_v27, %v681_v28 }
  0x76   : > { %v715_v42 = vld [vmem:[#allocation2 + $0x280] sm:$0xff]  ;;  %v3717_v44 = vcombine.high %v707_v38, %v711_v39  ;;  %v3716_v45 = vcombine.low %v707_v38, %v711_v39  ;;  %v761_v6 = vld [vmem:[#allocation2 + $0x3f0] sm:$0xff] }
  0x77   : > { %1454 = vmatpush1.bf16.msra.mxu0 %v3676_v25  ;;  %v719_v43 = vld [vmem:[#allocation2 + $0x2a0] sm:$0xff]  ;;  %v3673_v25 = vcombine.high %v661_v19, %v665_v18 }
  0x78   : > { %1455 = vmatprep.subr.bf16.mxu0 %v3685_v26  ;;  %v723_v46 = vld [vmem:[#allocation2 + $0x2c0] sm:$0xff]  ;;  %v3725_v48 = vcombine.high %v715_v42, %v719_v43  ;;  %v3724_v49 = vcombine.low %v715_v42, %v719_v43  ;;  %v3672_v26 = vcombine.low %v661_v19, %v665_v18 }
  0x79   : > { %v727_v47 = vld [vmem:[#allocation2 + $0x2e0] sm:$0xff] }
  0x7a   : > { %v731_v50 = vld [vmem:[#allocation2 + $0x300] sm:$0xff]  ;;  %v3733_v52 = vcombine.high %v723_v46, %v727_v47  ;;  %v3732_v53 = vcombine.low %v723_v46, %v727_v47 }
  0x7b   : > { %1456 = vmatpush1.bf16.msra.mxu0 %v3684_v29  ;;  %v735_v51 = vld [vmem:[#allocation2 + $0x320] sm:$0xff]  ;;  %v3681_v29 = vcombine.high %v669_v22, %v673_v23 }
  0x7c   : > { %1457 = vmatprep.subr.bf16.mxu0 %v3693_v30  ;;  %v739_v54 = vld [vmem:[#allocation2 + $0x340] sm:$0xff]  ;;  %v3741_v56 = vcombine.high %v731_v50, %v735_v51  ;;  %v3740_v57 = vcombine.low %v731_v50, %v735_v51  ;;  %v3680_v30 = vcombine.low %v669_v22, %v673_v23 }
  0x7d   : > { %v743_v55 = vld [vmem:[#allocation2 + $0x360] sm:$0xff] }
  0x7e   : > { %v747_v58 = vld [vmem:[#allocation2 + $0x380] sm:$0xff]  ;;  %v3749_v60 = vcombine.high %v739_v54, %v743_v55  ;;  %v3748_v61 = vcombine.low %v739_v54, %v743_v55 }
  0x7f   : > { %1458 = vmatpush1.bf16.msra.mxu0 %v3692_v33  ;;  %v751_v59 = vld [vmem:[#allocation2 + $0x3a0] sm:$0xff]  ;;  %v689_v33 = vld [vmem:[#allocation2 + $0x1b0] sm:$0xff] }
  0x80   : > { %1459 = vmatprep.subr.bf16.mxu0 %v3701_v36  ;;  %v755_v62 = vld [vmem:[#allocation2 + $0x3c0] sm:$0xff]  ;;  %v3757_v0 = vcombine.high %v747_v58, %v751_v59  ;;  %v3756_v2 = vcombine.low %v747_v58, %v751_v59  ;;  %v3697_v35 = vcombine.high %v685_v32, %v689_v33  ;;  %v693_v36 = vld [vmem:[#allocation2 + $0x1d0] sm:$0xff]  ;;  %v3696_v38 = vcombine.low %v685_v32, %v689_v33 }
  0x81   : > { %v759_v63 = vld [vmem:[#allocation2 + $0x3e0] sm:$0xff] }
  0x82   : > { %v3765_v5 = vcombine.high %v755_v62, %v759_v63  ;;  %v3764_v7 = vcombine.low %v755_v62, %v759_v63  ;;  %v4185_v13 = vld [vmem:[#allocation4 + $0x24] ss:$16 sps:$4 sm:$0xff]   ;;  %v4183_v14 = vld [vmem:[#allocation4 + $0x20] ss:$16 sps:$4 sm:$0xff]  }
  0x83   : > { %1460 = vmatpush1.bf16.msra.mxu0 %v3700_v37  ;;  %v697_v37 = vld [vmem:[#allocation2 + $0x1f0] sm:$0xff] }
  0x84   : > { %1461 = vmatprep.subr.bf16.mxu0 %v3709_v40  ;;  %v3705_v39 = vcombine.high %v693_v36, %v697_v37  ;;  %v701_v40 = vld [vmem:[#allocation2 + $0x210] sm:$0xff]  ;;  %v3704_v42 = vcombine.low %v693_v36, %v697_v37 }
  0x85   : > { %v4191_v19 = vld [vmem:[#allocation4 + $0x64] ss:$16 sps:$4 sm:$0xff]   ;;  %v4189_v18 = vld [vmem:[#allocation4 + $0x60] ss:$16 sps:$4 sm:$0xff]  }
  0x86   : > { %v4197_v22 = vld [vmem:[#allocation4 + $0xa4] ss:$16 sps:$4 sm:$0xff]   ;;  %v4195_v23 = vld [vmem:[#allocation4 + $0xa0] ss:$16 sps:$4 sm:$0xff]  }
  0x87   : > { %1462 = vmatpush1.bf16.msra.mxu0 %v3708_v41  ;;  %v705_v41 = vld [vmem:[#allocation2 + $0x230] sm:$0xff] }
  0x88   : > { %1463 = vmatprep.subr.bf16.mxu0 %v3717_v44  ;;  %v3713_v43 = vcombine.high %v701_v40, %v705_v41  ;;  %v709_v44 = vld [vmem:[#allocation2 + $0x250] sm:$0xff]  ;;  %v3712_v46 = vcombine.low %v701_v40, %v705_v41 }
  0x89   : > { %v4203_v27 = vld [vmem:[#allocation4 + $0xe4] ss:$16 sps:$4 sm:$0xff]   ;;  %v4201_v28 = vld [vmem:[#allocation4 + $0xe0] ss:$16 sps:$4 sm:$0xff]  }
  0x8a   : > { %v4207_v32 = vld [vmem:[#allocation4 + $0x120] ss:$16 sps:$4 sm:$0xff]   ;;  %v4212_v33 = vld [vmem:[#allocation4 + $0x144] ss:$16 sps:$4 sm:$0xff]  }
  0x8b   : > { %1464 = vmatpush1.bf16.msra.mxu0 %v3716_v45  ;;  %v713_v45 = vld [vmem:[#allocation2 + $0x270] sm:$0xff] }
  0x8c   : > { %1465 = vmatprep.subr.bf16.mxu0 %v3725_v48  ;;  %v3721_v47 = vcombine.high %v709_v44, %v713_v45  ;;  %v717_v48 = vld [vmem:[#allocation2 + $0x290] sm:$0xff]  ;;  %v3720_v50 = vcombine.low %v709_v44, %v713_v45 }
  0x8d   : > { %v4213_v36 = vld [vmem:[#allocation4 + $0x160] ss:$16 sps:$4 sm:$0xff]   ;;  %v4218_v37 = vld [vmem:[#allocation4 + $0x184] ss:$16 sps:$4 sm:$0xff]  }
  0x8e   : > { %v4219_v40 = vld [vmem:[#allocation4 + $0x1a0] ss:$16 sps:$4 sm:$0xff]   ;;  %v4224_v41 = vld [vmem:[#allocation4 + $0x1c4] ss:$16 sps:$4 sm:$0xff]  }
  0x8f   : > { %1466 = vmatpush1.bf16.msra.mxu0 %v3724_v49  ;;  %v721_v49 = vld [vmem:[#allocation2 + $0x2b0] sm:$0xff] }
  0x90   : > { %1467 = vmatprep.subr.bf16.mxu0 %v3733_v52  ;;  %v3729_v51 = vcombine.high %v717_v48, %v721_v49  ;;  %v725_v52 = vld [vmem:[#allocation2 + $0x2d0] sm:$0xff]  ;;  %v3728_v54 = vcombine.low %v717_v48, %v721_v49 }
  0x93   : > { %1468 = vmatpush1.bf16.msra.mxu0 %v3732_v53  ;;  %v729_v53 = vld [vmem:[#allocation2 + $0x2f0] sm:$0xff] }
  0x94   : > { %1469 = vmatprep.subr.bf16.mxu0 %v3741_v56  ;;  %v3737_v55 = vcombine.high %v725_v52, %v729_v53  ;;  %v733_v56 = vld [vmem:[#allocation2 + $0x310] sm:$0xff]  ;;  %v3736_v58 = vcombine.low %v725_v52, %v729_v53 }
  0x97   : > { %1470 = vmatpush1.bf16.msra.mxu0 %v3740_v57  ;;  %v737_v57 = vld [vmem:[#allocation2 + $0x330] sm:$0xff] }
  0x98   : > { %1471 = vmatprep.subr.bf16.mxu0 %v3749_v60  ;;  %v3745_v59 = vcombine.high %v733_v56, %v737_v57  ;;  %v741_v60 = vld [vmem:[#allocation2 + $0x350] sm:$0xff]  ;;  %v3744_v62 = vcombine.low %v733_v56, %v737_v57 }
  0x99   : > { %v4225_v57 = vld [vmem:[#allocation4 + $0x1e0] ss:$16 sps:$4 sm:$0xff]  }
  0x9b   : > { %1472 = vmatpush1.bf16.msra.mxu0 %v3748_v61  ;;  %v745_v61 = vld [vmem:[#allocation2 + $0x370] sm:$0xff] }
  0x9c   : > { %1473 = vmatprep.subr.bf16.mxu0 %v3757_v0  ;;  %v3753_v63 = vcombine.high %v741_v60, %v745_v61  ;;  %v749_v0 = vld [vmem:[#allocation2 + $0x390] sm:$0xff]  ;;  %v3752_v3 = vcombine.low %v741_v60, %v745_v61  ;;  %v4796_v60 = vpack.c.bf16 %v4765_v1, %v4765_v1  ;;  %v4528_v61 = vmov 0.0   ;;  %v652_v1 = vld [vmem:[#allocation2 + $0x88] sm:$0xff] }
  0x9f   : > { %1474 = vmatpush1.bf16.msra.mxu0 %v3756_v2  ;;  %v753_v2 = vld [vmem:[#allocation2 + $0x3b0] sm:$0xff] }
  0xa0   : > { %1475 = vmatprep.subr.bf16.mxu0 %v3765_v5  ;;  %v3761_v4 = vcombine.high %v749_v0, %v753_v2  ;;  %v757_v5 = vld [vmem:[#allocation2 + $0x3d0] sm:$0xff] }
  0xa1   : > { %v3769_v8 = vcombine.high %v757_v5, %v761_v6  ;;  %v3768_v9 = vcombine.low %v757_v5, %v761_v6  ;;  %v656_v6 = vld [vmem:[#allocation2 + $0xa8] sm:$0xff] }
  0xa3   : > { %1476 = vmatpush1.bf16.msra.mxu0 %v3764_v7  ;;  %v3760_v7 = vcombine.low %v749_v0, %v753_v2 }
  0xa4   : > { %1527 = vmatprep.subr.bf16.mxu0 %v3649_v10  ;;  %v4180_v10 = vld [vmem:[#allocation4] ss:$16 sps:$4 sm:$0xff]  }
  0xa6   : > { %1478 = vmatmul.mubr.bf16.vlgmr.msra.gmra.mrb[0].mxu0 %v4769_v11 }
  0xa7   : > { %1528 = vmatpush1.bf16.msra.mxu0 %v3648_v12  ;;  %1559 = vmatprep.mubr.bf16.mxu0 %v4754_v24  ;;  %v4182_v12 = vld [vmem:[#allocation4 + $0x4] ss:$16 sps:$4 sm:$0xff]  }
  0xa8   : > { %1529 = vmatprep.subr.bf16.mxu0 %v3657_v15  ;;  %v4188_v15 = vld [vmem:[#allocation4 + $0x44] ss:$16 sps:$4 sm:$0xff]  }
  0xab   : > { %1530 = vmatpush1.bf16.msra.mxu0 %v3656_v16  ;;  %v4186_v16 = vld [vmem:[#allocation4 + $0x40] ss:$16 sps:$4 sm:$0xff]  }
  0xac   : > { %1531 = vmatprep.subr.bf16.mxu0 %v3665_v20  ;;  %v4194_v20 = vld [vmem:[#allocation4 + $0x84] ss:$16 sps:$4 sm:$0xff]  }
  0xaf   : > { %1532 = vmatpush1.bf16.msra.mxu0 %v3664_v21  ;;  %v4192_v21 = vld [vmem:[#allocation4 + $0x80] ss:$16 sps:$4 sm:$0xff]  }
  0xb0   : > { %1533 = vmatprep.subr.bf16.mxu0 %v3673_v25  ;;  %v4200_v25 = vld [vmem:[#allocation4 + $0xc4] ss:$16 sps:$4 sm:$0xff]  }
  0xb3   : > { %1534 = vmatpush1.bf16.msra.mxu0 %v3672_v26  ;;  %v4198_v26 = vld [vmem:[#allocation4 + $0xc0] ss:$16 sps:$4 sm:$0xff]  }
  0xb4   : > { %1535 = vmatprep.subr.bf16.mxu0 %v3681_v29  ;;  %v4206_v29 = vld [vmem:[#allocation4 + $0x104] ss:$16 sps:$4 sm:$0xff]  }
  0xb7   : > { %1536 = vmatpush1.bf16.msra.mxu0 %v3680_v30  ;;  %v4204_v30 = vld [vmem:[#allocation4 + $0x100] ss:$16 sps:$4 sm:$0xff]  }
  0xb8   : > { %1537 = vmatprep.subr.bf16.mxu0 %v3689_v31  ;;  %v4209_v31 = vld [vmem:[#allocation4 + $0x124] ss:$16 sps:$4 sm:$0xff]  }
  0xbb   : > { %1538 = vmatpush1.bf16.msra.mxu0 %v3688_v34  ;;  %v4210_v34 = vld [vmem:[#allocation4 + $0x140] ss:$16 sps:$4 sm:$0xff]  }
  0xbc   : > { %1539 = vmatprep.subr.bf16.mxu0 %v3697_v35  ;;  %v4215_v35 = vld [vmem:[#allocation4 + $0x164] ss:$16 sps:$4 sm:$0xff]  }
  0xbf   : > { %1540 = vmatpush1.bf16.msra.mxu0 %v3696_v38  ;;  %v4216_v38 = vld [vmem:[#allocation4 + $0x180] ss:$16 sps:$4 sm:$0xff]  }
  0xc0   : > { %1541 = vmatprep.subr.bf16.mxu0 %v3705_v39  ;;  %v4221_v39 = vld [vmem:[#allocation4 + $0x1a4] ss:$16 sps:$4 sm:$0xff]  }
  0xc3   : > { %1542 = vmatpush1.bf16.msra.mxu0 %v3704_v42  ;;  %v4222_v42 = vld [vmem:[#allocation4 + $0x1c0] ss:$16 sps:$4 sm:$0xff]  }
  0xc4   : > { %1543 = vmatprep.subr.bf16.mxu0 %v3713_v43 }
  0xc7   : > { %1544 = vmatpush1.bf16.msra.mxu0 %v3712_v46 }
  0xc8   : > { %1545 = vmatprep.subr.bf16.mxu0 %v3721_v47  ;;  %v626_v47 = vlaneseq }
  0xca   : > { %v4779_v48 = vshrl.u32 %v626_v47, 7 }
  0xcb   : > { %1546 = vmatpush1.bf16.msra.mxu0 %v3720_v50  ;;  %v4785_v50 = vld [vmem:[%s5084_s4] sm:$0xff] }
  0xcc   : > { %1547 = vmatprep.subr.bf16.mxu0 %v3729_v51  ;;  %v783_v49 = vsub.s32 4, %v4779_v48 }
  0xce   : > { %v784_v51 = vrot.slane %v4785_v50, %v783_v49 }
  0xcf   : > { %1548 = vmatpush1.bf16.msra.mxu0 %v3728_v54 }
  0xd0   : > { %1549 = vmatprep.subr.bf16.mxu0 %v3737_v55 }
  0xd3   : > { %1550 = vmatpush1.bf16.msra.mxu0 %v3736_v58  ;;  %v4227_v58 = vld [vmem:[#allocation4 + $0x1e4] ss:$16 sps:$4 sm:$0xff]  }
  0xd4   : > { %1551 = vmatprep.subr.bf16.mxu0 %v3745_v59  ;;  %v4792_v59 = vpack.c.bf16 %v4748_v17, %v4748_v17  ;;  %v648_v17 = vld [vmem:[#allocation2 + $0x68] sm:$0xff] }
  0xd7   : > { %1552 = vmatpush1.bf16.msra.mxu0 %v3744_v62  ;;  %v636_v62 = vld [vmem:[#allocation2 + $0x8] sm:$0xff] }
  0xd8   : > { %1553 = vmatprep.subr.bf16.mxu0 %v3753_v63  ;;  %v640_v63 = vld [vmem:[#allocation2 + $0x28] sm:$0xff] }
  0xd9   : > { %v3647_v0 = vcombine.high %v636_v62, %v640_v63  ;;  %v3646_v2 = vcombine.low %v636_v62, %v640_v63 }
  0xdb   : > { %1554 = vmatpush1.bf16.msra.mxu0 %v3752_v3  ;;  %1486 = vmatprep.subr.bf16.mxu1 %v3647_v0  ;;  %v644_v3 = vld [vmem:[#allocation2 + $0x48] sm:$0xff] }
  0xdc   : > { %1555 = vmatprep.subr.bf16.mxu0 %v3761_v4  ;;  %1487 = vmatpush1.bf16.msra.mxu1 %v3646_v2  ;;  %v3655_v4 = vcombine.high %v644_v3, %v648_v17  ;;  %v3654_v5 = vcombine.low %v644_v3, %v648_v17  ;;  %v748_v0 = vld [vmem:[#allocation2 + $0x388] sm:$0xff] }
  0xdd   : > { %v752_v2 = vld [vmem:[#allocation2 + $0x3a8] sm:$0xff] }
  0xde   : > { %1488 = vmatprep.subr.bf16.mxu1 %v3655_v4  ;;  %v3759_v17 = vcombine.high %v748_v0, %v752_v2  ;;  %v756_v4 = vld [vmem:[#allocation2 + $0x3c8] sm:$0xff] }
  0xdf   : > { %1556 = vmatpush1.bf16.msra.mxu0 %v3760_v7  ;;  %v3663_v7 = vcombine.high %v652_v1, %v656_v6 }
  0xe0   : > { %1557 = vmatprep.subr.bf16.mxu0 %v3769_v8  ;;  %1489 = vmatpush1.bf16.msra.mxu1 %v3654_v5  ;;  %v3662_v8 = vcombine.low %v652_v1, %v656_v6  ;;  %v760_v5 = vld [vmem:[#allocation2 + $0x3e8] sm:$0xff]  ;;  %v3758_v1 = vcombine.low %v748_v0, %v752_v2  ;;  %v714_v0 = vld [vmem:[#allocation2 + $0x278] sm:$0xff] }
  0xe1   : > { %1490 = vmatprep.subr.bf16.mxu1 %v3663_v7  ;;  %v3767_v6 = vcombine.high %v756_v4, %v760_v5  ;;  %v638_v7 = vld [vmem:[#allocation2 + $0x18] sm:$0xff] }
  0xe3   : > { %1558 = vmatpush1.bf16.msra.mxu0 %v3768_v9  ;;  %v660_v9 = vld [vmem:[#allocation2 + $0xc8] sm:$0xff] }
  0xe4   : > { %2017 = vmatprep.subr.bf16.mxu0 %v4182_v12  ;;  %v668_v12 = vld [vmem:[#allocation2 + $0x108] sm:$0xff]  ;;  %1491 = vmatpush1.bf16.msra.mxu1 %v3662_v8  ;;  %v642_v8 = vld [vmem:[#allocation2 + $0x38] sm:$0xff] }
  0xe6   : > { %1560 = vmatmul.mubr.bf16.vlgmr.msra.gmra.mrb[4].mxu0 %v4769_v11 }
  0xe7   : > { %2018 = vmatpush1.bf16.msra.mxu0 %v4180_v10  ;;  %2049 = vmatprep.mubr.bf16.mxu0 %v4792_v59  ;;  %v664_v10 = vld [vmem:[#allocation2 + $0xe8] sm:$0xff] }
  0xe8   : > { %2019 = vmatprep.subr.bf16.mxu0 %v4185_v13  ;;  %v3671_v13 = vcombine.high %v660_v9, %v664_v10 }
  0xea   : > { %1492 = vmatprep.subr.bf16.mxu1 %v3671_v13  ;;  %v650_v13 = vld [vmem:[#allocation2 + $0x78] sm:$0xff] }
  0xeb   : > { %2020 = vmatpush1.bf16.msra.mxu0 %v4183_v14  ;;  %v672_v14 = vld [vmem:[#allocation2 + $0x128] sm:$0xff] }
  0xec   : > { %2021 = vmatprep.subr.bf16.mxu0 %v4188_v15  ;;  %v3670_v15 = vcombine.low %v660_v9, %v664_v10  ;;  %v3766_v9 = vcombine.low %v756_v4, %v760_v5  ;;  %v3651_v10 = vcombine.high %v638_v7, %v642_v8  ;;  %v718_v4 = vld [vmem:[#allocation2 + $0x298] sm:$0xff] }
  0xed   : > { %v722_v5 = vld [vmem:[#allocation2 + $0x2b8] sm:$0xff] }
  0xee   : > { %1493 = vmatpush1.bf16.msra.mxu1 %v3670_v15 }
  0xef   : > { %2022 = vmatpush1.bf16.msra.mxu0 %v4186_v16  ;;  %v3679_v16 = vcombine.high %v668_v12, %v672_v14 }
  0xf0   : > { %2023 = vmatprep.subr.bf16.mxu0 %v4191_v19  ;;  %v676_v19 = vld [vmem:[#allocation2 + $0x148] sm:$0xff] }
  0xf1   : > { %1494 = vmatprep.subr.bf16.mxu1 %v3679_v16  ;;  %v654_v16 = vld [vmem:[#allocation2 + $0x98] sm:$0xff] }
  0xf3   : > { %2024 = vmatpush1.bf16.msra.mxu0 %v4189_v18  ;;  %v680_v18 = vld [vmem:[#allocation2 + $0x168] sm:$0xff] }
  0xf4   : > { %2025 = vmatprep.subr.bf16.mxu0 %v4194_v20  ;;  %v3678_v20 = vcombine.low %v668_v12, %v672_v14  ;;  %v646_v12 = vld [vmem:[#allocation2 + $0x58] sm:$0xff]  ;;  %v3650_v14 = vcombine.low %v638_v7, %v642_v8  ;;  %v3731_v8 = vcombine.high %v718_v4, %v722_v5 }
  0xf5   : > { %v3659_v15 = vcombine.high %v646_v12, %v650_v13 }
  0xf6   : > { %1495 = vmatpush1.bf16.msra.mxu1 %v3678_v20 }
  0xf7   : > { %2026 = vmatpush1.bf16.msra.mxu0 %v4192_v21  ;;  %v3687_v21 = vcombine.high %v676_v19, %v680_v18 }
  0xf8   : > { %2027 = vmatprep.subr.bf16.mxu0 %v4197_v22  ;;  %v684_v22 = vld [vmem:[#allocation2 + $0x188] sm:$0xff] }
  0xf9   : > { %1496 = vmatprep.subr.bf16.mxu1 %v3687_v21  ;;  %v662_v21 = vld [vmem:[#allocation2 + $0xd8] sm:$0xff] }
  0xfb   : > { %2028 = vmatpush1.bf16.msra.mxu0 %v4195_v23  ;;  %v688_v23 = vld [vmem:[#allocation2 + $0x1a8] sm:$0xff] }
  0xfc   : > { %2029 = vmatprep.subr.bf16.mxu0 %v4200_v25  ;;  %v3686_v25 = vcombine.low %v676_v19, %v680_v18  ;;  %v658_v19 = vld [vmem:[#allocation2 + $0xb8] sm:$0xff]  ;;  %v3658_v18 = vcombine.low %v646_v12, %v650_v13  ;;  %v3730_v13 = vcombine.low %v718_v4, %v722_v5 }
  0xfd   : > { %v3667_v20 = vcombine.high %v654_v16, %v658_v19  ;;  %v4251_v4 = vld [vmem:[#allocation4 + $0xec] ss:$16 sps:$4 sm:$0xff]   ;;  %v4249_v5 = vld [vmem:[#allocation4 + $0xe8] ss:$16 sps:$4 sm:$0xff]  }
  0xfe   : > { %1497 = vmatpush1.bf16.msra.mxu1 %v3686_v25  ;;  %v3666_v25 = vcombine.low %v654_v16, %v658_v19  ;;  %v738_v16 = vld [vmem:[#allocation2 + $0x338] sm:$0xff] }
  0xff   : > { %2030 = vmatpush1.bf16.msra.mxu0 %v4198_v26  ;;  %v3695_v26 = vcombine.high %v684_v22, %v688_v23 }
 0x100   : > { %2031 = vmatprep.subr.bf16.mxu0 %v4203_v27  ;;  %v692_v27 = vld [vmem:[#allocation2 + $0x1c8] sm:$0xff] }
 0x101   : > { %1498 = vmatprep.subr.bf16.mxu1 %v3695_v26 }
 0x103   : > { %2032 = vmatpush1.bf16.msra.mxu0 %v4201_v28  ;;  %v696_v28 = vld [vmem:[#allocation2 + $0x1e8] sm:$0xff] }
 0x104   : > { %2033 = vmatprep.subr.bf16.mxu0 %v4206_v29  ;;  %v3694_v29 = vcombine.low %v684_v22, %v688_v23  ;;  %v666_v22 = vld [vmem:[#allocation2 + $0xf8] sm:$0xff] }
 0x105   : > { %v3675_v26 = vcombine.high %v662_v21, %v666_v22 }
 0x106   : > { %1499 = vmatpush1.bf16.msra.mxu1 %v3694_v29 }
 0x107   : > { %2034 = vmatpush1.bf16.msra.mxu0 %v4204_v30  ;;  %v3703_v30 = vcombine.high %v692_v27, %v696_v28 }
 0x108   : > { %2035 = vmatprep.subr.bf16.mxu0 %v4209_v31  ;;  %v700_v31 = vld [vmem:[#allocation2 + $0x208] sm:$0xff] }
 0x109   : > { %1500 = vmatprep.subr.bf16.mxu1 %v3703_v30  ;;  %v3674_v30 = vcombine.low %v662_v21, %v666_v22  ;;  %v742_v22 = vld [vmem:[#allocation2 + $0x358] sm:$0xff] }
 0x10b   : > { %2036 = vmatpush1.bf16.msra.mxu0 %v4207_v32  ;;  %v704_v32 = vld [vmem:[#allocation2 + $0x228] sm:$0xff] }
 0x10c   : > { %2037 = vmatprep.subr.bf16.mxu0 %v4212_v33  ;;  %v3702_v33 = vcombine.low %v692_v27, %v696_v28  ;;  %v670_v27 = vld [vmem:[#allocation2 + $0x118] sm:$0xff] }
 0x10d   : > { %v674_v28 = vld [vmem:[#allocation2 + $0x138] sm:$0xff] }
 0x10e   : > { %1501 = vmatpush1.bf16.msra.mxu1 %v3702_v33  ;;  %v678_v33 = vld [vmem:[#allocation2 + $0x158] sm:$0xff] }
 0x10f   : > { %2038 = vmatpush1.bf16.msra.mxu0 %v4210_v34  ;;  %v3711_v34 = vcombine.high %v700_v31, %v704_v32 }
 0x110   : > { %2039 = vmatprep.subr.bf16.mxu0 %v4215_v35  ;;  %v708_v35 = vld [vmem:[#allocation2 + $0x248] sm:$0xff] }
 0x111   : > { %1502 = vmatprep.subr.bf16.mxu1 %v3711_v34  ;;  %v682_v34 = vld [vmem:[#allocation2 + $0x178] sm:$0xff] }
 0x113   : > { %2040 = vmatpush1.bf16.msra.mxu0 %v4213_v36  ;;  %v712_v36 = vld [vmem:[#allocation2 + $0x268] sm:$0xff] }
 0x114   : > { %2041 = vmatprep.subr.bf16.mxu0 %v4218_v37  ;;  %v3710_v37 = vcombine.low %v700_v31, %v704_v32  ;;  %v3683_v32 = vcombine.high %v670_v27, %v674_v28 }
 0x116   : > { %1503 = vmatpush1.bf16.msra.mxu1 %v3710_v37  ;;  %v686_v37 = vld [vmem:[#allocation2 + $0x198] sm:$0xff] }
 0x117   : > { %2042 = vmatpush1.bf16.msra.mxu0 %v4216_v38  ;;  %v3719_v38 = vcombine.high %v708_v35, %v712_v36 }
 0x118   : > { %2043 = vmatprep.subr.bf16.mxu0 %v4221_v39  ;;  %v716_v39 = vld [vmem:[#allocation2 + $0x288] sm:$0xff] }
 0x119   : > { %1504 = vmatprep.subr.bf16.mxu1 %v3719_v38  ;;  %v690_v38 = vld [vmem:[#allocation2 + $0x1b8] sm:$0xff] }
 0x11b   : > { %2044 = vmatpush1.bf16.msra.mxu0 %v4219_v40  ;;  %v720_v40 = vld [vmem:[#allocation2 + $0x2a8] sm:$0xff] }
 0x11c   : > { %2045 = vmatprep.subr.bf16.mxu0 %v4224_v41  ;;  %v3718_v41 = vcombine.low %v708_v35, %v712_v36  ;;  %v3726_v49 = vcombine.low %v716_v39, %v720_v40  ;;  %v3682_v35 = vcombine.low %v670_v27, %v674_v28  ;;  %v3691_v36 = vcombine.high %v678_v33, %v682_v34  ;;  %v750_v28 = vld [vmem:[#allocation2 + $0x398] sm:$0xff] }
 0x11e   : > { %1505 = vmatpush1.bf16.msra.mxu1 %v3718_v41 }
 0x11f   : > { %2046 = vmatpush1.bf16.msra.mxu0 %v4222_v42  ;;  %v3727_v42 = vcombine.high %v716_v39, %v720_v40  ;;  %v3690_v40 = vcombine.low %v678_v33, %v682_v34  ;;  %v758_v34 = vld [vmem:[#allocation2 + $0x3d8] sm:$0xff] }
 0x120   : > { %2047 = vmatprep.subr.bf16.mxu0 %v4227_v58  ;;  %v744_v58 = vld [vmem:[#allocation2 + $0x368] sm:$0xff] }
 0x121   : > { %1506 = vmatprep.subr.bf16.mxu1 %v3727_v42  ;;  %v3699_v42 = vcombine.high %v686_v37, %v690_v38 }
 0x122   : > { %1507 = vmatpush1.bf16.msra.mxu1 %v3726_v49 }
 0x123   : > { %2048 = vmatpush1.bf16.msra.mxu0 %v4225_v57  ;;  %v740_v57 = vld [vmem:[#allocation2 + $0x348] sm:$0xff] }
 0x124   : > { %4009 = vmatprep.subr.bf16.mxu0 %v4528_v61  ;;  %v3751_v63 = vcombine.high %v740_v57, %v744_v58  ;;  %v3750_v3 = vcombine.low %v740_v57, %v744_v58 }
 0x126   : > { %2050 = vmatmul.mubr.bf16.vlgmr.msra.gmra.mrb[8].mxu0 %v4796_v60 }
 0x127   : > { %4025 = vmatprep.mubr.msk.bf16.mxu0 %vm4529_vm0, %v4528_v61 }
 0x179   : > { %v4774_v43 = vpop.f32.mrb[0].mxu0 }
 0x17a   : > { %v4776_v44 = vpop.f32.mrb[1].mxu0 }
 0x17b   : > { %v1483_v45 = vpop.f32.mrb[2].mxu0 }
 0x17c   : > { %v1484_v46 = vpop.f32.mrb[3].mxu0  ;;  %v724_v45 = vld [vmem:[#allocation2 + $0x2c8] sm:$0xff] }
 0x17d   : > { %v728_v46 = vld [vmem:[#allocation2 + $0x2e8] sm:$0xff] }
 0x1b9   : > { %v1561_v52 = vpop.f32.mrb[4].mxu0 }
 0x1ba   : > { %v4788_v53 = vpop.f32.mrb[5].mxu0  ;;  %v1562_v54 = vadd.f32 %v1561_v52, %v784_v51  ;;  %v3735_v51 = vcombine.high %v724_v45, %v728_v46  ;;  %v732_v52 = vld [vmem:[#allocation2 + $0x308] sm:$0xff] }
 0x1bb   : > { %v1565_v55 = vpop.f32.mrb[6].mxu0 }
 0x1bc   : > { %v1566_v56 = vpop.f32.mrb[7].mxu0  ;;  %2103 = vxpose.xlu0.b32.start.end [1/1] (short) %v1562_v54, 128  ;;  %v736_v54 = vld [vmem:[#allocation2 + $0x328] sm:$0xff]  ;;  %v3734_v55 = vcombine.low %v724_v45, %v728_v46  ;;  %1508 = vmatprep.subr.bf16.mxu1 %v3735_v51  ;;  %v694_v45 = vld [vmem:[#allocation2 + $0x1d8] sm:$0xff]  ;;  %v3698_v51 = vcombine.low %v686_v37, %v690_v38  ;;  %v4812_v38 = vsub.s32 0, %v4779_v48 }
 0x1bd   : > { %v3743_v56 = vcombine.high %v732_v52, %v736_v54  ;;  %v3742_v62 = vcombine.low %v732_v52, %v736_v54  ;;  %v698_v46 = vld [vmem:[#allocation2 + $0x1f8] sm:$0xff] }
 0x1be   : > { %1509 = vmatpush1.bf16.msra.mxu1 %v3734_v55  ;;  %v3707_v52 = vcombine.high %v694_v45, %v698_v46  ;;  %v702_v54 = vld [vmem:[#allocation2 + $0x218] sm:$0xff]  ;;  %v3706_v57 = vcombine.low %v694_v45, %v698_v46  ;;  %v768_v45 = vrot.slane %v4785_v50, %v4812_v38 }
 0x1bf   : > { %1510 = vmatprep.subr.bf16.mxu1 %v3743_v56  ;;  %v706_v55 = vld [vmem:[#allocation2 + $0x238] sm:$0xff] }
 0x1c2   : > { %1511 = vmatpush1.bf16.msra.mxu1 %v3742_v62  ;;  %v3715_v62 = vcombine.high %v702_v54, %v706_v55 }
 0x1c3   : > { %1512 = vmatprep.subr.bf16.mxu1 %v3751_v63  ;;  %v710_v63 = vld [vmem:[#allocation2 + $0x258] sm:$0xff] }
 0x1c6   : > { %1513 = vmatpush1.bf16.msra.mxu1 %v3750_v3  ;;  %v3714_v3 = vcombine.low %v702_v54, %v706_v55  ;;  %v4231_v55 = vld [vmem:[#allocation4 + $0x28] ss:$16 sps:$4 sm:$0xff]  }
 0x1c7   : > { %1514 = vmatprep.subr.bf16.mxu1 %v3759_v17  ;;  %v3723_v17 = vcombine.high %v710_v63, %v714_v0 }
 0x1ca   : > { %1515 = vmatpush1.bf16.msra.mxu1 %v3758_v1 }
 0x1cb   : > { %1516 = vmatprep.subr.bf16.mxu1 %v3767_v6  ;;  %v3722_v6 = vcombine.low %v710_v63, %v714_v0  ;;  %v4239_v63 = vld [vmem:[#allocation4 + $0x6c] ss:$16 sps:$4 sm:$0xff]  }
 0x1cc   : > { %v4245_v0 = vld [vmem:[#allocation4 + $0xac] ss:$16 sps:$4 sm:$0xff]  }
 0x1ce   : > { %1517 = vmatpush1.bf16.msra.mxu1 %v3766_v9  ;;  %v726_v9 = vld [vmem:[#allocation2 + $0x2d8] sm:$0xff] }
 0x1cf   : > { %1568 = vmatprep.subr.bf16.mxu1 %v3651_v10  ;;  %v730_v10 = vld [vmem:[#allocation2 + $0x2f8] sm:$0xff] }
 0x1d1   : > { %1519 = vmatmul.mubr.bf16.vlgmr.msra.gmra.mrb[0].mxu1 %v4769_v11 }
 0x1d2   : > { %1569 = vmatpush1.bf16.msra.mxu1 %v3650_v14  ;;  %1600 = vmatprep.mubr.bf16.mxu1 %v4754_v24  ;;  %v3739_v14 = vcombine.high %v726_v9, %v730_v10 }
 0x1d3   : > { %1570 = vmatprep.subr.bf16.mxu1 %v3659_v15  ;;  %v734_v15 = vld [vmem:[#allocation2 + $0x318] sm:$0xff] }
 0x1d4   : > { %v3747_v21 = vcombine.high %v734_v15, %v738_v16 }
 0x1d6   : > { %1571 = vmatpush1.bf16.msra.mxu1 %v3658_v18  ;;  %v3738_v18 = vcombine.low %v726_v9, %v730_v10  ;;  %v4257_v10 = vld [vmem:[#allocation4 + $0x12c] ss:$16 sps:$4 sm:$0xff]  }
 0x1d7   : > { %1572 = vmatprep.subr.bf16.mxu1 %v3667_v20 }
 0x1da   : > { %1573 = vmatpush1.bf16.msra.mxu1 %v3666_v25 }
 0x1db   : > { %1574 = vmatprep.subr.bf16.mxu1 %v3675_v26  ;;  %v3746_v26 = vcombine.low %v734_v15, %v738_v16 }
 0x1de   : > { %1575 = vmatpush1.bf16.msra.mxu1 %v3674_v30 }
 0x1df   : > { %1576 = vmatprep.subr.bf16.mxu1 %v3683_v32 }
 0x1e2   : > { %1577 = vmatpush1.bf16.msra.mxu1 %v3682_v35 }
 0x1e3   : > { %1578 = vmatprep.subr.bf16.mxu1 %v3691_v36 }
 0x1e6   : > { %1579 = vmatpush1.bf16.msra.mxu1 %v3690_v40 }
 0x1e7   : > { %1580 = vmatprep.subr.bf16.mxu1 %v3699_v42  ;;  %v4230_v42 = vld [vmem:[#allocation4 + $0xc] ss:$16 sps:$4 sm:$0xff]  }
 0x1ea   : > { %1581 = vmatpush1.bf16.msra.mxu1 %v3698_v51  ;;  %v4233_v51 = vld [vmem:[#allocation4 + $0x2c] ss:$16 sps:$4 sm:$0xff]  }
 0x1eb   : > { %1582 = vmatprep.subr.bf16.mxu1 %v3707_v52  ;;  %v1480_v52 = vadd.f32 %v4774_v43, %v768_v45  ;;  %v4242_v43 = vld [vmem:[#allocation4 + $0x8c] ss:$16 sps:$4 sm:$0xff]  }
 0x1ee   : > { %1583 = vmatpush1.bf16.msra.mxu1 %v3706_v57  ;;  %v4236_v57 = vld [vmem:[#allocation4 + $0x4c] ss:$16 sps:$4 sm:$0xff]  }
 0x1ef   : > { %1584 = vmatprep.subr.bf16.mxu1 %v3715_v62  ;;  %v4234_v62 = vld [vmem:[#allocation4 + $0x48] ss:$16 sps:$4 sm:$0xff]  }
 0x1f2   : > { %1585 = vmatpush1.bf16.msra.mxu1 %v3714_v3  ;;  %v4248_v3 = vld [vmem:[#allocation4 + $0xcc] ss:$16 sps:$4 sm:$0xff]  }
 0x1f3   : > { %1586 = vmatprep.subr.bf16.mxu1 %v3723_v17  ;;  %v4246_v17 = vld [vmem:[#allocation4 + $0xc8] ss:$16 sps:$4 sm:$0xff]  }
 0x1f6   : > { %1587 = vmatpush1.bf16.msra.mxu1 %v3722_v6  ;;  %v4826_v6 = vld [vmem:[%s5086_s6] sm:$0xf] }
 0x1f7   : > { %1588 = vmatprep.subr.bf16.mxu1 %v3731_v8  ;;  %v4252_v8 = vld [vmem:[#allocation4 + $0x108] ss:$16 sps:$4 sm:$0xff]  }
 0x1fa   : > { %1589 = vmatpush1.bf16.msra.mxu1 %v3730_v13 }
 0x1fb   : > { %1590 = vmatprep.subr.bf16.mxu1 %v3739_v14  ;;  %v4255_v14 = vld [vmem:[#allocation4 + $0x128] ss:$16 sps:$4 sm:$0xff]  }
 0x1fe   : > { %1591 = vmatpush1.bf16.msra.mxu1 %v3738_v18 }
 0x1ff   : > { %1592 = vmatprep.subr.bf16.mxu1 %v3747_v21  ;;  %v4258_v21 = vld [vmem:[#allocation4 + $0x148] ss:$16 sps:$4 sm:$0xff]  }
 0x202   : > { %1593 = vmatpush1.bf16.msra.mxu1 %v3746_v26  ;;  %v4266_v26 = vld [vmem:[#allocation4 + $0x18c] ss:$16 sps:$4 sm:$0xff]  }
 0x23c   : > { %v2119_v23 = vpop.trf.xlu0 }
 0x240   : > { %v2120_v29 = vpop.trf.xlu0 }
 0x241   : > { %v2231_v31 = vpack.c.bf16 %v2120_v29, %v2119_v23  ;;  %v746_v23 = vld [vmem:[#allocation2 + $0x378] sm:$0xff] }
 0x242   : > { %v3755_v27 = vcombine.high %v742_v22, %v746_v23  ;;  %v754_v29 = vld [vmem:[#allocation2 + $0x3b8] sm:$0xff] }
 0x243   : > { %4010 = vmatpush3.bf16.msra.mxu0 %v2231_v31  ;;  %v3754_v31 = vcombine.low %v742_v22, %v746_v23  ;;  %v3763_v33 = vcombine.high %v750_v28, %v754_v29  ;;  %v3762_v36 = vcombine.low %v750_v28, %v754_v29  ;;  %v4263_v23 = vld [vmem:[#allocation4 + $0x16c] ss:$16 sps:$4 sm:$0xff]   ;;  %v4267_v29 = vld [vmem:[#allocation4 + $0x1a8] ss:$16 sps:$4 sm:$0xff]  }
 0x244   : > { %v2121_v24 = vpop.trf.xlu0  ;;  %4011 = vmatprep.subr.bf16.mxu0 %v4528_v61  ;;  %1594 = vmatprep.subr.bf16.mxu1 %v3755_v27  ;;  %v4264_v27 = vld [vmem:[#allocation4 + $0x188] ss:$16 sps:$4 sm:$0xff]   ;;  %v4269_v28 = vld [vmem:[#allocation4 + $0x1ac] ss:$16 sps:$4 sm:$0xff]  }
 0x245   : > { %1595 = vmatpush1.bf16.msra.mxu1 %v3754_v31  ;;  %v4272_v31 = vld [vmem:[#allocation4 + $0x1cc] ss:$16 sps:$4 sm:$0xff]  }
 0x246   : > { %1596 = vmatprep.subr.bf16.mxu1 %v3763_v33 }
 0x248   : > { %v2122_v39 = vpop.trf.xlu0 }
 0x249   : > { %v2232_v41 = vpack.c.bf16 %v2122_v39, %v2121_v24  ;;  %v762_v24 = vld [vmem:[#allocation2 + $0x3f8] sm:$0xff]  ;;  %1597 = vmatpush1.bf16.msra.mxu1 %v3762_v36 }
 0x24a   : > { %v3771_v37 = vcombine.high %v758_v34, %v762_v24  ;;  %v3770_v40 = vcombine.low %v758_v34, %v762_v24  ;;  %v4275_v34 = vld [vmem:[#allocation4 + $0x1ec] ss:$16 sps:$4 sm:$0xff]   ;;  %v4273_v24 = vld [vmem:[#allocation4 + $0x1e8] ss:$16 sps:$4 sm:$0xff]  }
 0x24b   : > { %4012 = vmatpush3.bf16.msra.mxu0 %v2232_v41 }
 0x24c   : > { %v2123_v49 = vpop.trf.xlu0  ;;  %4013 = vmatprep.subr.bf16.mxu0 %v4528_v61  ;;  %1598 = vmatprep.subr.bf16.mxu1 %v3771_v37 }
 0x24d   : > { %1599 = vmatpush1.bf16.msra.mxu1 %v3770_v40 }
 0x24e   : > { %2058 = vmatprep.subr.bf16.mxu1 %v4230_v42 }
 0x250   : > { %v2124_v56 = vpop.trf.xlu0  ;;  %1601 = vmatmul.mubr.bf16.vlgmr.msra.gmra.mrb[4].mxu1 %v4769_v11  ;;  %v4237_v11 = vld [vmem:[#allocation4 + $0x68] ss:$16 sps:$4 sm:$0xff]  }
 0x251   : > { %v2233_v58 = vpack.c.bf16 %v2124_v56, %v2123_v49  ;;  %v4228_v49 = vld [vmem:[#allocation4 + $0x8] ss:$16 sps:$4 sm:$0xff]   ;;  %2090 = vmatprep.mubr.bf16.mxu1 %v4792_v59 }
 0x252   : > { %2059 = vmatpush1.bf16.msra.mxu1 %v4228_v49  ;;  %v4240_v59 = vld [vmem:[#allocation4 + $0x88] ss:$16 sps:$4 sm:$0xff]  }
 0x253   : > { %4014 = vmatpush3.bf16.msra.mxu0 %v2233_v58  ;;  %2060 = vmatprep.subr.bf16.mxu1 %v4233_v51  ;;  %v2263_v58 = vpack.c.bf16 %v1480_v52, %v1480_v52  ;;  %v787_v52 = vsub.s32 5, %v4779_v48 }
 0x254   : > { %v2125_v2 = vpop.trf.xlu0  ;;  %4015 = vmatprep.subr.bf16.mxu0 %v4528_v61 }
 0x256   : > { %2061 = vmatpush1.bf16.msra.mxu1 %v4231_v55 }
 0x257   : > { %2062 = vmatprep.subr.bf16.mxu1 %v4236_v57 }
 0x258   : > { %v2126_v1 = vpop.trf.xlu0 }
 0x259   : > { %v2234_v7 = vpack.c.bf16 %v2126_v1, %v2125_v2  ;;  %v4243_v2 = vld [vmem:[#allocation4 + $0xa8] ss:$16 sps:$4 sm:$0xff]   ;;  %v4254_v1 = vld [vmem:[#allocation4 + $0x10c] ss:$16 sps:$4 sm:$0xff]  }
 0x25a   : > { %2063 = vmatpush1.bf16.msra.mxu1 %v4234_v62 }
 0x25b   : > { %4016 = vmatpush3.bf16.msra.mxu0 %v2234_v7  ;;  %2064 = vmatprep.subr.bf16.mxu1 %v4239_v63  ;;  %v4829_v7 = vsub.s32 1, %v4779_v48 }
 0x25c   : > { %v2127_v12 = vpop.trf.xlu0  ;;  %4017 = vmatprep.subr.bf16.mxu0 %v4528_v61 }
 0x25d   : > { %v1684_v9 = vrot.slane %v4826_v6, %v4829_v7 }
 0x25e   : > { %2065 = vmatpush1.bf16.msra.mxu1 %v4237_v11 }
 0x25f   : > { %2066 = vmatprep.subr.bf16.mxu1 %v4242_v43 }
 0x260   : > { %v2128_v19 = vpop.trf.xlu0 }
 0x261   : > { %v2235_v20 = vpack.c.bf16 %v2128_v19, %v2127_v12  ;;  %v2051_v12 = vpop.f32.mrb[8].mxu0  ;;  %v4260_v19 = vld [vmem:[#allocation4 + $0x14c] ss:$16 sps:$4 sm:$0xff]  }
 0x262   : > { %2067 = vmatpush1.bf16.msra.mxu1 %v4240_v59  ;;  %v2053_v13 = vpop.f32.mrb[9].mxu0 }
 0x263   : > { %4018 = vmatpush3.bf16.msra.mxu0 %v2235_v20  ;;  %2068 = vmatprep.subr.bf16.mxu1 %v4245_v0  ;;  %v2054_v15 = vadd.f32 %v2053_v13, %v1684_v9  ;;  %v2055_v16 = vpop.f32.mrb[10].mxu0 }
 0x264   : > { %v2129_v25 = vpop.trf.xlu0  ;;  %4019 = vmatprep.subr.bf16.mxu0 %v4528_v61  ;;  %v2056_v18 = vpop.f32.mrb[11].mxu0 }
 0x265   : > { %v2100_v20 = vpack.c.bf16 %v2054_v15, %v2054_v15 }
 0x266   : > { %2069 = vmatpush1.bf16.msra.mxu1 %v4243_v2 }
 0x267   : > { %2070 = vmatprep.subr.bf16.mxu1 %v4248_v3  ;;  %v2421_v22 = vsel %vm2320_vm1, %v2100_v20, 0 }
 0x268   : > { %v2130_v30 = vpop.trf.xlu0 }
 0x269   : > { %v2236_v32 = vpack.c.bf16 %v2130_v30, %v2129_v25  ;;  %v4261_v25 = vld [vmem:[#allocation4 + $0x168] ss:$16 sps:$4 sm:$0xff]   ;;  %v1680_v30 = vrot.slane %v4826_v6, %v4812_v38 }
 0x26a   : > { %2071 = vmatpush1.bf16.msra.mxu1 %v4246_v17 }
 0x26b   : > { %4020 = vmatpush3.bf16.msra.mxu0 %v2236_v32  ;;  %2072 = vmatprep.subr.bf16.mxu1 %v4251_v4  ;;  %v4270_v32 = vld [vmem:[#allocation4 + $0x1c8] ss:$16 sps:$4 sm:$0xff]   ;;  %v2052_v33 = vadd.f32 %v2051_v12, %v1680_v30 }
 0x26c   : > { %v2131_v35 = vpop.trf.xlu0  ;;  %4021 = vmatprep.subr.bf16.mxu0 %v4528_v61 }
 0x26e   : > { %2073 = vmatpush1.bf16.msra.mxu1 %v4249_v5 }
 0x26f   : > { %2074 = vmatprep.subr.bf16.mxu1 %v4254_v1 }
 0x270   : > { %v2132_v39 = vpop.trf.xlu0 }
 0x271   : > { %v2237_v41 = vpack.c.bf16 %v2132_v39, %v2131_v35  ;;  %v2099_v35 = vpack.c.bf16 %v2052_v33, %v2052_v33 }
 0x272   : > { %2075 = vmatpush1.bf16.msra.mxu1 %v4252_v8 }
 0x273   : > { %4022 = vmatpush3.bf16.msra.mxu0 %v2237_v41  ;;  %2076 = vmatprep.subr.bf16.mxu1 %v4257_v10  ;;  %v2322_v36 = vsel %vm2320_vm1, %v2099_v35, 0 }
 0x274   : > { %v2133_v46 = vpop.trf.xlu0  ;;  %4023 = vmatprep.subr.bf16.mxu0 %v4528_v61 }
 0x276   : > { %2077 = vmatpush1.bf16.msra.mxu1 %v4255_v14 }
 0x277   : > { %2078 = vmatprep.subr.bf16.mxu1 %v4260_v19 }
 0x278   : > { %v2134_v54 = vpop.trf.xlu0 }
 0x279   : > { %v2238_v56 = vpack.c.bf16 %v2134_v54, %v2133_v46  ;;  %v788_v54 = vrot.slane %v4785_v50, %v787_v52 }
 0x27a   : > { %2079 = vmatpush1.bf16.msra.mxu1 %v4258_v21 }
 0x27b   : > { %4024 = vmatpush3.bf16.msra.mxu0 %v2238_v56  ;;  %2080 = vmatprep.subr.bf16.mxu1 %v4263_v23  ;;  %v1564_v55 = vadd.f32 %v4788_v53, %v788_v54  ;;  %v775_v56 = vsub.s32 2, %v4779_v48 }
 0x27c   : > { %4055 = vmatprep.subr.bf16.mxu0 %v4528_v61 }
 0x27d   : > { %v776_v63 = vrot.slane %v4785_v50, %v775_v56 }
 0x27e   : > { %4026 = vmatmul.mubr.bf16.vlgmr.msra.gmra.mrb[12].mxu0 %v2263_v58  ;;  %2081 = vmatpush1.bf16.msra.mxu1 %v4261_v25  ;;  %v779_v58 = vsub.s32 3, %v4779_v48 }
 0x27f   : > { %4057 = vmatprep.mubr.msk.bf16.mxu0 %vm4529_vm0, %v4528_v61  ;;  %4056 = vmatpush3.bf16.msra.mxu0 %v2421_v22 }
 0x280   : > { %4061 = vmatprep.subr.bf16.mxu0 %v4528_v61  ;;  %2082 = vmatprep.subr.bf16.mxu1 %v4266_v26  ;;  %v780_v11 = vrot.slane %v4785_v50, %v779_v58 }
 0x282   : > { %2083 = vmatpush1.bf16.msra.mxu1 %v4264_v27 }
 0x283   : > { %2084 = vmatprep.subr.bf16.mxu1 %v4269_v28 }
 0x286   : > { %2085 = vmatpush1.bf16.msra.mxu1 %v4267_v29 }
 0x287   : > { %2086 = vmatprep.subr.bf16.mxu1 %v4272_v31 }
 0x28a   : > { %2087 = vmatpush1.bf16.msra.mxu1 %v4270_v32 }
 0x28b   : > { %2088 = vmatprep.subr.bf16.mxu1 %v4275_v34 }
 0x28e   : > { %2089 = vmatpush1.bf16.msra.mxu1 %v4273_v24 }
 0x28f   : > { %4029 = vmatprep.subr.bf16.mxu1 %v4528_v61 }
 0x291   : > { %2091 = vmatmul.mubr.bf16.vlgmr.msra.gmra.mrb[8].mxu1 %v4796_v60 }
 0x292   : > { %4030 = vmatpush3.bf16.msra.mxu1 %v2322_v36  ;;  %4031 = vmatprep.mubr.msk.bf16.mxu1 %vm4529_vm0, %v4528_v61  ;;  %v1688_v36 = vrot.slane %v4826_v6, %v775_v56 }
 0x293   : > { %4035 = vmatprep.subr.bf16.mxu1 %v4528_v61 }
 0x2a4   : > { %v1520_v57 = vpop.f32.mrb[0].mxu1 }
 0x2a5   : > { %v1522_v62 = vpop.f32.mrb[1].mxu1  ;;  %v4854_v0 = vadd.f32 %v1520_v57, %v776_v63 }
 0x2a6   : > { %v1524_v43 = vpop.f32.mrb[2].mxu1  ;;  %v4856_v2 = vadd.f32 %v1522_v62, %v780_v11 }
 0x2a7   : > { %v1525_v59 = vpop.f32.mrb[3].mxu1 }
 0x323   : > { %v4858_v53 = vpop.f32.mrb[4].mxu1 }
 0x324   : > { %v4860_v3 = vpop.f32.mrb[5].mxu1 }
 0x325   : > { %v1606_v17 = vpop.f32.mrb[6].mxu1 }
 0x326   : > { %v1607_v4 = vpop.f32.mrb[7].mxu1 }
 0x351   : > { %v2298_v37 = vpop.f32.mrb[12].mxu0 }
 0x352   : > { %v4027_v39 = vpop.f32.mrb[13].mxu0  ;;  %v2305_v40 = vsel %vm2304_vm2, %v2298_v37, -inf }
 0x353   : > { %2306 = vmax.xlane.f32.xlu0 %v2305_v40  ;;  %v2301_v41 = vpop.f32.mrb[14].mxu0  ;;  %v772_v39 = vrot.slane %v4785_v50, %v4829_v7 }
 0x354   : > { %v4028_v42 = vpop.f32.mrb[15].mxu0 }
 0x355   : > { %v1482_v42 = vadd.f32 %v4776_v44, %v772_v39 }
 0x364   : > { %v2092_v5 = vpop.f32.mrb[8].mxu1 }
 0x365   : > { %v4862_v1 = vpop.f32.mrb[9].mxu1  ;;  %v2093_v41 = vadd.f32 %v2092_v5, %v1688_v36  ;;  %v1692_v36 = vrot.slane %v4826_v6, %v779_v58 }
 0x366   : > { %v2096_v8 = vpop.f32.mrb[10].mxu1 }
 0x367   : > { %v2097_v9 = vpop.f32.mrb[11].mxu1  ;;  %v791_v8 = vsub.s32 6, %v4779_v48  ;;  %v2095_v39 = vadd.f32 %v4862_v1, %v1692_v36 }
 0x369   : > { %v792_v9 = vrot.slane %v4785_v50, %v791_v8 }
 0x3e0   : > { %v2307_v45 = vpop.xlane.xlu0 %2306 }
 0x3e1   : > { %v2308_v46 = vsub.f32 %v2298_v37, %v2307_v45 }
 0x3e3   : > { %v2309_v49 = vmul.f32 1.442695, %v2308_v46  ;;  %v2101_v46 = vpack.c.bf16 %v2093_v41, %v2093_v41 }
 0x3e5   : > { %4396 = vpow2.f32 %v2309_v49 }
 0x3ef   : > { %v4397_v51 = vpop.eup %4396 }
 0x3f0   : > { %v2311_v60 = vsel %vm2304_vm2, %v4397_v51, 0.0 }
 0x3f1   : > { %2312 = vadd.xlane.f32.xlu1 %v2311_v60  ;;  %v2520_v60 = vsel %vm2320_vm1, %v2101_v46, 0 }
 0x424   : > { %2135 = vxpose.xlu1.b32.start.end [1/1] (short) %v1564_v55, 128 }
 0x47e   : > { %v2313_v10 = vpop.xlane.xlu1 %2312 }
 0x47f   : > { %4398 = vrcp.f32 %v2313_v10  ;;  %v1603_v10 = vadd.f32 %v4858_v53, %v792_v9 }
 0x489   : > { %v4399_v12 = vpop.eup %4398 }
 0x48a   : > { %v2315_v13 = vmul.f32 %v4399_v12, %v4397_v51  ;;  %v2364_v51 = vpack.c.bf16 %v1482_v42, %v1482_v42  ;;  %v2102_v42 = vpack.c.bf16 %v2095_v39, %v2095_v39 }
 0x48c   : > { %v2316_v14 = vpack.c.bf16 %v2315_v13, %v2315_v13  ;;  %v2619_v46 = vsel %vm2320_vm1, %v2102_v42, 0 }
 0x48e   : > { %4032 = vmatmul.mubr.msk.bf16.vlgmr.msra.gmra.mrb[12].mxu1 %vm2304_vm2, %v2316_v14 }
 0x48f   : > { %4051 = vmatprep.mubr.msk.bf16.mxu1 %vm4529_vm0, %v4528_v61 }
 0x4a4   : > { %v2151_v15 = vpop.trf.xlu1 }
 0x4a8   : > { %v2152_v16 = vpop.trf.xlu1 }
 0x4a9   : > { %v2239_v19 = vpack.c.bf16 %v2152_v16, %v2151_v15 }
 0x4ab   : > { %4036 = vmatpush3.bf16.msra.mxu1 %v2239_v19 }
 0x4ac   : > { %v2153_v18 = vpop.trf.xlu1  ;;  %4037 = vmatprep.subr.bf16.mxu1 %v4528_v61 }
 0x4b0   : > { %v2154_v20 = vpop.trf.xlu1 }
 0x4b1   : > { %v2240_v21 = vpack.c.bf16 %v2154_v20, %v2153_v18 }
 0x4b3   : > { %4038 = vmatpush3.bf16.msra.mxu1 %v2240_v21 }
 0x4b4   : > { %v2155_v22 = vpop.trf.xlu1  ;;  %4039 = vmatprep.subr.bf16.mxu1 %v4528_v61 }
 0x4b8   : > { %v2156_v23 = vpop.trf.xlu1 }
 0x4b9   : > { %v2241_v25 = vpack.c.bf16 %v2156_v23, %v2155_v22 }
 0x4bb   : > { %4040 = vmatpush3.bf16.msra.mxu1 %v2241_v25 }
 0x4bc   : > { %v2157_v26 = vpop.trf.xlu1  ;;  %4041 = vmatprep.subr.bf16.mxu1 %v4528_v61 }
 0x4c0   : > { %v2158_v27 = vpop.trf.xlu1 }
 0x4c1   : > { %v2242_v28 = vpack.c.bf16 %v2158_v27, %v2157_v26 }
 0x4c3   : > { %4042 = vmatpush3.bf16.msra.mxu1 %v2242_v28 }
 0x4c4   : > { %v2159_v29 = vpop.trf.xlu1  ;;  %4043 = vmatprep.subr.bf16.mxu1 %v4528_v61 }
 0x4c8   : > { %v2160_v30 = vpop.trf.xlu1 }
 0x4c9   : > { %v2243_v31 = vpack.c.bf16 %v2160_v30, %v2159_v29 }
 0x4cb   : > { %4044 = vmatpush3.bf16.msra.mxu1 %v2243_v31 }
 0x4cc   : > { %v2161_v32 = vpop.trf.xlu1  ;;  %4045 = vmatprep.subr.bf16.mxu1 %v4528_v61 }
 0x4d0   : > { %v2162_v33 = vpop.trf.xlu1 }
 0x4d1   : > { %v2244_v34 = vpack.c.bf16 %v2162_v33, %v2161_v32 }
 0x4d3   : > { %4046 = vmatpush3.bf16.msra.mxu1 %v2244_v34 }
 0x4d4   : > { %v2163_v24 = vpop.trf.xlu1  ;;  %4047 = vmatprep.subr.bf16.mxu1 %v4528_v61 }
 0x4d8   : > { %v2164_v35 = vpop.trf.xlu1 }
 0x4d9   : > { %v2245_v37 = vpack.c.bf16 %v2164_v35, %v2163_v24 }
 0x4db   : > { %4048 = vmatpush3.bf16.msra.mxu1 %v2245_v37 }
 0x4dc   : > { %v2165_v40 = vpop.trf.xlu1  ;;  %4049 = vmatprep.subr.bf16.mxu1 %v4528_v61 }
 0x4e0   : > { %v2166_v45 = vpop.trf.xlu1 }
 0x4e1   : > { %v2246_v49 = vpack.c.bf16 %v2166_v45, %v2165_v40  ;;  %v2463_v45 = vpack.c.bf16 %v4854_v0, %v4854_v0 }
 0x4e3   : > { %4050 = vmatpush3.bf16.msra.mxu1 %v2246_v49 }
 0x4e4   : > { %4081 = vmatprep.subr.bf16.mxu1 %v4528_v61 }
 0x4e6   : > { %4052 = vmatmul.mubr.bf16.vlgmr.msra.gmra.mrb[16].mxu1 %v2364_v51 }
 0x4e7   : > { %4082 = vmatpush3.bf16.msra.mxu1 %v2520_v60  ;;  %4083 = vmatprep.mubr.msk.bf16.mxu1 %vm4529_vm0, %v4528_v61 }
 0x4e8   : > { %4087 = vmatprep.subr.bf16.mxu1 %v4528_v61 }
 0x561   : > { %v4883_v52 = vpop.f32.mrb[12].mxu1 }
 0x562   : > { %v4033_v54 = vpop.f32.mrb[13].mxu1 }
 0x563   : > { %v2361_v44 = vpop.f32.mrb[14].mxu1 }
 0x564   : > { %v4034_v55 = vpop.f32.mrb[15].mxu1 }
 0x565   : > { %v795_v55 = vsub.s32 7, %v4779_v48 }
 0x5b9   : > { %v2399_v56 = vpop.f32.mrb[16].mxu1 }
 0x5ba   : > { %v4053_v57 = vpop.f32.mrb[17].mxu1  ;;  %v2405_v62 = vsel %vm2304_vm2, %v2399_v56, -inf }
 0x5bb   : > { %2406 = vmax.xlane.f32.xlu1 %v2405_v62  ;;  %v2402_v63 = vpop.f32.mrb[18].mxu1 }
 0x5bc   : > { %v4054_v11 = vpop.f32.mrb[19].mxu1 }
 0x648   : > { %v2407_v43 = vpop.xlane.xlu1 %2406 }
 0x649   : > { %v2408_v59 = vsub.f32 %v2399_v56, %v2407_v43  ;;  %v4416_v56 = vld [vmem:[%s5084_s4] sm:$0xff] }
 0x64a   : > { %v796_v57 = vrot.slane %v4416_v56, %v795_v55  ;;  %v4330_v55 = vld [vmem:[#allocation6 + $0x120] ss:$8 sps:$4 sm:$0xff]   ;;  %v4335_v56 = vld [vmem:[#allocation6 + $0x134] ss:$8 sps:$4 sm:$0xff]  }
 0x64b   : > { %v2409_v17 = vmul.f32 1.442695, %v2408_v59 }
 0x64c   : > { %v1605_v62 = vadd.f32 %v4860_v3, %v796_v57  ;;  %v4333_v57 = vld [vmem:[#allocation6 + $0x130] ss:$8 sps:$4 sm:$0xff]  }
 0x64d   : > { %4400 = vpow2.f32 %v2409_v17 }
 0x657   : > { %v4401_v4 = vpop.eup %4400 }
 0x658   : > { %v2411_v5 = vsel %vm2304_vm2, %v4401_v4, 0.0 }
 0x659   : > { %2412 = vadd.xlane.f32.xlu0 %v2411_v5 }
 0x686   : > { %2167 = vxpose.xlu0.b32.start.end [1/1] (short) %v1603_v10, 128 }
 0x6e6   : > { %v2413_v12 = vpop.xlane.xlu0 %2412 }
 0x6e7   : > { %4402 = vrcp.f32 %v2413_v12 }
 0x6f1   : > { %v4403_v13 = vpop.eup %4402 }
 0x6f2   : > { %v2415_v14 = vmul.f32 %v4403_v13, %v4401_v4 }
 0x6f4   : > { %v2416_v15 = vpack.c.bf16 %v2415_v14, %v2415_v14 }
 0x6f6   : > { %4058 = vmatmul.mubr.msk.bf16.vlgmr.msra.gmra.mrb[16].mxu0 %vm2304_vm2, %v2416_v15 }
 0x6f7   : > { %4077 = vmatprep.mubr.msk.bf16.mxu0 %vm4529_vm0, %v4528_v61 }
 0x706   : > { %v2183_v16 = vpop.trf.xlu0 }
 0x70a   : > { %v2184_v19 = vpop.trf.xlu0 }
 0x70b   : > { %v2247_v18 = vpack.c.bf16 %v2184_v19, %v2183_v16 }
 0x70d   : > { %4062 = vmatpush3.bf16.msra.mxu0 %v2247_v18 }
 0x70e   : > { %v2185_v20 = vpop.trf.xlu0  ;;  %4063 = vmatprep.subr.bf16.mxu0 %v4528_v61 }
 0x712   : > { %v2186_v50 = vpop.trf.xlu0 }
 0x713   : > { %v2248_v53 = vpack.c.bf16 %v2186_v50, %v2185_v20 }
 0x715   : > { %4064 = vmatpush3.bf16.msra.mxu0 %v2248_v53 }
 0x716   : > { %v2187_v21 = vpop.trf.xlu0  ;;  %4065 = vmatprep.subr.bf16.mxu0 %v4528_v61 }
 0x71a   : > { %v2188_v22 = vpop.trf.xlu0 }
 0x71b   : > { %v2249_v23 = vpack.c.bf16 %v2188_v22, %v2187_v21 }
 0x71d   : > { %4066 = vmatpush3.bf16.msra.mxu0 %v2249_v23 }
 0x71e   : > { %v2189_v25 = vpop.trf.xlu0  ;;  %4067 = vmatprep.subr.bf16.mxu0 %v4528_v61 }
 0x722   : > { %v2190_v26 = vpop.trf.xlu0 }
 0x723   : > { %v2250_v27 = vpack.c.bf16 %v2190_v26, %v2189_v25 }
 0x725   : > { %4068 = vmatpush3.bf16.msra.mxu0 %v2250_v27 }
 0x726   : > { %v2191_v28 = vpop.trf.xlu0  ;;  %4069 = vmatprep.subr.bf16.mxu0 %v4528_v61 }
 0x72a   : > { %v2192_v29 = vpop.trf.xlu0 }
 0x72b   : > { %v2251_v30 = vpack.c.bf16 %v2192_v29, %v2191_v28 }
 0x72d   : > { %4070 = vmatpush3.bf16.msra.mxu0 %v2251_v30 }
 0x72e   : > { %v2193_v31 = vpop.trf.xlu0  ;;  %4071 = vmatprep.subr.bf16.mxu0 %v4528_v61 }
 0x732   : > { %v2194_v32 = vpop.trf.xlu0 }
 0x733   : > { %v2252_v33 = vpack.c.bf16 %v2194_v32, %v2193_v31 }
 0x735   : > { %4072 = vmatpush3.bf16.msra.mxu0 %v2252_v33  ;;  %v2562_v33 = vpack.c.bf16 %v4856_v2, %v4856_v2 }
 0x736   : > { %v2195_v34 = vpop.trf.xlu0  ;;  %4073 = vmatprep.subr.bf16.mxu0 %v4528_v61 }
 0x73a   : > { %v2196_v24 = vpop.trf.xlu0 }
 0x73b   : > { %v2253_v35 = vpack.c.bf16 %v2196_v24, %v2195_v34 }
 0x73d   : > { %4074 = vmatpush3.bf16.msra.mxu0 %v2253_v35 }
 0x73e   : > { %v2197_v37 = vpop.trf.xlu0  ;;  %4075 = vmatprep.subr.bf16.mxu0 %v4528_v61 }
 0x742   : > { %v2198_v40 = vpop.trf.xlu0 }
 0x743   : > { %v2254_v41 = vpack.c.bf16 %v2198_v40, %v2197_v37 }
 0x745   : > { %4076 = vmatpush3.bf16.msra.mxu0 %v2254_v41 }
 0x746   : > { %4107 = vmatprep.subr.bf16.mxu0 %v4528_v61 }
 0x748   : > { %4078 = vmatmul.mubr.bf16.vlgmr.msra.gmra.mrb[20].mxu0 %v2463_v45 }
 0x749   : > { %4108 = vmatpush3.bf16.msra.mxu0 %v2619_v46  ;;  %4109 = vmatprep.mubr.msk.bf16.mxu0 %vm4529_vm0, %v4528_v61 }
 0x7c9   : > { %v4910_v6 = vpop.f32.mrb[16].mxu0 }
 0x7ca   : > { %v4059_v58 = vpop.f32.mrb[17].mxu0 }
 0x7cb   : > { %v2460_v1 = vpop.f32.mrb[18].mxu0 }
 0x7cc   : > { %v4060_v49 = vpop.f32.mrb[19].mxu0 }
 0x7cd   : > { %v4278_v49 = vld [vmem:[#allocation6 + $0x4] ss:$8 sps:$4 sm:$0xff]  }
 0x7ce   : > { %3061 = vmatprep.subr.bf16.mxu0 %v4278_v49  ;;  %v4309_v49 = vld [vmem:[#allocation6 + $0xb0] ss:$8 sps:$4 sm:$0xff]  }
 0x81b   : > { %v2498_v51 = vpop.f32.mrb[20].mxu0 }
 0x81c   : > { %v4079_v60 = vpop.f32.mrb[21].mxu0  ;;  %v2504_v54 = vsel %vm2304_vm2, %v2498_v51, -inf }
 0x81d   : > { %2505 = vmax.xlane.f32.xlu1 %v2504_v54  ;;  %v2501_v0 = vpop.f32.mrb[22].mxu0  ;;  %v4326_v60 = vld [vmem:[#allocation6 + $0x104] ss:$8 sps:$4 sm:$0xff]   ;;  %v4329_v54 = vld [vmem:[#allocation6 + $0x114] ss:$8 sps:$4 sm:$0xff]  }
 0x81e   : > { %v4080_v44 = vpop.f32.mrb[23].mxu0  ;;  %v4327_v0 = vld [vmem:[#allocation6 + $0x110] ss:$8 sps:$4 sm:$0xff]  }
 0x81f   : > { %v4332_v44 = vld [vmem:[#allocation6 + $0x124] ss:$8 sps:$4 sm:$0xff]  }
 0x850   : > { %2199 = vxpose.xlu1.b32.start.end [1/1] (short) %v1605_v62, 128  ;;  %v4338_v62 = vld [vmem:[#allocation6 + $0x144] ss:$8 sps:$4 sm:$0xff]  }
 0x8aa   : > { %v2506_v63 = vpop.xlane.xlu1 %2505 }
 0x8ab   : > { %v2507_v11 = vsub.f32 %v2498_v51, %v2506_v63  ;;  %v4324_v51 = vld [vmem:[#allocation6 + $0x100] ss:$8 sps:$4 sm:$0xff]  }
 0x8ac   : > { %v4336_v63 = vld [vmem:[#allocation6 + $0x140] ss:$8 sps:$4 sm:$0xff]  }
 0x8ad   : > { %v2508_v43 = vmul.f32 1.442695, %v2507_v11  ;;  %v4341_v11 = vld [vmem:[#allocation6 + $0x154] ss:$8 sps:$4 sm:$0xff]  }
 0x8af   : > { %4404 = vpow2.f32 %v2508_v43  ;;  %v4339_v43 = vld [vmem:[#allocation6 + $0x150] ss:$8 sps:$4 sm:$0xff]  }
 0x8b9   : > { %v4405_v59 = vpop.eup %4404 }
 0x8ba   : > { %v2510_v17 = vsel %vm2304_vm2, %v4405_v59, 0.0 }
 0x8bb   : > { %2511 = vadd.xlane.f32.xlu0 %v2510_v17  ;;  %v4342_v17 = vld [vmem:[#allocation6 + $0x160] ss:$8 sps:$4 sm:$0xff]  }
 0x8d0   : > { %v2215_v4 = vpop.trf.xlu1 }
 0x8d4   : > { %v2216_v5 = vpop.trf.xlu1 }
 0x8d5   : > { %v2255_v50 = vpack.c.bf16 %v2216_v5, %v2215_v4  ;;  %v4347_v4 = vld [vmem:[#allocation6 + $0x174] ss:$8 sps:$4 sm:$0xff]   ;;  %v4345_v5 = vld [vmem:[#allocation6 + $0x170] ss:$8 sps:$4 sm:$0xff]  }
 0x8d8   : > { %v2217_v8 = vpop.trf.xlu1 }
 0x8dc   : > { %v2218_v48 = vpop.trf.xlu1 }
 0x8dd   : > { %v2256_v21 = vpack.c.bf16 %v2218_v48, %v2217_v8  ;;  %v4350_v8 = vld [vmem:[#allocation6 + $0x184] ss:$8 sps:$4 sm:$0xff]   ;;  %v4348_v48 = vld [vmem:[#allocation6 + $0x180] ss:$8 sps:$4 sm:$0xff]  }
 0x8e0   : > { %v2219_v9 = vpop.trf.xlu1 }
 0x8e4   : > { %v2220_v10 = vpop.trf.xlu1 }
 0x8e5   : > { %v2257_v23 = vpack.c.bf16 %v2220_v10, %v2219_v9  ;;  %v4353_v9 = vld [vmem:[#allocation6 + $0x194] ss:$8 sps:$4 sm:$0xff]   ;;  %v4351_v10 = vld [vmem:[#allocation6 + $0x190] ss:$8 sps:$4 sm:$0xff]  }
 0x8e8   : > { %v2221_v12 = vpop.trf.xlu1 }
 0x8ec   : > { %v2222_v13 = vpop.trf.xlu1 }
 0x8ed   : > { %v2258_v25 = vpack.c.bf16 %v2222_v13, %v2221_v12  ;;  %v4356_v12 = vld [vmem:[#allocation6 + $0x1a4] ss:$8 sps:$4 sm:$0xff]   ;;  %v4354_v13 = vld [vmem:[#allocation6 + $0x1a0] ss:$8 sps:$4 sm:$0xff]  }
 0x8f0   : > { %v2223_v14 = vpop.trf.xlu1 }
 0x8f4   : > { %v2224_v3 = vpop.trf.xlu1 }
 0x8f5   : > { %v2259_v27 = vpack.c.bf16 %v2224_v3, %v2223_v14  ;;  %v4359_v14 = vld [vmem:[#allocation6 + $0x1b4] ss:$8 sps:$4 sm:$0xff]   ;;  %v4362_v3 = vld [vmem:[#allocation6 + $0x1c4] ss:$8 sps:$4 sm:$0xff]  }
 0x8f8   : > { %v2225_v16 = vpop.trf.xlu1 }
 0x8fc   : > { %v2226_v53 = vpop.trf.xlu1 }
 0x8fd   : > { %v2260_v29 = vpack.c.bf16 %v2226_v53, %v2225_v16  ;;  %v4360_v16 = vld [vmem:[#allocation6 + $0x1c0] ss:$8 sps:$4 sm:$0xff]  }
 0x8fe   : > { %v4366_v53 = vld [vmem:[#allocation6 + $0x1e0] ss:$8 sps:$4 sm:$0xff]  }
 0x900   : > { %v2227_v22 = vpop.trf.xlu1 }
 0x904   : > { %v2228_v26 = vpop.trf.xlu1 }
 0x905   : > { %v2261_v30 = vpack.c.bf16 %v2228_v26, %v2227_v22  ;;  %v4281_v26 = vld [vmem:[#allocation6 + $0x14] ss:$8 sps:$4 sm:$0xff]  }
 0x908   : > { %v2229_v28 = vpop.trf.xlu1 }
 0x90c   : > { %v2230_v31 = vpop.trf.xlu1 }
 0x90d   : > { %v2262_v32 = vpack.c.bf16 %v2230_v31, %v2229_v28  ;;  %v4279_v28 = vld [vmem:[#allocation6 + $0x10] ss:$8 sps:$4 sm:$0xff]   ;;  %v4287_v31 = vld [vmem:[#allocation6 + $0x34] ss:$8 sps:$4 sm:$0xff]  }
 0x948   : > { %v2512_v15 = vpop.xlane.xlu0 %2511 }
 0x949   : > { %4406 = vrcp.f32 %v2512_v15  ;;  %v4357_v15 = vld [vmem:[#allocation6 + $0x1b0] ss:$8 sps:$4 sm:$0xff]  }
 0x953   : > { %v4407_v19 = vpop.eup %4406 }
 0x954   : > { %v2514_v18 = vmul.f32 %v4407_v19, %v4405_v59  ;;  %v4344_v59 = vld [vmem:[#allocation6 + $0x164] ss:$8 sps:$4 sm:$0xff]  }
 0x956   : > { %v2515_v20 = vpack.c.bf16 %v2514_v18, %v2514_v18  ;;  %v4365_v18 = vld [vmem:[#allocation6 + $0x1d4] ss:$8 sps:$4 sm:$0xff]  }
 0x958   : > { %4084 = vmatmul.mubr.msk.bf16.vlgmr.msra.gmra.mrb[20].mxu1 %vm2304_vm2, %v2515_v20  ;;  %v4363_v20 = vld [vmem:[#allocation6 + $0x1d0] ss:$8 sps:$4 sm:$0xff]  }
 0x959   : > { %4088 = vmatpush3.bf16.msra.mxu1 %v2255_v50  ;;  %4103 = vmatprep.mubr.msk.bf16.mxu1 %vm4529_vm0, %v4528_v61  ;;  %v4368_v50 = vld [vmem:[#allocation6 + $0x1e4] ss:$8 sps:$4 sm:$0xff]  }
 0x95a   : > { %4089 = vmatprep.subr.bf16.mxu1 %v4528_v61 }
 0x95d   : > { %4090 = vmatpush3.bf16.msra.mxu1 %v2256_v21 }
 0x95e   : > { %4091 = vmatprep.subr.bf16.mxu1 %v4528_v61 }
 0x961   : > { %4092 = vmatpush3.bf16.msra.mxu1 %v2257_v23  ;;  %v4276_v23 = vld [vmem:[#allocation6] ss:$8 sps:$4 sm:$0xff]  }
 0x962   : > { %4093 = vmatprep.subr.bf16.mxu1 %v4528_v61 }
 0x965   : > { %4094 = vmatpush3.bf16.msra.mxu1 %v2258_v25 }
 0x966   : > { %4095 = vmatprep.subr.bf16.mxu1 %v4528_v61 }
 0x969   : > { %4096 = vmatpush3.bf16.msra.mxu1 %v2259_v27  ;;  %v2662_v27 = vpack.c.bf16 %v4910_v6, %v4910_v6  ;;  %v4291_v6 = vld [vmem:[#allocation6 + $0x50] ss:$8 sps:$4 sm:$0xff]  }
 0x96a   : > { %4097 = vmatprep.subr.bf16.mxu1 %v4528_v61 }
 0x96d   : > { %4098 = vmatpush3.bf16.msra.mxu1 %v2260_v29  ;;  %v4284_v29 = vld [vmem:[#allocation6 + $0x24] ss:$8 sps:$4 sm:$0xff]  }
 0x96e   : > { %4099 = vmatprep.subr.bf16.mxu1 %v4528_v61 }
 0x971   : > { %4100 = vmatpush3.bf16.msra.mxu1 %v2261_v30  ;;  %v4282_v30 = vld [vmem:[#allocation6 + $0x20] ss:$8 sps:$4 sm:$0xff]  }
 0x972   : > { %4101 = vmatprep.subr.bf16.mxu1 %v4528_v61 }
 0x975   : > { %4102 = vmatpush3.bf16.msra.mxu1 %v2262_v32  ;;  %v4285_v32 = vld [vmem:[#allocation6 + $0x30] ss:$8 sps:$4 sm:$0xff]  }
 0x976   : > { %3102 = vmatprep.subr.bf16.mxu1 %v4326_v60  ;;  %v4312_v60 = vld [vmem:[#allocation6 + $0xc0] ss:$8 sps:$4 sm:$0xff]  }
 0x978   : > { %4104 = vmatmul.mubr.bf16.vlgmr.msra.gmra.mrb[24].mxu1 %v2562_v33  ;;  %v4290_v33 = vld [vmem:[#allocation6 + $0x44] ss:$8 sps:$4 sm:$0xff]  }
 0x979   : > { %3103 = vmatpush1.bf16.msra.mxu1 %v4324_v51  ;;  %v4314_v51 = vld [vmem:[#allocation6 + $0xc4] ss:$8 sps:$4 sm:$0xff]  }
 0x97a   : > { %3104 = vmatprep.subr.bf16.mxu1 %v4329_v54  ;;  %v4317_v54 = vld [vmem:[#allocation6 + $0xd4] ss:$8 sps:$4 sm:$0xff]  }
 0x97d   : > { %3105 = vmatpush1.bf16.msra.mxu1 %v4327_v0  ;;  %v4315_v0 = vld [vmem:[#allocation6 + $0xd0] ss:$8 sps:$4 sm:$0xff]  }
 0x97e   : > { %3106 = vmatprep.subr.bf16.mxu1 %v4332_v44  ;;  %v4320_v44 = vld [vmem:[#allocation6 + $0xe4] ss:$8 sps:$4 sm:$0xff]  }
 0x981   : > { %3107 = vmatpush1.bf16.msra.mxu1 %v4330_v55  ;;  %v4318_v55 = vld [vmem:[#allocation6 + $0xe0] ss:$8 sps:$4 sm:$0xff]  }
 0x982   : > { %3108 = vmatprep.subr.bf16.mxu1 %v4335_v56  ;;  %v4323_v56 = vld [vmem:[#allocation6 + $0xf4] ss:$8 sps:$4 sm:$0xff]  }
 0x985   : > { %3109 = vmatpush1.bf16.msra.mxu1 %v4333_v57  ;;  %v4321_v57 = vld [vmem:[#allocation6 + $0xf0] ss:$8 sps:$4 sm:$0xff]  }
 0x986   : > { %3110 = vmatprep.subr.bf16.mxu1 %v4338_v62  ;;  %v2661_v62 = vpack.c.bf16 %v4883_v52, %v4883_v52 }
 0x989   : > { %3111 = vmatpush1.bf16.msra.mxu1 %v4336_v63  ;;  %v4371_v63 = vld [vmem:[#allocation6 + $0x1f4] ss:$8 sps:$4 sm:$0xff]  }
 0x98a   : > { %3112 = vmatprep.subr.bf16.mxu1 %v4341_v11  ;;  %v4369_v11 = vld [vmem:[#allocation6 + $0x1f0] ss:$8 sps:$4 sm:$0xff]  }
 0x98d   : > { %3113 = vmatpush1.bf16.msra.mxu1 %v4339_v43 }
 0x98e   : > { %3114 = vmatprep.subr.bf16.mxu1 %v4344_v59 }
 0x991   : > { %3115 = vmatpush1.bf16.msra.mxu1 %v4342_v17 }
 0x992   : > { %3116 = vmatprep.subr.bf16.mxu1 %v4347_v4 }
 0x995   : > { %3117 = vmatpush1.bf16.msra.mxu1 %v4345_v5 }
 0x996   : > { %3118 = vmatprep.subr.bf16.mxu1 %v4350_v8 }
 0x999   : > { %3119 = vmatpush1.bf16.msra.mxu1 %v4348_v48 }
 0x99a   : > { %3120 = vmatprep.subr.bf16.mxu1 %v4353_v9 }
 0x99d   : > { %3121 = vmatpush1.bf16.msra.mxu1 %v4351_v10 }
 0x99e   : > { %3122 = vmatprep.subr.bf16.mxu1 %v4356_v12  ;;  %v627_v12 = vand.u32 127, %v626_v47 }
 0x9a0   : > { %vm628_vm3 = vcmp.lt.s32.totalorder %v627_v12, 32 }
 0x9a1   : > { %3123 = vmatpush1.bf16.msra.mxu1 %v4354_v13  ;;  %v2729_v13 = vld [vmem:[%s5088_s8] sm:$0x3] }
 0x9a2   : > { %3124 = vmatprep.subr.bf16.mxu1 %v4359_v14  ;;  %v2738_v14 = vrot.slane %v2729_v13, %v4829_v7 }
 0x9a5   : > { %3125 = vmatpush1.bf16.msra.mxu1 %v4357_v15  ;;  %v4956_v15 = vsel %vm628_vm3, 1.0, %v4528_v61 }
 0x9a6   : > { %3126 = vmatprep.subr.bf16.mxu1 %v4362_v3  ;;  %v3150_v47 = vrot.slane %v4956_v15, %v4812_v38 }
 0x9a9   : > { %3127 = vmatpush1.bf16.msra.mxu1 %v4360_v16 }
 0x9aa   : > { %3128 = vmatprep.subr.bf16.mxu1 %v4365_v18 }
 0x9ad   : > { %3129 = vmatpush1.bf16.msra.mxu1 %v4363_v20 }
 0x9ae   : > { %3130 = vmatprep.subr.bf16.mxu1 %v4368_v50 }
 0x9b1   : > { %3131 = vmatpush1.bf16.msra.mxu1 %v4366_v53 }
 0x9b2   : > { %3132 = vmatprep.subr.bf16.mxu1 %v4371_v63  ;;  %v4391_v63 = vld [vmem:[%s5093_s13 + $0x18] sm:$0xff]  }
 0x9b5   : > { %3133 = vmatpush1.bf16.msra.mxu1 %v4369_v11  ;;  %v4392_v11 = vld [vmem:[%s5093_s13 + $0x20] sm:$0xff]  }
 0x9b6   : > { %4113 = vmatprep.subr.bf16.mxu1 %v4528_v61 }
 0xa2b   : > { %v4931_v34 = vpop.f32.mrb[20].mxu1 }
 0xa2c   : > { %v4085_v24 = vpop.f32.mrb[21].mxu1  ;;  %v2663_v4 = vpack.c.bf16 %v4931_v34, %v4931_v34  ;;  %v2734_v34 = vrot.slane %v2729_v13, %v4812_v38 }
 0xa2d   : > { %v2559_v35 = vpop.f32.mrb[22].mxu1  ;;  %v4288_v24 = vld [vmem:[#allocation6 + $0x40] ss:$8 sps:$4 sm:$0xff]  }
 0xa2e   : > { %v4086_v36 = vpop.f32.mrb[23].mxu1  ;;  %v4293_v35 = vld [vmem:[#allocation6 + $0x54] ss:$8 sps:$4 sm:$0xff]  }
 0xa2f   : > { %v4296_v36 = vld [vmem:[#allocation6 + $0x64] ss:$8 sps:$4 sm:$0xff]  }
 0xa4b   : > { %v2597_v37 = vpop.f32.mrb[24].mxu1 }
 0xa4c   : > { %v4105_v39 = vpop.f32.mrb[25].mxu1  ;;  %v2603_v40 = vsel %vm2304_vm2, %v2597_v37, -inf }
 0xa4d   : > { %2604 = vmax.xlane.f32.xlu1 %v2603_v40  ;;  %v2600_v41 = vpop.f32.mrb[26].mxu1  ;;  %v4299_v39 = vld [vmem:[#allocation6 + $0x74] ss:$8 sps:$4 sm:$0xff]   ;;  %v4297_v40 = vld [vmem:[#allocation6 + $0x70] ss:$8 sps:$4 sm:$0xff]  }
 0xa4e   : > { %v4106_v42 = vpop.f32.mrb[27].mxu1  ;;  %v4302_v41 = vld [vmem:[#allocation6 + $0x84] ss:$8 sps:$4 sm:$0xff]  }
 0xa4f   : > { %v4300_v42 = vld [vmem:[#allocation6 + $0x80] ss:$8 sps:$4 sm:$0xff]  }
 0xada   : > { %v2605_v45 = vpop.xlane.xlu1 %2604 }
 0xadb   : > { %v2606_v46 = vsub.f32 %v2597_v37, %v2605_v45  ;;  %v4294_v37 = vld [vmem:[#allocation6 + $0x60] ss:$8 sps:$4 sm:$0xff]   ;;  %v4305_v45 = vld [vmem:[#allocation6 + $0x94] ss:$8 sps:$4 sm:$0xff]  }
 0xadd   : > { %v2607_v58 = vmul.f32 1.442695, %v2606_v46  ;;  %v4303_v46 = vld [vmem:[#allocation6 + $0x90] ss:$8 sps:$4 sm:$0xff]  }
 0xadf   : > { %4408 = vpow2.f32 %v2607_v58  ;;  %v4308_v58 = vld [vmem:[#allocation6 + $0xa4] ss:$8 sps:$4 sm:$0xff]  }
 0xae9   : > { %v4934_v1 = vpop.eup %4408 }
 0xaea   : > { %v2609_v2 = vsel %vm2304_vm2, %v4934_v1, 0.0 }
 0xaeb   : > { %2610 = vadd.xlane.f32.xlu0 %v2609_v2  ;;  %v4311_v2 = vld [vmem:[#allocation6 + $0xb4] ss:$8 sps:$4 sm:$0xff]  }
 0xb78   : > { %v2611_v19 = vpop.xlane.xlu0 %2610 }
 0xb79   : > { %4410 = vrcp.f32 %v2611_v19 }
 0xb83   : > { %v4411_v21 = vpop.eup %4410 }
 0xb84   : > { %v2613_v22 = vmul.f32 %v4411_v21, %v4934_v1  ;;  %v4306_v1 = vld [vmem:[#allocation6 + $0xa0] ss:$8 sps:$4 sm:$0xff]   ;;  %v4961_v21 = vld [vmem:[%s4762_s1] sm:$0xff] }
 0xb86   : > { %v2614_v25 = vpack.c.bf16 %v2613_v22, %v2613_v22 }
 0xb88   : > { %4110 = vmatmul.mubr.msk.bf16.vlgmr.msra.gmra.mrb[24].mxu0 %vm2304_vm2, %v2614_v25  ;;  %v4965_v25 = vld [vmem:[%s4741_s24] sm:$0xff] }
 0xb89   : > { %3062 = vmatpush1.bf16.msra.mxu0 %v4276_v23  ;;  %3093 = vmatprep.mubr.bf16.mxu0 %v2662_v27 }
 0xb8a   : > { %3063 = vmatprep.subr.bf16.mxu0 %v4281_v26 }
 0xb8d   : > { %3064 = vmatpush1.bf16.msra.mxu0 %v4279_v28 }
 0xb8e   : > { %3065 = vmatprep.subr.bf16.mxu0 %v4284_v29 }
 0xb91   : > { %3066 = vmatpush1.bf16.msra.mxu0 %v4282_v30  ;;  %v4372_v30 = vld [vmem:[%s5091_s11 + $0x40] sm:$0xff]  }
 0xb92   : > { %3067 = vmatprep.subr.bf16.mxu0 %v4287_v31  ;;  %v4373_v31 = vld [vmem:[%s5091_s11] sm:$0xff]  }
 0xb95   : > { %3068 = vmatpush1.bf16.msra.mxu0 %v4285_v32  ;;  %v4374_v32 = vld [vmem:[%s5091_s11 + $0x48] sm:$0xff]  }
 0xb96   : > { %3069 = vmatprep.subr.bf16.mxu0 %v4290_v33  ;;  %v4375_v33 = vld [vmem:[%s5091_s11 + $0x8] sm:$0xff]  }
 0xb99   : > { %3070 = vmatpush1.bf16.msra.mxu0 %v4288_v24 }
 0xb9a   : > { %3071 = vmatprep.subr.bf16.mxu0 %v4293_v35 }
 0xb9d   : > { %3072 = vmatpush1.bf16.msra.mxu0 %v4291_v6 }
 0xb9e   : > { %3073 = vmatprep.subr.bf16.mxu0 %v4296_v36 }
 0xba1   : > { %3074 = vmatpush1.bf16.msra.mxu0 %v4294_v37 }
 0xba2   : > { %3075 = vmatprep.subr.bf16.mxu0 %v4299_v39 }
 0xba5   : > { %3076 = vmatpush1.bf16.msra.mxu0 %v4297_v40 }
 0xba6   : > { %3077 = vmatprep.subr.bf16.mxu0 %v4302_v41 }
 0xba9   : > { %3078 = vmatpush1.bf16.msra.mxu0 %v4300_v42 }
 0xbaa   : > { %3079 = vmatprep.subr.bf16.mxu0 %v4305_v45  ;;  %v4376_v45 = vld [vmem:[%s5091_s11 + $0x50] sm:$0xff]  }
 0xbad   : > { %3080 = vmatpush1.bf16.msra.mxu0 %v4303_v46  ;;  %v4377_v46 = vld [vmem:[%s5091_s11 + $0x10] sm:$0xff]  }
 0xbae   : > { %3081 = vmatprep.subr.bf16.mxu0 %v4308_v58  ;;  %v4378_v58 = vld [vmem:[%s5091_s11 + $0x58] sm:$0xff]  }
 0xbb1   : > { %3082 = vmatpush1.bf16.msra.mxu0 %v4306_v1  ;;  %v4379_v1 = vld [vmem:[%s5091_s11 + $0x18] sm:$0xff]  }
 0xbb2   : > { %3083 = vmatprep.subr.bf16.mxu0 %v4311_v2  ;;  %v4380_v2 = vld [vmem:[%s5091_s11 + $0x60] sm:$0xff]  }
 0xbb5   : > { %3084 = vmatpush1.bf16.msra.mxu0 %v4309_v49  ;;  %v4381_v49 = vld [vmem:[%s5091_s11 + $0x20] sm:$0xff]  }
 0xbb6   : > { %3085 = vmatprep.subr.bf16.mxu0 %v4314_v51  ;;  %v4382_v51 = vld [vmem:[%s5091_s11 + $0x68] sm:$0xff]  }
 0xbb9   : > { %3086 = vmatpush1.bf16.msra.mxu0 %v4312_v60  ;;  %v4383_v60 = vld [vmem:[%s5091_s11 + $0x28] sm:$0xff]  }
 0xbba   : > { %3087 = vmatprep.subr.bf16.mxu0 %v4317_v54  ;;  %v4384_v54 = vld [vmem:[%s5091_s11 + $0x70] sm:$0xff]  }
 0xbbd   : > { %3088 = vmatpush1.bf16.msra.mxu0 %v4315_v0  ;;  %v4385_v0 = vld [vmem:[%s5091_s11 + $0x30] sm:$0xff]  }
 0xbbe   : > { %3089 = vmatprep.subr.bf16.mxu0 %v4320_v44  ;;  %v4386_v44 = vld [vmem:[%s5091_s11 + $0x78] sm:$0xff]  }
 0xbc1   : > { %3090 = vmatpush1.bf16.msra.mxu0 %v4318_v55  ;;  %v4387_v55 = vld [vmem:[%s5091_s11 + $0x38] sm:$0xff]  }
 0xbc2   : > { %3091 = vmatprep.subr.bf16.mxu0 %v4323_v56  ;;  %v4388_v56 = vld [vmem:[%s5093_s13] sm:$0xff]  }
 0xbc5   : > { %3092 = vmatpush1.bf16.msra.mxu0 %v4321_v57  ;;  %v4389_v57 = vld [vmem:[%s5093_s13 + $0x8] sm:$0xff]  }
 0xbc6   : > { %3978 = vmatprep.subr.bf16.mxu0 %v4372_v30 }
 0xbc8   : > { %3094 = vmatmul.mubr.bf16.vlgmr.msra.gmra.mrb[28].mxu0 %v2661_v62  ;;  %v4390_v62 = vld [vmem:[%s5093_s13 + $0x10] sm:$0xff]  }
 0xbc9   : > { %3979 = vmatpush3.bf16.msra.mxu0 %v4373_v31 }
 0xbca   : > { %3980 = vmatprep.subr.bf16.mxu0 %v4374_v32 }
 0xbcd   : > { %3981 = vmatpush3.bf16.msra.mxu0 %v4375_v33 }
 0xbce   : > { %3982 = vmatprep.subr.bf16.mxu0 %v4376_v45 }
 0xbd1   : > { %3983 = vmatpush3.bf16.msra.mxu0 %v4377_v46 }
 0xbd2   : > { %3984 = vmatprep.subr.bf16.mxu0 %v4378_v58 }
 0xbd5   : > { %3985 = vmatpush3.bf16.msra.mxu0 %v4379_v1 }
 0xbd6   : > { %3986 = vmatprep.subr.bf16.mxu0 %v4380_v2  ;;  %v3931_v2 = vld [vmem:[%s5118_s0] ss:$0 sm:$0xff] }
 0xbd9   : > { %3987 = vmatpush3.bf16.msra.mxu0 %v4381_v49 }
 0xbda   : > { %3988 = vmatprep.subr.bf16.mxu0 %v4382_v51 }
 0xbdd   : > { %3989 = vmatpush3.bf16.msra.mxu0 %v4383_v60 }
 0xbde   : > { %3990 = vmatprep.subr.bf16.mxu0 %v4384_v54 }
 0xbe1   : > { %3991 = vmatpush3.bf16.msra.mxu0 %v4385_v0 }
 0xbe2   : > { %3992 = vmatprep.subr.bf16.mxu0 %v4386_v44 }
 0xbe5   : > { %3993 = vmatpush3.bf16.msra.mxu0 %v4387_v55 }
 0xc5b   : > { %v2655_v43 = vpop.f32.mrb[24].mxu0 }
 0xc5c   : > { %v2664_v59 = vpack.c.bf16 %v2655_v43, %v2655_v43  ;;  %v4111_v17 = vpop.f32.mrb[25].mxu0  ;;  %v4393_v43 = vld [vmem:[%s5093_s13 + $0x28] sm:$0xff]  }
 0xc5d   : > { %v2658_v5 = vpop.f32.mrb[26].mxu0 }
 0xc5e   : > { %v4112_v8 = vpop.f32.mrb[27].mxu0  ;;  %3134 = vmatprep.mubr.bf16.mxu1 %v2664_v59  ;;  %v3145_v5 = vld [vmem:[%s5089_s9] sm:$0x3] }
 0xc5f   : > { %3135 = vmatmul.mubr.bf16.vlgmr.msra.gmra.mrb[28].mxu1 %v2663_v4  ;;  %v3146_v8 = vld [vmem:[%s5090_s10] sm:$0x3] }
 0xc60   : > { %4129 = vmatprep.mubr.msk.bf16.mxu1 %vm4529_vm0, %v4528_v61  ;;  %4114 = vmatpush3.bf16.msra.mxu1 %v4388_v56  ;;  %v3188_v12 = vrot.slane %v3146_v8, %v4812_v38  ;;  %v3192_v13 = vrot.slane %v3146_v8, %v4829_v7 }
 0xc61   : > { %4115 = vmatprep.subr.bf16.mxu1 %v4528_v61 }
 0xc64   : > { %4116 = vmatpush3.bf16.msra.mxu1 %v4389_v57 }
 0xc65   : > { %4117 = vmatprep.subr.bf16.mxu1 %v4528_v61 }
 0xc68   : > { %4118 = vmatpush3.bf16.msra.mxu1 %v4390_v62 }
 0xc69   : > { %4119 = vmatprep.subr.bf16.mxu1 %v4528_v61 }
 0xc6c   : > { %4120 = vmatpush3.bf16.msra.mxu1 %v4391_v63 }
 0xc6d   : > { %4121 = vmatprep.subr.bf16.mxu1 %v4528_v61 }
 0xc70   : > { %4122 = vmatpush3.bf16.msra.mxu1 %v4392_v11 }
 0xc71   : > { %4123 = vmatprep.subr.bf16.mxu1 %v4528_v61 }
 0xc74   : > { %4124 = vmatpush3.bf16.msra.mxu1 %v4393_v43 }
 0xc75   : > { %4125 = vmatprep.subr.bf16.mxu1 %v4528_v61 }
 0xc9b   : > { %v3095_v52 = vpop.f32.mrb[28].mxu0 }
 0xc9c   : > { %v3097_v48 = vpop.f32.mrb[29].mxu0  ;;  %v3096_v3 = vadd.f32 %v3095_v52, %v2734_v34  ;;  %v3175_v52 = vrot.slane %v3145_v5, %v4812_v38  ;;  %v4395_v38 = vld [vmem:[%s5093_s13 + $0x38] sm:$0xff]  }
 0xc9d   : > { %v3099_v9 = vpop.f32.mrb[30].mxu0  ;;  %v3098_v16 = vadd.f32 %v3097_v48, %v2738_v14  ;;  %v3179_v48 = vrot.slane %v3145_v5, %v4829_v7 }
 0xc9e   : > { %v3100_v10 = vpop.f32.mrb[31].mxu0 }
 0xd32   : > { %v3136_v19 = vpop.f32.mrb[28].mxu1 }
 0xd33   : > { %v3137_v18 = vadd.f32 %v3136_v19, %v3096_v3  ;;  %v3138_v20 = vpop.f32.mrb[29].mxu1 }
 0xd34   : > { %v3139_v50 = vadd.f32 %v3138_v20, %v3098_v16  ;;  %v3140_v53 = vpop.f32.mrb[30].mxu1 }
 0xd35   : > { %v3143_v22 = vadd.f32 %v4961_v21, %v3137_v18  ;;  %v3141_v23 = vpop.f32.mrb[31].mxu1 }
 0xd36   : > { %v3144_v26 = vadd.f32 %v4965_v25, %v3139_v50  ;;  %v3904_v50 = vld [vmem:[%s5092_s12] ss:$0 sm:$0xff] }
 0xd37   : > { %v3151_v27 = vmul.f32 %v3150_v47, %v3143_v22 }
 0xd38   : > { %v3152_v28 = vmul.f32 %v3150_v47, %v3144_v26 }
 0xd3a   : > { %v3153_v29 = vadd.f32 %v3152_v28, %v3151_v27 }
 0xd3c   : > { %3154 = vadd.xlane.f32.xlu0 %v3153_v29 }
 0xdc9   : > { %v3155_v24 = vpop.xlane.xlu0 %3154 }
 0xdca   : > { %v3156_v35 = vmul.f32 0.015625, %v3155_v24 }
 0xdcc   : > { %v3157_v6 = vsub.f32 %v3151_v27, %v3156_v35  ;;  %v3158_v36 = vsub.f32 %v3152_v28, %v3156_v35 }
 0xdce   : > { %v3159_v37 = vmul.f32 %v3157_v6, %v3150_v47  ;;  %v3160_v39 = vmul.f32 %v3158_v36, %v3150_v47  ;;  %v4394_v47 = vld [vmem:[%s5093_s13 + $0x30] sm:$0xff]  }
 0xdcf   : > { %4126 = vmatpush3.bf16.msra.mxu1 %v4394_v47 }
 0xdd0   : > { %v3161_v40 = vmul.f32 %v3159_v37, %v3159_v37  ;;  %v3162_v41 = vmul.f32 %v3160_v39, %v3160_v39  ;;  %4127 = vmatprep.subr.bf16.mxu1 %v4528_v61  ;;  %v3921_v61 = vld [vmem:[%s5094_s14] ss:$0 sm:$0xff] }
 0xdd2   : > { %v3163_v42 = vadd.f32 %v3162_v41, %v3161_v40 }
 0xdd3   : > { %4128 = vmatpush3.bf16.msra.mxu1 %v4395_v38 }
 0xdd4   : > { %3164 = vadd.xlane.f32.xlu0 %v3163_v42 }
 0xe61   : > { %v3165_v59 = vpop.xlane.xlu0 %3164 }
 0xe62   : > { %v3166_v17 = vmul.f32 0.015625, %v3165_v59 }
 0xe64   : > { %v3167_v4 = vadd.f32 1e-05, %v3166_v17 }
 0xe66   : > { %4412 = vrsqrt.f32 %v3167_v4 }
 0xe70   : > { %v4413_v9 = vpop.eup %4412 }
 0xe71   : > { %v3170_v10 = vmul.f32 %v4413_v9, %v3160_v39  ;;  %v3169_v34 = vmul.f32 %v4413_v9, %v3159_v37 }
 0xe73   : > { %v3183_v14 = vmul.f32 %v3179_v48, %v3170_v10  ;;  %v3182_v3 = vmul.f32 %v3175_v52, %v3169_v34 }
 0xe75   : > { %v3196_v16 = vadd.f32 %v3192_v13, %v3183_v14  ;;  %v3195_v19 = vadd.f32 %v3188_v12, %v3182_v3 }
 0xe77   : > { %v3198_v18 = vpack.c.bf16 %v3196_v16, %v3196_v16  ;;  %v3197_v20 = vpack.c.bf16 %v3195_v19, %v3195_v19 }
 0xe79   : > { %3366 = vmatprep.mubr.bf16.mxu0 %v3198_v18 }
 0xe7a   : > { %3367 = vmatmul.mubr.bf16.vlgmr.msra.gmra.mrb[32].mxu0 %v3197_v20 }
 0xf4d   : > { %v3994_v7 = vpop.f32.mrb[32].mxu0 }
 0xf4e   : > { %v3995_v53 = vpop.f32.mrb[33].mxu0 }
 0xf4f   : > { %v3996_v22 = vadd.f32 %v3995_v53, %v3994_v7  ;;  %v3997_v23 = vpop.f32.mrb[34].mxu0 }
 0xf50   : > { %v3998_v26 = vpop.f32.mrb[35].mxu0 }
 0xf51   : > { %v3369_v27 = vadd.f32 %v3996_v22, %v3904_v50 }
 0xf53   : > { %v3374_v28 = vmax.f32 %v3369_v27, 0.0 }
 0xf55   : > { %v3375_v29 = vpack.c.bf16 %v3374_v28, %v3374_v28 }
 0xf57   : > { %4130 = vmatmul.mubr.bf16.vlgmr.msra.gmra.mrb[32].mxu1 %v3375_v29 }
0x102a   : > { %v3481_v30 = vpop.f32.mrb[32].mxu1 }
0x102b   : > { %v3482_v31 = vadd.f32 %v3921_v61, %v3481_v30  ;;  %v4131_v32 = vpop.f32.mrb[33].mxu1 }
0x102c   : > { %v3484_v33 = vpop.f32.mrb[34].mxu1 }
0x102d   : > { %v3487_v24 = vadd.f32 %v4961_v21, %v3482_v31  ;;  %v4132_v35 = vpop.f32.mrb[35].mxu1  ;;  %v3930_v21 = vld [vmem:[%s5117_s18] ss:$0 sm:$0xff] }
0x102f   : > { %v3488_v6 = vadd.f32 %v4965_v25, %v3487_v24 }
0x1031   : > { %v3491_v36 = vmul.f32 %v4956_v15, %v3488_v6 }
0x1033   : > { %3492 = vadd.xlane.f32.xlu0 %v3491_v36 }
0x10c0   : > { %v3493_v37 = vpop.xlane.xlu0 %3492 }
0x10c1   : > { %v3494_v39 = vmul.f32 0.03125, %v3493_v37 }
0x10c3   : > { %v3495_v40 = vsub.f32 %v3491_v36, %v3494_v39 }
0x10c5   : > { %v3496_v41 = vmul.f32 %v4956_v15, %v3495_v40 }
0x10c7   : > { %v3497_v42 = vmul.f32 %v3496_v41, %v3496_v41 }
0x10c9   : > { %3498 = vadd.xlane.f32.xlu0 %v3497_v42 }
0x1156   : > { %v3499_v45 = vpop.xlane.xlu0 %3498 }
0x1157   : > { %v3500_v46 = vmul.f32 0.03125, %v3499_v45 }
0x1159   : > { %v3501_v58 = vadd.f32 1e-05, %v3500_v46 }
0x115b   : > { %4414 = vrsqrt.f32 %v3501_v58 }
0x1165   : > { %v4415_v1 = vpop.eup %4414 }
0x1166   : > { %v3503_v25 = vmul.f32 %v4415_v1, %v3496_v41 }
0x1168   : > { %v3510_v49 = vmul.f32 %v3930_v21, %v3503_v25 }
0x116a   : > { %v3517_v51 = vadd.f32 %v3931_v2, %v3510_v49 }
0x116c   : > { %v3518_v15 = vpack.c.bf16 %v3517_v51, %v3517_v51 }
0x116e   : > { %3519 = vst [vmem:[%s621_s30] sm:$0xf] %v3518_v15 }
0x116f PF: > { %s5120_s19 = sld [smem:[#allocation9_spill]] }
0x1175   : > { %s29_s24 = sadd.s32 1, %s5120_s19  }
0x1176   : > { %p26_p5 = scmp.ge.s32.totalorder %s29_s24, 4  }
0x1178   :  { %28 = sbr.rel (!%p26_p5) target bundleno = 8 (0x8), region = 137 }
0x117f   :  { %3539 = vsyncpa [#allocation3], 1 }
0x1180   :  { %3541 = vsyncpa [#allocation3 + $0x1], 1 }
0x1181   :  { %3542 = vsyncpa [#allocation5], 1 }

</bundles_post_ra>
